<compile_context>
chip_gen: v7x
topology: tpu7x:2x2x1
jax: 0.10.0
libtpu: 0.0.40
codegen_flags: <defaults>
</compile_context>

<pallas_src>
import functools

import jax
import jax.numpy as jnp
from jax import lax
from jax.experimental import pallas as pl
from jax.experimental.pallas import tpu as pltpu

MM_DTYPE = jnp.bfloat16   # MXU operand / inter-call activation dtype (f32 accumulate)
NEG_SLOPE = 0.2
IN_EPS = 1e-5
VMEM_LIMIT = 32 * 1024 * 1024


def _round_up(x, m):
    return (x + m - 1) // m * m


# ----------------------------------------------------------------------------
# In-kernel helpers (traced inside the Pallas kernel bodies)
# ----------------------------------------------------------------------------
def _leaky_relu(y):
    return jnp.where(y >= 0.0, y, NEG_SLOPE * y)


def _col_mask(m_rows, row_pitch, valid_cols, channels):
    """(m_rows, channels) bool mask: True where the flat row maps to a valid
    output column (< valid_cols) of a buffer with row pitch `row_pitch`."""
    j = lax.broadcasted_iota(jnp.int32, (m_rows, channels), 0)
    return (j % row_pitch) < valid_cols


def _instance_norm(y, mask, n_valid, eps):
    """Per-channel InstanceNorm over the valid rows of an (M, C) f32 tile.
    Centered variance + clamp (review correctness concern)."""
    inv = 1.0 / n_valid
    y_m = jnp.where(mask, y, 0.0)
    mean = jnp.sum(y_m, axis=0, keepdims=True) * inv
    diff = jnp.where(mask, y - mean, 0.0)
    var = jnp.sum(diff * diff, axis=0, keepdims=True) * inv
    return (y - mean) * lax.rsqrt(jnp.maximum(var, 0.0) + eps)


def _conv3x3_s1_from_flat(buf_ref, w_ref, b_ref, oh, ow):
    """3x3 stride-1 conv as 9 shifted-slab MXU matmuls read from a flat,
    zero-padded (rows, Cin) VMEM buffer with row pitch ow+2.

    Returns the f32 accumulator of shape (oh*(ow+2), Cout).  Rows whose
    flat column index is >= ow are wrap-around junk (callers mask / slice)."""
    pitch = ow + 2
    m = oh * pitch
    acc = None
    for t in range(9):
        kh, kw = divmod(t, 3)
        a = buf_ref[pl.ds(kh * pitch + kw, m), :].astype(MM_DTYPE)
        d = jnp.dot(a, w_ref[t], preferred_element_type=jnp.float32)
        acc = d if acc is None else acc + d
    return acc + b_ref[...]


def _store_dense_rows(buf_ref, y, oh, ow):
    """Scatter a dense (oh*ow, C) f32 tile into the interior of a zeroed flat
    padded VMEM buffer with row pitch ow+2 (border stays zero)."""
    pitch = ow + 2
    for r in range(oh):
        buf_ref[pl.ds((r + 1) * pitch + 1, ow), :] = y[r * ow:(r + 1) * ow, :]


def _store_flat_rows(buf_ref, y_masked, oh, ow):
    """Store an (oh*(ow+2), C) tile whose junk rows are already zero into a flat
    padded buffer of the same row pitch, shifted by one padded row + one col."""
    pitch = ow + 2
    buf_ref[pl.ds(pitch + 1, oh * pitch), :] = y_masked


# ----------------------------------------------------------------------------
# Kernel bodies (one grid step == one batch element)
# ----------------------------------------------------------------------------
def _stage1_kernel(x_ref, w1_ref, b1_ref, o_ref, *, oh, ow):
    # Layer 1: conv3x3 s1 + LeakyReLU.  x_ref is the spatially zero-padded,
    # channel-padded, flattened input image of one batch element.
    y = _conv3x3_s1_from_flat(x_ref, w1_ref, b1_ref, oh, ow)
    o_ref[...] = _leaky_relu(y).astype(o_ref.dtype)


def _stage2_kernel(p_ref, w2_ref, b2_ref, w3_ref, b3_ref, o_ref, buf_ref, *, oh, ow):
    # Layer 2: conv3x3 s2 (im2col patches, K=9*32) + LeakyReLU, then
    # layer 3: conv3x3 s1 + InstanceNorm + LeakyReLU -- all VMEM resident.
    pitch = ow + 2
    y2 = jnp.dot(p_ref[...], w2_ref[...], preferred_element_type=jnp.float32)
    y2 = _leaky_relu(y2 + b2_ref[...])

    buf_ref[...] = jnp.zeros(buf_ref.shape, buf_ref.dtype)
    _store_dense_rows(buf_ref, y2, oh, ow)

    y3 = _conv3x3_s1_from_flat(buf_ref, w3_ref, b3_ref, oh, ow)
    mask = _col_mask(oh * pitch, pitch, ow, y3.shape[1])
    y3 = _leaky_relu(_instance_norm(y3, mask, oh * ow, IN_EPS))
    o_ref[...] = y3.astype(o_ref.dtype)


def _stage3_kernel(p_ref, w4_ref, b4_ref, w5_ref, b5_ref, w6_ref, b6_ref,
                   w7_ref, b7_ref, o_ref, bufa_ref, bufb_ref, *, oh, ow):
    # Layers 4..7: conv s2 + LReLU, 2x (conv s1 + InstanceNorm + LReLU), conv s1.
    pitch = ow + 2
    m = oh * pitch
    hw = oh * ow

    y4 = jnp.dot(p_ref[...], w4_ref[...], preferred_element_type=jnp.float32)
    y4 = _leaky_relu(y4 + b4_ref[...])
    bufa_ref[...] = jnp.zeros(bufa_ref.shape, bufa_ref.dtype)
    bufb_ref[...] = jnp.zeros(bufb_ref.shape, bufb_ref.dtype)
    _store_dense_rows(bufa_ref, y4, oh, ow)

    mask = _col_mask(m, pitch, ow, bufa_ref.shape[1])

    y5 = _conv3x3_s1_from_flat(bufa_ref, w5_ref, b5_ref, oh, ow)
    y5 = _leaky_relu(_instance_norm(y5, mask, hw, IN_EPS))
    _store_flat_rows(bufb_ref, jnp.where(mask, y5, 0.0), oh, ow)

    y6 = _conv3x3_s1_from_flat(bufb_ref, w6_ref, b6_ref, oh, ow)
    y6 = _leaky_relu(_instance_norm(y6, mask, hw, IN_EPS))
    _store_flat_rows(bufa_ref, jnp.where(mask, y6, 0.0), oh, ow)

    y7 = _conv3x3_s1_from_flat(bufa_ref, w7_ref, b7_ref, oh, ow)  # no activation
    o_ref[...] = y7.astype(o_ref.dtype)


# ----------------------------------------------------------------------------
# pallas_call wrappers
# ----------------------------------------------------------------------------
def _compiler_params():
    return pltpu.CompilerParams(dimension_semantics=("parallel",),
                                vmem_limit_bytes=VMEM_LIMIT)


def _stage1_call(x_flat, w1, b1, oh, ow):
    n, rows, cin = x_flat.shape
    cout = w1.shape[2]
    m_out = oh * (ow + 2)
    return pl.pallas_call(
        functools.partial(_stage1_kernel, oh=oh, ow=ow),
        out_shape=jax.ShapeDtypeStruct((n, m_out, cout), MM_DTYPE),
        grid_spec=pltpu.PrefetchScalarGridSpec(
            num_scalar_prefetch=0,
            grid=(n,),
            in_specs=[pl.BlockSpec((None, rows, cin), lambda i: (i, 0, 0)),
                      pl.BlockSpec((9, cin, cout), lambda i: (0, 0, 0)),
                      pl.BlockSpec((1, cout), lambda i: (0, 0))],
            out_specs=pl.BlockSpec((None, m_out, cout), lambda i: (i, 0, 0))),
        compiler_params=_compiler_params(),
    )(x_flat, w1, b1)


def _stage2_call(patches, w2, b2, w3, b3, oh, ow):
    n, m_p, k2 = patches.shape
    c2 = w2.shape[1]
    c3 = w3.shape[2]
    m_out = oh * (ow + 2)
    buf_rows = _round_up((oh + 2) * (ow + 2) + 2, 8)
    return pl.pallas_call(
        functools.partial(_stage2_kernel, oh=oh, ow=ow),
        out_shape=jax.ShapeDtypeStruct((n, m_out, c3), MM_DTYPE),
        grid_spec=pltpu.PrefetchScalarGridSpec(
            num_scalar_prefetch=0,
            grid=(n,),
            in_specs=[pl.BlockSpec((None, m_p, k2), lambda i: (i, 0, 0)),
                      pl.BlockSpec((k2, c2), lambda i: (0, 0)),
                      pl.BlockSpec((1, c2), lambda i: (0, 0)),
                      pl.BlockSpec((9, c2, c3), lambda i: (0, 0, 0)),
                      pl.BlockSpec((1, c3), lambda i: (0, 0))],
            out_specs=pl.BlockSpec((None, m_out, c3), lambda i: (i, 0, 0)),
            scratch_shapes=[pltpu.VMEM((buf_rows, c2), jnp.float32)]),
        compiler_params=_compiler_params(),
    )(patches, w2, b2, w3, b3)


def _stage3_call(patches, w4, b4, w5, b5, w6, b6, w7, b7, oh, ow):
    n, m_p, k4 = patches.shape
    c = w4.shape[1]          # 8*hidden_dim
    c7 = w7.shape[2]         # lane-dense padded output channels (128)
    m_out = oh * (ow + 2)
    buf_rows = _round_up((oh + 2) * (ow + 2) + 2, 8)
    return pl.pallas_call(
        functools.partial(_stage3_kernel, oh=oh, ow=ow),
        out_shape=jax.ShapeDtypeStruct((n, m_out, c7), jnp.float32),
        grid_spec=pltpu.PrefetchScalarGridSpec(
            num_scalar_prefetch=0,
            grid=(n,),
            in_specs=[pl.BlockSpec((None, m_p, k4), lambda i: (i, 0, 0)),
                      pl.BlockSpec((k4, c), lambda i: (0, 0)),
                      pl.BlockSpec((1, c), lambda i: (0, 0)),
                      pl.BlockSpec((9, c, c), lambda i: (0, 0, 0)),
                      pl.BlockSpec((1, c), lambda i: (0, 0)),
                      pl.BlockSpec((9, c, c), lambda i: (0, 0, 0)),
                      pl.BlockSpec((1, c), lambda i: (0, 0)),
                      pl.BlockSpec((9, c, c7), lambda i: (0, 0, 0)),
                      pl.BlockSpec((1, c7), lambda i: (0, 0))],
            out_specs=pl.BlockSpec((None, m_out, c7), lambda i: (i, 0, 0)),
            scratch_shapes=[pltpu.VMEM((buf_rows, c), jnp.float32),
                            pltpu.VMEM((buf_rows, c), jnp.float32)]),
        compiler_params=_compiler_params(),
    )(patches, w4, b4, w5, b5, w6, b6, w7, b7)


# ----------------------------------------------------------------------------
# Plain-XLA glue: patch extraction for the two stride-2 convs + layout helpers
# ----------------------------------------------------------------------------
def _im2col_s2(x):
    """x: (N,H,W,C) -> patches (N, OH*OW, 9*C) for a 3x3 / stride-2 / pad-1 conv."""
    n, h, w, c = x.shape
    oh, ow = (h + 1) // 2, (w + 1) // 2
    xp = jnp.pad(x, ((0, 0), (1, 1), (1, 1), (0, 0)))
    cols = [xp[:, kh:kh + 2 * (oh - 1) + 1:2, kw:kw + 2 * (ow - 1) + 1:2, :]
            for kh in range(3) for kw in range(3)]
    return jnp.concatenate(cols, axis=-1).reshape(n, oh * ow, 9 * c), oh, ow


def _unflatten(y_flat, oh, ow):
    """(N, oh*(ow+2), C) flat kernel output -> (N, oh, ow, C) (drop junk cols)."""
    n, _, c = y_flat.shape
    return y_flat.reshape(n, oh, ow + 2, c)[:, :, :ow, :]


# ----------------------------------------------------------------------------
# Parameter construction (weights packed once, bf16 MXU layout)
# ----------------------------------------------------------------------------
def init_params(key, dim_in=3, dim_out=1, hidden_dim=32):
    h = hidden_dim
    chans = [(dim_in, h), (h, 2 * h), (2 * h, 4 * h), (4 * h, 8 * h),
             (8 * h, 8 * h), (8 * h, 8 * h), (8 * h, dim_out)]
    keys = jax.random.split(key, 2 * len(chans))
    raw = []
    for i, (cin, cout) in enumerate(chans):
        w = jax.random.normal(keys[2 * i], (3, 3, cin, cout), jnp.float32) * 0.05
        b = jax.random.normal(keys[2 * i + 1], (cout,), jnp.float32) * 0.05
        raw.append((w, b))
    return pack_params(raw, dim_in=dim_in, dim_out=dim_out)


def pack_params(raw, dim_in=3, dim_out=1):
    (w1, b1), (w2, b2), (w3, b3), (w4, b4), (w5, b5), (w6, b6), (w7, b7) = raw

    def tap_major(w):      # (3,3,cin,cout) -> (9,cin,cout) bf16 (shifted-slab layout)
        return w.reshape(9, w.shape[2], w.shape[3]).astype(MM_DTYPE)

    def k_major(w):        # (3,3,cin,cout) -> (9*cin,cout) bf16 (im2col layout)
        return w.reshape(9 * w.shape[2], w.shape[3]).astype(MM_DTYPE)

    def bias(b, pad_to=None):
        if pad_to is not None:
            b = jnp.pad(b, (0, pad_to - b.shape[0]))
        return b.reshape(1, -1).astype(jnp.float32)

    cin_pad = _round_up(dim_in, 8)                 # layer-1 input channel padding
    cout_pad = _round_up(max(dim_out, 1), 128)     # lane-dense final output
    w1p = jnp.pad(w1, ((0, 0), (0, 0), (0, cin_pad - dim_in), (0, 0)))
    w7p = jnp.pad(w7, ((0, 0), (0, 0), (0, 0), (0, cout_pad - dim_out)))

    return dict(
        w1=tap_major(w1p), b1=bias(b1),
        w2=k_major(w2), b2=bias(b2),
        w3=tap_major(w3), b3=bias(b3),
        w4=k_major(w4), b4=bias(b4),
        w5=tap_major(w5), b5=bias(b5),
        w6=tap_major(w6), b6=bias(b6),
        w7=tap_major(w7p), b7=bias(b7, pad_to=cout_pad),
    )


# ----------------------------------------------------------------------------
# Forward pass (NCHW in, NCHW out — same as the PyTorch module)
# ----------------------------------------------------------------------------
def discriminator_forward(params, x_nchw, dim_out=1):
    n, cin, h, w = x_nchw.shape
    cin_pad = _round_up(cin, 8)
    x = jnp.transpose(x_nchw, (0, 2, 3, 1))                         # NCHW -> NHWC

    # --- stage 1: layer 1 (conv s1 + LeakyReLU), in-kernel shifted-slab conv
    xp = jnp.pad(x, ((0, 0), (1, 1), (1, 1), (0, cin_pad - cin)))
    flat_len = (h + 2) * (w + 2)
    rows = _round_up(flat_len + 2, 8)
    x_flat = jnp.pad(xp.reshape(n, flat_len, cin_pad),
                     ((0, 0), (0, rows - flat_len), (0, 0))).astype(MM_DTYPE)
    a1 = _unflatten(_stage1_call(x_flat, params["w1"], params["b1"], h, w), h, w)

    # --- stage 2: layer 2 (s2) + layer 3 (s1 + InstanceNorm) fused
    p2, oh2, ow2 = _im2col_s2(a1)
    a3 = _unflatten(_stage2_call(p2.astype(MM_DTYPE), params["w2"], params["b2"],
                                 params["w3"], params["b3"], oh2, ow2), oh2, ow2)

    # --- stage 3: layer 4 (s2) + layers 5/6 (s1 + IN) + layer 7 (s1) fused
    p4, oh4, ow4 = _im2col_s2(a3)
    y = _stage3_call(p4.astype(MM_DTYPE), params["w4"], params["b4"],
                     params["w5"], params["b5"], params["w6"], params["b6"],
                     params["w7"], params["b7"], oh4, ow4)
    y = _unflatten(y, oh4, ow4)[..., :dim_out]
    return jnp.transpose(y, (0, 3, 1, 2)).astype(jnp.float32)       # NHWC -> NCHW


if __name__ == "__main__":
    key = jax.random.PRNGKey(0)
    pkey, xkey = jax.random.split(key)
    params = init_params(pkey, dim_in=3, dim_out=1, hidden_dim=32)
    x = jax.random.normal(xkey, (2, 3, 16, 16), jnp.float32)        # NCHW like PyTorch
    fwd = jax.jit(functools.partial(discriminator_forward, dim_out=1))
    out = jax.block_until_ready(fwd(params, x))
    assert out.shape == (2, 1, 4, 4), out.shape                     # two stride-2 downsamples
    assert bool(jnp.all(jnp.isfinite(out)))
    print("KERNEL_OK")
</pallas_src>

<mosaic_0001>
module attributes {stable_mosaic.version = 11 : i64} {
  func.func @_stage1_kernel(%arg0: i32, %arg1: memref<1x328x8xbf16, #tpu.memory_space<vmem>>, %arg2: memref<9x8x32xbf16, #tpu.memory_space<vmem>>, %arg3: memref<1x32xf32, #tpu.memory_space<vmem>>, %arg4: memref<1x288x32xbf16, #tpu.memory_space<vmem>>) attributes {dimension_semantics = [#tpu.dimension_semantics<parallel>], iteration_bounds = array<i64: 2>, scalar_prefetch = 0 : i64, scratch_operands = 0 : i64, tpu.core_type = #tpu.core_type<tc>, window_params = [{transform_indices = @transform_0, window_bounds = array<i64: 1, 328, 8>}, {pipeline_mode = #tpu.pipeline_mode<synchronous>, transform_indices = @transform_1, window_bounds = array<i64: 9, 8, 32>}, {pipeline_mode = #tpu.pipeline_mode<synchronous>, transform_indices = @transform_2, window_bounds = array<i64: 1, 32>}, {transform_indices = @transform_3, window_bounds = array<i64: 1, 288, 32>}]} {
    %c0 = arith.constant 0 : index
    %c0_0 = arith.constant 0 : index
    %c0_1 = arith.constant 0 : index
    %0 = vector.load %arg1[%c0, %c0_0, %c0_1] : memref<1x328x8xbf16, #tpu.memory_space<vmem>>, vector<1x288x8xbf16>
    %1 = vector.shape_cast %0 : vector<1x288x8xbf16> to vector<288x8xbf16>
    %c0_2 = arith.constant 0 : index
    %c0_3 = arith.constant 0 : index
    %c0_4 = arith.constant 0 : index
    %2 = vector.load %arg2[%c0_2, %c0_3, %c0_4] : memref<9x8x32xbf16, #tpu.memory_space<vmem>>, vector<1x8x32xbf16>
    %3 = vector.shape_cast %2 : vector<1x8x32xbf16> to vector<8x32xbf16>
    %cst = arith.constant dense<0.000000e+00> : vector<288x32xf32>
    %4 = tpu.matmul %1, %3, %cst {dimension_numbers = #tpu.dot_dimension_numbers<[1], [0], [0], [1], [0, 0, 1, 1], [], []>} : vector<288x8xbf16>, vector<8x32xbf16>, vector<288x32xf32> -> vector<288x32xf32>
    %c0_5 = arith.constant 0 : index
    %c1 = arith.constant 1 : index
    %c0_6 = arith.constant 0 : index
    %5 = vector.load %arg1[%c0_5, %c1, %c0_6] : memref<1x328x8xbf16, #tpu.memory_space<vmem>>, vector<1x288x8xbf16>
    %6 = vector.shape_cast %5 : vector<1x288x8xbf16> to vector<288x8xbf16>
    %c1_7 = arith.constant 1 : index
    %c0_8 = arith.constant 0 : index
    %c0_9 = arith.constant 0 : index
    %7 = vector.load %arg2[%c1_7, %c0_8, %c0_9] : memref<9x8x32xbf16, #tpu.memory_space<vmem>>, vector<1x8x32xbf16>
    %8 = vector.shape_cast %7 : vector<1x8x32xbf16> to vector<8x32xbf16>
    %cst_10 = arith.constant dense<0.000000e+00> : vector<288x32xf32>
    %9 = tpu.matmul %6, %8, %cst_10 {dimension_numbers = #tpu.dot_dimension_numbers<[1], [0], [0], [1], [0, 0, 1, 1], [], []>} : vector<288x8xbf16>, vector<8x32xbf16>, vector<288x32xf32> -> vector<288x32xf32>
    %10 = arith.addf %4, %9 : vector<288x32xf32>
    %c0_11 = arith.constant 0 : index
    %c2 = arith.constant 2 : index
    %c0_12 = arith.constant 0 : index
    %11 = vector.load %arg1[%c0_11, %c2, %c0_12] : memref<1x328x8xbf16, #tpu.memory_space<vmem>>, vector<1x288x8xbf16>
    %12 = vector.shape_cast %11 : vector<1x288x8xbf16> to vector<288x8xbf16>
    %c2_13 = arith.constant 2 : index
    %c0_14 = arith.constant 0 : index
    %c0_15 = arith.constant 0 : index
    %13 = vector.load %arg2[%c2_13, %c0_14, %c0_15] : memref<9x8x32xbf16, #tpu.memory_space<vmem>>, vector<1x8x32xbf16>
    %14 = vector.shape_cast %13 : vector<1x8x32xbf16> to vector<8x32xbf16>
    %cst_16 = arith.constant dense<0.000000e+00> : vector<288x32xf32>
    %15 = tpu.matmul %12, %14, %cst_16 {dimension_numbers = #tpu.dot_dimension_numbers<[1], [0], [0], [1], [0, 0, 1, 1], [], []>} : vector<288x8xbf16>, vector<8x32xbf16>, vector<288x32xf32> -> vector<288x32xf32>
    %16 = arith.addf %10, %15 : vector<288x32xf32>
    %c0_17 = arith.constant 0 : index
    %c18 = arith.constant 18 : index
    %c0_18 = arith.constant 0 : index
    %17 = vector.load %arg1[%c0_17, %c18, %c0_18] : memref<1x328x8xbf16, #tpu.memory_space<vmem>>, vector<1x288x8xbf16>
    %18 = vector.shape_cast %17 : vector<1x288x8xbf16> to vector<288x8xbf16>
    %c3 = arith.constant 3 : index
    %c0_19 = arith.constant 0 : index
    %c0_20 = arith.constant 0 : index
    %19 = vector.load %arg2[%c3, %c0_19, %c0_20] : memref<9x8x32xbf16, #tpu.memory_space<vmem>>, vector<1x8x32xbf16>
    %20 = vector.shape_cast %19 : vector<1x8x32xbf16> to vector<8x32xbf16>
    %cst_21 = arith.constant dense<0.000000e+00> : vector<288x32xf32>
    %21 = tpu.matmul %18, %20, %cst_21 {dimension_numbers = #tpu.dot_dimension_numbers<[1], [0], [0], [1], [0, 0, 1, 1], [], []>} : vector<288x8xbf16>, vector<8x32xbf16>, vector<288x32xf32> -> vector<288x32xf32>
    %22 = arith.addf %16, %21 : vector<288x32xf32>
    %c0_22 = arith.constant 0 : index
    %c19 = arith.constant 19 : index
    %c0_23 = arith.constant 0 : index
    %23 = vector.load %arg1[%c0_22, %c19, %c0_23] : memref<1x328x8xbf16, #tpu.memory_space<vmem>>, vector<1x288x8xbf16>
    %24 = vector.shape_cast %23 : vector<1x288x8xbf16> to vector<288x8xbf16>
    %c4 = arith.constant 4 : index
    %c0_24 = arith.constant 0 : index
    %c0_25 = arith.constant 0 : index
    %25 = vector.load %arg2[%c4, %c0_24, %c0_25] : memref<9x8x32xbf16, #tpu.memory_space<vmem>>, vector<1x8x32xbf16>
    %26 = vector.shape_cast %25 : vector<1x8x32xbf16> to vector<8x32xbf16>
    %cst_26 = arith.constant dense<0.000000e+00> : vector<288x32xf32>
    %27 = tpu.matmul %24, %26, %cst_26 {dimension_numbers = #tpu.dot_dimension_numbers<[1], [0], [0], [1], [0, 0, 1, 1], [], []>} : vector<288x8xbf16>, vector<8x32xbf16>, vector<288x32xf32> -> vector<288x32xf32>
    %28 = arith.addf %22, %27 : vector<288x32xf32>
    %c0_27 = arith.constant 0 : index
    %c20 = arith.constant 20 : index
    %c0_28 = arith.constant 0 : index
    %29 = vector.load %arg1[%c0_27, %c20, %c0_28] : memref<1x328x8xbf16, #tpu.memory_space<vmem>>, vector<1x288x8xbf16>
    %30 = vector.shape_cast %29 : vector<1x288x8xbf16> to vector<288x8xbf16>
    %c5 = arith.constant 5 : index
    %c0_29 = arith.constant 0 : index
    %c0_30 = arith.constant 0 : index
    %31 = vector.load %arg2[%c5, %c0_29, %c0_30] : memref<9x8x32xbf16, #tpu.memory_space<vmem>>, vector<1x8x32xbf16>
    %32 = vector.shape_cast %31 : vector<1x8x32xbf16> to vector<8x32xbf16>
    %cst_31 = arith.constant dense<0.000000e+00> : vector<288x32xf32>
    %33 = tpu.matmul %30, %32, %cst_31 {dimension_numbers = #tpu.dot_dimension_numbers<[1], [0], [0], [1], [0, 0, 1, 1], [], []>} : vector<288x8xbf16>, vector<8x32xbf16>, vector<288x32xf32> -> vector<288x32xf32>
    %34 = arith.addf %28, %33 : vector<288x32xf32>
    %c0_32 = arith.constant 0 : index
    %c36 = arith.constant 36 : index
    %c0_33 = arith.constant 0 : index
    %35 = vector.load %arg1[%c0_32, %c36, %c0_33] : memref<1x328x8xbf16, #tpu.memory_space<vmem>>, vector<1x288x8xbf16>
    %36 = vector.shape_cast %35 : vector<1x288x8xbf16> to vector<288x8xbf16>
    %c6 = arith.constant 6 : index
    %c0_34 = arith.constant 0 : index
    %c0_35 = arith.constant 0 : index
    %37 = vector.load %arg2[%c6, %c0_34, %c0_35] : memref<9x8x32xbf16, #tpu.memory_space<vmem>>, vector<1x8x32xbf16>
    %38 = vector.shape_cast %37 : vector<1x8x32xbf16> to vector<8x32xbf16>
    %cst_36 = arith.constant dense<0.000000e+00> : vector<288x32xf32>
    %39 = tpu.matmul %36, %38, %cst_36 {dimension_numbers = #tpu.dot_dimension_numbers<[1], [0], [0], [1], [0, 0, 1, 1], [], []>} : vector<288x8xbf16>, vector<8x32xbf16>, vector<288x32xf32> -> vector<288x32xf32>
    %40 = arith.addf %34, %39 : vector<288x32xf32>
    %c0_37 = arith.constant 0 : index
    %c37 = arith.constant 37 : index
    %c0_38 = arith.constant 0 : index
    %41 = vector.load %arg1[%c0_37, %c37, %c0_38] : memref<1x328x8xbf16, #tpu.memory_space<vmem>>, vector<1x288x8xbf16>
    %42 = vector.shape_cast %41 : vector<1x288x8xbf16> to vector<288x8xbf16>
    %c7 = arith.constant 7 : index
    %c0_39 = arith.constant 0 : index
    %c0_40 = arith.constant 0 : index
    %43 = vector.load %arg2[%c7, %c0_39, %c0_40] : memref<9x8x32xbf16, #tpu.memory_space<vmem>>, vector<1x8x32xbf16>
    %44 = vector.shape_cast %43 : vector<1x8x32xbf16> to vector<8x32xbf16>
    %cst_41 = arith.constant dense<0.000000e+00> : vector<288x32xf32>
    %45 = tpu.matmul %42, %44, %cst_41 {dimension_numbers = #tpu.dot_dimension_numbers<[1], [0], [0], [1], [0, 0, 1, 1], [], []>} : vector<288x8xbf16>, vector<8x32xbf16>, vector<288x32xf32> -> vector<288x32xf32>
    %46 = arith.addf %40, %45 : vector<288x32xf32>
    %c0_42 = arith.constant 0 : index
    %c38 = arith.constant 38 : index
    %c0_43 = arith.constant 0 : index
    %47 = vector.load %arg1[%c0_42, %c38, %c0_43] : memref<1x328x8xbf16, #tpu.memory_space<vmem>>, vector<1x288x8xbf16>
    %48 = vector.shape_cast %47 : vector<1x288x8xbf16> to vector<288x8xbf16>
    %c8 = arith.constant 8 : index
    %c0_44 = arith.constant 0 : index
    %c0_45 = arith.constant 0 : index
    %49 = vector.load %arg2[%c8, %c0_44, %c0_45] : memref<9x8x32xbf16, #tpu.memory_space<vmem>>, vector<1x8x32xbf16>
    %50 = vector.shape_cast %49 : vector<1x8x32xbf16> to vector<8x32xbf16>
    %cst_46 = arith.constant dense<0.000000e+00> : vector<288x32xf32>
    %51 = tpu.matmul %48, %50, %cst_46 {dimension_numbers = #tpu.dot_dimension_numbers<[1], [0], [0], [1], [0, 0, 1, 1], [], []>} : vector<288x8xbf16>, vector<8x32xbf16>, vector<288x32xf32> -> vector<288x32xf32>
    %52 = arith.addf %46, %51 : vector<288x32xf32>
    %c0_47 = arith.constant 0 : index
    %c0_48 = arith.constant 0 : index
    %53 = vector.load %arg3[%c0_47, %c0_48] : memref<1x32xf32, #tpu.memory_space<vmem>>, vector<1x32xf32>
    %54 = vector.broadcast %53 : vector<1x32xf32> to vector<288x32xf32>
    %55 = arith.addf %52, %54 : vector<288x32xf32>
    %cst_49 = arith.constant 0.000000e+00 : f32
    %56 = vector.broadcast %cst_49 : f32 to vector<288x32xf32>
    %57 = arith.cmpf oge, %55, %56 : vector<288x32xf32>
    %cst_50 = arith.constant 2.000000e-01 : f32
    %58 = vector.broadcast %cst_50 : f32 to vector<288x32xf32>
    %59 = arith.mulf %58, %55 : vector<288x32xf32>
    %60 = arith.select %57, %55, %59 : vector<288x32xi1>, vector<288x32xf32>
    %61 = arith.truncf %60 : vector<288x32xf32> to vector<288x32xbf16>
    %c0_51 = arith.constant 0 : index
    %c0_52 = arith.constant 0 : index
    %c0_53 = arith.constant 0 : index
    %62 = vector.load %arg4[%c0_51, %c0_52, %c0_53] : memref<1x288x32xbf16, #tpu.memory_space<vmem>>, vector<1x288x32xbf16>
    %63 = vector.shape_cast %62 : vector<1x288x32xbf16> to vector<288x32xbf16>
    %64 = vector.shape_cast %61 : vector<288x32xbf16> to vector<1x288x32xbf16>
    tpu.vector_store %arg4[%c0_51, %c0_52, %c0_53], %64 {strides = array<i32>} : memref<1x288x32xbf16, #tpu.memory_space<vmem>>, vector<1x288x32xbf16>,
    return
  }
  func.func @transform_0(%arg0: i32) -> (i32, i32, i32) {
    %c0_i32 = arith.constant 0 : i32
    %c0_i32_0 = arith.constant 0 : i32
    %c0_i32_1 = arith.constant 0 : i32
    return %arg0, %c0_i32, %c0_i32_0 : i32, i32, i32
  }
  func.func @transform_1(%arg0: i32) -> (i32, i32, i32) {
    %c0_i32 = arith.constant 0 : i32
    %c0_i32_0 = arith.constant 0 : i32
    %c0_i32_1 = arith.constant 0 : i32
    %c0_i32_2 = arith.constant 0 : i32
    return %c0_i32, %c0_i32_0, %c0_i32_1 : i32, i32, i32
  }
  func.func @transform_2(%arg0: i32) -> (i32, i32) {
    %c0_i32 = arith.constant 0 : i32
    %c0_i32_0 = arith.constant 0 : i32
    %c0_i32_1 = arith.constant 0 : i32
    return %c0_i32, %c0_i32_0 : i32, i32
  }
  func.func @transform_3(%arg0: i32) -> (i32, i32, i32) {
    %c0_i32 = arith.constant 0 : i32
    %c0_i32_0 = arith.constant 0 : i32
    %c0_i32_1 = arith.constant 0 : i32
    return %arg0, %c0_i32, %c0_i32_0 : i32, i32, i32
  }
}

module attributes {stable_mosaic.version = 11 : i64} {
  func.func @_stage2_kernel(%arg0: i32, %arg1: memref<1x64x288xbf16, #tpu.memory_space<vmem>>, %arg2: memref<288x64xbf16, #tpu.memory_space<vmem>>, %arg3: memref<1x64xf32, #tpu.memory_space<vmem>>, %arg4: memref<9x64x128xbf16, #tpu.memory_space<vmem>>, %arg5: memref<1x128xf32, #tpu.memory_space<vmem>>, %arg6: memref<1x80x128xbf16, #tpu.memory_space<vmem>>, %arg7: memref<104x64xf32, #tpu.memory_space<vmem>>) attributes {dimension_semantics = [#tpu.dimension_semantics<parallel>], iteration_bounds = array<i64: 2>, scalar_prefetch = 0 : i64, scratch_operands = 1 : i64, tpu.core_type = #tpu.core_type<tc>, window_params = [{transform_indices = @transform_0, window_bounds = array<i64: 1, 64, 288>}, {pipeline_mode = #tpu.pipeline_mode<synchronous>, transform_indices = @transform_1, window_bounds = array<i64: 288, 64>}, {pipeline_mode = #tpu.pipeline_mode<synchronous>, transform_indices = @transform_2, window_bounds = array<i64: 1, 64>}, {pipeline_mode = #tpu.pipeline_mode<synchronous>, transform_indices = @transform_3, window_bounds = array<i64: 9, 64, 128>}, {pipeline_mode = #tpu.pipeline_mode<synchronous>, transform_indices = @transform_4, window_bounds = array<i64: 1, 128>}, {transform_indices = @transform_5, window_bounds = array<i64: 1, 80, 128>}]} {
    %c0 = arith.constant 0 : index
    %c0_0 = arith.constant 0 : index
    %c0_1 = arith.constant 0 : index
    %0 = vector.load %arg1[%c0, %c0_0, %c0_1] : memref<1x64x288xbf16, #tpu.memory_space<vmem>>, vector<1x64x288xbf16>
    %1 = vector.shape_cast %0 : vector<1x64x288xbf16> to vector<64x288xbf16>
    %c0_2 = arith.constant 0 : index
    %c0_3 = arith.constant 0 : index
    %2 = vector.load %arg2[%c0_2, %c0_3] : memref<288x64xbf16, #tpu.memory_space<vmem>>, vector<288x64xbf16>
    %cst = arith.constant dense<0.000000e+00> : vector<64x64xf32>
    %3 = tpu.matmul %1, %2, %cst {dimension_numbers = #tpu.dot_dimension_numbers<[1], [0], [0], [1], [0, 0, 1, 1], [], []>} : vector<64x288xbf16>, vector<288x64xbf16>, vector<64x64xf32> -> vector<64x64xf32>
    %c0_4 = arith.constant 0 : index
    %c0_5 = arith.constant 0 : index
    %4 = vector.load %arg3[%c0_4, %c0_5] : memref<1x64xf32, #tpu.memory_space<vmem>>, vector<1x64xf32>
    %5 = vector.broadcast %4 : vector<1x64xf32> to vector<64x64xf32>
    %6 = arith.addf %3, %5 : vector<64x64xf32>
    %cst_6 = arith.constant 0.000000e+00 : f32
    %7 = vector.broadcast %cst_6 : f32 to vector<64x64xf32>
    %8 = arith.cmpf oge, %6, %7 : vector<64x64xf32>
    %cst_7 = arith.constant 2.000000e-01 : f32
    %9 = vector.broadcast %cst_7 : f32 to vector<64x64xf32>
    %10 = arith.mulf %9, %6 : vector<64x64xf32>
    %11 = arith.select %8, %6, %10 : vector<64x64xi1>, vector<64x64xf32>
    %cst_8 = arith.constant 0.000000e+00 : f32
    %12 = vector.broadcast %cst_8 : f32 to vector<104x64xf32>
    %c0_9 = arith.constant 0 : index
    %c0_10 = arith.constant 0 : index
    %13 = vector.load %arg7[%c0_9, %c0_10] : memref<104x64xf32, #tpu.memory_space<vmem>>, vector<104x64xf32>
    tpu.vector_store %arg7[%c0_9, %c0_10], %12 {strides = array<i32>} : memref<104x64xf32, #tpu.memory_space<vmem>>, vector<104x64xf32>,
    %14 = vector.extract_strided_slice %11 {offsets = [0, 0], sizes = [8, 64], strides = [1, 1]} : vector<64x64xf32> to vector<8x64xf32>
    %c11 = arith.constant 11 : index
    %c0_11 = arith.constant 0 : index
    %15 = vector.load %arg7[%c11, %c0_11] : memref<104x64xf32, #tpu.memory_space<vmem>>, vector<8x64xf32>
    tpu.vector_store %arg7[%c11, %c0_11], %14 {strides = array<i32>} : memref<104x64xf32, #tpu.memory_space<vmem>>, vector<8x64xf32>,
    %16 = vector.extract_strided_slice %11 {offsets = [8, 0], sizes = [8, 64], strides = [1, 1]} : vector<64x64xf32> to vector<8x64xf32>
    %c21 = arith.constant 21 : index
    %c0_12 = arith.constant 0 : index
    %17 = vector.load %arg7[%c21, %c0_12] : memref<104x64xf32, #tpu.memory_space<vmem>>, vector<8x64xf32>
    tpu.vector_store %arg7[%c21, %c0_12], %16 {strides = array<i32>} : memref<104x64xf32, #tpu.memory_space<vmem>>, vector<8x64xf32>,
    %18 = vector.extract_strided_slice %11 {offsets = [16, 0], sizes = [8, 64], strides = [1, 1]} : vector<64x64xf32> to vector<8x64xf32>
    %c31 = arith.constant 31 : index
    %c0_13 = arith.constant 0 : index
    %19 = vector.load %arg7[%c31, %c0_13] : memref<104x64xf32, #tpu.memory_space<vmem>>, vector<8x64xf32>
    tpu.vector_store %arg7[%c31, %c0_13], %18 {strides = array<i32>} : memref<104x64xf32, #tpu.memory_space<vmem>>, vector<8x64xf32>,
    %20 = vector.extract_strided_slice %11 {offsets = [24, 0], sizes = [8, 64], strides = [1, 1]} : vector<64x64xf32> to vector<8x64xf32>
    %c41 = arith.constant 41 : index
    %c0_14 = arith.constant 0 : index
    %21 = vector.load %arg7[%c41, %c0_14] : memref<104x64xf32, #tpu.memory_space<vmem>>, vector<8x64xf32>
    tpu.vector_store %arg7[%c41, %c0_14], %20 {strides = array<i32>} : memref<104x64xf32, #tpu.memory_space<vmem>>, vector<8x64xf32>,
    %22 = vector.extract_strided_slice %11 {offsets = [32, 0], sizes = [8, 64], strides = [1, 1]} : vector<64x64xf32> to vector<8x64xf32>
    %c51 = arith.constant 51 : index
    %c0_15 = arith.constant 0 : index
    %23 = vector.load %arg7[%c51, %c0_15] : memref<104x64xf32, #tpu.memory_space<vmem>>, vector<8x64xf32>
    tpu.vector_store %arg7[%c51, %c0_15], %22 {strides = array<i32>} : memref<104x64xf32, #tpu.memory_space<vmem>>, vector<8x64xf32>,
    %24 = vector.extract_strided_slice %11 {offsets = [40, 0], sizes = [8, 64], strides = [1, 1]} : vector<64x64xf32> to vector<8x64xf32>
    %c61 = arith.constant 61 : index
    %c0_16 = arith.constant 0 : index
    %25 = vector.load %arg7[%c61, %c0_16] : memref<104x64xf32, #tpu.memory_space<vmem>>, vector<8x64xf32>
    tpu.vector_store %arg7[%c61, %c0_16], %24 {strides = array<i32>} : memref<104x64xf32, #tpu.memory_space<vmem>>, vector<8x64xf32>,
    %26 = vector.extract_strided_slice %11 {offsets = [48, 0], sizes = [8, 64], strides = [1, 1]} : vector<64x64xf32> to vector<8x64xf32>
    %c71 = arith.constant 71 : index
    %c0_17 = arith.constant 0 : index
    %27 = vector.load %arg7[%c71, %c0_17] : memref<104x64xf32, #tpu.memory_space<vmem>>, vector<8x64xf32>
    tpu.vector_store %arg7[%c71, %c0_17], %26 {strides = array<i32>} : memref<104x64xf32, #tpu.memory_space<vmem>>, vector<8x64xf32>,
    %28 = vector.extract_strided_slice %11 {offsets = [56, 0], sizes = [8, 64], strides = [1, 1]} : vector<64x64xf32> to vector<8x64xf32>
    %c81 = arith.constant 81 : index
    %c0_18 = arith.constant 0 : index
    %29 = vector.load %arg7[%c81, %c0_18] : memref<104x64xf32, #tpu.memory_space<vmem>>, vector<8x64xf32>
    tpu.vector_store %arg7[%c81, %c0_18], %28 {strides = array<i32>} : memref<104x64xf32, #tpu.memory_space<vmem>>, vector<8x64xf32>,
    %c0_19 = arith.constant 0 : index
    %c0_20 = arith.constant 0 : index
    %30 = vector.load %arg7[%c0_19, %c0_20] : memref<104x64xf32, #tpu.memory_space<vmem>>, vector<80x64xf32>
    %31 = arith.truncf %30 : vector<80x64xf32> to vector<80x64xbf16>
    %c0_21 = arith.constant 0 : index
    %c0_22 = arith.constant 0 : index
    %c0_23 = arith.constant 0 : index
    %32 = vector.load %arg4[%c0_21, %c0_22, %c0_23] : memref<9x64x128xbf16, #tpu.memory_space<vmem>>, vector<1x64x128xbf16>
    %33 = vector.shape_cast %32 : vector<1x64x128xbf16> to vector<64x128xbf16>
    %cst_24 = arith.constant dense<0.000000e+00> : vector<80x128xf32>
    %34 = tpu.matmul %31, %33, %cst_24 {dimension_numbers = #tpu.dot_dimension_numbers<[1], [0], [0], [1], [0, 0, 1, 1], [], []>} : vector<80x64xbf16>, vector<64x128xbf16>, vector<80x128xf32> -> vector<80x128xf32>
    %c1 = arith.constant 1 : index
    %c0_25 = arith.constant 0 : index
    %35 = vector.load %arg7[%c1, %c0_25] : memref<104x64xf32, #tpu.memory_space<vmem>>, vector<80x64xf32>
    %36 = arith.truncf %35 : vector<80x64xf32> to vector<80x64xbf16>
    %c1_26 = arith.constant 1 : index
    %c0_27 = arith.constant 0 : index
    %c0_28 = arith.constant 0 : index
    %37 = vector.load %arg4[%c1_26, %c0_27, %c0_28] : memref<9x64x128xbf16, #tpu.memory_space<vmem>>, vector<1x64x128xbf16>
    %38 = vector.shape_cast %37 : vector<1x64x128xbf16> to vector<64x128xbf16>
    %cst_29 = arith.constant dense<0.000000e+00> : vector<80x128xf32>
    %39 = tpu.matmul %36, %38, %cst_29 {dimension_numbers = #tpu.dot_dimension_numbers<[1], [0], [0], [1], [0, 0, 1, 1], [], []>} : vector<80x64xbf16>, vector<64x128xbf16>, vector<80x128xf32> -> vector<80x128xf32>
    %40 = arith.addf %34, %39 : vector<80x128xf32>
    %c2 = arith.constant 2 : index
    %c0_30 = arith.constant 0 : index
    %41 = vector.load %arg7[%c2, %c0_30] : memref<104x64xf32, #tpu.memory_space<vmem>>, vector<80x64xf32>
    %42 = arith.truncf %41 : vector<80x64xf32> to vector<80x64xbf16>
    %c2_31 = arith.constant 2 : index
    %c0_32 = arith.constant 0 : index
    %c0_33 = arith.constant 0 : index
    %43 = vector.load %arg4[%c2_31, %c0_32, %c0_33] : memref<9x64x128xbf16, #tpu.memory_space<vmem>>, vector<1x64x128xbf16>
    %44 = vector.shape_cast %43 : vector<1x64x128xbf16> to vector<64x128xbf16>
    %cst_34 = arith.constant dense<0.000000e+00> : vector<80x128xf32>
    %45 = tpu.matmul %42, %44, %cst_34 {dimension_numbers = #tpu.dot_dimension_numbers<[1], [0], [0], [1], [0, 0, 1, 1], [], []>} : vector<80x64xbf16>, vector<64x128xbf16>, vector<80x128xf32> -> vector<80x128xf32>
    %46 = arith.addf %40, %45 : vector<80x128xf32>
    %c10 = arith.constant 10 : index
    %c0_35 = arith.constant 0 : index
    %47 = vector.load %arg7[%c10, %c0_35] : memref<104x64xf32, #tpu.memory_space<vmem>>, vector<80x64xf32>
    %48 = arith.truncf %47 : vector<80x64xf32> to vector<80x64xbf16>
    %c3 = arith.constant 3 : index
    %c0_36 = arith.constant 0 : index
    %c0_37 = arith.constant 0 : index
    %49 = vector.load %arg4[%c3, %c0_36, %c0_37] : memref<9x64x128xbf16, #tpu.memory_space<vmem>>, vector<1x64x128xbf16>
    %50 = vector.shape_cast %49 : vector<1x64x128xbf16> to vector<64x128xbf16>
    %cst_38 = arith.constant dense<0.000000e+00> : vector<80x128xf32>
    %51 = tpu.matmul %48, %50, %cst_38 {dimension_numbers = #tpu.dot_dimension_numbers<[1], [0], [0], [1], [0, 0, 1, 1], [], []>} : vector<80x64xbf16>, vector<64x128xbf16>, vector<80x128xf32> -> vector<80x128xf32>
    %52 = arith.addf %46, %51 : vector<80x128xf32>
    %c11_39 = arith.constant 11 : index
    %c0_40 = arith.constant 0 : index
    %53 = vector.load %arg7[%c11_39, %c0_40] : memref<104x64xf32, #tpu.memory_space<vmem>>, vector<80x64xf32>
    %54 = arith.truncf %53 : vector<80x64xf32> to vector<80x64xbf16>
    %c4 = arith.constant 4 : index
    %c0_41 = arith.constant 0 : index
    %c0_42 = arith.constant 0 : index
    %55 = vector.load %arg4[%c4, %c0_41, %c0_42] : memref<9x64x128xbf16, #tpu.memory_space<vmem>>, vector<1x64x128xbf16>
    %56 = vector.shape_cast %55 : vector<1x64x128xbf16> to vector<64x128xbf16>
    %cst_43 = arith.constant dense<0.000000e+00> : vector<80x128xf32>
    %57 = tpu.matmul %54, %56, %cst_43 {dimension_numbers = #tpu.dot_dimension_numbers<[1], [0], [0], [1], [0, 0, 1, 1], [], []>} : vector<80x64xbf16>, vector<64x128xbf16>, vector<80x128xf32> -> vector<80x128xf32>
    %58 = arith.addf %52, %57 : vector<80x128xf32>
    %c12 = arith.constant 12 : index
    %c0_44 = arith.constant 0 : index
    %59 = vector.load %arg7[%c12, %c0_44] : memref<104x64xf32, #tpu.memory_space<vmem>>, vector<80x64xf32>
    %60 = arith.truncf %59 : vector<80x64xf32> to vector<80x64xbf16>
    %c5 = arith.constant 5 : index
    %c0_45 = arith.constant 0 : index
    %c0_46 = arith.constant 0 : index
    %61 = vector.load %arg4[%c5, %c0_45, %c0_46] : memref<9x64x128xbf16, #tpu.memory_space<vmem>>, vector<1x64x128xbf16>
    %62 = vector.shape_cast %61 : vector<1x64x128xbf16> to vector<64x128xbf16>
    %cst_47 = arith.constant dense<0.000000e+00> : vector<80x128xf32>
    %63 = tpu.matmul %60, %62, %cst_47 {dimension_numbers = #tpu.dot_dimension_numbers<[1], [0], [0], [1], [0, 0, 1, 1], [], []>} : vector<80x64xbf16>, vector<64x128xbf16>, vector<80x128xf32> -> vector<80x128xf32>
    %64 = arith.addf %58, %63 : vector<80x128xf32>
    %c20 = arith.constant 20 : index
    %c0_48 = arith.constant 0 : index
    %65 = vector.load %arg7[%c20, %c0_48] : memref<104x64xf32, #tpu.memory_space<vmem>>, vector<80x64xf32>
    %66 = arith.truncf %65 : vector<80x64xf32> to vector<80x64xbf16>
    %c6 = arith.constant 6 : index
    %c0_49 = arith.constant 0 : index
    %c0_50 = arith.constant 0 : index
    %67 = vector.load %arg4[%c6, %c0_49, %c0_50] : memref<9x64x128xbf16, #tpu.memory_space<vmem>>, vector<1x64x128xbf16>
    %68 = vector.shape_cast %67 : vector<1x64x128xbf16> to vector<64x128xbf16>
    %cst_51 = arith.constant dense<0.000000e+00> : vector<80x128xf32>
    %69 = tpu.matmul %66, %68, %cst_51 {dimension_numbers = #tpu.dot_dimension_numbers<[1], [0], [0], [1], [0, 0, 1, 1], [], []>} : vector<80x64xbf16>, vector<64x128xbf16>, vector<80x128xf32> -> vector<80x128xf32>
    %70 = arith.addf %64, %69 : vector<80x128xf32>
    %c21_52 = arith.constant 21 : index
    %c0_53 = arith.constant 0 : index
    %71 = vector.load %arg7[%c21_52, %c0_53] : memref<104x64xf32, #tpu.memory_space<vmem>>, vector<80x64xf32>
    %72 = arith.truncf %71 : vector<80x64xf32> to vector<80x64xbf16>
    %c7 = arith.constant 7 : index
    %c0_54 = arith.constant 0 : index
    %c0_55 = arith.constant 0 : index
    %73 = vector.load %arg4[%c7, %c0_54, %c0_55] : memref<9x64x128xbf16, #tpu.memory_space<vmem>>, vector<1x64x128xbf16>
    %74 = vector.shape_cast %73 : vector<1x64x128xbf16> to vector<64x128xbf16>
    %cst_56 = arith.constant dense<0.000000e+00> : vector<80x128xf32>
    %75 = tpu.matmul %72, %74, %cst_56 {dimension_numbers = #tpu.dot_dimension_numbers<[1], [0], [0], [1], [0, 0, 1, 1], [], []>} : vector<80x64xbf16>, vector<64x128xbf16>, vector<80x128xf32> -> vector<80x128xf32>
    %76 = arith.addf %70, %75 : vector<80x128xf32>
    %c22 = arith.constant 22 : index
    %c0_57 = arith.constant 0 : index
    %77 = vector.load %arg7[%c22, %c0_57] : memref<104x64xf32, #tpu.memory_space<vmem>>, vector<80x64xf32>
    %78 = arith.truncf %77 : vector<80x64xf32> to vector<80x64xbf16>
    %c8 = arith.constant 8 : index
    %c0_58 = arith.constant 0 : index
    %c0_59 = arith.constant 0 : index
    %79 = vector.load %arg4[%c8, %c0_58, %c0_59] : memref<9x64x128xbf16, #tpu.memory_space<vmem>>, vector<1x64x128xbf16>
    %80 = vector.shape_cast %79 : vector<1x64x128xbf16> to vector<64x128xbf16>
    %cst_60 = arith.constant dense<0.000000e+00> : vector<80x128xf32>
    %81 = tpu.matmul %78, %80, %cst_60 {dimension_numbers = #tpu.dot_dimension_numbers<[1], [0], [0], [1], [0, 0, 1, 1], [], []>} : vector<80x64xbf16>, vector<64x128xbf16>, vector<80x128xf32> -> vector<80x128xf32>
    %82 = arith.addf %76, %81 : vector<80x128xf32>
    %c0_61 = arith.constant 0 : index
    %c0_62 = arith.constant 0 : index
    %83 = vector.load %arg5[%c0_61, %c0_62] : memref<1x128xf32, #tpu.memory_space<vmem>>, vector<1x128xf32>
    %84 = vector.broadcast %83 : vector<1x128xf32> to vector<80x128xf32>
    %85 = arith.addf %82, %84 : vector<80x128xf32>
    %86 = tpu.iota {dimensions = array<i32: 0>} : vector<80x128xi32>
    %c10_i32 = arith.constant 10 : i32
    %c0_i32 = arith.constant 0 : i32
    %87 = arith.cmpi eq, %c10_i32, %c0_i32 : i32
    %c1_i32 = arith.constant 1 : i32
    %88 = arith.select %87, %c1_i32, %c10_i32 : i32
    %89 = vector.broadcast %88 : i32 to vector<80x128xi32>
    %90 = arith.remsi %86, %89 : vector<80x128xi32>
    %c0_i32_63 = arith.constant 0 : i32
    %91 = vector.broadcast %c0_i32_63 : i32 to vector<80x128xi32>
    %92 = arith.cmpi ne, %90, %91 : vector<80x128xi32>
    %c0_i32_64 = arith.constant 0 : i32
    %93 = vector.broadcast %c0_i32_64 : i32 to vector<80x128xi32>
    %94 = arith.cmpi slt, %90, %93 : vector<80x128xi32>
    %c0_i32_65 = arith.constant 0 : i32
    %95 = arith.cmpi slt, %88, %c0_i32_65 : i32
    %96 = vector.broadcast %95 : i1 to vector<80x128xi1>
    %97 = vector.broadcast %96 : vector<80x128xi1> to vector<80x128xi1>
    %98 = arith.xori %94, %97 : vector<80x128xi1>
    %99 = arith.andi %98, %92 : vector<80x128xi1>
    %100 = vector.broadcast %88 : i32 to vector<80x128xi32>
    %101 = arith.addi %90, %100 : vector<80x128xi32>
    %102 = arith.select %99, %101, %90 : vector<80x128xi1>, vector<80x128xi32>
    %c8_i32 = arith.constant 8 : i32
    %103 = vector.broadcast %c8_i32 : i32 to vector<80x128xi32>
    %104 = arith.cmpi slt, %102, %103 : vector<80x128xi32>
    %cst_66 = arith.constant 0.000000e+00 : f32
    %105 = vector.broadcast %cst_66 : f32 to vector<80x128xf32>
    %106 = arith.select %104, %85, %105 : vector<80x128xi1>, vector<80x128xf32>
    %cst_67 = arith.constant dense<0.000000e+00> : vector<128xf32>
    %107 = vector.multi_reduction <add>, %106, %cst_67 [0] : vector<80x128xf32> to vector<128xf32>
    %108 = vector.shape_cast %107 : vector<128xf32> to vector<1x128xf32>
    %cst_68 = arith.constant 1.562500e-02 : f32
    %109 = vector.broadcast %cst_68 : f32 to vector<1x128xf32>
    %110 = arith.mulf %108, %109 : vector<1x128xf32>
    %111 = vector.broadcast %110 : vector<1x128xf32> to vector<80x128xf32>
    %112 = arith.subf %85, %111 : vector<80x128xf32>
    %cst_69 = arith.constant 0.000000e+00 : f32
    %113 = vector.broadcast %cst_69 : f32 to vector<80x128xf32>
    %114 = arith.select %104, %112, %113 : vector<80x128xi1>, vector<80x128xf32>
    %115 = arith.mulf %114, %114 : vector<80x128xf32>
    %cst_70 = arith.constant dense<0.000000e+00> : vector<128xf32>
    %116 = vector.multi_reduction <add>, %115, %cst_70 [0] : vector<80x128xf32> to vector<128xf32>
    %117 = vector.shape_cast %116 : vector<128xf32> to vector<1x128xf32>
    %cst_71 = arith.constant 1.562500e-02 : f32
    %118 = vector.broadcast %cst_71 : f32 to vector<1x128xf32>
    %119 = arith.mulf %117, %118 : vector<1x128xf32>
    %120 = vector.broadcast %110 : vector<1x128xf32> to vector<80x128xf32>
    %121 = arith.subf %85, %120 : vector<80x128xf32>
    %cst_72 = arith.constant 0.000000e+00 : f32
    %122 = vector.broadcast %cst_72 : f32 to vector<1x128xf32>
    %123 = arith.maximumf %119, %122 : vector<1x128xf32>
    %cst_73 = arith.constant 9.99999974E-6 : f32
    %124 = vector.broadcast %cst_73 : f32 to vector<1x128xf32>
    %125 = arith.addf %123, %124 : vector<1x128xf32>
    %126 = math.rsqrt %125 : vector<1x128xf32>
    %127 = vector.broadcast %126 : vector<1x128xf32> to vector<80x128xf32>
    %128 = arith.mulf %121, %127 : vector<80x128xf32>
    %cst_74 = arith.constant 0.000000e+00 : f32
    %129 = vector.broadcast %cst_74 : f32 to vector<80x128xf32>
    %130 = arith.cmpf oge, %128, %129 : vector<80x128xf32>
    %cst_75 = arith.constant 2.000000e-01 : f32
    %131 = vector.broadcast %cst_75 : f32 to vector<80x128xf32>
    %132 = arith.mulf %131, %128 : vector<80x128xf32>
    %133 = arith.select %130, %128, %132 : vector<80x128xi1>, vector<80x128xf32>
    %134 = arith.truncf %133 : vector<80x128xf32> to vector<80x128xbf16>
    %c0_76 = arith.constant 0 : index
    %c0_77 = arith.constant 0 : index
    %c0_78 = arith.constant 0 : index
    %135 = vector.load %arg6[%c0_76, %c0_77, %c0_78] : memref<1x80x128xbf16, #tpu.memory_space<vmem>>, vector<1x80x128xbf16>
    %136 = vector.shape_cast %135 : vector<1x80x128xbf16> to vector<80x128xbf16>
    %137 = vector.shape_cast %134 : vector<80x128xbf16> to vector<1x80x128xbf16>
    tpu.vector_store %arg6[%c0_76, %c0_77, %c0_78], %137 {strides = array<i32>} : memref<1x80x128xbf16, #tpu.memory_space<vmem>>, vector<1x80x128xbf16>,
    return
  }
  func.func @transform_0(%arg0: i32) -> (i32, i32, i32) {
    %c0_i32 = arith.constant 0 : i32
    %c0_i32_0 = arith.constant 0 : i32
    %c0_i32_1 = arith.constant 0 : i32
    return %arg0, %c0_i32, %c0_i32_0 : i32, i32, i32
  }
  func.func @transform_1(%arg0: i32) -> (i32, i32) {
    %c0_i32 = arith.constant 0 : i32
    %c0_i32_0 = arith.constant 0 : i32
    %c0_i32_1 = arith.constant 0 : i32
    return %c0_i32, %c0_i32_0 : i32, i32
  }
  func.func @transform_2(%arg0: i32) -> (i32, i32) {
    %c0_i32 = arith.constant 0 : i32
    %c0_i32_0 = arith.constant 0 : i32
    %c0_i32_1 = arith.constant 0 : i32
    return %c0_i32, %c0_i32_0 : i32, i32
  }
  func.func @transform_3(%arg0: i32) -> (i32, i32, i32) {
    %c0_i32 = arith.constant 0 : i32
    %c0_i32_0 = arith.constant 0 : i32
    %c0_i32_1 = arith.constant 0 : i32
    %c0_i32_2 = arith.constant 0 : i32
    return %c0_i32, %c0_i32_0, %c0_i32_1 : i32, i32, i32
  }
  func.func @transform_4(%arg0: i32) -> (i32, i32) {
    %c0_i32 = arith.constant 0 : i32
    %c0_i32_0 = arith.constant 0 : i32
    %c0_i32_1 = arith.constant 0 : i32
    return %c0_i32, %c0_i32_0 : i32, i32
  }
  func.func @transform_5(%arg0: i32) -> (i32, i32, i32) {
    %c0_i32 = arith.constant 0 : i32
    %c0_i32_0 = arith.constant 0 : i32
    %c0_i32_1 = arith.constant 0 : i32
    return %arg0, %c0_i32, %c0_i32_0 : i32, i32, i32
  }
}

module attributes {stable_mosaic.version = 11 : i64} {
  func.func @_stage3_kernel(%arg0: i32, %arg1: memref<1x16x1152xbf16, #tpu.memory_space<vmem>>, %arg2: memref<1152x256xbf16, #tpu.memory_space<vmem>>, %arg3: memref<1x256xf32, #tpu.memory_space<vmem>>, %arg4: memref<9x256x256xbf16, #tpu.memory_space<vmem>>, %arg5: memref<1x256xf32, #tpu.memory_space<vmem>>, %arg6: memref<9x256x256xbf16, #tpu.memory_space<vmem>>, %arg7: memref<1x256xf32, #tpu.memory_space<vmem>>, %arg8: memref<9x256x128xbf16, #tpu.memory_space<vmem>>, %arg9: memref<1x128xf32, #tpu.memory_space<vmem>>, %arg10: memref<1x24x128xf32, #tpu.memory_space<vmem>>, %arg11: memref<40x256xf32, #tpu.memory_space<vmem>>, %arg12: memref<40x256xf32, #tpu.memory_space<vmem>>) attributes {dimension_semantics = [#tpu.dimension_semantics<parallel>], iteration_bounds = array<i64: 2>, scalar_prefetch = 0 : i64, scratch_operands = 2 : i64, tpu.core_type = #tpu.core_type<tc>, window_params = [{transform_indices = @transform_0, window_bounds = array<i64: 1, 16, 1152>}, {pipeline_mode = #tpu.pipeline_mode<synchronous>, transform_indices = @transform_1, window_bounds = array<i64: 1152, 256>}, {pipeline_mode = #tpu.pipeline_mode<synchronous>, transform_indices = @transform_2, window_bounds = array<i64: 1, 256>}, {pipeline_mode = #tpu.pipeline_mode<synchronous>, transform_indices = @transform_3, window_bounds = array<i64: 9, 256, 256>}, {pipeline_mode = #tpu.pipeline_mode<synchronous>, transform_indices = @transform_4, window_bounds = array<i64: 1, 256>}, {pipeline_mode = #tpu.pipeline_mode<synchronous>, transform_indices = @transform_5, window_bounds = array<i64: 9, 256, 256>}, {pipeline_mode = #tpu.pipeline_mode<synchronous>, transform_indices = @transform_6, window_bounds = array<i64: 1, 256>}, {pipeline_mode = #tpu.pipeline_mode<synchronous>, transform_indices = @transform_7, window_bounds = array<i64: 9, 256, 128>}, {pipeline_mode = #tpu.pipeline_mode<synchronous>, transform_indices = @transform_8, window_bounds = array<i64: 1, 128>}, {transform_indices = @transform_9, window_bounds = array<i64: 1, 24, 128>}]} {
    %c0 = arith.constant 0 : index
    %c0_0 = arith.constant 0 : index
    %c0_1 = arith.constant 0 : index
    %0 = vector.load %arg1[%c0, %c0_0, %c0_1] : memref<1x16x1152xbf16, #tpu.memory_space<vmem>>, vector<1x16x1152xbf16>
    %1 = vector.shape_cast %0 : vector<1x16x1152xbf16> to vector<16x1152xbf16>
    %c0_2 = arith.constant 0 : index
    %c0_3 = arith.constant 0 : index
    %2 = vector.load %arg2[%c0_2, %c0_3] : memref<1152x256xbf16, #tpu.memory_space<vmem>>, vector<1152x256xbf16>
    %cst = arith.constant dense<0.000000e+00> : vector<16x256xf32>
    %3 = tpu.matmul %1, %2, %cst {dimension_numbers = #tpu.dot_dimension_numbers<[1], [0], [0], [1], [0, 0, 1, 1], [], []>} : vector<16x1152xbf16>, vector<1152x256xbf16>, vector<16x256xf32> -> vector<16x256xf32>
    %c0_4 = arith.constant 0 : index
    %c0_5 = arith.constant 0 : index
    %4 = vector.load %arg3[%c0_4, %c0_5] : memref<1x256xf32, #tpu.memory_space<vmem>>, vector<1x256xf32>
    %5 = vector.broadcast %4 : vector<1x256xf32> to vector<16x256xf32>
    %6 = arith.addf %3, %5 : vector<16x256xf32>
    %cst_6 = arith.constant 0.000000e+00 : f32
    %7 = vector.broadcast %cst_6 : f32 to vector<16x256xf32>
    %8 = arith.cmpf oge, %6, %7 : vector<16x256xf32>
    %cst_7 = arith.constant 2.000000e-01 : f32
    %9 = vector.broadcast %cst_7 : f32 to vector<16x256xf32>
    %10 = arith.mulf %9, %6 : vector<16x256xf32>
    %11 = arith.select %8, %6, %10 : vector<16x256xi1>, vector<16x256xf32>
    %cst_8 = arith.constant 0.000000e+00 : f32
    %12 = vector.broadcast %cst_8 : f32 to vector<40x256xf32>
    %c0_9 = arith.constant 0 : index
    %c0_10 = arith.constant 0 : index
    %13 = vector.load %arg11[%c0_9, %c0_10] : memref<40x256xf32, #tpu.memory_space<vmem>>, vector<40x256xf32>
    tpu.vector_store %arg11[%c0_9, %c0_10], %12 {strides = array<i32>} : memref<40x256xf32, #tpu.memory_space<vmem>>, vector<40x256xf32>,
    %cst_11 = arith.constant 0.000000e+00 : f32
    %14 = vector.broadcast %cst_11 : f32 to vector<40x256xf32>
    %c0_12 = arith.constant 0 : index
    %c0_13 = arith.constant 0 : index
    %15 = vector.load %arg12[%c0_12, %c0_13] : memref<40x256xf32, #tpu.memory_space<vmem>>, vector<40x256xf32>
    tpu.vector_store %arg12[%c0_12, %c0_13], %14 {strides = array<i32>} : memref<40x256xf32, #tpu.memory_space<vmem>>, vector<40x256xf32>,
    %16 = vector.extract_strided_slice %11 {offsets = [0, 0], sizes = [4, 256], strides = [1, 1]} : vector<16x256xf32> to vector<4x256xf32>
    %c7 = arith.constant 7 : index
    %c0_14 = arith.constant 0 : index
    %17 = vector.load %arg11[%c7, %c0_14] : memref<40x256xf32, #tpu.memory_space<vmem>>, vector<4x256xf32>
    tpu.vector_store %arg11[%c7, %c0_14], %16 {strides = array<i32>} : memref<40x256xf32, #tpu.memory_space<vmem>>, vector<4x256xf32>,
    %18 = vector.extract_strided_slice %11 {offsets = [4, 0], sizes = [4, 256], strides = [1, 1]} : vector<16x256xf32> to vector<4x256xf32>
    %c13 = arith.constant 13 : index
    %c0_15 = arith.constant 0 : index
    %19 = vector.load %arg11[%c13, %c0_15] : memref<40x256xf32, #tpu.memory_space<vmem>>, vector<4x256xf32>
    tpu.vector_store %arg11[%c13, %c0_15], %18 {strides = array<i32>} : memref<40x256xf32, #tpu.memory_space<vmem>>, vector<4x256xf32>,
    %20 = vector.extract_strided_slice %11 {offsets = [8, 0], sizes = [4, 256], strides = [1, 1]} : vector<16x256xf32> to vector<4x256xf32>
    %c19 = arith.constant 19 : index
    %c0_16 = arith.constant 0 : index
    %21 = vector.load %arg11[%c19, %c0_16] : memref<40x256xf32, #tpu.memory_space<vmem>>, vector<4x256xf32>
    tpu.vector_store %arg11[%c19, %c0_16], %20 {strides = array<i32>} : memref<40x256xf32, #tpu.memory_space<vmem>>, vector<4x256xf32>,
    %22 = vector.extract_strided_slice %11 {offsets = [12, 0], sizes = [4, 256], strides = [1, 1]} : vector<16x256xf32> to vector<4x256xf32>
    %c25 = arith.constant 25 : index
    %c0_17 = arith.constant 0 : index
    %23 = vector.load %arg11[%c25, %c0_17] : memref<40x256xf32, #tpu.memory_space<vmem>>, vector<4x256xf32>
    tpu.vector_store %arg11[%c25, %c0_17], %22 {strides = array<i32>} : memref<40x256xf32, #tpu.memory_space<vmem>>, vector<4x256xf32>,
    %24 = tpu.iota {dimensions = array<i32: 0>} : vector<24x256xi32>
    %c6_i32 = arith.constant 6 : i32
    %c0_i32 = arith.constant 0 : i32
    %25 = arith.cmpi eq, %c6_i32, %c0_i32 : i32
    %c1_i32 = arith.constant 1 : i32
    %26 = arith.select %25, %c1_i32, %c6_i32 : i32
    %27 = vector.broadcast %26 : i32 to vector<24x256xi32>
    %28 = arith.remsi %24, %27 : vector<24x256xi32>
    %c0_i32_18 = arith.constant 0 : i32
    %29 = vector.broadcast %c0_i32_18 : i32 to vector<24x256xi32>
    %30 = arith.cmpi ne, %28, %29 : vector<24x256xi32>
    %c0_i32_19 = arith.constant 0 : i32
    %31 = vector.broadcast %c0_i32_19 : i32 to vector<24x256xi32>
    %32 = arith.cmpi slt, %28, %31 : vector<24x256xi32>
    %c0_i32_20 = arith.constant 0 : i32
    %33 = arith.cmpi slt, %26, %c0_i32_20 : i32
    %34 = vector.broadcast %33 : i1 to vector<24x256xi1>
    %35 = vector.broadcast %34 : vector<24x256xi1> to vector<24x256xi1>
    %36 = arith.xori %32, %35 : vector<24x256xi1>
    %37 = arith.andi %36, %30 : vector<24x256xi1>
    %38 = vector.broadcast %26 : i32 to vector<24x256xi32>
    %39 = arith.addi %28, %38 : vector<24x256xi32>
    %40 = arith.select %37, %39, %28 : vector<24x256xi1>, vector<24x256xi32>
    %c4_i32 = arith.constant 4 : i32
    %41 = vector.broadcast %c4_i32 : i32 to vector<24x256xi32>
    %42 = arith.cmpi slt, %40, %41 : vector<24x256xi32>
    %c0_21 = arith.constant 0 : index
    %c0_22 = arith.constant 0 : index
    %43 = vector.load %arg11[%c0_21, %c0_22] : memref<40x256xf32, #tpu.memory_space<vmem>>, vector<24x256xf32>
    %44 = arith.truncf %43 : vector<24x256xf32> to vector<24x256xbf16>
    %c0_23 = arith.constant 0 : index
    %c0_24 = arith.constant 0 : index
    %c0_25 = arith.constant 0 : index
    %45 = vector.load %arg4[%c0_23, %c0_24, %c0_25] : memref<9x256x256xbf16, #tpu.memory_space<vmem>>, vector<1x256x256xbf16>
    %46 = vector.shape_cast %45 : vector<1x256x256xbf16> to vector<256x256xbf16>
    %cst_26 = arith.constant dense<0.000000e+00> : vector<24x256xf32>
    %47 = tpu.matmul %44, %46, %cst_26 {dimension_numbers = #tpu.dot_dimension_numbers<[1], [0], [0], [1], [0, 0, 1, 1], [], []>} : vector<24x256xbf16>, vector<256x256xbf16>, vector<24x256xf32> -> vector<24x256xf32>
    %c1 = arith.constant 1 : index
    %c0_27 = arith.constant 0 : index
    %48 = vector.load %arg11[%c1, %c0_27] : memref<40x256xf32, #tpu.memory_space<vmem>>, vector<24x256xf32>
    %49 = arith.truncf %48 : vector<24x256xf32> to vector<24x256xbf16>
    %c1_28 = arith.constant 1 : index
    %c0_29 = arith.constant 0 : index
    %c0_30 = arith.constant 0 : index
    %50 = vector.load %arg4[%c1_28, %c0_29, %c0_30] : memref<9x256x256xbf16, #tpu.memory_space<vmem>>, vector<1x256x256xbf16>
    %51 = vector.shape_cast %50 : vector<1x256x256xbf16> to vector<256x256xbf16>
    %cst_31 = arith.constant dense<0.000000e+00> : vector<24x256xf32>
    %52 = tpu.matmul %49, %51, %cst_31 {dimension_numbers = #tpu.dot_dimension_numbers<[1], [0], [0], [1], [0, 0, 1, 1], [], []>} : vector<24x256xbf16>, vector<256x256xbf16>, vector<24x256xf32> -> vector<24x256xf32>
    %53 = arith.addf %47, %52 : vector<24x256xf32>
    %c2 = arith.constant 2 : index
    %c0_32 = arith.constant 0 : index
    %54 = vector.load %arg11[%c2, %c0_32] : memref<40x256xf32, #tpu.memory_space<vmem>>, vector<24x256xf32>
    %55 = arith.truncf %54 : vector<24x256xf32> to vector<24x256xbf16>
    %c2_33 = arith.constant 2 : index
    %c0_34 = arith.constant 0 : index
    %c0_35 = arith.constant 0 : index
    %56 = vector.load %arg4[%c2_33, %c0_34, %c0_35] : memref<9x256x256xbf16, #tpu.memory_space<vmem>>, vector<1x256x256xbf16>
    %57 = vector.shape_cast %56 : vector<1x256x256xbf16> to vector<256x256xbf16>
    %cst_36 = arith.constant dense<0.000000e+00> : vector<24x256xf32>
    %58 = tpu.matmul %55, %57, %cst_36 {dimension_numbers = #tpu.dot_dimension_numbers<[1], [0], [0], [1], [0, 0, 1, 1], [], []>} : vector<24x256xbf16>, vector<256x256xbf16>, vector<24x256xf32> -> vector<24x256xf32>
    %59 = arith.addf %53, %58 : vector<24x256xf32>
    %c6 = arith.constant 6 : index
    %c0_37 = arith.constant 0 : index
    %60 = vector.load %arg11[%c6, %c0_37] : memref<40x256xf32, #tpu.memory_space<vmem>>, vector<24x256xf32>
    %61 = arith.truncf %60 : vector<24x256xf32> to vector<24x256xbf16>
    %c3 = arith.constant 3 : index
    %c0_38 = arith.constant 0 : index
    %c0_39 = arith.constant 0 : index
    %62 = vector.load %arg4[%c3, %c0_38, %c0_39] : memref<9x256x256xbf16, #tpu.memory_space<vmem>>, vector<1x256x256xbf16>
    %63 = vector.shape_cast %62 : vector<1x256x256xbf16> to vector<256x256xbf16>
    %cst_40 = arith.constant dense<0.000000e+00> : vector<24x256xf32>
    %64 = tpu.matmul %61, %63, %cst_40 {dimension_numbers = #tpu.dot_dimension_numbers<[1], [0], [0], [1], [0, 0, 1, 1], [], []>} : vector<24x256xbf16>, vector<256x256xbf16>, vector<24x256xf32> -> vector<24x256xf32>
    %65 = arith.addf %59, %64 : vector<24x256xf32>
    %c7_41 = arith.constant 7 : index
    %c0_42 = arith.constant 0 : index
    %66 = vector.load %arg11[%c7_41, %c0_42] : memref<40x256xf32, #tpu.memory_space<vmem>>, vector<24x256xf32>
    %67 = arith.truncf %66 : vector<24x256xf32> to vector<24x256xbf16>
    %c4 = arith.constant 4 : index
    %c0_43 = arith.constant 0 : index
    %c0_44 = arith.constant 0 : index
    %68 = vector.load %arg4[%c4, %c0_43, %c0_44] : memref<9x256x256xbf16, #tpu.memory_space<vmem>>, vector<1x256x256xbf16>
    %69 = vector.shape_cast %68 : vector<1x256x256xbf16> to vector<256x256xbf16>
    %cst_45 = arith.constant dense<0.000000e+00> : vector<24x256xf32>
    %70 = tpu.matmul %67, %69, %cst_45 {dimension_numbers = #tpu.dot_dimension_numbers<[1], [0], [0], [1], [0, 0, 1, 1], [], []>} : vector<24x256xbf16>, vector<256x256xbf16>, vector<24x256xf32> -> vector<24x256xf32>
    %71 = arith.addf %65, %70 : vector<24x256xf32>
    %c8 = arith.constant 8 : index
    %c0_46 = arith.constant 0 : index
    %72 = vector.load %arg11[%c8, %c0_46] : memref<40x256xf32, #tpu.memory_space<vmem>>, vector<24x256xf32>
    %73 = arith.truncf %72 : vector<24x256xf32> to vector<24x256xbf16>
    %c5 = arith.constant 5 : index
    %c0_47 = arith.constant 0 : index
    %c0_48 = arith.constant 0 : index
    %74 = vector.load %arg4[%c5, %c0_47, %c0_48] : memref<9x256x256xbf16, #tpu.memory_space<vmem>>, vector<1x256x256xbf16>
    %75 = vector.shape_cast %74 : vector<1x256x256xbf16> to vector<256x256xbf16>
    %cst_49 = arith.constant dense<0.000000e+00> : vector<24x256xf32>
    %76 = tpu.matmul %73, %75, %cst_49 {dimension_numbers = #tpu.dot_dimension_numbers<[1], [0], [0], [1], [0, 0, 1, 1], [], []>} : vector<24x256xbf16>, vector<256x256xbf16>, vector<24x256xf32> -> vector<24x256xf32>
    %77 = arith.addf %71, %76 : vector<24x256xf32>
    %c12 = arith.constant 12 : index
    %c0_50 = arith.constant 0 : index
    %78 = vector.load %arg11[%c12, %c0_50] : memref<40x256xf32, #tpu.memory_space<vmem>>, vector<24x256xf32>
    %79 = arith.truncf %78 : vector<24x256xf32> to vector<24x256xbf16>
    %c6_51 = arith.constant 6 : index
    %c0_52 = arith.constant 0 : index
    %c0_53 = arith.constant 0 : index
    %80 = vector.load %arg4[%c6_51, %c0_52, %c0_53] : memref<9x256x256xbf16, #tpu.memory_space<vmem>>, vector<1x256x256xbf16>
    %81 = vector.shape_cast %80 : vector<1x256x256xbf16> to vector<256x256xbf16>
    %cst_54 = arith.constant dense<0.000000e+00> : vector<24x256xf32>
    %82 = tpu.matmul %79, %81, %cst_54 {dimension_numbers = #tpu.dot_dimension_numbers<[1], [0], [0], [1], [0, 0, 1, 1], [], []>} : vector<24x256xbf16>, vector<256x256xbf16>, vector<24x256xf32> -> vector<24x256xf32>
    %83 = arith.addf %77, %82 : vector<24x256xf32>
    %c13_55 = arith.constant 13 : index
    %c0_56 = arith.constant 0 : index
    %84 = vector.load %arg11[%c13_55, %c0_56] : memref<40x256xf32, #tpu.memory_space<vmem>>, vector<24x256xf32>
    %85 = arith.truncf %84 : vector<24x256xf32> to vector<24x256xbf16>
    %c7_57 = arith.constant 7 : index
    %c0_58 = arith.constant 0 : index
    %c0_59 = arith.constant 0 : index
    %86 = vector.load %arg4[%c7_57, %c0_58, %c0_59] : memref<9x256x256xbf16, #tpu.memory_space<vmem>>, vector<1x256x256xbf16>
    %87 = vector.shape_cast %86 : vector<1x256x256xbf16> to vector<256x256xbf16>
    %cst_60 = arith.constant dense<0.000000e+00> : vector<24x256xf32>
    %88 = tpu.matmul %85, %87, %cst_60 {dimension_numbers = #tpu.dot_dimension_numbers<[1], [0], [0], [1], [0, 0, 1, 1], [], []>} : vector<24x256xbf16>, vector<256x256xbf16>, vector<24x256xf32> -> vector<24x256xf32>
    %89 = arith.addf %83, %88 : vector<24x256xf32>
    %c14 = arith.constant 14 : index
    %c0_61 = arith.constant 0 : index
    %90 = vector.load %arg11[%c14, %c0_61] : memref<40x256xf32, #tpu.memory_space<vmem>>, vector<24x256xf32>
    %91 = arith.truncf %90 : vector<24x256xf32> to vector<24x256xbf16>
    %c8_62 = arith.constant 8 : index
    %c0_63 = arith.constant 0 : index
    %c0_64 = arith.constant 0 : index
    %92 = vector.load %arg4[%c8_62, %c0_63, %c0_64] : memref<9x256x256xbf16, #tpu.memory_space<vmem>>, vector<1x256x256xbf16>
    %93 = vector.shape_cast %92 : vector<1x256x256xbf16> to vector<256x256xbf16>
    %cst_65 = arith.constant dense<0.000000e+00> : vector<24x256xf32>
    %94 = tpu.matmul %91, %93, %cst_65 {dimension_numbers = #tpu.dot_dimension_numbers<[1], [0], [0], [1], [0, 0, 1, 1], [], []>} : vector<24x256xbf16>, vector<256x256xbf16>, vector<24x256xf32> -> vector<24x256xf32>
    %95 = arith.addf %89, %94 : vector<24x256xf32>
    %c0_66 = arith.constant 0 : index
    %c0_67 = arith.constant 0 : index
    %96 = vector.load %arg5[%c0_66, %c0_67] : memref<1x256xf32, #tpu.memory_space<vmem>>, vector<1x256xf32>
    %97 = vector.broadcast %96 : vector<1x256xf32> to vector<24x256xf32>
    %98 = arith.addf %95, %97 : vector<24x256xf32>
    %cst_68 = arith.constant 0.000000e+00 : f32
    %99 = vector.broadcast %cst_68 : f32 to vector<24x256xf32>
    %100 = arith.select %42, %98, %99 : vector<24x256xi1>, vector<24x256xf32>
    %cst_69 = arith.constant dense<0.000000e+00> : vector<256xf32>
    %101 = vector.multi_reduction <add>, %100, %cst_69 [0] : vector<24x256xf32> to vector<256xf32>
    %102 = vector.shape_cast %101 : vector<256xf32> to vector<1x256xf32>
    %cst_70 = arith.constant 6.250000e-02 : f32
    %103 = vector.broadcast %cst_70 : f32 to vector<1x256xf32>
    %104 = arith.mulf %102, %103 : vector<1x256xf32>
    %105 = vector.broadcast %104 : vector<1x256xf32> to vector<24x256xf32>
    %106 = arith.subf %98, %105 : vector<24x256xf32>
    %cst_71 = arith.constant 0.000000e+00 : f32
    %107 = vector.broadcast %cst_71 : f32 to vector<24x256xf32>
    %108 = arith.select %42, %106, %107 : vector<24x256xi1>, vector<24x256xf32>
    %109 = arith.mulf %108, %108 : vector<24x256xf32>
    %cst_72 = arith.constant dense<0.000000e+00> : vector<256xf32>
    %110 = vector.multi_reduction <add>, %109, %cst_72 [0] : vector<24x256xf32> to vector<256xf32>
    %111 = vector.shape_cast %110 : vector<256xf32> to vector<1x256xf32>
    %cst_73 = arith.constant 6.250000e-02 : f32
    %112 = vector.broadcast %cst_73 : f32 to vector<1x256xf32>
    %113 = arith.mulf %111, %112 : vector<1x256xf32>
    %114 = vector.broadcast %104 : vector<1x256xf32> to vector<24x256xf32>
    %115 = arith.subf %98, %114 : vector<24x256xf32>
    %cst_74 = arith.constant 0.000000e+00 : f32
    %116 = vector.broadcast %cst_74 : f32 to vector<1x256xf32>
    %117 = arith.maximumf %113, %116 : vector<1x256xf32>
    %cst_75 = arith.constant 9.99999974E-6 : f32
    %118 = vector.broadcast %cst_75 : f32 to vector<1x256xf32>
    %119 = arith.addf %117, %118 : vector<1x256xf32>
    %120 = math.rsqrt %119 : vector<1x256xf32>
    %121 = vector.broadcast %120 : vector<1x256xf32> to vector<24x256xf32>
    %122 = arith.mulf %115, %121 : vector<24x256xf32>
    %cst_76 = arith.constant 0.000000e+00 : f32
    %123 = vector.broadcast %cst_76 : f32 to vector<24x256xf32>
    %124 = arith.cmpf oge, %122, %123 : vector<24x256xf32>
    %cst_77 = arith.constant 2.000000e-01 : f32
    %125 = vector.broadcast %cst_77 : f32 to vector<24x256xf32>
    %126 = arith.mulf %125, %122 : vector<24x256xf32>
    %127 = arith.select %124, %122, %126 : vector<24x256xi1>, vector<24x256xf32>
    %cst_78 = arith.constant 0.000000e+00 : f32
    %128 = vector.broadcast %cst_78 : f32 to vector<24x256xf32>
    %129 = arith.select %42, %127, %128 : vector<24x256xi1>, vector<24x256xf32>
    %c7_79 = arith.constant 7 : index
    %c0_80 = arith.constant 0 : index
    %130 = vector.load %arg12[%c7_79, %c0_80] : memref<40x256xf32, #tpu.memory_space<vmem>>, vector<24x256xf32>
    tpu.vector_store %arg12[%c7_79, %c0_80], %129 {strides = array<i32>} : memref<40x256xf32, #tpu.memory_space<vmem>>, vector<24x256xf32>,
    %c0_81 = arith.constant 0 : index
    %c0_82 = arith.constant 0 : index
    %131 = vector.load %arg12[%c0_81, %c0_82] : memref<40x256xf32, #tpu.memory_space<vmem>>, vector<24x256xf32>
    %132 = arith.truncf %131 : vector<24x256xf32> to vector<24x256xbf16>
    %c0_83 = arith.constant 0 : index
    %c0_84 = arith.constant 0 : index
    %c0_85 = arith.constant 0 : index
    %133 = vector.load %arg6[%c0_83, %c0_84, %c0_85] : memref<9x256x256xbf16, #tpu.memory_space<vmem>>, vector<1x256x256xbf16>
    %134 = vector.shape_cast %133 : vector<1x256x256xbf16> to vector<256x256xbf16>
    %cst_86 = arith.constant dense<0.000000e+00> : vector<24x256xf32>
    %135 = tpu.matmul %132, %134, %cst_86 {dimension_numbers = #tpu.dot_dimension_numbers<[1], [0], [0], [1], [0, 0, 1, 1], [], []>} : vector<24x256xbf16>, vector<256x256xbf16>, vector<24x256xf32> -> vector<24x256xf32>
    %c1_87 = arith.constant 1 : index
    %c0_88 = arith.constant 0 : index
    %136 = vector.load %arg12[%c1_87, %c0_88] : memref<40x256xf32, #tpu.memory_space<vmem>>, vector<24x256xf32>
    %137 = arith.truncf %136 : vector<24x256xf32> to vector<24x256xbf16>
    %c1_89 = arith.constant 1 : index
    %c0_90 = arith.constant 0 : index
    %c0_91 = arith.constant 0 : index
    %138 = vector.load %arg6[%c1_89, %c0_90, %c0_91] : memref<9x256x256xbf16, #tpu.memory_space<vmem>>, vector<1x256x256xbf16>
    %139 = vector.shape_cast %138 : vector<1x256x256xbf16> to vector<256x256xbf16>
    %cst_92 = arith.constant dense<0.000000e+00> : vector<24x256xf32>
    %140 = tpu.matmul %137, %139, %cst_92 {dimension_numbers = #tpu.dot_dimension_numbers<[1], [0], [0], [1], [0, 0, 1, 1], [], []>} : vector<24x256xbf16>, vector<256x256xbf16>, vector<24x256xf32> -> vector<24x256xf32>
    %141 = arith.addf %135, %140 : vector<24x256xf32>
    %c2_93 = arith.constant 2 : index
    %c0_94 = arith.constant 0 : index
    %142 = vector.load %arg12[%c2_93, %c0_94] : memref<40x256xf32, #tpu.memory_space<vmem>>, vector<24x256xf32>
    %143 = arith.truncf %142 : vector<24x256xf32> to vector<24x256xbf16>
    %c2_95 = arith.constant 2 : index
    %c0_96 = arith.constant 0 : index
    %c0_97 = arith.constant 0 : index
    %144 = vector.load %arg6[%c2_95, %c0_96, %c0_97] : memref<9x256x256xbf16, #tpu.memory_space<vmem>>, vector<1x256x256xbf16>
    %145 = vector.shape_cast %144 : vector<1x256x256xbf16> to vector<256x256xbf16>
    %cst_98 = arith.constant dense<0.000000e+00> : vector<24x256xf32>
    %146 = tpu.matmul %143, %145, %cst_98 {dimension_numbers = #tpu.dot_dimension_numbers<[1], [0], [0], [1], [0, 0, 1, 1], [], []>} : vector<24x256xbf16>, vector<256x256xbf16>, vector<24x256xf32> -> vector<24x256xf32>
    %147 = arith.addf %141, %146 : vector<24x256xf32>
    %c6_99 = arith.constant 6 : index
    %c0_100 = arith.constant 0 : index
    %148 = vector.load %arg12[%c6_99, %c0_100] : memref<40x256xf32, #tpu.memory_space<vmem>>, vector<24x256xf32>
    %149 = arith.truncf %148 : vector<24x256xf32> to vector<24x256xbf16>
    %c3_101 = arith.constant 3 : index
    %c0_102 = arith.constant 0 : index
    %c0_103 = arith.constant 0 : index
    %150 = vector.load %arg6[%c3_101, %c0_102, %c0_103] : memref<9x256x256xbf16, #tpu.memory_space<vmem>>, vector<1x256x256xbf16>
    %151 = vector.shape_cast %150 : vector<1x256x256xbf16> to vector<256x256xbf16>
    %cst_104 = arith.constant dense<0.000000e+00> : vector<24x256xf32>
    %152 = tpu.matmul %149, %151, %cst_104 {dimension_numbers = #tpu.dot_dimension_numbers<[1], [0], [0], [1], [0, 0, 1, 1], [], []>} : vector<24x256xbf16>, vector<256x256xbf16>, vector<24x256xf32> -> vector<24x256xf32>
    %153 = arith.addf %147, %152 : vector<24x256xf32>
    %c7_105 = arith.constant 7 : index
    %c0_106 = arith.constant 0 : index
    %154 = vector.load %arg12[%c7_105, %c0_106] : memref<40x256xf32, #tpu.memory_space<vmem>>, vector<24x256xf32>
    %155 = arith.truncf %154 : vector<24x256xf32> to vector<24x256xbf16>
    %c4_107 = arith.constant 4 : index
    %c0_108 = arith.constant 0 : index
    %c0_109 = arith.constant 0 : index
    %156 = vector.load %arg6[%c4_107, %c0_108, %c0_109] : memref<9x256x256xbf16, #tpu.memory_space<vmem>>, vector<1x256x256xbf16>
    %157 = vector.shape_cast %156 : vector<1x256x256xbf16> to vector<256x256xbf16>
    %cst_110 = arith.constant dense<0.000000e+00> : vector<24x256xf32>
    %158 = tpu.matmul %155, %157, %cst_110 {dimension_numbers = #tpu.dot_dimension_numbers<[1], [0], [0], [1], [0, 0, 1, 1], [], []>} : vector<24x256xbf16>, vector<256x256xbf16>, vector<24x256xf32> -> vector<24x256xf32>
    %159 = arith.addf %153, %158 : vector<24x256xf32>
    %c8_111 = arith.constant 8 : index
    %c0_112 = arith.constant 0 : index
    %160 = vector.load %arg12[%c8_111, %c0_112] : memref<40x256xf32, #tpu.memory_space<vmem>>, vector<24x256xf32>
    %161 = arith.truncf %160 : vector<24x256xf32> to vector<24x256xbf16>
    %c5_113 = arith.constant 5 : index
    %c0_114 = arith.constant 0 : index
    %c0_115 = arith.constant 0 : index
    %162 = vector.load %arg6[%c5_113, %c0_114, %c0_115] : memref<9x256x256xbf16, #tpu.memory_space<vmem>>, vector<1x256x256xbf16>
    %163 = vector.shape_cast %162 : vector<1x256x256xbf16> to vector<256x256xbf16>
    %cst_116 = arith.constant dense<0.000000e+00> : vector<24x256xf32>
    %164 = tpu.matmul %161, %163, %cst_116 {dimension_numbers = #tpu.dot_dimension_numbers<[1], [0], [0], [1], [0, 0, 1, 1], [], []>} : vector<24x256xbf16>, vector<256x256xbf16>, vector<24x256xf32> -> vector<24x256xf32>
    %165 = arith.addf %159, %164 : vector<24x256xf32>
    %c12_117 = arith.constant 12 : index
    %c0_118 = arith.constant 0 : index
    %166 = vector.load %arg12[%c12_117, %c0_118] : memref<40x256xf32, #tpu.memory_space<vmem>>, vector<24x256xf32>
    %167 = arith.truncf %166 : vector<24x256xf32> to vector<24x256xbf16>
    %c6_119 = arith.constant 6 : index
    %c0_120 = arith.constant 0 : index
    %c0_121 = arith.constant 0 : index
    %168 = vector.load %arg6[%c6_119, %c0_120, %c0_121] : memref<9x256x256xbf16, #tpu.memory_space<vmem>>, vector<1x256x256xbf16>
    %169 = vector.shape_cast %168 : vector<1x256x256xbf16> to vector<256x256xbf16>
    %cst_122 = arith.constant dense<0.000000e+00> : vector<24x256xf32>
    %170 = tpu.matmul %167, %169, %cst_122 {dimension_numbers = #tpu.dot_dimension_numbers<[1], [0], [0], [1], [0, 0, 1, 1], [], []>} : vector<24x256xbf16>, vector<256x256xbf16>, vector<24x256xf32> -> vector<24x256xf32>
    %171 = arith.addf %165, %170 : vector<24x256xf32>
    %c13_123 = arith.constant 13 : index
    %c0_124 = arith.constant 0 : index
    %172 = vector.load %arg12[%c13_123, %c0_124] : memref<40x256xf32, #tpu.memory_space<vmem>>, vector<24x256xf32>
    %173 = arith.truncf %172 : vector<24x256xf32> to vector<24x256xbf16>
    %c7_125 = arith.constant 7 : index
    %c0_126 = arith.constant 0 : index
    %c0_127 = arith.constant 0 : index
    %174 = vector.load %arg6[%c7_125, %c0_126, %c0_127] : memref<9x256x256xbf16, #tpu.memory_space<vmem>>, vector<1x256x256xbf16>
    %175 = vector.shape_cast %174 : vector<1x256x256xbf16> to vector<256x256xbf16>
    %cst_128 = arith.constant dense<0.000000e+00> : vector<24x256xf32>
    %176 = tpu.matmul %173, %175, %cst_128 {dimension_numbers = #tpu.dot_dimension_numbers<[1], [0], [0], [1], [0, 0, 1, 1], [], []>} : vector<24x256xbf16>, vector<256x256xbf16>, vector<24x256xf32> -> vector<24x256xf32>
    %177 = arith.addf %171, %176 : vector<24x256xf32>
    %c14_129 = arith.constant 14 : index
    %c0_130 = arith.constant 0 : index
    %178 = vector.load %arg12[%c14_129, %c0_130] : memref<40x256xf32, #tpu.memory_space<vmem>>, vector<24x256xf32>
    %179 = arith.truncf %178 : vector<24x256xf32> to vector<24x256xbf16>
    %c8_131 = arith.constant 8 : index
    %c0_132 = arith.constant 0 : index
    %c0_133 = arith.constant 0 : index
    %180 = vector.load %arg6[%c8_131, %c0_132, %c0_133] : memref<9x256x256xbf16, #tpu.memory_space<vmem>>, vector<1x256x256xbf16>
    %181 = vector.shape_cast %180 : vector<1x256x256xbf16> to vector<256x256xbf16>
    %cst_134 = arith.constant dense<0.000000e+00> : vector<24x256xf32>
    %182 = tpu.matmul %179, %181, %cst_134 {dimension_numbers = #tpu.dot_dimension_numbers<[1], [0], [0], [1], [0, 0, 1, 1], [], []>} : vector<24x256xbf16>, vector<256x256xbf16>, vector<24x256xf32> -> vector<24x256xf32>
    %183 = arith.addf %177, %182 : vector<24x256xf32>
    %c0_135 = arith.constant 0 : index
    %c0_136 = arith.constant 0 : index
    %184 = vector.load %arg7[%c0_135, %c0_136] : memref<1x256xf32, #tpu.memory_space<vmem>>, vector<1x256xf32>
    %185 = vector.broadcast %184 : vector<1x256xf32> to vector<24x256xf32>
    %186 = arith.addf %183, %185 : vector<24x256xf32>
    %cst_137 = arith.constant 0.000000e+00 : f32
    %187 = vector.broadcast %cst_137 : f32 to vector<24x256xf32>
    %188 = arith.select %42, %186, %187 : vector<24x256xi1>, vector<24x256xf32>
    %cst_138 = arith.constant dense<0.000000e+00> : vector<256xf32>
    %189 = vector.multi_reduction <add>, %188, %cst_138 [0] : vector<24x256xf32> to vector<256xf32>
    %190 = vector.shape_cast %189 : vector<256xf32> to vector<1x256xf32>
    %cst_139 = arith.constant 6.250000e-02 : f32
    %191 = vector.broadcast %cst_139 : f32 to vector<1x256xf32>
    %192 = arith.mulf %190, %191 : vector<1x256xf32>
    %193 = vector.broadcast %192 : vector<1x256xf32> to vector<24x256xf32>
    %194 = arith.subf %186, %193 : vector<24x256xf32>
    %cst_140 = arith.constant 0.000000e+00 : f32
    %195 = vector.broadcast %cst_140 : f32 to vector<24x256xf32>
    %196 = arith.select %42, %194, %195 : vector<24x256xi1>, vector<24x256xf32>
    %197 = arith.mulf %196, %196 : vector<24x256xf32>
    %cst_141 = arith.constant dense<0.000000e+00> : vector<256xf32>
    %198 = vector.multi_reduction <add>, %197, %cst_141 [0] : vector<24x256xf32> to vector<256xf32>
    %199 = vector.shape_cast %198 : vector<256xf32> to vector<1x256xf32>
    %cst_142 = arith.constant 6.250000e-02 : f32
    %200 = vector.broadcast %cst_142 : f32 to vector<1x256xf32>
    %201 = arith.mulf %199, %200 : vector<1x256xf32>
    %202 = vector.broadcast %192 : vector<1x256xf32> to vector<24x256xf32>
    %203 = arith.subf %186, %202 : vector<24x256xf32>
    %cst_143 = arith.constant 0.000000e+00 : f32
    %204 = vector.broadcast %cst_143 : f32 to vector<1x256xf32>
    %205 = arith.maximumf %201, %204 : vector<1x256xf32>
    %cst_144 = arith.constant 9.99999974E-6 : f32
    %206 = vector.broadcast %cst_144 : f32 to vector<1x256xf32>
    %207 = arith.addf %205, %206 : vector<1x256xf32>
    %208 = math.rsqrt %207 : vector<1x256xf32>
    %209 = vector.broadcast %208 : vector<1x256xf32> to vector<24x256xf32>
    %210 = arith.mulf %203, %209 : vector<24x256xf32>
    %cst_145 = arith.constant 0.000000e+00 : f32
    %211 = vector.broadcast %cst_145 : f32 to vector<24x256xf32>
    %212 = arith.cmpf oge, %210, %211 : vector<24x256xf32>
    %cst_146 = arith.constant 2.000000e-01 : f32
    %213 = vector.broadcast %cst_146 : f32 to vector<24x256xf32>
    %214 = arith.mulf %213, %210 : vector<24x256xf32>
    %215 = arith.select %212, %210, %214 : vector<24x256xi1>, vector<24x256xf32>
    %cst_147 = arith.constant 0.000000e+00 : f32
    %216 = vector.broadcast %cst_147 : f32 to vector<24x256xf32>
    %217 = arith.select %42, %215, %216 : vector<24x256xi1>, vector<24x256xf32>
    %c7_148 = arith.constant 7 : index
    %c0_149 = arith.constant 0 : index
    %218 = vector.load %arg11[%c7_148, %c0_149] : memref<40x256xf32, #tpu.memory_space<vmem>>, vector<24x256xf32>
    tpu.vector_store %arg11[%c7_148, %c0_149], %217 {strides = array<i32>} : memref<40x256xf32, #tpu.memory_space<vmem>>, vector<24x256xf32>,
    %c0_150 = arith.constant 0 : index
    %c0_151 = arith.constant 0 : index
    %219 = vector.load %arg11[%c0_150, %c0_151] : memref<40x256xf32, #tpu.memory_space<vmem>>, vector<24x256xf32>
    %220 = arith.truncf %219 : vector<24x256xf32> to vector<24x256xbf16>
    %c0_152 = arith.constant 0 : index
    %c0_153 = arith.constant 0 : index
    %c0_154 = arith.constant 0 : index
    %221 = vector.load %arg8[%c0_152, %c0_153, %c0_154] : memref<9x256x128xbf16, #tpu.memory_space<vmem>>, vector<1x256x128xbf16>
    %222 = vector.shape_cast %221 : vector<1x256x128xbf16> to vector<256x128xbf16>
    %cst_155 = arith.constant dense<0.000000e+00> : vector<24x128xf32>
    %223 = tpu.matmul %220, %222, %cst_155 {dimension_numbers = #tpu.dot_dimension_numbers<[1], [0], [0], [1], [0, 0, 1, 1], [], []>} : vector<24x256xbf16>, vector<256x128xbf16>, vector<24x128xf32> -> vector<24x128xf32>
    %c1_156 = arith.constant 1 : index
    %c0_157 = arith.constant 0 : index
    %224 = vector.load %arg11[%c1_156, %c0_157] : memref<40x256xf32, #tpu.memory_space<vmem>>, vector<24x256xf32>
    %225 = arith.truncf %224 : vector<24x256xf32> to vector<24x256xbf16>
    %c1_158 = arith.constant 1 : index
    %c0_159 = arith.constant 0 : index
    %c0_160 = arith.constant 0 : index
    %226 = vector.load %arg8[%c1_158, %c0_159, %c0_160] : memref<9x256x128xbf16, #tpu.memory_space<vmem>>, vector<1x256x128xbf16>
    %227 = vector.shape_cast %226 : vector<1x256x128xbf16> to vector<256x128xbf16>
    %cst_161 = arith.constant dense<0.000000e+00> : vector<24x128xf32>
    %228 = tpu.matmul %225, %227, %cst_161 {dimension_numbers = #tpu.dot_dimension_numbers<[1], [0], [0], [1], [0, 0, 1, 1], [], []>} : vector<24x256xbf16>, vector<256x128xbf16>, vector<24x128xf32> -> vector<24x128xf32>
    %229 = arith.addf %223, %228 : vector<24x128xf32>
    %c2_162 = arith.constant 2 : index
    %c0_163 = arith.constant 0 : index
    %230 = vector.load %arg11[%c2_162, %c0_163] : memref<40x256xf32, #tpu.memory_space<vmem>>, vector<24x256xf32>
    %231 = arith.truncf %230 : vector<24x256xf32> to vector<24x256xbf16>
    %c2_164 = arith.constant 2 : index
    %c0_165 = arith.constant 0 : index
    %c0_166 = arith.constant 0 : index
    %232 = vector.load %arg8[%c2_164, %c0_165, %c0_166] : memref<9x256x128xbf16, #tpu.memory_space<vmem>>, vector<1x256x128xbf16>
    %233 = vector.shape_cast %232 : vector<1x256x128xbf16> to vector<256x128xbf16>
    %cst_167 = arith.constant dense<0.000000e+00> : vector<24x128xf32>
    %234 = tpu.matmul %231, %233, %cst_167 {dimension_numbers = #tpu.dot_dimension_numbers<[1], [0], [0], [1], [0, 0, 1, 1], [], []>} : vector<24x256xbf16>, vector<256x128xbf16>, vector<24x128xf32> -> vector<24x128xf32>
    %235 = arith.addf %229, %234 : vector<24x128xf32>
    %c6_168 = arith.constant 6 : index
    %c0_169 = arith.constant 0 : index
    %236 = vector.load %arg11[%c6_168, %c0_169] : memref<40x256xf32, #tpu.memory_space<vmem>>, vector<24x256xf32>
    %237 = arith.truncf %236 : vector<24x256xf32> to vector<24x256xbf16>
    %c3_170 = arith.constant 3 : index
    %c0_171 = arith.constant 0 : index
    %c0_172 = arith.constant 0 : index
    %238 = vector.load %arg8[%c3_170, %c0_171, %c0_172] : memref<9x256x128xbf16, #tpu.memory_space<vmem>>, vector<1x256x128xbf16>
    %239 = vector.shape_cast %238 : vector<1x256x128xbf16> to vector<256x128xbf16>
    %cst_173 = arith.constant dense<0.000000e+00> : vector<24x128xf32>
    %240 = tpu.matmul %237, %239, %cst_173 {dimension_numbers = #tpu.dot_dimension_numbers<[1], [0], [0], [1], [0, 0, 1, 1], [], []>} : vector<24x256xbf16>, vector<256x128xbf16>, vector<24x128xf32> -> vector<24x128xf32>
    %241 = arith.addf %235, %240 : vector<24x128xf32>
    %c7_174 = arith.constant 7 : index
    %c0_175 = arith.constant 0 : index
    %242 = vector.load %arg11[%c7_174, %c0_175] : memref<40x256xf32, #tpu.memory_space<vmem>>, vector<24x256xf32>
    %243 = arith.truncf %242 : vector<24x256xf32> to vector<24x256xbf16>
    %c4_176 = arith.constant 4 : index
    %c0_177 = arith.constant 0 : index
    %c0_178 = arith.constant 0 : index
    %244 = vector.load %arg8[%c4_176, %c0_177, %c0_178] : memref<9x256x128xbf16, #tpu.memory_space<vmem>>, vector<1x256x128xbf16>
    %245 = vector.shape_cast %244 : vector<1x256x128xbf16> to vector<256x128xbf16>
    %cst_179 = arith.constant dense<0.000000e+00> : vector<24x128xf32>
    %246 = tpu.matmul %243, %245, %cst_179 {dimension_numbers = #tpu.dot_dimension_numbers<[1], [0], [0], [1], [0, 0, 1, 1], [], []>} : vector<24x256xbf16>, vector<256x128xbf16>, vector<24x128xf32> -> vector<24x128xf32>
    %247 = arith.addf %241, %246 : vector<24x128xf32>
    %c8_180 = arith.constant 8 : index
    %c0_181 = arith.constant 0 : index
    %248 = vector.load %arg11[%c8_180, %c0_181] : memref<40x256xf32, #tpu.memory_space<vmem>>, vector<24x256xf32>
    %249 = arith.truncf %248 : vector<24x256xf32> to vector<24x256xbf16>
    %c5_182 = arith.constant 5 : index
    %c0_183 = arith.constant 0 : index
    %c0_184 = arith.constant 0 : index
    %250 = vector.load %arg8[%c5_182, %c0_183, %c0_184] : memref<9x256x128xbf16, #tpu.memory_space<vmem>>, vector<1x256x128xbf16>
    %251 = vector.shape_cast %250 : vector<1x256x128xbf16> to vector<256x128xbf16>
    %cst_185 = arith.constant dense<0.000000e+00> : vector<24x128xf32>
    %252 = tpu.matmul %249, %251, %cst_185 {dimension_numbers = #tpu.dot_dimension_numbers<[1], [0], [0], [1], [0, 0, 1, 1], [], []>} : vector<24x256xbf16>, vector<256x128xbf16>, vector<24x128xf32> -> vector<24x128xf32>
    %253 = arith.addf %247, %252 : vector<24x128xf32>
    %c12_186 = arith.constant 12 : index
    %c0_187 = arith.constant 0 : index
    %254 = vector.load %arg11[%c12_186, %c0_187] : memref<40x256xf32, #tpu.memory_space<vmem>>, vector<24x256xf32>
    %255 = arith.truncf %254 : vector<24x256xf32> to vector<24x256xbf16>
    %c6_188 = arith.constant 6 : index
    %c0_189 = arith.constant 0 : index
    %c0_190 = arith.constant 0 : index
    %256 = vector.load %arg8[%c6_188, %c0_189, %c0_190] : memref<9x256x128xbf16, #tpu.memory_space<vmem>>, vector<1x256x128xbf16>
    %257 = vector.shape_cast %256 : vector<1x256x128xbf16> to vector<256x128xbf16>
    %cst_191 = arith.constant dense<0.000000e+00> : vector<24x128xf32>
    %258 = tpu.matmul %255, %257, %cst_191 {dimension_numbers = #tpu.dot_dimension_numbers<[1], [0], [0], [1], [0, 0, 1, 1], [], []>} : vector<24x256xbf16>, vector<256x128xbf16>, vector<24x128xf32> -> vector<24x128xf32>
    %259 = arith.addf %253, %258 : vector<24x128xf32>
    %c13_192 = arith.constant 13 : index
    %c0_193 = arith.constant 0 : index
    %260 = vector.load %arg11[%c13_192, %c0_193] : memref<40x256xf32, #tpu.memory_space<vmem>>, vector<24x256xf32>
    %261 = arith.truncf %260 : vector<24x256xf32> to vector<24x256xbf16>
    %c7_194 = arith.constant 7 : index
    %c0_195 = arith.constant 0 : index
    %c0_196 = arith.constant 0 : index
    %262 = vector.load %arg8[%c7_194, %c0_195, %c0_196] : memref<9x256x128xbf16, #tpu.memory_space<vmem>>, vector<1x256x128xbf16>
    %263 = vector.shape_cast %262 : vector<1x256x128xbf16> to vector<256x128xbf16>
    %cst_197 = arith.constant dense<0.000000e+00> : vector<24x128xf32>
    %264 = tpu.matmul %261, %263, %cst_197 {dimension_numbers = #tpu.dot_dimension_numbers<[1], [0], [0], [1], [0, 0, 1, 1], [], []>} : vector<24x256xbf16>, vector<256x128xbf16>, vector<24x128xf32> -> vector<24x128xf32>
    %265 = arith.addf %259, %264 : vector<24x128xf32>
    %c14_198 = arith.constant 14 : index
    %c0_199 = arith.constant 0 : index
    %266 = vector.load %arg11[%c14_198, %c0_199] : memref<40x256xf32, #tpu.memory_space<vmem>>, vector<24x256xf32>
    %267 = arith.truncf %266 : vector<24x256xf32> to vector<24x256xbf16>
    %c8_200 = arith.constant 8 : index
    %c0_201 = arith.constant 0 : index
    %c0_202 = arith.constant 0 : index
    %268 = vector.load %arg8[%c8_200, %c0_201, %c0_202] : memref<9x256x128xbf16, #tpu.memory_space<vmem>>, vector<1x256x128xbf16>
    %269 = vector.shape_cast %268 : vector<1x256x128xbf16> to vector<256x128xbf16>
    %cst_203 = arith.constant dense<0.000000e+00> : vector<24x128xf32>
    %270 = tpu.matmul %267, %269, %cst_203 {dimension_numbers = #tpu.dot_dimension_numbers<[1], [0], [0], [1], [0, 0, 1, 1], [], []>} : vector<24x256xbf16>, vector<256x128xbf16>, vector<24x128xf32> -> vector<24x128xf32>
    %271 = arith.addf %265, %270 : vector<24x128xf32>
    %c0_204 = arith.constant 0 : index
    %c0_205 = arith.constant 0 : index
    %272 = vector.load %arg9[%c0_204, %c0_205] : memref<1x128xf32, #tpu.memory_space<vmem>>, vector<1x128xf32>
    %273 = vector.broadcast %272 : vector<1x128xf32> to vector<24x128xf32>
    %274 = arith.addf %271, %273 : vector<24x128xf32>
    %c0_206 = arith.constant 0 : index
    %c0_207 = arith.constant 0 : index
    %c0_208 = arith.constant 0 : index
    %275 = vector.load %arg10[%c0_206, %c0_207, %c0_208] : memref<1x24x128xf32, #tpu.memory_space<vmem>>, vector<1x24x128xf32>
    %276 = vector.shape_cast %275 : vector<1x24x128xf32> to vector<24x128xf32>
    %277 = vector.shape_cast %274 : vector<24x128xf32> to vector<1x24x128xf32>
    tpu.vector_store %arg10[%c0_206, %c0_207, %c0_208], %277 {strides = array<i32>} : memref<1x24x128xf32, #tpu.memory_space<vmem>>, vector<1x24x128xf32>,
    return
  }
  func.func @transform_0(%arg0: i32) -> (i32, i32, i32) {
    %c0_i32 = arith.constant 0 : i32
    %c0_i32_0 = arith.constant 0 : i32
    %c0_i32_1 = arith.constant 0 : i32
    return %arg0, %c0_i32, %c0_i32_0 : i32, i32, i32
  }
  func.func @transform_1(%arg0: i32) -> (i32, i32) {
    %c0_i32 = arith.constant 0 : i32
    %c0_i32_0 = arith.constant 0 : i32
    %c0_i32_1 = arith.constant 0 : i32
    return %c0_i32, %c0_i32_0 : i32, i32
  }
  func.func @transform_2(%arg0: i32) -> (i32, i32) {
    %c0_i32 = arith.constant 0 : i32
    %c0_i32_0 = arith.constant 0 : i32
    %c0_i32_1 = arith.constant 0 : i32
    return %c0_i32, %c0_i32_0 : i32, i32
  }
  func.func @transform_3(%arg0: i32) -> (i32, i32, i32) {
    %c0_i32 = arith.constant 0 : i32
    %c0_i32_0 = arith.constant 0 : i32
    %c0_i32_1 = arith.constant 0 : i32
    %c0_i32_2 = arith.constant 0 : i32
    return %c0_i32, %c0_i32_0, %c0_i32_1 : i32, i32, i32
  }
  func.func @transform_4(%arg0: i32) -> (i32, i32) {
    %c0_i32 = arith.constant 0 : i32
    %c0_i32_0 = arith.constant 0 : i32
    %c0_i32_1 = arith.constant 0 : i32
    return %c0_i32, %c0_i32_0 : i32, i32
  }
  func.func @transform_5(%arg0: i32) -> (i32, i32, i32) {
    %c0_i32 = arith.constant 0 : i32
    %c0_i32_0 = arith.constant 0 : i32
    %c0_i32_1 = arith.constant 0 : i32
    %c0_i32_2 = arith.constant 0 : i32
    return %c0_i32, %c0_i32_0, %c0_i32_1 : i32, i32, i32
  }
  func.func @transform_6(%arg0: i32) -> (i32, i32) {
    %c0_i32 = arith.constant 0 : i32
    %c0_i32_0 = arith.constant 0 : i32
    %c0_i32_1 = arith.constant 0 : i32
    return %c0_i32, %c0_i32_0 : i32, i32
  }
  func.func @transform_7(%arg0: i32) -> (i32, i32, i32) {
    %c0_i32 = arith.constant 0 : i32
    %c0_i32_0 = arith.constant 0 : i32
    %c0_i32_1 = arith.constant 0 : i32
    %c0_i32_2 = arith.constant 0 : i32
    return %c0_i32, %c0_i32_0, %c0_i32_1 : i32, i32, i32
  }
  func.func @transform_8(%arg0: i32) -> (i32, i32) {
    %c0_i32 = arith.constant 0 : i32
    %c0_i32_0 = arith.constant 0 : i32
    %c0_i32_1 = arith.constant 0 : i32
    return %c0_i32, %c0_i32_0 : i32, i32
  }
  func.func @transform_9(%arg0: i32) -> (i32, i32, i32) {
    %c0_i32 = arith.constant 0 : i32
    %c0_i32_0 = arith.constant 0 : i32
    %c0_i32_1 = arith.constant 0 : i32
    return %arg0, %c0_i32, %c0_i32_0 : i32, i32, i32
  }
}

</mosaic_0001>

<bundles_post_ra>
// kernel: discriminator_forward.3
= control target key start
LH: loop header
LB: loop body
LE: loop exit
PB: predicated region body
PF: predicated region fallthrough
CT: control target
= control target key end

     0   :  { %8 = vsyncpa [#allocation3], 0  ;;  %s6399_s0 = inlined_call_operand.vmem [shape: bf16[2,328,8], index: 0, kind: input, shape index: {}]   ;;  %s6400_s1 = inlined_call_operand.hbm [shape: bf16[9,8,32], index: 1, kind: input, shape index: {}]   ;;  %s6401_s2 = inlined_call_operand.hbm [shape: f32[1,32], index: 2, kind: input, shape index: {}]   ;;  %s6402_s3 = inlined_call_operand.vmem [shape: bf16[2,288,32], index: 3, kind: output, shape index: {}]  }
   0x1   :  { %9 = vsyncpa [#allocation5], 0  ;;  %s5381_s12 = smov 0  }
   0x2 LB: > { %s5387_s13 = sadd.s32 4294967295, %s5355_s12   ;;  %p4059_p0 = scmp.ge.s32.totalorder %s5355_s12, 1  ;;  %s5355_s12 = sphi %s5381_s12, %s15_s12  }
   0x3   : > { %p114_p1 = scmp.lt.s32.totalorder %s5355_s12, 3  ;;  %s5357_s14 = smov [#allocation2]  }
   0x4   : > { %s126_s15 = sshll.u32 %s5357_s14, 4  ;;  %p6403_p3 = scmp.eq.s32.totalorder %s5387_s13, 0  ;;  %s127_s15 = int_to_ptr.vmem [resolvable:$true] %s126_s15 }
   0x5   : > { %p5391_p2 = pnand %p4059_p0, %p114_p1  ;;  %s5358_s17 = smov [#allocation4]  }
   0x6   : > { %s140_s18 = sshll.u32 %s5358_s17, 4  ;;  %s5285_s22 = scalar_lea.hbm %s6400_s1, 576  ;;  %s5404_s18 = int_to_ptr.vmem [resolvable:$true] %s140_s18 }
   0x7   : > { %s6405_s16 = scalar_select %p5391_p2, 1, 0 }
   0x8   : > { %p5190_p4 = pneg %p5391_p2  ;;  %p5286_p6 = scmp.ne.s32.totalorder %s6400_s1, %s5285_s22 }
   0x9   : > { %p5292_p10 = scmp.lt.u32.totalorder %s5285_s22, %s6400_s1 }
   0xa   : > { %p5400_p5 = pnand %p6403_p3, %p5190_p4 }
   0xc   : > { %p5287_p7 = pneg %p5400_p5 }
   0xe   : > { %p5288_p8 = pnand %p5287_p7, %p5286_p6 }
  0x10   : > { %p5289_p9 = pneg %p5288_p8 }
  0x12   : > { %p5294_p11 = pnand %p5292_p10, %p5289_p9 }
  0x14   : > { %5297 = shalt.err (!%p5294_p11)
}
  0x15   : > { %s5298_s27 = scalar_lea.vmem %s127_s15, 576  ;;  %p5306_p1 = scmp.lt.s32.totalorder %s127_s15, %s127_s15 }
  0x16   : > { %p5299_p12 = scmp.ne.s32.totalorder %s127_s15, %s5298_s27  ;;  %p5307_p4 = scmp.lt.s32.totalorder %s5298_s27, %s5298_s27 }
  0x18   : > { %p5301_p13 = pnand %p5299_p12, %p5287_p7  ;;  %p5308_p3 = por %p5307_p4, %p5306_p1 }
  0x1a   : > { %p5302_p0 = pneg %p5301_p13 }
  0x1c   : > { %p5309_p2 = pnand %p5308_p3, %p5302_p0 }
  0x1e   : > { %5312 = shalt.err (!%p5309_p2)
}
  0x1f   : > { %s5359_s28 = smov 64   ;;  %s5360_s29 = smov 4  }
  0x20   : > { %5193 = dma.hbm_to_vmem [thread:$0]  (!%p5400_p5), %s6400_s1, 576, %s127_s15, [#allocation3], %s5359_s28, %s5359_s28, %s5360_s29  }
  0x21   : > { %s5313_s7 = scalar_lea.hbm %s6401_s2, 16 }
  0x22   : > { %p5314_p6 = scmp.ne.s32.totalorder %s6401_s2, %s5313_s7  ;;  %p5320_p8 = scmp.lt.u32.totalorder %s5313_s7, %s6401_s2 }
  0x24   : > { %p5316_p2 = pnand %p5314_p6, %p5287_p7 }
  0x26   : > { %p5317_p3 = pneg %p5316_p2 }
  0x28   : > { %p5322_p9 = pnand %p5320_p8, %p5317_p3 }
  0x2a   : > { %5325 = shalt.err (!%p5322_p9)
}
  0x2b   : > { %s5326_s14 = scalar_lea.vmem %s5404_s18, 16  ;;  %s5333_s15 = scalar_lea.vmem %s5404_s18, 32 }
  0x2c   : > { %p5327_p10 = scmp.ne.s32.totalorder %s5404_s18, %s5326_s14  ;;  %p5334_p13 = scmp.lt.s32.totalorder %s5404_s18, %s5404_s18 }
  0x2d   : > { %p5335_p0 = scmp.lt.s32.totalorder %s5333_s15, %s5326_s14 }
  0x2e   : > { %p5329_p11 = pnand %p5327_p10, %p5287_p7 }
  0x2f   : > { %p5336_p1 = por %p5335_p0, %p5334_p13 }
  0x30   : > { %p5330_p12 = pneg %p5329_p11 }
  0x32   : > { %p5337_p4 = pnand %p5336_p1, %p5330_p12 }
  0x34   : > { %5340 = shalt.err (!%p5337_p4)
}
  0x35   : > { %5196 = dma.hbm_to_vmem [thread:$0]  (!%p5400_p5), %s6401_s2, 16, %s5404_s18, [#allocation5]  }
  0x36   : > { %p6407_p6 = scmp.ne.s32.totalorder %s6405_s16, 0 }
  0x37   : > { %p6408_p7 = scmp.eq.s32.totalorder (!%p6407_p6), %s5387_s13, 0 }
  0x38   : > { %161 = sbr.rel (%p6407_p6) target bundleno = 633 (0x279), region = 32 }
  0x3f   : > { %5346 = dma.done.wait (%p6408_p7), [#allocation3], 576   ;;  %p6409_p2 = pmov %p6408_p7 }
  0x41   : > { %5348 = vsyncadd (%p6409_p2), [#allocation3], 4294966720  ;;  %p6410_p3 = pmov %p6409_p2 }
  0x42   : > { %p6411_p8 = pmov %p6409_p2 }
  0x43   : > { %5350 = dma.done.wait (%p6410_p3), [#allocation5], 16  }
  0x44   : > { %5352 = vsyncadd (%p6411_p8), [#allocation5], 4294967280  ;;  %p189_p9 = scmp.lt.s32.totalorder %s5387_s13, 1  ;;  %vm537_vm0 = vcmask 1043456   ;;  %vm333_vm1 = vsmask.f32 7424 }
  0x45   : > { %v5474_v0 = vld [vmem:[#allocation2 + $0x10] sm:$0xf]  ;;  %v239_v1 = vld [vmem:[#allocation2 + $0x4] sm:$0xf]  ;;  %vm482_vm2 = vcmask 64512   ;;  %vm2140_vm4 = vcmask 1045504  }
  0x46   : > { %s6413_s13 = smov (!%p189_p9, %s5387_s13), 1  ;;  %5174 = vmatprep.subr.msk.bf16.mxu0 %vm537_vm0, %v5474_v0  ;;  %5170 = vmatprep.subr.msk.bf16.mxu1 %vm537_vm0, %v239_v1  ;;  %v5482_v3 = vsel %vm537_vm0, %v5474_v0, 0  ;;  %v539_v4 = vsel %vm537_vm0, %v239_v1, 0  ;;  %vm1693_vm3 = vsmask.f32 6400  ;;  %vm940_vm5 = vcmask 1046528  }
  0x47   : > { %s5180_s16 = smul.u32 164, %s6413_s13  ;;  %4691 = vmatpush3.bf16.msra.mxu0 %v5482_v3  ;;  %4539 = vmatpush3.bf16.msra.mxu1 %v539_v4  ;;  %v2136_v17 = vld [vmem:[#allocation2 + $0x14] sm:$0xf]  ;;  %v236_v40 = vld [vmem:[#allocation2] sm:$0xf]  ;;  %vm3340_vm7 = vcmask 1044480  }
  0x48   : > { %5176 = vmatprep.subr.msk.bf16.mxu0 %vm537_vm0, %v2136_v17  ;;  %v2233_v39 = vsel %vm537_vm0, %v2136_v17, 0  ;;  %5171 = vmatprep.subr.msk.bf16.mxu1 %vm537_vm0, %v236_v40  ;;  %v755_v53 = vsel %vm537_vm0, %v236_v40, 0  ;;  %vm2893_vm6 = vsmask.f32 5376  ;;  %s5181_s22 = smul.u32 144, %s6413_s13  ;;  %vm3943_vm10 = vcmask 257024  }
  0x49   : > { %s5472_s21 = scalar_lea.vmem %s6399_s0, %s5180_s16 }
  0x4a   : > { %v200_v2 = vld [vmem:[%s5472_s21] sm:$0xf]  ;;  %v5486_v5 = vld [vmem:[%s5472_s21 + $0x4] sm:$0xf]  ;;  %v5493_v7 = vld [vmem:[%s5472_s21 + $0x8] sm:$0xff]   ;;  %s6278_s25 = scalar_lea.vmem %s6402_s3, %s5181_s22 }
  0x4b   : > { %v5490_v6 = vcombine.low %v200_v2, %v5486_v5  ;;  %v1248_v8 = vld [vmem:[%s5472_s21 + $0x8] sm:$0xe]  ;;  %v5497_v9 = vld [vmem:[%s5472_s21 + $0xc] sm:$0xf]  ;;  %v342_v12 = vshll.u32 %v5493_v7, 16  ;;  %v346_v13 = vshrl.u32 %v5493_v7, 16 }
  0x4c   : > { %v5504_v14 = vld [vmem:[%s5472_s21 + $0x10] sm:$0xff]   ;;  %v5510_v16 = vcombine.low %v1248_v8, %v5497_v9  ;;  %v5519_v25 = vld [vmem:[%s5472_s21 + $0x18] sm:$0xff]   ;;  %v5526_v35 = vld [vmem:[%s5472_s21 + $0x20] sm:$0xff]  }
  0x4d   : > { %v335_v10 = vshrl.u32 %v5490_v6, 16  ;;  %v337_v11 = vshll.u32 %v5490_v6, 16  ;;  %v5507_v15 = vld [vmem:[%s5472_s21 + $0x10] sm:$0xff]   ;;  %v344_v19 = vrot.slane %v342_v12, 1  ;;  %v1703_v20 = vshrl.u32 %v5504_v14, 16  ;;  %v5523_v34 = vld [vmem:[%s5472_s21 + $0x18] sm:$0xff]  }
  0x4e   : > { %v1706_v21 = vshll.u32 %v5504_v14, 16  ;;  %v1695_v22 = vshrl.u32 %v5510_v16, 16  ;;  %v1698_v23 = vshll.u32 %v5510_v16, 16  ;;  %v350_v24 = vshll.u32 %v5507_v15, 16  ;;  %v5541_v51 = vld [vmem:[%s5472_s21 + $0x20] sm:$0xff]   ;;  %v5546_v54 = vld [vmem:[%s5472_s21 + $0x28] sm:$0xff]  }
  0x4f   : > { %v339_v18 = vrot.slane %v337_v11, 1  ;;  %v348_v27 = vor.u32 %v346_v13, %v344_v19  ;;  %v1705_v28 = vrot.slane %v1703_v20, 1  ;;  %v1712_v33 = vshrl.u32 %v5519_v25, 16  ;;  %v5550_v59 = vld [vmem:[%s5472_s21 + $0x28] sm:$0xff]   ;;  %v5562_v17 = vld [vmem:[%s5472_s21 + $0x30] sm:$0xff]  }
  0x50   : > { %v1708_v29 = vrot.slane %v1706_v21, 2  ;;  %v1697_v30 = vrot.slane %v1695_v22, 1  ;;  %v1700_v31 = vrot.slane %v1698_v23, 2  ;;  %v352_v32 = vrot.slane %v350_v24, 1  ;;  %v5570_v21 = vld [vmem:[%s5472_s21 + $0x38] sm:$0xff]  }
  0x51   : > { %v340_v26 = vor.u32 %v339_v18, %v335_v10  ;;  %v1715_v38 = vshll.u32 %v5519_v25, 16  ;;  %v1714_v43 = vrot.slane %v1712_v33, 1  ;;  %v354_v44 = vshrl.u32 %v5507_v15, 16  ;;  %v5565_v18 = vld [vmem:[%s5472_s21 + $0x30] sm:$0xff]  }
  0x52   : > { %v1709_v37 = vor.u32 %v1708_v29, %v1705_v28  ;;  %v1701_v41 = vor.u32 %v1700_v31, %v1697_v30  ;;  %v353_v42 = vsel %vm333_vm1, %v348_v27, %v352_v32  ;;  %v358_v46 = vshll.u32 %v5523_v34, 16  ;;  %v5575_v27 = vld [vmem:[%s5472_s21 + $0x38] sm:$0xff]  }
  0x53   : > { %v345_v36 = vsel %vm333_vm1, %v340_v26, %v344_v19  ;;  %v1717_v45 = vrot.slane %v1715_v38, 2  ;;  %v1721_v47 = vshrl.u32 %v5526_v35, 16  ;;  %v1724_v48 = vshll.u32 %v5526_v35, 16  ;;  %v5586_v38 = vld [vmem:[%s5472_s21 + $0x40] sm:$0xff]  }
  0x54   : > { %4540 = vmatprep.mubr.msk.bf16.mxu1 %vm482_vm2, %v345_v36  ;;  %v1710_v49 = vsel %vm1693_vm3, %v1701_v41, %v1709_v37  ;;  %v356_v50 = vor.u32 %v354_v44, %v352_v32  ;;  %v362_v52 = vshrl.u32 %v5523_v34, 16  ;;  %v360_v56 = vrot.slane %v358_v46, 1 }
  0x55   : > { %4541 = vmatmul.mubr.msk.bf16.vlgmr.msra.gmra.mrb[0].mxu1 %vm482_vm2, %v353_v42  ;;  %4692 = vmatprep.mubr.msk.bf16.mxu0 %vm482_vm2, %v1710_v49  ;;  %v1718_v55 = vor.u32 %v1717_v45, %v1714_v43  ;;  %v1723_v57 = vrot.slane %v1721_v47, 1  ;;  %v1726_v58 = vrot.slane %v1724_v48, 2  ;;  %v366_v60 = vshll.u32 %v5541_v51, 16 }
  0x56   : > { %4577 = vmatpush3.bf16.msra.mxu1 %v755_v53  ;;  %v1730_v61 = vshrl.u32 %v5546_v54, 16  ;;  %v1733_v62 = vshll.u32 %v5546_v54, 16  ;;  %v370_v63 = vshrl.u32 %v5541_v51, 16  ;;  %v361_v2 = vsel %vm333_vm1, %v356_v50, %v360_v56  ;;  %v5595_v50 = vld [vmem:[%s5472_s21 + $0x40] sm:$0xff]   ;;  %v5599_v53 = vld [vmem:[%s5472_s21 + $0x48] sm:$0xff]  }
  0x57   : > { %v1719_v1 = vsel %vm1693_vm3, %v1709_v37, %v1718_v55  ;;  %v1727_v4 = vor.u32 %v1726_v58, %v1723_v57  ;;  %v364_v8 = vor.u32 %v362_v52, %v360_v56  ;;  %4544 = vmatprep.mubr.msk.bf16.mxu1 %vm482_vm2, %v361_v2  ;;  %v368_v10 = vrot.slane %v366_v60, 1 }
  0x58   : > { %4693 = vmatmul.mubr.msk.bf16.vlgmr.msra.gmra.mrb[0].mxu0 %vm482_vm2, %v1719_v1  ;;  %v1732_v11 = vrot.slane %v1730_v61, 1  ;;  %v1735_v12 = vrot.slane %v1733_v62, 2  ;;  %v374_v13 = vshll.u32 %v5550_v59, 16  ;;  %v378_v20 = vshrl.u32 %v5550_v59, 16  ;;  %v5606_v1 = vld [vmem:[%s5472_s21 + $0x48] sm:$0xff]  }
  0x59   : > { %4729 = vmatpush3.bf16.msra.mxu0 %v2233_v39  ;;  %v1728_v19 = vsel %vm1693_vm3, %v1718_v55, %v1727_v4  ;;  %v369_v22 = vsel %vm333_vm1, %v364_v8, %v368_v10  ;;  %v372_v24 = vor.u32 %v370_v63, %v368_v10  ;;  %v1739_v28 = vshrl.u32 %v5562_v17, 16  ;;  %v5612_v8 = vld [vmem:[%s5472_s21 + $0x50] sm:$0xff]  }
  0x5a   : > { %4696 = vmatprep.mubr.msk.bf16.mxu0 %vm482_vm2, %v1728_v19  ;;  %v1736_v23 = vor.u32 %v1735_v12, %v1732_v11  ;;  %v376_v26 = vrot.slane %v374_v13, 1  ;;  %v1742_v29 = vshll.u32 %v5562_v17, 16  ;;  %v382_v30 = vshll.u32 %v5565_v18, 16  ;;  %v5617_v19 = vld [vmem:[%s5472_s21 + $0x50] sm:$0xff]  }
  0x5b   : > { %v1748_v31 = vshrl.u32 %v5570_v21, 16  ;;  %v1751_v37 = vshll.u32 %v5570_v21, 16  ;;  %v1741_v39 = vrot.slane %v1739_v28, 1  ;;  %v386_v44 = vshrl.u32 %v5565_v18, 16 }
  0x5c   : > { %v1737_v32 = vsel %vm1693_vm3, %v1727_v4, %v1736_v23  ;;  %v377_v33 = vsel %vm333_vm1, %v372_v24, %v376_v26  ;;  %v380_v36 = vor.u32 %v378_v20, %v376_v26  ;;  %v1744_v40 = vrot.slane %v1742_v29, 2 }
  0x5d   : > { %4545 = vmatmul.mubr.msk.bf16.gmra.mrb[4].mxu1 %vm482_vm2, %v369_v22  ;;  %v384_v41 = vrot.slane %v382_v30, 1  ;;  %v1750_v42 = vrot.slane %v1748_v31, 1  ;;  %v1753_v43 = vrot.slane %v1751_v37, 2  ;;  %v390_v45 = vshll.u32 %v5575_v27, 16  ;;  %v5625_v30 = vld [vmem:[%s5472_s21 + $0x58] sm:$0xff]  }
  0x5e   : > { %4548 = vmatprep.mubr.msk.bf16.mxu1 %vm482_vm2, %v377_v33  ;;  %v1757_v46 = vshrl.u32 %v5586_v38, 16  ;;  %v1745_v47 = vor.u32 %v1744_v40, %v1741_v39  ;;  %v1760_v49 = vshll.u32 %v5586_v38, 16  ;;  %v394_v52 = vshrl.u32 %v5575_v27, 16  ;;  %v5629_v37 = vld [vmem:[%s5472_s21 + $0x58] sm:$0xff]  }
  0x5f   : > { %v385_v48 = vsel %vm333_vm1, %v380_v36, %v384_v41  ;;  %v1754_v55 = vor.u32 %v1753_v43, %v1750_v42  ;;  %v388_v56 = vor.u32 %v386_v44, %v384_v41  ;;  %v392_v57 = vrot.slane %v390_v45, 1  ;;  %v5637_v44 = vld [vmem:[#allocation2 + $0x18] sm:$0xf] }
  0x60   : > { %4697 = vmatmul.mubr.msk.bf16.gmra.mrb[4].mxu0 %vm482_vm2, %v1737_v32  ;;  %v1759_v58 = vrot.slane %v1757_v46, 1  ;;  %v1746_v60 = vsel %vm1693_vm3, %v1736_v23, %v1745_v47  ;;  %v1762_v61 = vrot.slane %v1760_v49, 2  ;;  %v398_v62 = vshll.u32 %v5595_v50, 16  ;;  %5177 = vmatprep.subr.msk.bf16.mxu0 %vm537_vm0, %v5637_v44 }
  0x61   : > { %v1766_v63 = vshrl.u32 %v5599_v53, 16  ;;  %4700 = vmatprep.mubr.msk.bf16.mxu0 %vm482_vm2, %v1746_v60  ;;  %v393_v2 = vsel %vm333_vm1, %v388_v56, %v392_v57  ;;  %v1769_v4 = vshll.u32 %v5599_v53, 16  ;;  %v396_v11 = vor.u32 %v394_v52, %v392_v57  ;;  %v2134_v52 = vld [vmem:[%s5472_s21 + $0x8] sm:$0xc]  ;;  %v5648_v56 = vld [vmem:[%s5472_s21 + $0x60] sm:$0xff]  }
  0x62   : > { %v1763_v10 = vor.u32 %v1762_v61, %v1759_v58  ;;  %v400_v12 = vrot.slane %v398_v62, 1  ;;  %v402_v13 = vshrl.u32 %v5595_v50, 16  ;;  %v406_v22 = vshll.u32 %v5606_v1, 16 }
  0x63   : > { %v1768_v20 = vrot.slane %v1766_v63, 1  ;;  %v1775_v23 = vshrl.u32 %v5612_v8, 16  ;;  %v1778_v24 = vshll.u32 %v5612_v8, 16  ;;  %v1755_v26 = vsel %vm1693_vm3, %v1745_v47, %v1754_v55 }
  0x64   : > { %v1771_v28 = vrot.slane %v1769_v4, 2  ;;  %v404_v29 = vor.u32 %v402_v13, %v400_v12  ;;  %v1764_v31 = vsel %vm1693_vm3, %v1754_v55, %v1763_v10  ;;  %v408_v32 = vrot.slane %v406_v22, 1 }
  0x65   : > { %4549 = vmatmul.mubr.msk.bf16.gmra.mrb[8].mxu1 %vm482_vm2, %v385_v48  ;;  %v1777_v33 = vrot.slane %v1775_v23, 1  ;;  %v1780_v36 = vrot.slane %v1778_v24, 2  ;;  %v410_v39 = vshrl.u32 %v5606_v1, 16  ;;  %v414_v40 = vshll.u32 %v5617_v19, 16 }
  0x66   : > { %4552 = vmatprep.mubr.msk.bf16.mxu1 %vm482_vm2, %v393_v2  ;;  %v401_v41 = vsel %vm333_vm1, %v396_v11, %v400_v12  ;;  %v1784_v42 = vshrl.u32 %v5625_v30, 16  ;;  %v1787_v43 = vshll.u32 %v5625_v30, 16  ;;  %v1772_v45 = vor.u32 %v1771_v28, %v1768_v20  ;;  %v5653_v2 = vld [vmem:[%s5472_s21 + $0x68] sm:$0xff]  }
  0x67   : > { %v409_v46 = vsel %vm333_vm1, %v404_v29, %v408_v32  ;;  %v418_v47 = vshrl.u32 %v5617_v19, 16  ;;  %v422_v48 = vshll.u32 %v5629_v37, 16  ;;  %v1781_v49 = vor.u32 %v1780_v36, %v1777_v33  ;;  %v5670_v29 = vld [vmem:[%s5472_s21 + $0x70] sm:$0xff]  }
  0x68   : > { %4701 = vmatmul.mubr.msk.bf16.gmra.mrb[8].mxu0 %vm482_vm2, %v1755_v26  ;;  %v416_v55 = vrot.slane %v414_v40, 1  ;;  %v412_v57 = vor.u32 %v410_v39, %v408_v32  ;;  %v1786_v58 = vrot.slane %v1784_v42, 1  ;;  %v1789_v60 = vrot.slane %v1787_v43, 2  ;;  %v5680_v39 = vld [vmem:[%s5472_s21 + $0x78] sm:$0xff]  }
  0x69   : > { %4704 = vmatprep.mubr.msk.bf16.mxu0 %vm482_vm2, %v1764_v31  ;;  %v1773_v61 = vsel %vm1693_vm3, %v1763_v10, %v1772_v45  ;;  %v424_v63 = vrot.slane %v422_v48, 1  ;;  %v1782_v4 = vsel %vm1693_vm3, %v1772_v45, %v1781_v49  ;;  %v4198_v11 = vcombine.low %v2134_v52, %v5497_v9  ;;  %v5672_v31 = vld [vmem:[#allocation2 + $0x8] sm:$0xf] }
  0x6a   : > { %v420_v62 = vor.u32 %v418_v47, %v416_v55  ;;  %v430_v12 = vshll.u32 %v5648_v56, 16  ;;  %v417_v13 = vsel %vm333_vm1, %v412_v57, %v416_v55  ;;  %v426_v20 = vshrl.u32 %v5629_v37, 16  ;;  %5172 = vmatprep.subr.msk.bf16.mxu1 %vm537_vm0, %v5672_v31  ;;  %v5695_v55 = vld [vmem:[%s5472_s21 + $0x80] sm:$0xff]  }
  0x6b   : > { %v5662_v10 = vor.u32 %v1789_v60, %v1786_v58  ;;  %v434_v23 = vshrl.u32 %v5648_v56, 16  ;;  %v438_v24 = vshll.u32 %v5653_v2, 16  ;;  %v2141_v9 = vrot.slane %v4198_v11, 2 }
  0x6c   : > { %v425_v22 = vsel %vm333_vm1, %v420_v62, %v424_v63  ;;  %v2142_v26 = vrot.slane %v5504_v14, 2  ;;  %v432_v28 = vrot.slane %v430_v12, 1  ;;  %v428_v32 = vor.u32 %v426_v20, %v424_v63 }
  0x6d   : > { %4553 = vmatmul.mubr.msk.bf16.gmra.mrb[12].mxu1 %vm482_vm2, %v401_v41  ;;  %v1791_v33 = vsel %vm1693_vm3, %v1781_v49, %v5662_v10  ;;  %v440_v14 = vrot.slane %v438_v24, 1  ;;  %v446_v41 = vshll.u32 %v5670_v29, 16  ;;  %v2144_v43 = vrot.slane %v5519_v25, 2  ;;  %v5718_v24 = vld [vmem:[%s5472_s21 + $0x90] ss:$0 sps:$4 sm:$0x11]  }
  0x6e   : > { %4556 = vmatprep.mubr.msk.bf16.mxu1 %vm482_vm2, %v409_v46  ;;  %v436_v36 = vor.u32 %v434_v23, %v432_v28  ;;  %v2143_v40 = vsel %vm2140_vm4, %v2141_v9, %v2142_v26  ;;  %v433_v42 = vsel %vm333_vm1, %v428_v32, %v432_v28  ;;  %v442_v45 = vshrl.u32 %v5653_v2, 16 }
  0x6f   : > { %v450_v47 = vshrl.u32 %v5670_v29, 16  ;;  %v454_v48 = vshll.u32 %v5680_v39, 16  ;;  %v2146_v49 = vrot.slane %v5526_v35, 2  ;;  %v448_v52 = vrot.slane %v446_v41, 1 }
  0x70   : > { %4705 = vmatmul.mubr.msk.bf16.gmra.mrb[12].mxu0 %vm482_vm2, %v1773_v61  ;;  %v441_v46 = vsel %vm333_vm1, %v436_v36, %v440_v14  ;;  %v444_v25 = vor.u32 %v442_v45, %v440_v14  ;;  %v2145_v57 = vsel %vm2140_vm4, %v2142_v26, %v2144_v43  ;;  %v5700_v61 = vld [vmem:[%s5472_s21 + $0x88] sm:$0xff]   ;;  %v2672_v62 = vsel %vm537_vm0, %v5637_v44, 0 }
  0x71   : > { %4708 = vmatprep.mubr.msk.bf16.mxu0 %vm482_vm2, %v1782_v4  ;;  %v452_v58 = vor.u32 %v450_v47, %v448_v52  ;;  %v456_v60 = vrot.slane %v454_v48, 1  ;;  %v2147_v35 = vsel %vm2140_vm4, %v2144_v43, %v2146_v49  ;;  %v462_v63 = vshll.u32 %v5695_v55, 16  ;;  %v5706_v4 = vld [vmem:[#allocation2 + $0x1c] sm:$0xf] }
  0x72   : > { %v449_v11 = vsel %vm333_vm1, %v444_v25, %v448_v52  ;;  %v2148_v12 = vrot.slane %v5546_v54, 2  ;;  %v466_v44 = vshrl.u32 %v5695_v55, 16  ;;  %v2150_v23 = vrot.slane %v5562_v17, 2  ;;  %v5749_v25 = vld [vmem:[%s5472_s21 + $0x60] sm:$0xff]  }
  0x73   : > { %v457_v20 = vsel %vm333_vm1, %v452_v58, %v456_v60  ;;  %v464_v54 = vrot.slane %v462_v63, 1  ;;  %v474_v36 = vshrl.u32 %v5700_v61, 16  ;;  %v478_v14 = vshll.u32 %v5718_v24, 16  ;;  %v5757_v58 = vld [vmem:[#allocation2 + $0xc] sm:$0xf] }
  0x74   : > { %v2149_v26 = vsel %vm2140_vm4, %v2146_v49, %v2148_v12 }
  0x75   : > { %4557 = vmatmul.mubr.msk.bf16.gmra.mrb[16].mxu1 %vm482_vm2, %v417_v13  ;;  %v458_v13 = vshrl.u32 %v5680_v39, 16  ;;  %v468_v28 = vor.u32 %v466_v44, %v464_v54  ;;  %v480_v45 = vrot.slane %v478_v14, 1 }
  0x76   : > { %4560 = vmatprep.mubr.msk.bf16.mxu1 %vm482_vm2, %v425_v22  ;;  %v470_v22 = vshll.u32 %v5700_v61, 16 }
  0x77   : > { %v460_v9 = vor.u32 %v458_v13, %v456_v60  ;;  %v5765_v60 = vld [vmem:[%s5472_s21 + $0x68] sm:$0xff]   ;;  %v5787_v13 = vld [vmem:[%s5472_s21 + $0x80] sm:$0xff]  }
  0x78   : > { %4709 = vmatmul.mubr.msk.bf16.gmra.mrb[16].mxu0 %vm482_vm2, %v1791_v33  ;;  %v472_v32 = vrot.slane %v470_v22, 1  ;;  %v2151_v33 = vsel %vm2140_vm4, %v2148_v12, %v2150_v23  ;;  %v2170_v44 = vrot.slane %v5787_v13, 2 }
  0x79   : > { %4730 = vmatprep.mubr.msk.bf16.mxu0 %vm482_vm2, %v2143_v40  ;;  %v465_v17 = vsel %vm333_vm1, %v460_v9, %v464_v54  ;;  %v2152_v40 = vrot.slane %v5570_v21, 2  ;;  %v2156_v21 = vrot.slane %v5599_v53, 2  ;;  %v2160_v53 = vrot.slane %v5625_v30, 2  ;;  %v5803_v9 = vld [vmem:[%s5472_s21 + $0x90] sm:$0xff]  }
  0x7a   : > { %v473_v41 = vsel %vm333_vm1, %v468_v28, %v472_v32  ;;  %v476_v43 = vor.u32 %v474_v36, %v472_v32  ;;  %v2174_v28 = vrot.slane %v5803_v9, 2  ;;  %v2448_v32 = vld [vmem:[%s5472_s21 + $0x10] sm:$0xc]  ;;  %v5819_v36 = vld [vmem:[%s5472_s21 + $0x98] ss:$0 sps:$4 sm:$0x33]  }
  0x7c   : > { %v481_v48 = vsel %vm333_vm1, %v476_v43, %v480_v45 }
  0x7d   : > { %4561 = vmatmul.mubr.msk.bf16.gmra.mrb[20].mxu1 %vm482_vm2, %v433_v42  ;;  %v2154_v42 = vrot.slane %v5586_v38, 2  ;;  %v2158_v38 = vrot.slane %v5612_v8, 2  ;;  %v1033_v8 = vsel %vm537_vm0, %v5672_v31, 0  ;;  %v5771_v31 = vld [vmem:[%s5472_s21 + $0x70] sm:$0xff]  }
  0x7e   : > { %4564 = vmatprep.mubr.msk.bf16.mxu1 %vm482_vm2, %v441_v46  ;;  %v2153_v46 = vsel %vm2140_vm4, %v2150_v23, %v2152_v40  ;;  %v5799_v23 = vld [vmem:[%s5472_s21 + $0x88] sm:$0xff]  }
  0x7f   : > { %v2155_v47 = vsel %vm2140_vm4, %v2152_v40, %v2154_v42  ;;  %v2157_v49 = vsel %vm2140_vm4, %v2154_v42, %v2156_v21  ;;  %v2159_v52 = vsel %vm2140_vm4, %v2156_v21, %v2158_v38  ;;  %v2176_v42 = vrot.slane %v5819_v36, 2  ;;  %v5843_v21 = vld [vmem:[%s5472_s21 + $0x28] sm:$0xff]  }
  0x80   : > { %4731 = vmatmul.mubr.msk.bf16.vlgmr.msra.gmra.mrb[0].mxu0 %vm482_vm2, %v2145_v57  ;;  %v2162_v57 = vrot.slane %v5749_v25, 2 }
  0x81   : > { %4767 = vmatpush3.bf16.msra.mxu0 %v2672_v62  ;;  %4734 = vmatprep.mubr.msk.bf16.mxu0 %vm482_vm2, %v2147_v35  ;;  %v2164_v62 = vrot.slane %v5765_v60, 2  ;;  %v2166_v35 = vrot.slane %v5771_v31, 2 }
  0x82   : > { %5178 = vmatprep.subr.msk.bf16.mxu0 %vm537_vm0, %v5706_v4  ;;  %v2163_v30 = vsel %vm2140_vm4, %v2160_v53, %v2162_v57 }
  0x83   : > { %v2165_v63 = vsel %vm2140_vm4, %v2162_v57, %v2164_v62  ;;  %v2167_v12 = vsel %vm2140_vm4, %v2164_v62, %v2166_v35 }
  0x85   : > { %4565 = vmatmul.mubr.msk.bf16.gmra.mrb[24].mxu1 %vm482_vm2, %v449_v11  ;;  %v5783_v11 = vld [vmem:[%s5472_s21 + $0x78] sm:$0xff]  }
  0x86   : > { %4568 = vmatprep.mubr.msk.bf16.mxu1 %vm482_vm2, %v457_v20  ;;  %v2168_v20 = vrot.slane %v5783_v11, 2 }
  0x88   : > { %4735 = vmatmul.mubr.msk.bf16.gmra.mrb[4].mxu0 %vm482_vm2, %v2149_v26  ;;  %v2169_v22 = vsel %vm2140_vm4, %v2166_v35, %v2168_v20  ;;  %v2171_v54 = vsel %vm2140_vm4, %v2168_v20, %v2170_v44  ;;  %v2172_v26 = vrot.slane %v5799_v23, 2  ;;  %v5881_v20 = vld [vmem:[%s5472_s21 + $0x48] sm:$0xff]  }
  0x89   : > { %4738 = vmatprep.mubr.msk.bf16.mxu0 %vm482_vm2, %v2151_v33  ;;  %v5813_v33 = vld [vmem:[%s5472_s21 + $0x14] sm:$0xf] }
  0x8a   : > { %v2175_v14 = vsel %vm2140_vm4, %v2172_v26, %v2174_v28  ;;  %v5823_v40 = vcombine.low %v2448_v32, %v5813_v33  ;;  %v5895_v32 = vld [vmem:[%s5472_s21 + $0x50] sm:$0xff]  }
  0x8c   : > { %v2580_v43 = vrot.slane %v5823_v40, 2 }
  0x8d   : > { %4569 = vmatmul.mubr.msk.bf16.gmra.mrb[28].mxu1 %vm482_vm2, %v465_v17  ;;  %v2173_v17 = vsel %vm2140_vm4, %v2170_v44, %v2172_v26  ;;  %v934_v44 = vld [vmem:[%s5472_s21] sm:$0xe]  ;;  %v2593_v26 = vrot.slane %v5881_v20, 2 }
  0x8e   : > { %4572 = vmatprep.mubr.msk.bf16.mxu1 %vm482_vm2, %v473_v41  ;;  %v5826_v41 = vld [vmem:[%s5472_s21 + $0x18] sm:$0xff]  }
  0x8f   : > { %v2581_v45 = vrot.slane %v5826_v41, 2 }
  0x90   : > { %4739 = vmatmul.mubr.msk.bf16.gmra.mrb[8].mxu0 %vm482_vm2, %v2153_v46  ;;  %v2177_v46 = vsel %vm2140_vm4, %v2174_v28, %v2176_v42 }
  0x91   : > { %4742 = vmatprep.mubr.msk.bf16.mxu0 %vm482_vm2, %v2155_v47  ;;  %v5839_v47 = vld [vmem:[%s5472_s21 + $0x20] sm:$0xff]  }
  0x95   : > { %4573 = vmatmul.mubr.msk.bf16.gmra.mrb[32].mxu1 %vm482_vm2, %v481_v48  ;;  %v2582_v48 = vsel %vm2140_vm4, %v2580_v43, %v2581_v45  ;;  %v2595_v43 = vrot.slane %v5895_v32, 2 }
  0x96   : > { %4578 = vmatprep.mubr.msk.bf16.mxu1 %vm482_vm2, %v5490_v6  ;;  %v2161_v6 = vsel %vm2140_vm4, %v2158_v38, %v2160_v53  ;;  %v2583_v38 = vrot.slane %v5839_v47, 2  ;;  %v5855_v53 = vld [vmem:[%s5472_s21 + $0x30] sm:$0xff]  }
  0x97   : > { %v2587_v62 = vrot.slane %v5855_v53, 2 }
  0x98   : > { %4743 = vmatmul.mubr.msk.bf16.gmra.mrb[12].mxu0 %vm482_vm2, %v2157_v49  ;;  %v2585_v49 = vrot.slane %v5843_v21, 2 }
  0x99   : > { %4746 = vmatprep.mubr.msk.bf16.mxu0 %vm482_vm2, %v2159_v52  ;;  %v2584_v52 = vsel %vm2140_vm4, %v2581_v45, %v2583_v38 }
  0x9a   : > { %v2586_v57 = vsel %vm2140_vm4, %v2583_v38, %v2585_v49  ;;  %v5913_v38 = vld [vmem:[%s5472_s21 + $0x60] sm:$0xff]  }
  0x9d   : > { %4579 = vmatmul.mubr.msk.bf16.vlgmr.msra.gmra.mrb[0].mxu1 %vm482_vm2, %v5493_v7 }
  0x9e   : > { %4582 = vmatprep.mubr.msk.bf16.mxu1 %vm482_vm2, %v5507_v15  ;;  %4615 = vmatpush3.bf16.msra.mxu1 %v1033_v8  ;;  %v3119_v8 = vsel %vm537_vm0, %v5706_v4, 0  ;;  %v2588_v4 = vsel %vm2140_vm4, %v2585_v49, %v2587_v62  ;;  %v946_v49 = vrot.slane %v5523_v34, 1 }
  0x9f   : > { %5173 = vmatprep.subr.msk.bf16.mxu1 %vm537_vm0, %v5757_v58 }
  0xa0   : > { %4747 = vmatmul.mubr.msk.bf16.gmra.mrb[16].mxu0 %vm482_vm2, %v2161_v6  ;;  %v5861_v6 = vld [vmem:[%s5472_s21 + $0x38] sm:$0xff]  }
  0xa1   : > { %4750 = vmatprep.mubr.msk.bf16.mxu0 %vm482_vm2, %v2163_v30  ;;  %v5863_v30 = vld [vmem:[#allocation2 + $0x20] sm:$0xf]  ;;  %v2589_v35 = vrot.slane %v5861_v6, 2 }
  0xa5   : > { %4583 = vmatmul.mubr.msk.bf16.gmra.mrb[4].mxu1 %vm482_vm2, %v5523_v34 }
  0xa6   : > { %4586 = vmatprep.mubr.msk.bf16.mxu1 %vm482_vm2, %v5541_v51 }
  0xa8   : > { %4751 = vmatmul.mubr.msk.bf16.gmra.mrb[20].mxu0 %vm482_vm2, %v2165_v63  ;;  %v5877_v63 = vld [vmem:[%s5472_s21 + $0x40] sm:$0xff]  }
  0xa9   : > { %4754 = vmatprep.mubr.msk.bf16.mxu0 %vm482_vm2, %v2167_v12  ;;  %v2590_v12 = vsel %vm2140_vm4, %v2587_v62, %v2589_v35 }
  0xad   : > { %4587 = vmatmul.mubr.msk.bf16.gmra.mrb[8].mxu1 %vm482_vm2, %v5550_v59 }
  0xae   : > { %4590 = vmatprep.mubr.msk.bf16.mxu1 %vm482_vm2, %v5565_v18 }
  0xb0   : > { %4755 = vmatmul.mubr.msk.bf16.gmra.mrb[24].mxu0 %vm482_vm2, %v2169_v22  ;;  %v2591_v22 = vrot.slane %v5877_v63, 2 }
  0xb1   : > { %4758 = vmatprep.mubr.msk.bf16.mxu0 %vm482_vm2, %v2171_v54  ;;  %v4123_v54 = vcombine.low %v934_v44, %v5486_v5  ;;  %v5900_v5 = vld [vmem:[%s5472_s21 + $0x58] sm:$0xff]   ;;  %v5933_v44 = vld [vmem:[%s5472_s21 + $0x70] sm:$0xff]  }
  0xb2   : > { %v2592_v28 = vsel %vm2140_vm4, %v2589_v35, %v2591_v22  ;;  %v2594_v42 = vsel %vm2140_vm4, %v2591_v22, %v2593_v26  ;;  %v1472_v35 = vsel %vm537_vm0, %v5757_v58, 0  ;;  %v950_v22 = vrot.slane %v5550_v59, 1 }
  0xb5   : > { %4591 = vmatmul.mubr.msk.bf16.gmra.mrb[12].mxu1 %vm482_vm2, %v5575_v27 }
  0xb6   : > { %4594 = vmatprep.mubr.msk.bf16.mxu1 %vm482_vm2, %v5595_v50 }
  0xb8   : > { %4759 = vmatmul.mubr.msk.bf16.gmra.mrb[28].mxu0 %vm482_vm2, %v2173_v17  ;;  %v941_v17 = vrot.slane %v4123_v54, 1  ;;  %v5940_v54 = vld [vmem:[%s5472_s21 + $0x78] sm:$0xff]  }
  0xb9   : > { %4762 = vmatprep.mubr.msk.bf16.mxu0 %vm482_vm2, %v2175_v14  ;;  %v942_v14 = vrot.slane %v5493_v7, 1  ;;  %v944_v7 = vrot.slane %v5507_v15, 1  ;;  %v2599_v15 = vrot.slane %v5913_v38, 2  ;;  %v2605_v59 = vrot.slane %v5940_v54, 2 }
  0xbb   : > { %v943_v45 = vsel %vm940_vm5, %v941_v17, %v942_v14  ;;  %v947_v62 = vsel %vm940_vm5, %v944_v7, %v946_v49 }
  0xbd   : > { %4595 = vmatmul.mubr.msk.bf16.gmra.mrb[16].mxu1 %vm482_vm2, %v5606_v1 }
  0xbe   : > { %4598 = vmatprep.mubr.msk.bf16.mxu1 %vm482_vm2, %v5617_v19 }
  0xc0   : > { %4763 = vmatmul.mubr.msk.bf16.gmra.mrb[32].mxu0 %vm482_vm2, %v2177_v46  ;;  %v2597_v46 = vrot.slane %v5900_v5, 2 }
  0xc1   : > { %4768 = vmatprep.mubr.msk.bf16.mxu0 %vm482_vm2, %v2582_v48  ;;  %v2596_v48 = vsel %vm2140_vm4, %v2593_v26, %v2595_v43  ;;  %v2603_v26 = vrot.slane %v5933_v44, 2 }
  0xc5   : > { %4599 = vmatmul.mubr.msk.bf16.gmra.mrb[20].mxu1 %vm482_vm2, %v5629_v37 }
  0xc6   : > { %4602 = vmatprep.mubr.msk.bf16.mxu1 %vm482_vm2, %v5648_v56 }
  0xc8   : > { %4769 = vmatmul.mubr.msk.bf16.vlgmr.msra.gmra.mrb[0].mxu0 %vm482_vm2, %v2584_v52  ;;  %v2598_v52 = vsel %vm2140_vm4, %v2595_v43, %v2597_v46  ;;  %v2606_v43 = vsel %vm2140_vm4, %v2603_v26, %v2605_v59 }
  0xc9   : > { %4805 = vmatpush3.bf16.msra.mxu0 %v3119_v8  ;;  %4772 = vmatprep.mubr.msk.bf16.mxu0 %vm482_vm2, %v2586_v57  ;;  %v5918_v8 = vld [vmem:[%s5472_s21 + $0x68] sm:$0xff]   ;;  %v945_v57 = vsel %vm940_vm5, %v942_v14, %v944_v7  ;;  %v5953_v14 = vld [vmem:[%s5472_s21 + $0x80] sm:$0xff]  }
  0xca   : > { %5179 = vmatprep.subr.msk.bf16.mxu0 %vm537_vm0, %v5863_v30  ;;  %v2601_v34 = vrot.slane %v5918_v8, 2 }
  0xcc   : > { %v2602_v58 = vsel %vm2140_vm4, %v2599_v15, %v2601_v34  ;;  %v2604_v17 = vsel %vm2140_vm4, %v2601_v34, %v2603_v26 }
  0xcd   : > { %4603 = vmatmul.mubr.msk.bf16.gmra.mrb[24].mxu1 %vm482_vm2, %v5653_v2 }
  0xce   : > { %4606 = vmatprep.mubr.msk.bf16.mxu1 %vm482_vm2, %v5670_v29 }
  0xd0   : > { %4773 = vmatmul.mubr.msk.bf16.gmra.mrb[4].mxu0 %vm482_vm2, %v2588_v4  ;;  %v948_v4 = vrot.slane %v5541_v51, 1 }
  0xd1   : > { %4776 = vmatprep.mubr.msk.bf16.mxu0 %vm482_vm2, %v2590_v12  ;;  %v2600_v12 = vsel %vm2140_vm4, %v2597_v46, %v2599_v15  ;;  %v5975_v15 = vld [vmem:[%s5472_s21 + $0x98] sm:$0xff]  }
  0xd2   : > { %v949_v51 = vsel %vm940_vm5, %v946_v49, %v948_v4 }
  0xd5   : > { %4607 = vmatmul.mubr.msk.bf16.gmra.mrb[28].mxu1 %vm482_vm2, %v5680_v39 }
  0xd6   : > { %4610 = vmatprep.mubr.msk.bf16.mxu1 %vm482_vm2, %v5695_v55 }
  0xd8   : > { %4777 = vmatmul.mubr.msk.bf16.gmra.mrb[8].mxu0 %vm482_vm2, %v2592_v28  ;;  %v951_v28 = vsel %vm940_vm5, %v948_v4, %v950_v22  ;;  %v2613_v4 = vrot.slane %v5975_v15, 2 }
  0xd9   : > { %4780 = vmatprep.mubr.msk.bf16.mxu0 %vm482_vm2, %v2594_v42  ;;  %v954_v42 = vrot.slane %v5575_v27, 1  ;;  %v956_v27 = vrot.slane %v5595_v50, 1 }
  0xdd   : > { %4611 = vmatmul.mubr.msk.bf16.gmra.mrb[32].mxu1 %vm482_vm2, %v5700_v61 }
  0xde   : > { %4616 = vmatprep.mubr.msk.bf16.mxu1 %vm482_vm2, %v943_v45  ;;  %v5958_v45 = vld [vmem:[%s5472_s21 + $0x88] sm:$0xff]  }
  0xe0   : > { %4781 = vmatmul.mubr.msk.bf16.gmra.mrb[12].mxu0 %vm482_vm2, %v2596_v48  ;;  %v2609_v48 = vrot.slane %v5958_v45, 2 }
  0xe1   : > { %4784 = vmatprep.mubr.msk.bf16.mxu0 %vm482_vm2, %v2598_v52  ;;  %v5971_v52 = vld [vmem:[%s5472_s21 + $0x90] sm:$0xff]  }
  0xe2   : > { %v2611_v34 = vrot.slane %v5971_v52, 2 }
  0xe4   : > { %v2612_v26 = vsel %vm2140_vm4, %v2609_v48, %v2611_v34 }
  0xe5   : > { %4617 = vmatmul.mubr.msk.bf16.vlgmr.msra.gmra.mrb[0].mxu1 %vm482_vm2, %v945_v57  ;;  %v958_v57 = vrot.slane %v5606_v1, 1  ;;  %v2898_v1 = vshll.u32 %v5823_v40, 16 }
  0xe6   : > { %4620 = vmatprep.mubr.msk.bf16.mxu1 %vm482_vm2, %v947_v62  ;;  %4653 = vmatpush3.bf16.msra.mxu1 %v1472_v35  ;;  %v957_v35 = vsel %vm940_vm5, %v954_v42, %v956_v27 }
  0xe7   : > { %5175 = vmatprep.subr.msk.bf16.mxu1 %vm537_vm0, %v5474_v0  ;;  %v952_v0 = vrot.slane %v5565_v18, 1  ;;  %v2607_v18 = vrot.slane %v5953_v14, 2  ;;  %v959_v50 = vsel %vm940_vm5, %v956_v27, %v958_v57 }
  0xe8   : > { %4785 = vmatmul.mubr.msk.bf16.gmra.mrb[16].mxu0 %vm482_vm2, %v2600_v12  ;;  %v2895_v12 = vshrl.u32 %v5823_v40, 16 }
  0xe9   : > { %4788 = vmatprep.mubr.msk.bf16.mxu0 %vm482_vm2, %v2602_v58  ;;  %v953_v46 = vsel %vm940_vm5, %v950_v22, %v952_v0  ;;  %v955_v7 = vsel %vm940_vm5, %v952_v0, %v954_v42  ;;  %v2608_v49 = vsel %vm2140_vm4, %v2605_v59, %v2607_v18  ;;  %v2610_v62 = vsel %vm2140_vm4, %v2607_v18, %v2609_v48  ;;  %v5271_v59 = vld [vmem:[%s5472_s21 + $0xa0] ss:$0 sps:$4 sm:$0x33]  }
  0xea   : > { %v2903_v22 = vshrl.u32 %v5826_v41, 16  ;;  %v2906_v58 = vshll.u32 %v5826_v41, 16  ;;  %v962_v0 = vrot.slane %v5629_v37, 1  ;;  %v2900_v42 = vrot.slane %v2898_v1, 3 }
  0xeb   : > { %v2615_v18 = vrot.slane %v5271_v59, 2  ;;  %v2915_v48 = vshll.u32 %v5839_v47, 16  ;;  %v2921_v37 = vshrl.u32 %v5843_v21, 16 }
  0xec   : > { %v2905_v40 = vrot.slane %v2903_v22, 2 }
  0xed   : > { %4621 = vmatmul.mubr.msk.bf16.gmra.mrb[4].mxu1 %vm482_vm2, %v949_v51  ;;  %v960_v51 = vrot.slane %v5617_v19, 1  ;;  %v2923_v22 = vrot.slane %v2921_v37, 2  ;;  %v2948_v37 = vshrl.u32 %v5877_v63, 16 }
  0xee   : > { %4624 = vmatprep.mubr.msk.bf16.mxu1 %vm482_vm2, %v951_v28  ;;  %v2614_v28 = vsel %vm2140_vm4, %v2611_v34, %v2613_v4 }
  0xef   : > { %v963_v19 = vsel %vm940_vm5, %v960_v51, %v962_v0 }
  0xf0   : > { %4789 = vmatmul.mubr.msk.bf16.gmra.mrb[20].mxu0 %vm482_vm2, %v2604_v17  ;;  %v2897_v17 = vrot.slane %v2895_v12, 2  ;;  %v966_v12 = vrot.slane %v5653_v2, 1  ;;  %v2939_v2 = vshrl.u32 %v5861_v6, 16 }
  0xf1   : > { %4792 = vmatprep.mubr.msk.bf16.mxu0 %vm482_vm2, %v2606_v43  ;;  %v2908_v43 = vrot.slane %v2906_v58, 3 }
  0xf2   : > { %v2901_v27 = vor.u32 %v2900_v42, %v2897_v17  ;;  %v2942_v17 = vshll.u32 %v5861_v6, 16 }
  0xf5   : > { %4625 = vmatmul.mubr.msk.bf16.gmra.mrb[8].mxu1 %vm482_vm2, %v953_v46  ;;  %v961_v46 = vsel %vm940_vm5, %v958_v57, %v960_v51  ;;  %v964_v57 = vrot.slane %v5648_v56, 1  ;;  %v2930_v56 = vshrl.u32 %v5855_v53, 16 }
  0xf6   : > { %4628 = vmatprep.mubr.msk.bf16.mxu1 %vm482_vm2, %v955_v7  ;;  %v2912_v7 = vshrl.u32 %v5839_v47, 16 }
  0xf7   : > { %v965_v51 = vsel %vm940_vm5, %v962_v0, %v964_v57  ;;  %v968_v0 = vrot.slane %v5670_v29, 1 }
  0xf8   : > { %4793 = vmatmul.mubr.msk.bf16.gmra.mrb[24].mxu0 %vm482_vm2, %v2608_v49  ;;  %v2909_v49 = vor.u32 %v2908_v43, %v2905_v40  ;;  %v2914_v34 = vrot.slane %v2912_v7, 2  ;;  %v2932_v40 = vrot.slane %v2930_v56, 2  ;;  %v2941_v7 = vrot.slane %v2939_v2, 2 }
  0xf9   : > { %4796 = vmatprep.mubr.msk.bf16.mxu0 %vm482_vm2, %v2610_v62  ;;  %v2924_v62 = vshll.u32 %v5843_v21, 16  ;;  %v2978_v2 = vshll.u32 %v5900_v5, 16 }
  0xfa   : > { %v2910_v1 = vsel %vm2893_vm6, %v2901_v27, %v2909_v49  ;;  %v969_v27 = vsel %vm940_vm5, %v966_v12, %v968_v0 }
  0xfb   : > { %v2926_v58 = vrot.slane %v2924_v62, 3 }
  0xfd   : > { %4629 = vmatmul.mubr.msk.bf16.gmra.mrb[12].mxu1 %vm482_vm2, %v957_v35  ;;  %v2616_v35 = vsel %vm2140_vm4, %v2613_v4, %v2615_v18  ;;  %v2933_v4 = vshll.u32 %v5855_v53, 16  ;;  %v2927_v59 = vor.u32 %v2926_v58, %v2923_v22  ;;  %v3433_v18 = vsel %vm537_vm0, %v5863_v30, 0 }
  0xfe   : > { %4632 = vmatprep.mubr.msk.bf16.mxu1 %vm482_vm2, %v959_v50  ;;  %v2917_v50 = vrot.slane %v2915_v48, 3  ;;  %v2944_v48 = vrot.slane %v2942_v17, 3  ;;  %v2957_v30 = vshrl.u32 %v5881_v20, 16  ;;  %v976_v17 = vrot.slane %v5718_v24, 1 }
  0xff   : > { %v2935_v43 = vrot.slane %v2933_v4, 3  ;;  %v2969_v4 = vshll.u32 %v5895_v32, 16 }
 0x100   : > { %4797 = vmatmul.mubr.msk.bf16.gmra.mrb[28].mxu0 %vm482_vm2, %v2612_v26  ;;  %v2918_v26 = vor.u32 %v2917_v50, %v2914_v34  ;;  %v2945_v62 = vor.u32 %v2944_v48, %v2941_v7  ;;  %v2950_v50 = vrot.slane %v2948_v37, 2  ;;  %v2959_v58 = vrot.slane %v2957_v30, 2  ;;  %v5276_v30 = vld [vmem:[%s5472_s21 + $0x18] sm:$0xff]  }
 0x101   : > { %4800 = vmatprep.mubr.msk.bf16.mxu0 %vm482_vm2, %v2614_v28  ;;  %v967_v28 = vsel %vm940_vm5, %v964_v57, %v966_v12  ;;  %v2936_v29 = vor.u32 %v2935_v43, %v2932_v40  ;;  %v2960_v57 = vshll.u32 %v5881_v20, 16  ;;  %v2971_v40 = vrot.slane %v2969_v4, 3 }
 0x102   : > { %v2919_v42 = vsel %vm2893_vm6, %v2909_v49, %v2918_v26  ;;  %v1380_v43 = vrot.slane %v5510_v16, 1  ;;  %v2980_v48 = vrot.slane %v2978_v2, 3  ;;  %v2987_v16 = vshll.u32 %v5913_v38, 16 }
 0x103   : > { %v2937_v34 = vsel %vm2893_vm6, %v2927_v59, %v2936_v29  ;;  %v2946_v22 = vsel %vm2893_vm6, %v2936_v29, %v2945_v62  ;;  %v3005_v4 = vshll.u32 %v5933_v44, 16  ;;  %v3014_v2 = vshll.u32 %v5940_v54, 16 }
 0x105   : > { %4633 = vmatmul.mubr.msk.bf16.gmra.mrb[16].mxu1 %vm482_vm2, %v961_v46  ;;  %v970_v46 = vrot.slane %v5680_v39, 1  ;;  %v2951_v39 = vshll.u32 %v5877_v63, 16 }
 0x106   : > { %4636 = vmatprep.mubr.msk.bf16.mxu1 %vm482_vm2, %v963_v19  ;;  %v2928_v19 = vsel %vm2893_vm6, %v2918_v26, %v2927_v59 }
 0x107   : > { %v971_v49 = vsel %vm940_vm5, %v968_v0, %v970_v46  ;;  %v2953_v12 = vrot.slane %v2951_v39, 3  ;;  %v2993_v39 = vshrl.u32 %v5918_v8, 16 }
 0x108   : > { %4801 = vmatmul.mubr.msk.bf16.gmra.mrb[32].mxu0 %vm482_vm2, %v2616_v35  ;;  %v972_v35 = vrot.slane %v5695_v55, 1 }
 0x109   : > { %4806 = vmatprep.mubr.msk.bf16.mxu0 %vm482_vm2, %v2910_v1  ;;  %v974_v1 = vrot.slane %v5700_v61, 1  ;;  %v2954_v55 = vor.u32 %v2953_v12, %v2950_v50  ;;  %v2975_v61 = vshrl.u32 %v5900_v5, 16  ;;  %v2989_v50 = vrot.slane %v2987_v16, 3  ;;  %v5277_v12 = vld [vmem:[%s5472_s21 + $0x20] sm:$0xff]  }
 0x10a   : > { %v973_v26 = vsel %vm940_vm5, %v970_v46, %v972_v35  ;;  %v5275_v46 = vld [vmem:[%s5472_s21 + $0x10] sm:$0xff]  }
 0x10b   : > { %v975_v56 = vsel %vm940_vm5, %v972_v35, %v974_v1  ;;  %v2977_v7 = vrot.slane %v2975_v61, 2  ;;  %v3011_v61 = vshrl.u32 %v5940_v54, 16 }
 0x10d   : > { %4637 = vmatmul.mubr.msk.bf16.gmra.mrb[20].mxu1 %vm482_vm2, %v965_v51  ;;  %v2962_v51 = vrot.slane %v2960_v57, 3  ;;  %v2981_v37 = vor.u32 %v2980_v48, %v2977_v7  ;;  %v1383_v57 = vrot.slane %v5276_v30, 1  ;;  %v3013_v7 = vrot.slane %v3011_v61, 2 }
 0x10e   : > { %4640 = vmatprep.mubr.msk.bf16.mxu1 %vm482_vm2, %v967_v28  ;;  %v2966_v28 = vshrl.u32 %v5895_v32, 16  ;;  %v3016_v48 = vrot.slane %v3014_v2, 3  ;;  %v3050_v61 = vshll.u32 %v5975_v15, 16  ;;  %v5282_v2 = vld [vmem:[%s5472_s21 + $0x48] sm:$0xff]  }
 0x10f   : > { %v2963_v59 = vor.u32 %v2962_v51, %v2959_v58  ;;  %v2995_v58 = vrot.slane %v2993_v39, 2  ;;  %v3032_v39 = vshll.u32 %v5958_v45, 16 }
 0x110   : > { %4807 = vmatmul.mubr.msk.bf16.vlgmr.msra.gmra.mrb[0].mxu0 %vm482_vm2, %v2919_v42  ;;  %v2968_v0 = vrot.slane %v2966_v28, 2  ;;  %v2955_v42 = vsel %vm2893_vm6, %v2945_v62, %v2954_v55  ;;  %v2996_v62 = vshll.u32 %v5918_v8, 16  ;;  %v3017_v16 = vor.u32 %v3016_v48, %v3013_v7 }
 0x111   : > { %4843 = vmatpush3.bf16.msra.mxu0 %v3433_v18  ;;  %4810 = vmatprep.mubr.msk.bf16.mxu0 %vm482_vm2, %v2928_v19  ;;  %v1381_v18 = vrot.slane %v5275_v46, 1  ;;  %v2964_v19 = vsel %vm2893_vm6, %v2954_v55, %v2963_v59  ;;  %v5279_v46 = vld [vmem:[%s5472_s21 + $0x30] sm:$0xff]   ;;  %v3052_v48 = vrot.slane %v3050_v61, 3  ;;  %v3346_v61 = vrot.slane %v5843_v21, 3 }
 0x112   : > { %v2972_v24 = vor.u32 %v2971_v40, %v2968_v0  ;;  %v2998_v51 = vrot.slane %v2996_v62, 3  ;;  %v5280_v62 = vld [vmem:[%s5472_s21 + $0x38] sm:$0xff]   ;;  %v3348_v21 = vrot.slane %v5855_v53, 3 }
 0x113   : > { %v1382_v29 = vsel %vm940_vm5, %v1380_v43, %v1381_v18  ;;  %v3007_v43 = vrot.slane %v3005_v4, 3  ;;  %v1391_v30 = vrot.slane %v5280_v62, 1 }
 0x114   : > { %v2973_v35 = vsel %vm2893_vm6, %v2963_v59, %v2972_v24  ;;  %v2999_v59 = vor.u32 %v2998_v51, %v2995_v58  ;;  %v3034_v58 = vrot.slane %v3032_v39, 3  ;;  %v5284_v39 = vld [vmem:[%s5472_s21 + $0x58] sm:$0xff]  }
 0x115   : > { %4641 = vmatmul.mubr.msk.bf16.gmra.mrb[24].mxu1 %vm482_vm2, %v969_v27  ;;  %v977_v27 = vsel %vm940_vm5, %v974_v1, %v976_v17  ;;  %v1385_v1 = vrot.slane %v5277_v12, 1  ;;  %v5278_v17 = vld [vmem:[%s5472_s21 + $0x28] sm:$0xff]   ;;  %v1399_v62 = vrot.slane %v5284_v39, 1  ;;  %v1802_v39 = vshrl.u32 %v5765_v60, 16 }
 0x116   : > { %4644 = vmatprep.mubr.msk.bf16.mxu1 %vm482_vm2, %v971_v49  ;;  %v2984_v49 = vshrl.u32 %v5913_v38, 16  ;;  %v1387_v0 = vrot.slane %v5278_v17, 1  ;;  %v1395_v17 = vrot.slane %v5282_v2, 1  ;;  %v1407_v2 = vrot.slane %v5783_v11, 1 }
 0x117   : > { %v1386_v55 = vsel %vm940_vm5, %v1383_v57, %v1385_v1 }
 0x118   : > { %4811 = vmatmul.mubr.msk.bf16.gmra.mrb[4].mxu0 %vm482_vm2, %v2937_v34  ;;  %v2986_v34 = vrot.slane %v2984_v49, 2  ;;  %v3023_v49 = vshll.u32 %v5953_v14, 16 }
 0x119   : > { %4814 = vmatprep.mubr.msk.bf16.mxu0 %vm482_vm2, %v2946_v22  ;;  %v2982_v22 = vsel %vm2893_vm6, %v2972_v24, %v2981_v37 }
 0x11a   : > { %v2990_v28 = vor.u32 %v2989_v50, %v2986_v34  ;;  %v3025_v34 = vrot.slane %v3023_v49, 3  ;;  %v5281_v50 = vld [vmem:[%s5472_s21 + $0x40] sm:$0xff]  }
 0x11b   : > { %v1393_v12 = vrot.slane %v5281_v50, 1 }
 0x11d   : > { %4645 = vmatmul.mubr.msk.bf16.gmra.mrb[28].mxu1 %vm482_vm2, %v973_v26  ;;  %v1384_v26 = vsel %vm940_vm5, %v1381_v18, %v1383_v57  ;;  %v1389_v18 = vrot.slane %v5279_v46, 1 }
 0x11e   : > { %4648 = vmatprep.mubr.msk.bf16.mxu1 %vm482_vm2, %v975_v56  ;;  %v3002_v56 = vshrl.u32 %v5933_v44, 16 }
 0x11f   : > { %v1392_v51 = vsel %vm940_vm5, %v1389_v18, %v1391_v30 }
 0x120   : > { %4815 = vmatmul.mubr.msk.bf16.gmra.mrb[8].mxu0 %vm482_vm2, %v2955_v42  ;;  %v2991_v42 = vsel %vm2893_vm6, %v2981_v37, %v2990_v28  ;;  %v3004_v40 = vrot.slane %v3002_v56, 2  ;;  %v3029_v37 = vshrl.u32 %v5958_v45, 16  ;;  %v3041_v56 = vshll.u32 %v5971_v52, 16 }
 0x121   : > { %4818 = vmatprep.mubr.msk.bf16.mxu0 %vm482_vm2, %v2964_v19  ;;  %v3000_v19 = vsel %vm2893_vm6, %v2990_v28, %v2999_v59  ;;  %v1394_v28 = vsel %vm940_vm5, %v1391_v30, %v1393_v12 }
 0x122   : > { %v3008_v24 = vor.u32 %v3007_v43, %v3004_v40  ;;  %v3043_v40 = vrot.slane %v3041_v56, 3  ;;  %v5283_v43 = vld [vmem:[%s5472_s21 + $0x50] sm:$0xff]  }
 0x123   : > { %v1397_v46 = vrot.slane %v5283_v43, 1  ;;  %v3350_v43 = vrot.slane %v5861_v6, 3 }
 0x124   : > { %v3009_v57 = vsel %vm2893_vm6, %v2999_v59, %v3008_v24  ;;  %v3047_v59 = vshrl.u32 %v5975_v15, 16 }
 0x125   : > { %4649 = vmatmul.mubr.msk.bf16.gmra.mrb[32].mxu1 %vm482_vm2, %v977_v27  ;;  %v1388_v27 = vsel %vm940_vm5, %v1385_v1, %v1387_v0  ;;  %v3018_v1 = vsel %vm2893_vm6, %v3008_v24, %v3017_v16  ;;  %v3351_v53 = vsel %vm3340_vm7, %v3348_v21, %v3350_v43 }
 0x126   : > { %4654 = vmatprep.mubr.msk.bf16.mxu1 %vm482_vm2, %v1382_v29  ;;  %v3020_v29 = vshrl.u32 %v5953_v14, 16  ;;  %v3049_v7 = vrot.slane %v3047_v59, 2 }
 0x128   : > { %4819 = vmatmul.mubr.msk.bf16.gmra.mrb[12].mxu0 %vm482_vm2, %v2973_v35  ;;  %v3022_v35 = vrot.slane %v3020_v29, 2 }
 0x129   : > { %4822 = vmatprep.mubr.msk.bf16.mxu0 %vm482_vm2, %v2982_v22  ;;  %v3031_v22 = vrot.slane %v3029_v37, 2  ;;  %v3334_v37 = vld [vmem:[%s5472_s21 + $0x10] sm:$0x8] }
 0x12b   : > { %v3035_v4 = vor.u32 %v3034_v58, %v3031_v22 }
 0x12d   : > { %4655 = vmatmul.mubr.msk.bf16.vlgmr.msra.gmra.mrb[0].mxu1 %vm482_vm2, %v1384_v26  ;;  %v3026_v26 = vor.u32 %v3025_v34, %v3022_v35  ;;  %v1401_v34 = vrot.slane %v5749_v25, 1 }
 0x12e   : > { %4658 = vmatprep.mubr.msk.bf16.mxu1 %vm482_vm2, %v1386_v55  ;;  %4881 = vmatpush3.bf16.msra.mxu1 %v5482_v3  ;;  %v1390_v3 = vsel %vm940_vm5, %v1387_v0, %v1389_v18  ;;  %v3038_v55 = vshrl.u32 %v5971_v52, 16  ;;  %v6111_v18 = vld [vmem:[%s5472_s21 + $0xa0] ss:$0 sps:$4 sm:$0x77]  }
 0x12f   : > { %v3027_v0 = vsel %vm2893_vm6, %v3017_v16, %v3026_v26  ;;  %v3056_v29 = vshrl.u32 %v6111_v18, 16  ;;  %v3059_v49 = vshll.u32 %v6111_v18, 16  ;;  %v3053_v16 = vor.u32 %v3052_v48, %v3049_v7 }
 0x130   : > { %4823 = vmatmul.mubr.msk.bf16.gmra.mrb[16].mxu0 %vm482_vm2, %v2991_v42  ;;  %v3040_v42 = vrot.slane %v3038_v55, 2  ;;  %v1402_v58 = vsel %vm940_vm5, %v1399_v62, %v1401_v34  ;;  %v1405_v55 = vrot.slane %v5771_v31, 1  ;;  %v1413_v7 = vrot.slane %v5803_v9, 1 }
 0x131   : > { %4826 = vmatprep.mubr.msk.bf16.mxu0 %vm482_vm2, %v3000_v19  ;;  %v3036_v19 = vsel %vm2893_vm6, %v3026_v26, %v3035_v4  ;;  %v3061_v35 = vrot.slane %v3059_v49, 3  ;;  %v3342_v26 = vrot.slane %v5826_v41, 3  ;;  %v3344_v41 = vrot.slane %v5839_v47, 3 }
 0x132   : > { %v3044_v24 = vor.u32 %v3043_v40, %v3040_v42  ;;  %v1408_v47 = vsel %vm940_vm5, %v1405_v55, %v1407_v2  ;;  %v1793_v48 = vshrl.u32 %v5749_v25, 16 }
 0x133   : > { %v3347_v42 = vsel %vm3340_vm7, %v3344_v41, %v3346_v61 }
 0x134   : > { %v3045_v30 = vsel %vm2893_vm6, %v3035_v4, %v3044_v24  ;;  %v3054_v50 = vsel %vm2893_vm6, %v3044_v24, %v3053_v16  ;;  %v5274_v24 = vld [vmem:[%s5472_s21 + $0x98] ss:$0 sps:$4 sm:$0x11]   ;;  %v1795_v49 = vrot.slane %v1793_v48, 1 }
 0x135   : > { %4659 = vmatmul.mubr.msk.bf16.gmra.mrb[4].mxu1 %vm482_vm2, %v1388_v27  ;;  %v1396_v27 = vsel %vm940_vm5, %v1393_v12, %v1395_v17  ;;  %v4273_v12 = vcombine.low %v3334_v37, %v5813_v33  ;;  %v3354_v37 = vrot.slane %v5881_v20, 3 }
 0x136   : > { %4662 = vmatprep.mubr.msk.bf16.mxu1 %vm482_vm2, %v1390_v3  ;;  %v1398_v3 = vsel %vm940_vm5, %v1395_v17, %v1397_v46  ;;  %v3345_v17 = vsel %vm3340_vm7, %v3342_v26, %v3344_v41 }
 0x138   : > { %4827 = vmatmul.mubr.msk.bf16.gmra.mrb[20].mxu0 %vm482_vm2, %v3009_v57  ;;  %v3058_v57 = vrot.slane %v3056_v29, 2 }
 0x139   : > { %4830 = vmatprep.mubr.msk.bf16.mxu0 %vm482_vm2, %v3018_v1  ;;  %v1400_v1 = vsel %vm940_vm5, %v1397_v46, %v1399_v62  ;;  %v1411_v46 = vrot.slane %v5799_v23, 1  ;;  %v1805_v62 = vshll.u32 %v5765_v60, 16 }
 0x13a   : > { %v3062_v22 = vor.u32 %v3061_v35, %v3058_v57  ;;  %v1814_v35 = vshll.u32 %v5771_v31, 16 }
 0x13b   : > { %v1414_v29 = vsel %vm940_vm5, %v1411_v46, %v1413_v7 }
 0x13c   : > { %v3063_v33 = vsel %vm2893_vm6, %v3053_v16, %v3062_v22 }
 0x13d   : > { %4663 = vmatmul.mubr.msk.bf16.gmra.mrb[8].mxu1 %vm482_vm2, %v1392_v51  ;;  %v3341_v51 = vrot.slane %v4273_v12, 3  ;;  %v1807_v12 = vrot.slane %v1805_v62, 2 }
 0x13e   : > { %4666 = vmatprep.mubr.msk.bf16.mxu1 %vm482_vm2, %v1394_v28  ;;  %v1403_v28 = vrot.slane %v5765_v60, 1 }
 0x13f   : > { %v3343_v56 = vsel %vm3340_vm7, %v3341_v51, %v3342_v26  ;;  %v3358_v51 = vrot.slane %v5900_v5, 3  ;;  %v1820_v26 = vshrl.u32 %v5783_v11, 16 }
 0x140   : > { %4831 = vmatmul.mubr.msk.bf16.gmra.mrb[24].mxu0 %vm482_vm2, %v3027_v0  ;;  %v1404_v4 = vsel %vm940_vm5, %v1401_v34, %v1403_v28  ;;  %v1406_v59 = vsel %vm940_vm5, %v1403_v28, %v1405_v55  ;;  %v1409_v0 = vrot.slane %v5787_v13, 1  ;;  %v1823_v28 = vshll.u32 %v5783_v11, 16 }
 0x141   : > { %4834 = vmatprep.mubr.msk.bf16.mxu0 %vm482_vm2, %v3036_v19  ;;  %v3349_v19 = vsel %vm3340_vm7, %v3346_v61, %v3348_v21 }
 0x142   : > { %v1410_v40 = vsel %vm940_vm5, %v1407_v2, %v1409_v0  ;;  %v1412_v6 = vsel %vm940_vm5, %v1409_v0, %v1411_v46  ;;  %v1825_v41 = vrot.slane %v1823_v28, 2  ;;  %v1838_v0 = vshrl.u32 %v5799_v23, 16 }
 0x144   : > { %v1840_v46 = vrot.slane %v1838_v0, 1 }
 0x145   : > { %4667 = vmatmul.mubr.msk.bf16.gmra.mrb[12].mxu1 %vm482_vm2, %v1396_v27  ;;  %v1796_v27 = vshll.u32 %v5749_v25, 16  ;;  %v1415_v25 = vrot.slane %v5274_v24, 1  ;;  %v1859_v24 = vshll.u32 %v5819_v36, 16 }
 0x146   : > { %4670 = vmatprep.mubr.msk.bf16.mxu1 %vm482_vm2, %v1398_v3  ;;  %v3352_v3 = vrot.slane %v5877_v63, 3  ;;  %v1811_v63 = vshrl.u32 %v5771_v31, 16 }
 0x147   : > { %v1798_v16 = vrot.slane %v1796_v27, 2  ;;  %v1416_v20 = vsel %vm940_vm5, %v1413_v7, %v1415_v25  ;;  %v3364_v7 = vrot.slane %v5933_v44, 3 }
 0x148   : > { %4835 = vmatmul.mubr.msk.bf16.gmra.mrb[28].mxu0 %vm482_vm2, %v3045_v30  ;;  %v3353_v30 = vsel %vm3340_vm7, %v3350_v43, %v3352_v3  ;;  %v3355_v34 = vsel %vm3340_vm7, %v3352_v3, %v3354_v37  ;;  %v1813_v22 = vrot.slane %v1811_v63, 1  ;;  %v3374_v63 = vrot.slane %v5975_v15, 3 }
 0x149   : > { %4838 = vmatprep.mubr.msk.bf16.mxu0 %vm482_vm2, %v3054_v50  ;;  %v1799_v57 = vor.u32 %v1798_v16, %v1795_v49  ;;  %v1804_v50 = vrot.slane %v1802_v39, 1  ;;  %v3370_v39 = vrot.slane %v5958_v45, 3 }
 0x14b   : > { %v1800_v60 = vsel %vm1693_vm3, %v5662_v10, %v1799_v57  ;;  %v1808_v31 = vor.u32 %v1807_v12, %v1804_v50  ;;  %v1832_v10 = vshll.u32 %v5787_v13, 16 }
 0x14d   : > { %4671 = vmatmul.mubr.msk.bf16.gmra.mrb[16].mxu1 %vm482_vm2, %v1400_v1  ;;  %v3356_v1 = vrot.slane %v5895_v32, 3  ;;  %v1829_v32 = vshrl.u32 %v5787_v13, 16  ;;  %v1809_v5 = vsel %vm1693_vm3, %v1799_v57, %v1808_v31  ;;  %v1834_v2 = vrot.slane %v1832_v10, 2 }
 0x14e   : > { %4674 = vmatprep.mubr.msk.bf16.mxu1 %vm482_vm2, %v1402_v58  ;;  %v1816_v58 = vrot.slane %v1814_v35, 2 }
 0x14f   : > { %v1831_v61 = vrot.slane %v1829_v32, 1 }
 0x150   : > { %4839 = vmatmul.mubr.msk.bf16.gmra.mrb[32].mxu0 %vm482_vm2, %v3063_v33  ;;  %v3357_v33 = vsel %vm3340_vm7, %v3354_v37, %v3356_v1  ;;  %v1817_v55 = vor.u32 %v1816_v58, %v1813_v22  ;;  %v3368_v37 = vrot.slane %v5953_v14, 3  ;;  %v3372_v14 = vrot.slane %v5971_v52, 3 }
 0x151   : > { %4844 = vmatprep.mubr.msk.bf16.mxu0 %vm482_vm2, %v3343_v56  ;;  %v3359_v56 = vsel %vm3340_vm7, %v3356_v1, %v3358_v51  ;;  %v1835_v21 = vor.u32 %v1834_v2, %v1831_v61 }
 0x152   : > { %v1818_v11 = vsel %vm1693_vm3, %v1808_v31, %v1817_v55  ;;  %v3373_v45 = vsel %vm3340_vm7, %v3370_v39, %v3372_v14  ;;  %v3375_v35 = vsel %vm3340_vm7, %v3372_v14, %v3374_v63 }
 0x155   : > { %4675 = vmatmul.mubr.msk.bf16.gmra.mrb[20].mxu1 %vm482_vm2, %v1404_v4  ;;  %v1822_v4 = vrot.slane %v1820_v26, 1 }
 0x156   : > { %4678 = vmatprep.mubr.msk.bf16.mxu1 %vm482_vm2, %v1406_v59  ;;  %v3360_v59 = vrot.slane %v5913_v38, 3  ;;  %v1847_v38 = vshrl.u32 %v5803_v9, 16 }
 0x157   : > { %v1826_v13 = vor.u32 %v1825_v41, %v1822_v4 }
 0x158   : > { %4845 = vmatmul.mubr.msk.bf16.vlgmr.msra.gmra.mrb[0].mxu0 %vm482_vm2, %v3345_v17  ;;  %v3362_v17 = vrot.slane %v5918_v8, 3  ;;  %v1849_v48 = vrot.slane %v1847_v38, 1 }
 0x159   : > { %4848 = vmatprep.mubr.msk.bf16.mxu0 %vm482_vm2, %v3347_v42  ;;  %v1841_v42 = vshll.u32 %v5799_v23, 16  ;;  %v1827_v8 = vsel %vm1693_vm3, %v1817_v55, %v1826_v13  ;;  %v1836_v23 = vsel %vm1693_vm3, %v1826_v13, %v1835_v21 }
 0x15a   : > { %v3363_v43 = vsel %vm3340_vm7, %v3360_v59, %v3362_v17  ;;  %v3365_v3 = vsel %vm3340_vm7, %v3362_v17, %v3364_v7 }
 0x15d   : > { %4679 = vmatmul.mubr.msk.bf16.gmra.mrb[24].mxu1 %vm482_vm2, %v1408_v47  ;;  %v3361_v47 = vsel %vm3340_vm7, %v3358_v51, %v3360_v59  ;;  %v6268_v59 = vld [vmem:[#allocation4] ss:$0 sm:$0xff] }
 0x15e   : > { %4682 = vmatprep.mubr.msk.bf16.mxu1 %vm482_vm2, %v1410_v40  ;;  %v1850_v40 = vshll.u32 %v5803_v9, 16 }
 0x160   : > { %4849 = vmatmul.mubr.msk.bf16.gmra.mrb[4].mxu0 %vm482_vm2, %v3349_v19  ;;  %v1843_v19 = vrot.slane %v1841_v42, 2  ;;  %v1852_v27 = vrot.slane %v1850_v40, 2 }
 0x161   : > { %4852 = vmatprep.mubr.msk.bf16.mxu0 %vm482_vm2, %v3351_v53  ;;  %v3366_v53 = vrot.slane %v5940_v54, 3  ;;  %v1861_v54 = vrot.slane %v1859_v24, 2 }
 0x162   : > { %v1844_v9 = vor.u32 %v1843_v19, %v1840_v46 }
 0x163   : > { %v3367_v44 = vsel %vm3340_vm7, %v3364_v7, %v3366_v53  ;;  %v3369_v62 = vsel %vm3340_vm7, %v3366_v53, %v3368_v37 }
 0x164   : > { %v1845_v49 = vsel %vm1693_vm3, %v1835_v21, %v1844_v9 }
 0x165   : > { %4683 = vmatmul.mubr.msk.bf16.gmra.mrb[28].mxu1 %vm482_vm2, %v1412_v6  ;;  %v1856_v6 = vshrl.u32 %v5819_v36, 16 }
 0x166   : > { %4686 = vmatprep.mubr.msk.bf16.mxu1 %vm482_vm2, %v1414_v29  ;;  %v1853_v29 = vor.u32 %v1852_v27, %v1849_v48 }
 0x167   : > { %v1858_v16 = vrot.slane %v1856_v6, 1 }
 0x168   : > { %4853 = vmatmul.mubr.msk.bf16.gmra.mrb[8].mxu0 %vm482_vm2, %v3353_v30  ;;  %v1854_v25 = vsel %vm1693_vm3, %v1844_v9, %v1853_v29  ;;  %v3371_v30 = vsel %vm3340_vm7, %v3368_v37, %v3370_v39 }
 0x169   : > { %4856 = vmatprep.mubr.msk.bf16.mxu0 %vm482_vm2, %v3355_v34  ;;  %v1862_v36 = vor.u32 %v1861_v54, %v1858_v16  ;;  %v3376_v34 = vrot.slane %v6111_v18, 3 }
 0x16b   : > { %v1863_v57 = vsel %vm1693_vm3, %v1853_v29, %v1862_v36 }
 0x16d   : > { %4687 = vmatmul.mubr.msk.bf16.gmra.mrb[32].mxu1 %vm482_vm2, %v1416_v20  ;;  %v3377_v20 = vsel %vm3340_vm7, %v3374_v63, %v3376_v34 }
 0x16e   : > { %4712 = vmatprep.mubr.msk.bf16.mxu1 %vm482_vm2, %v1800_v60 }
 0x170   : > { %4857 = vmatmul.mubr.msk.bf16.gmra.mrb[12].mxu0 %vm482_vm2, %v3357_v33 }
 0x171   : > { %4860 = vmatprep.mubr.msk.bf16.mxu0 %vm482_vm2, %v3359_v56 }
 0x175   : > { %4713 = vmatmul.mubr.msk.bf16.vlgmr.msra.gmra.mrb[20].mxu1 %vm482_vm2, %v1809_v5 }
 0x176   : > { %4716 = vmatprep.mubr.msk.bf16.mxu1 %vm482_vm2, %v1818_v11 }
 0x178   : > { %4861 = vmatmul.mubr.msk.bf16.gmra.mrb[16].mxu0 %vm482_vm2, %v3361_v47 }
 0x179   : > { %4864 = vmatprep.mubr.msk.bf16.mxu0 %vm482_vm2, %v3363_v43 }
 0x17d   : > { %4717 = vmatmul.mubr.msk.bf16.gmra.mrb[24].mxu1 %vm482_vm2, %v1827_v8 }
 0x17e   : > { %4720 = vmatprep.mubr.msk.bf16.mxu1 %vm482_vm2, %v1836_v23 }
 0x180   : > { %4865 = vmatmul.mubr.msk.bf16.gmra.mrb[20].mxu0 %vm482_vm2, %v3365_v3 }
 0x181   : > { %4868 = vmatprep.mubr.msk.bf16.mxu0 %vm482_vm2, %v3367_v44 }
 0x185   : > { %4721 = vmatmul.mubr.msk.bf16.gmra.mrb[28].mxu1 %vm482_vm2, %v1845_v49 }
 0x186   : > { %4724 = vmatprep.mubr.msk.bf16.mxu1 %vm482_vm2, %v1854_v25 }
 0x188   : > { %4869 = vmatmul.mubr.msk.bf16.gmra.mrb[24].mxu0 %vm482_vm2, %v3369_v62 }
 0x189   : > { %4872 = vmatprep.mubr.msk.bf16.mxu0 %vm482_vm2, %v3371_v30 }
 0x18d   : > { %4725 = vmatmul.mubr.msk.bf16.gmra.mrb[32].mxu1 %vm482_vm2, %v1863_v57 }
 0x190   : > { %4873 = vmatmul.mubr.msk.bf16.gmra.mrb[28].mxu0 %vm482_vm2, %v3373_v45 }
 0x191   : > { %4876 = vmatprep.mubr.msk.bf16.mxu0 %vm482_vm2, %v3375_v35 }
 0x198   : > { %4877 = vmatmul.mubr.msk.bf16.gmra.mrb[32].mxu0 %vm482_vm2, %v3377_v20 }
 0x200   : > { %v4656_v50 = vpop.f32.mrb[0].mxu1 }
 0x201   : > { %v1508_v52 = vpop.f32.mrb[1].mxu1 }
 0x202   : > { %v4657_v12 = vpop.f32.mrb[2].mxu1 }
 0x203   : > { %v1511_v15 = vpop.f32.mrb[3].mxu1 }
 0x208   : > { %v4660_v1 = vpop.f32.mrb[4].mxu1 }
 0x209   : > { %v1524_v60 = vpop.f32.mrb[5].mxu1 }
 0x20a   : > { %v4661_v22 = vpop.f32.mrb[6].mxu1 }
 0x20b   : > { %v1527_v58 = vpop.f32.mrb[7].mxu1 }
 0x210   : > { %v6244_v51 = vpop.f32.mrb[8].mxu1 }
 0x211   : > { %v6246_v31 = vpop.f32.mrb[9].mxu1 }
 0x212   : > { %v6248_v26 = vpop.f32.mrb[10].mxu1 }
 0x213   : > { %v6250_v18 = vpop.f32.mrb[11].mxu1 }
 0x218   : > { %v6252_v28 = vpop.f32.mrb[12].mxu1 }
 0x219   : > { %v6254_v33 = vpop.f32.mrb[13].mxu1 }
 0x21a   : > { %v6256_v55 = vpop.f32.mrb[14].mxu1 }
 0x21b   : > { %v6258_v32 = vpop.f32.mrb[15].mxu1 }
 0x220   : > { %v6260_v10 = vpop.f32.mrb[16].mxu1 }
 0x221   : > { %v6262_v56 = vpop.f32.mrb[17].mxu1 }
 0x222   : > { %v6264_v5 = vpop.f32.mrb[18].mxu1 }
 0x223   : > { %v6266_v4 = vpop.f32.mrb[19].mxu1 }
 0x22b   : > { %v4846_v41 = vpop.f32.mrb[0].mxu0 }
 0x22c   : > { %v4882_v11 = vadd.f32 %v4846_v41, %v4656_v50  ;;  %v3469_v61 = vpop.f32.mrb[1].mxu0 }
 0x22d   : > { %v4883_v2 = vadd.f32 %v3469_v61, %v1508_v52  ;;  %v4847_v17 = vpop.f32.mrb[2].mxu0 }
 0x22e   : > { %v3657_v13 = vadd.f32 %v4882_v11, %v6268_v59  ;;  %v4884_v0 = vadd.f32 %v4847_v17, %v4657_v12  ;;  %v3472_v42 = vpop.f32.mrb[3].mxu0 }
 0x22f   : > { %v3655_v47 = vadd.f32 %v4883_v2, %v6268_v59  ;;  %v4885_v21 = vadd.f32 %v3472_v42, %v1511_v15 }
 0x230   : > { %vm3693_vm8 = vcmp.ge.f32.partialorder %v3657_v13, 0.0  ;;  %v3729_v38 = vmul.f32 0.2, %v3657_v13  ;;  %v3658_v40 = vadd.f32 %v4884_v0, %v6268_v59 }
 0x231   : > { %vm3691_vm9 = vcmp.ge.f32.partialorder %v3655_v47, 0.0  ;;  %v3727_v43 = vmul.f32 0.2, %v3655_v47  ;;  %v3656_v8 = vadd.f32 %v4885_v21, %v6268_v59 }
 0x232   : > { %v3765_v46 = vsel %vm3693_vm8, %v3657_v13, %v3729_v38  ;;  %vm3694_vm11 = vcmp.ge.f32.partialorder %v3658_v40, 0.0  ;;  %v3730_v19 = vmul.f32 0.2, %v3658_v40 }
 0x233   : > { %v4333_v7 = vpack.c.bf16 %v3765_v46, %v3765_v46  ;;  %v3763_v23 = vsel %vm3691_vm9, %v3655_v47, %v3727_v43  ;;  %vm3692_vm12 = vcmp.ge.f32.partialorder %v3656_v8, 0.0  ;;  %v3728_v48 = vmul.f32 0.2, %v3656_v8  ;;  %v4850_v27 = vpop.f32.mrb[4].mxu0 }
 0x234   : > { %v4331_v53 = vpack.c.bf16 %v3763_v23, %v3763_v23  ;;  %v3766_v9 = vsel %vm3694_vm11, %v3658_v40, %v3730_v19  ;;  %v4886_v6 = vadd.f32 %v4850_v27, %v4660_v1  ;;  %v3485_v24 = vpop.f32.mrb[5].mxu0 }
 0x235   : > { %3946 = vst.msk [vmem:[%s6278_s25 + $0x8] sm:$0xf] %vm3943_vm10, %v4333_v7  ;;  %v4334_v3 = vpack.c.bf16 %v3766_v9, %v3766_v9  ;;  %v3764_v29 = vsel %vm3692_vm12, %v3656_v8, %v3728_v48  ;;  %v4887_v44 = vadd.f32 %v3485_v24, %v1524_v60  ;;  %v4851_v49 = vpop.f32.mrb[6].mxu0 }
 0x236   : > { %3944 = vst.msk [vmem:[%s6278_s25] sm:$0xf] %vm3943_vm10, %v4331_v53  ;;  %v4332_v16 = vpack.c.bf16 %v3764_v29, %v3764_v29  ;;  %v3661_v54 = vadd.f32 %v4886_v6, %v6268_v59  ;;  %v4888_v37 = vadd.f32 %v4851_v49, %v4661_v22  ;;  %v3488_v25 = vpop.f32.mrb[7].mxu0 }
 0x237   : > { %3947 = vst.msk [vmem:[%s6278_s25 + $0xc] sm:$0xf] %vm3943_vm10, %v4334_v3  ;;  %v3659_v39 = vadd.f32 %v4887_v44, %v6268_v59  ;;  %v4889_v36 = vadd.f32 %v3488_v25, %v1527_v58 }
 0x238   : > { %3945 = vst.msk [vmem:[%s6278_s25 + $0x4] sm:$0xf] %vm3943_vm10, %v4332_v16  ;;  %vm3697_vm13 = vcmp.ge.f32.partialorder %v3661_v54, 0.0  ;;  %v3733_v62 = vmul.f32 0.2, %v3661_v54  ;;  %v3662_v30 = vadd.f32 %v4888_v37, %v6268_v59 }
 0x239   : > { %vm3695_vm14 = vcmp.ge.f32.partialorder %v3659_v39, 0.0  ;;  %v3731_v57 = vmul.f32 0.2, %v3659_v39  ;;  %v3660_v14 = vadd.f32 %v4889_v36, %v6268_v59 }
 0x23a   : > { %v3769_v63 = vsel %vm3697_vm13, %v3661_v54, %v3733_v62  ;;  %vm3698_vm15 = vcmp.ge.f32.partialorder %v3662_v30, 0.0  ;;  %v3734_v45 = vmul.f32 0.2, %v3662_v30 }
 0x23b   : > { %v4337_v35 = vpack.c.bf16 %v3769_v63, %v3769_v63  ;;  %v3767_v34 = vsel %vm3695_vm14, %v3659_v39, %v3731_v57  ;;  %vm3696_vm0 = vcmp.ge.f32.partialorder %v3660_v14, 0.0  ;;  %v3732_v20 = vmul.f32 0.2, %v3660_v14  ;;  %v4854_v50 = vpop.f32.mrb[8].mxu0 }
 0x23c   : > { %v4335_v52 = vpack.c.bf16 %v3767_v34, %v3767_v34  ;;  %v3770_v12 = vsel %vm3698_vm15, %v3662_v30, %v3734_v45  ;;  %v4890_v15 = vadd.f32 %v4854_v50, %v6244_v51  ;;  %v3501_v1 = vpop.f32.mrb[9].mxu0 }
 0x23d   : > { %3950 = vst.msk [vmem:[%s6278_s25 + $0x18] sm:$0xf] %vm3943_vm10, %v4337_v35  ;;  %v4338_v60 = vpack.c.bf16 %v3770_v12, %v3770_v12  ;;  %v3768_v22 = vsel %vm3696_vm0, %v3660_v14, %v3732_v20  ;;  %v4891_v58 = vadd.f32 %v3501_v1, %v6246_v31  ;;  %v4855_v41 = vpop.f32.mrb[10].mxu0 }
 0x23e   : > { %3948 = vst.msk [vmem:[%s6278_s25 + $0x10] sm:$0xf] %vm3943_vm10, %v4335_v52  ;;  %v4336_v11 = vpack.c.bf16 %v3768_v22, %v3768_v22  ;;  %v3665_v61 = vadd.f32 %v4890_v15, %v6268_v59  ;;  %v4892_v2 = vadd.f32 %v4855_v41, %v6248_v26  ;;  %v3504_v17 = vpop.f32.mrb[11].mxu0 }
 0x23f   : > { %3951 = vst.msk [vmem:[%s6278_s25 + $0x1c] sm:$0xf] %vm3943_vm10, %v4338_v60  ;;  %v3663_v51 = vadd.f32 %v4891_v58, %v6268_v59  ;;  %v4893_v13 = vadd.f32 %v3504_v17, %v6250_v18 }
 0x240   : > { %3949 = vst.msk [vmem:[%s6278_s25 + $0x14] sm:$0xf] %vm3943_vm10, %v4336_v11  ;;  %vm3701_vm1 = vcmp.ge.f32.partialorder %v3665_v61, 0.0  ;;  %v3737_v0 = vmul.f32 0.2, %v3665_v61  ;;  %v3666_v31 = vadd.f32 %v4892_v2, %v6268_v59 }
 0x241   : > { %vm3699_vm2 = vcmp.ge.f32.partialorder %v3663_v51, 0.0  ;;  %v3735_v42 = vmul.f32 0.2, %v3663_v51  ;;  %v3664_v47 = vadd.f32 %v4893_v13, %v6268_v59 }
 0x242   : > { %v3773_v21 = vsel %vm3701_vm1, %v3665_v61, %v3737_v0  ;;  %vm3702_vm3 = vcmp.ge.f32.partialorder %v3666_v31, 0.0  ;;  %v3738_v26 = vmul.f32 0.2, %v3666_v31 }
 0x243   : > { %v4341_v38 = vpack.c.bf16 %v3773_v21, %v3773_v21  ;;  %v3771_v40 = vsel %vm3699_vm2, %v3663_v51, %v3735_v42  ;;  %vm3700_vm4 = vcmp.ge.f32.partialorder %v3664_v47, 0.0  ;;  %v3736_v43 = vmul.f32 0.2, %v3664_v47  ;;  %v4858_v18 = vpop.f32.mrb[12].mxu0 }
 0x244   : > { %v4339_v8 = vpack.c.bf16 %v3771_v40, %v3771_v40  ;;  %v3774_v46 = vsel %vm3702_vm3, %v3666_v31, %v3738_v26  ;;  %v4894_v19 = vadd.f32 %v4858_v18, %v6252_v28  ;;  %v3517_v7 = vpop.f32.mrb[13].mxu0 }
 0x245   : > { %3954 = vst.msk [vmem:[%s6278_s25 + $0x28] sm:$0xf] %vm3943_vm10, %v4341_v38  ;;  %v4342_v23 = vpack.c.bf16 %v3774_v46, %v3774_v46  ;;  %v3772_v48 = vsel %vm3700_vm4, %v3664_v47, %v3736_v43  ;;  %v4895_v27 = vadd.f32 %v3517_v7, %v6254_v33  ;;  %v4859_v53 = vpop.f32.mrb[14].mxu0 }
 0x246   : > { %3952 = vst.msk [vmem:[%s6278_s25 + $0x20] sm:$0xf] %vm3943_vm10, %v4339_v8  ;;  %v4340_v9 = vpack.c.bf16 %v3772_v48, %v3772_v48  ;;  %v3669_v6 = vadd.f32 %v4894_v19, %v6268_v59  ;;  %v4896_v24 = vadd.f32 %v4859_v53, %v6256_v55  ;;  %v3520_v3 = vpop.f32.mrb[15].mxu0 }
 0x247   : > { %3955 = vst.msk [vmem:[%s6278_s25 + $0x2c] sm:$0xf] %vm3943_vm10, %v4342_v23  ;;  %v3667_v28 = vadd.f32 %v4895_v27, %v6268_v59  ;;  %v4897_v44 = vadd.f32 %v3520_v3, %v6258_v32 }
 0x248   : > { %v4714_v29 = vpop.f32.mrb[20].mxu1  ;;  %3953 = vst.msk [vmem:[%s6278_s25 + $0x24] sm:$0xf] %vm3943_vm10, %v4340_v9  ;;  %vm3705_vm5 = vcmp.ge.f32.partialorder %v3669_v6, 0.0  ;;  %v3741_v33 = vmul.f32 0.2, %v3669_v6  ;;  %v3670_v16 = vadd.f32 %v4896_v24, %v6268_v59 }
 0x249   : > { %v2035_v49 = vpop.f32.mrb[21].mxu1  ;;  %vm3703_vm6 = vcmp.ge.f32.partialorder %v3667_v28, 0.0  ;;  %v3739_v37 = vmul.f32 0.2, %v3667_v28  ;;  %v3668_v55 = vadd.f32 %v4897_v44, %v6268_v59 }
 0x24a   : > { %v4715_v54 = vpop.f32.mrb[22].mxu1  ;;  %v3777_v39 = vsel %vm3705_vm5, %v3669_v6, %v3741_v33  ;;  %vm3706_vm7 = vcmp.ge.f32.partialorder %v3670_v16, 0.0  ;;  %v3742_v36 = vmul.f32 0.2, %v3670_v16 }
 0x24b   : > { %v2038_v25 = vpop.f32.mrb[23].mxu1  ;;  %v4345_v62 = vpack.c.bf16 %v3777_v39, %v3777_v39  ;;  %v3775_v32 = vsel %vm3703_vm6, %v3667_v28, %v3739_v37  ;;  %vm3704_vm8 = vcmp.ge.f32.partialorder %v3668_v55, 0.0  ;;  %v3740_v30 = vmul.f32 0.2, %v3668_v55  ;;  %v4862_v57 = vpop.f32.mrb[16].mxu0 }
 0x24c   : > { %v4343_v14 = vpack.c.bf16 %v3775_v32, %v3775_v32  ;;  %v3778_v63 = vsel %vm3706_vm7, %v3670_v16, %v3742_v36  ;;  %v4898_v45 = vadd.f32 %v4862_v57, %v6260_v10  ;;  %v3533_v35 = vpop.f32.mrb[17].mxu0 }
 0x24d   : > { %3958 = vst.msk [vmem:[%s6278_s25 + $0x38] sm:$0xf] %vm3943_vm10, %v4345_v62  ;;  %v4346_v34 = vpack.c.bf16 %v3778_v63, %v3778_v63  ;;  %v3776_v20 = vsel %vm3704_vm8, %v3668_v55, %v3740_v30  ;;  %v4899_v50 = vadd.f32 %v3533_v35, %v6262_v56  ;;  %v4863_v52 = vpop.f32.mrb[18].mxu0 }
 0x24e   : > { %3956 = vst.msk [vmem:[%s6278_s25 + $0x30] sm:$0xf] %vm3943_vm10, %v4343_v14  ;;  %v4344_v12 = vpack.c.bf16 %v3776_v20, %v3776_v20  ;;  %v3673_v15 = vadd.f32 %v4898_v45, %v6268_v59  ;;  %v4900_v1 = vadd.f32 %v4863_v52, %v6264_v5  ;;  %v3536_v60 = vpop.f32.mrb[19].mxu0 }
 0x24f   : > { %3959 = vst.msk [vmem:[%s6278_s25 + $0x3c] sm:$0xf] %vm3943_vm10, %v4346_v34  ;;  %v3671_v10 = vadd.f32 %v4899_v50, %v6268_v59  ;;  %v4901_v58 = vadd.f32 %v3536_v60, %v6266_v4 }
 0x250   : > { %v4718_v22 = vpop.f32.mrb[24].mxu1  ;;  %3957 = vst.msk [vmem:[%s6278_s25 + $0x34] sm:$0xf] %vm3943_vm10, %v4344_v12  ;;  %vm3709_vm9 = vcmp.ge.f32.partialorder %v3673_v15, 0.0  ;;  %v3745_v56 = vmul.f32 0.2, %v3673_v15  ;;  %v3674_v11 = vadd.f32 %v4900_v1, %v6268_v59 }
 0x251   : > { %v2051_v41 = vpop.f32.mrb[25].mxu1  ;;  %vm3707_vm11 = vcmp.ge.f32.partialorder %v3671_v10, 0.0  ;;  %v3743_v2 = vmul.f32 0.2, %v3671_v10  ;;  %v3672_v5 = vadd.f32 %v4901_v58, %v6268_v59 }
 0x252   : > { %v4719_v61 = vpop.f32.mrb[26].mxu1  ;;  %v3781_v51 = vsel %vm3709_vm9, %v3673_v15, %v3745_v56  ;;  %vm3710_vm12 = vcmp.ge.f32.partialorder %v3674_v11, 0.0  ;;  %v3746_v13 = vmul.f32 0.2, %v3674_v11 }
 0x253   : > { %v2054_v17 = vpop.f32.mrb[27].mxu1  ;;  %v4349_v0 = vpack.c.bf16 %v3781_v51, %v3781_v51  ;;  %v3779_v4 = vsel %vm3707_vm11, %v3671_v10, %v3743_v2  ;;  %vm3708_vm13 = vcmp.ge.f32.partialorder %v3672_v5, 0.0  ;;  %v3744_v31 = vmul.f32 0.2, %v3672_v5  ;;  %v4866_v42 = vpop.f32.mrb[20].mxu0 }
 0x254   : > { %v4347_v47 = vpack.c.bf16 %v3779_v4, %v3779_v4  ;;  %v3782_v21 = vsel %vm3710_vm12, %v3674_v11, %v3746_v13  ;;  %v4902_v26 = vadd.f32 %v4866_v42, %v4714_v29  ;;  %v3549_v38 = vpop.f32.mrb[21].mxu0 }
 0x255   : > { %3962 = vst.msk [vmem:[%s6278_s25 + $0x48] sm:$0xf] %vm3943_vm10, %v4349_v0  ;;  %v4350_v40 = vpack.c.bf16 %v3782_v21, %v3782_v21  ;;  %v3780_v43 = vsel %vm3708_vm13, %v3672_v5, %v3744_v31  ;;  %v4903_v18 = vadd.f32 %v3549_v38, %v2035_v49  ;;  %v4867_v8 = vpop.f32.mrb[22].mxu0 }
 0x256   : > { %3960 = vst.msk [vmem:[%s6278_s25 + $0x40] sm:$0xf] %vm3943_vm10, %v4347_v47  ;;  %v4348_v46 = vpack.c.bf16 %v3780_v43, %v3780_v43  ;;  %v3677_v19 = vadd.f32 %v4902_v26, %v6268_v59  ;;  %v4904_v7 = vadd.f32 %v4867_v8, %v4715_v54  ;;  %v3552_v23 = vpop.f32.mrb[23].mxu0 }
 0x257   : > { %3963 = vst.msk [vmem:[%s6278_s25 + $0x4c] sm:$0xf] %vm3943_vm10, %v4350_v40  ;;  %v3675_v27 = vadd.f32 %v4903_v18, %v6268_v59  ;;  %v4905_v53 = vadd.f32 %v3552_v23, %v2038_v25 }
 0x258   : > { %v4722_v48 = vpop.f32.mrb[28].mxu1  ;;  %3961 = vst.msk [vmem:[%s6278_s25 + $0x44] sm:$0xf] %vm3943_vm10, %v4348_v46  ;;  %vm3713_vm14 = vcmp.ge.f32.partialorder %v3677_v19, 0.0  ;;  %v3749_v6 = vmul.f32 0.2, %v3677_v19  ;;  %v3678_v24 = vadd.f32 %v4904_v7, %v6268_v59 }
 0x259   : > { %v2067_v9 = vpop.f32.mrb[29].mxu1  ;;  %vm3711_vm15 = vcmp.ge.f32.partialorder %v3675_v27, 0.0  ;;  %v3747_v29 = vmul.f32 0.2, %v3675_v27  ;;  %v3676_v28 = vadd.f32 %v4905_v53, %v6268_v59 }
 0x25a   : > { %v4723_v3 = vpop.f32.mrb[30].mxu1  ;;  %v3785_v49 = vsel %vm3713_vm14, %v3677_v19, %v3749_v6  ;;  %vm3714_vm0 = vcmp.ge.f32.partialorder %v3678_v24, 0.0  ;;  %v3750_v33 = vmul.f32 0.2, %v3678_v24 }
 0x25b   : > { %v2070_v44 = vpop.f32.mrb[31].mxu1  ;;  %v4353_v16 = vpack.c.bf16 %v3785_v49, %v3785_v49  ;;  %v3783_v54 = vsel %vm3711_vm15, %v3675_v27, %v3747_v29  ;;  %vm3712_vm1 = vcmp.ge.f32.partialorder %v3676_v28, 0.0  ;;  %v3748_v37 = vmul.f32 0.2, %v3676_v28  ;;  %v4870_v55 = vpop.f32.mrb[24].mxu0 }
 0x25c   : > { %v4351_v25 = vpack.c.bf16 %v3783_v54, %v3783_v54  ;;  %v3786_v39 = vsel %vm3714_vm0, %v3678_v24, %v3750_v33  ;;  %v4906_v36 = vadd.f32 %v4870_v55, %v4718_v22  ;;  %v3565_v62 = vpop.f32.mrb[25].mxu0 }
 0x25d   : > { %3966 = vst.msk [vmem:[%s6278_s25 + $0x58] sm:$0xf] %vm3943_vm10, %v4353_v16  ;;  %v4354_v32 = vpack.c.bf16 %v3786_v39, %v3786_v39  ;;  %v3784_v30 = vsel %vm3712_vm1, %v3676_v28, %v3748_v37  ;;  %v4907_v57 = vadd.f32 %v3565_v62, %v2051_v41  ;;  %v4871_v14 = vpop.f32.mrb[26].mxu0 }
 0x25e   : > { %3964 = vst.msk [vmem:[%s6278_s25 + $0x50] sm:$0xf] %vm3943_vm10, %v4351_v25  ;;  %v4352_v63 = vpack.c.bf16 %v3784_v30, %v3784_v30  ;;  %v3681_v45 = vadd.f32 %v4906_v36, %v6268_v59  ;;  %v4908_v35 = vadd.f32 %v4871_v14, %v4719_v61  ;;  %v3568_v34 = vpop.f32.mrb[27].mxu0 }
 0x25f   : > { %3967 = vst.msk [vmem:[%s6278_s25 + $0x5c] sm:$0xf] %vm3943_vm10, %v4354_v32  ;;  %v3679_v50 = vadd.f32 %v4907_v57, %v6268_v59  ;;  %v4909_v52 = vadd.f32 %v3568_v34, %v2054_v17 }
 0x260   : > { %v4726_v20 = vpop.f32.mrb[32].mxu1  ;;  %3965 = vst.msk [vmem:[%s6278_s25 + $0x54] sm:$0xf] %vm3943_vm10, %v4352_v63  ;;  %vm3717_vm2 = vcmp.ge.f32.partialorder %v3681_v45, 0.0  ;;  %v3753_v15 = vmul.f32 0.2, %v3681_v45  ;;  %v3682_v1 = vadd.f32 %v4908_v35, %v6268_v59 }
 0x261   : > { %v2083_v12 = vpop.f32.mrb[33].mxu1  ;;  %vm3715_vm3 = vcmp.ge.f32.partialorder %v3679_v50, 0.0  ;;  %v3751_v22 = vmul.f32 0.2, %v3679_v50  ;;  %v3680_v10 = vadd.f32 %v4909_v52, %v6268_v59 }
 0x262   : > { %v4727_v60 = vpop.f32.mrb[34].mxu1  ;;  %v3789_v41 = vsel %vm3717_vm2, %v3681_v45, %v3753_v15  ;;  %vm3718_vm4 = vcmp.ge.f32.partialorder %v3682_v1, 0.0  ;;  %v3754_v56 = vmul.f32 0.2, %v3682_v1 }
 0x263   : > { %v2086_v58 = vpop.f32.mrb[35].mxu1  ;;  %v4357_v11 = vpack.c.bf16 %v3789_v41, %v3789_v41  ;;  %v3787_v61 = vsel %vm3715_vm3, %v3679_v50, %v3751_v22  ;;  %vm3716_vm5 = vcmp.ge.f32.partialorder %v3680_v10, 0.0  ;;  %v3752_v2 = vmul.f32 0.2, %v3680_v10  ;;  %v4874_v5 = vpop.f32.mrb[28].mxu0 }
 0x264   : > { %v4355_v17 = vpack.c.bf16 %v3787_v61, %v3787_v61  ;;  %v3790_v51 = vsel %vm3718_vm4, %v3682_v1, %v3754_v56  ;;  %v4910_v13 = vadd.f32 %v4874_v5, %v4722_v48  ;;  %v3581_v0 = vpop.f32.mrb[29].mxu0 }
 0x265   : > { %3970 = vst.msk [vmem:[%s6278_s25 + $0x68] sm:$0xf] %vm3943_vm10, %v4357_v11  ;;  %v4358_v4 = vpack.c.bf16 %v3790_v51, %v3790_v51  ;;  %v3788_v31 = vsel %vm3716_vm5, %v3680_v10, %v3752_v2  ;;  %v4911_v42 = vadd.f32 %v3581_v0, %v2067_v9  ;;  %v4875_v47 = vpop.f32.mrb[30].mxu0 }
 0x266   : > { %3968 = vst.msk [vmem:[%s6278_s25 + $0x60] sm:$0xf] %vm3943_vm10, %v4355_v17  ;;  %v4356_v21 = vpack.c.bf16 %v3788_v31, %v3788_v31  ;;  %v3685_v26 = vadd.f32 %v4910_v13, %v6268_v59  ;;  %v4912_v38 = vadd.f32 %v4875_v47, %v4723_v3  ;;  %v3584_v40 = vpop.f32.mrb[31].mxu0 }
 0x267   : > { %3971 = vst.msk [vmem:[%s6278_s25 + $0x6c] sm:$0xf] %vm3943_vm10, %v4358_v4  ;;  %v3683_v43 = vadd.f32 %v4911_v42, %v6268_v59  ;;  %v4913_v18 = vadd.f32 %v3584_v40, %v2070_v44 }
 0x268   : > { %3969 = vst.msk [vmem:[%s6278_s25 + $0x64] sm:$0xf] %vm3943_vm10, %v4356_v21  ;;  %vm3721_vm6 = vcmp.ge.f32.partialorder %v3685_v26, 0.0  ;;  %v3757_v8 = vmul.f32 0.2, %v3685_v26  ;;  %v3686_v46 = vadd.f32 %v4912_v38, %v6268_v59 }
 0x269   : > { %vm3719_vm7 = vcmp.ge.f32.partialorder %v3683_v43, 0.0  ;;  %v3755_v19 = vmul.f32 0.2, %v3683_v43  ;;  %v3684_v7 = vadd.f32 %v4913_v18, %v6268_v59 }
 0x26a   : > { %v3793_v23 = vsel %vm3721_vm6, %v3685_v26, %v3757_v8  ;;  %vm3722_vm8 = vcmp.ge.f32.partialorder %v3686_v46, 0.0  ;;  %v3758_v48 = vmul.f32 0.2, %v3686_v46 }
 0x26b   : > { %v4361_v27 = vpack.c.bf16 %v3793_v23, %v3793_v23  ;;  %v3791_v53 = vsel %vm3719_vm7, %v3683_v43, %v3755_v19  ;;  %vm3720_vm9 = vcmp.ge.f32.partialorder %v3684_v7, 0.0  ;;  %v3756_v9 = vmul.f32 0.2, %v3684_v7  ;;  %v4878_v6 = vpop.f32.mrb[32].mxu0 }
 0x26c   : > { %v4359_v24 = vpack.c.bf16 %v3791_v53, %v3791_v53  ;;  %v3794_v3 = vsel %vm3722_vm8, %v3686_v46, %v3758_v48  ;;  %v4914_v29 = vadd.f32 %v4878_v6, %v4726_v20  ;;  %v3597_v28 = vpop.f32.mrb[33].mxu0 }
 0x26d   : > { %3974 = vst.msk [vmem:[%s6278_s25 + $0x78] sm:$0xf] %vm3943_vm10, %v4361_v27  ;;  %v4362_v44 = vpack.c.bf16 %v3794_v3, %v3794_v3  ;;  %v3792_v49 = vsel %vm3720_vm9, %v3684_v7, %v3756_v9  ;;  %v4915_v33 = vadd.f32 %v3597_v28, %v2083_v12  ;;  %v4879_v16 = vpop.f32.mrb[34].mxu0 }
 0x26e   : > { %3972 = vst.msk [vmem:[%s6278_s25 + $0x70] sm:$0xf] %vm3943_vm10, %v4359_v24  ;;  %v4360_v54 = vpack.c.bf16 %v3792_v49, %v3792_v49  ;;  %v3689_v37 = vadd.f32 %v4914_v29, %v6268_v59  ;;  %v4916_v55 = vadd.f32 %v4879_v16, %v4727_v60  ;;  %v3600_v25 = vpop.f32.mrb[35].mxu0 }
 0x26f   : > { %3975 = vst.msk [vmem:[%s6278_s25 + $0x7c] sm:$0xf] %vm3943_vm10, %v4362_v44  ;;  %v3687_v39 = vadd.f32 %v4915_v33, %v6268_v59  ;;  %v4917_v36 = vadd.f32 %v3600_v25, %v2086_v58 }
 0x270   : > { %3973 = vst.msk [vmem:[%s6278_s25 + $0x74] sm:$0xf] %vm3943_vm10, %v4360_v54  ;;  %vm3725_vm11 = vcmp.ge.f32.partialorder %v3689_v37, 0.0  ;;  %v3761_v62 = vmul.f32 0.2, %v3689_v37  ;;  %v3690_v32 = vadd.f32 %v4916_v55, %v6268_v59 }
 0x271   : > { %vm3723_vm12 = vcmp.ge.f32.partialorder %v3687_v39, 0.0  ;;  %v3759_v30 = vmul.f32 0.2, %v3687_v39  ;;  %v3688_v57 = vadd.f32 %v4917_v36, %v6268_v59 }
 0x272   : > { %v3797_v14 = vsel %vm3725_vm11, %v3689_v37, %v3761_v62  ;;  %vm3726_vm13 = vcmp.ge.f32.partialorder %v3690_v32, 0.0  ;;  %v3762_v63 = vmul.f32 0.2, %v3690_v32 }
 0x273   : > { %v4365_v45 = vpack.c.bf16 %v3797_v14, %v3797_v14  ;;  %v3795_v35 = vsel %vm3723_vm12, %v3687_v39, %v3759_v30  ;;  %vm3724_vm14 = vcmp.ge.f32.partialorder %v3688_v57, 0.0  ;;  %v3760_v34 = vmul.f32 0.2, %v3688_v57 }
 0x274   : > { %v4363_v20 = vpack.c.bf16 %v3795_v35, %v3795_v35  ;;  %v3798_v50 = vsel %vm3726_vm13, %v3690_v32, %v3762_v63 }
 0x275   : > { %3978 = vst.msk [vmem:[%s6278_s25 + $0x88] sm:$0xf] %vm3943_vm10, %v4365_v45  ;;  %v4366_v52 = vpack.c.bf16 %v3798_v50, %v3798_v50  ;;  %v3796_v12 = vsel %vm3724_vm14, %v3688_v57, %v3760_v34 }
 0x276   : > { %3976 = vst.msk [vmem:[%s6278_s25 + $0x80] sm:$0xf] %vm3943_vm10, %v4363_v20  ;;  %v4364_v15 = vpack.c.bf16 %v3796_v12, %v3796_v12 }
 0x277   : > { %3979 = vst.msk [vmem:[%s6278_s25 + $0x8c] sm:$0xf] %vm3943_vm10, %v4366_v52 }
 0x278   : > { %3977 = vst.msk [vmem:[%s6278_s25 + $0x84] sm:$0xf] %vm3943_vm10, %v4364_v15 }
 0x279 PF: > { %s15_s12 = sadd.s32 1, %s5355_s12  }
 0x27a   : > { %p12_p5 = scmp.ge.s32.totalorder %s15_s12, 4  }
 0x27c   :  { %14 = sbr.rel (!%p12_p5) target bundleno = 2 (0x2), region = 79 }
 0x283   :  { %4001 = vsyncpa [#allocation3], 1 }
 0x284   :  { %4003 = vsyncpa [#allocation3 + $0x1], 1 }
 0x285   :  { %4004 = vsyncpa [#allocation5], 1 }

// kernel: discriminator_forward.4
= control target key start
LH: loop header
LB: loop body
LE: loop exit
PB: predicated region body
PF: predicated region fallthrough
CT: control target
= control target key end

     0   :  { %s3127_s18 = smov 0   ;;  %s3871_s0 = inlined_call_operand.vmem [shape: bf16[2,64,288], index: 0, kind: input, shape index: {}]   ;;  %s3872_s1 = inlined_call_operand.vmem [shape: bf16[288,64], index: 1, kind: input, shape index: {}]   ;;  %s3873_s2 = inlined_call_operand.vmem [shape: f32[1,64], index: 2, kind: input, shape index: {}]   ;;  %s3874_s3 = inlined_call_operand.vmem [shape: bf16[9,64,128], index: 3, kind: input, shape index: {}]   ;;  %s3875_s4 = inlined_call_operand.vmem [shape: f32[1,128], index: 4, kind: input, shape index: {}]   ;;  %s3876_s5 = inlined_call_operand.vmem [shape: bf16[2,80,128], index: 5, kind: output, shape index: {}]  }
   0x1 LB: > { %s2353_s19 = sadd.s32 4294967295, %s3093_s18   ;;  %p2357_p0 = scmp.ge.s32.totalorder %s3093_s18, 1  ;;  %s3093_s18 = sphi %s3127_s18, %s15_s18  }
   0x2   : > { %p187_p1 = scmp.lt.s32.totalorder %s3093_s18, 3 }
   0x4   : > { %p188_p2 = pnand %p2357_p0, %p187_p1 }
   0x5   : > { %v3015_v0 = vld [vmem:[%s3872_s1 + $0x40] sm:$0xff] (!%p188_p2)   ;;  %v3017_v2 = vld [vmem:[%s3872_s1 + $0x48] sm:$0xff] (!%p188_p2)   ;;  %v3019_v4 = vld [vmem:[%s3872_s1 + $0x50] sm:$0xff] (!%p188_p2)   ;;  %p215_p3 = scmp.lt.s32.totalorder (!%p188_p2), %s2353_s19, 1  ;;  %vm453_vm0 = vcmask (!%p188_p2), 261120   ;;  %v3095_v32 = vmov (!%p188_p2), 0.0  }
   0x6   : > { %191 = sbr.rel (%p188_p2) target bundleno = 764 (0x2fc), region = 40  ;;  %v3016_v1 = vld [vmem:[%s3872_s1] sm:$0xff] (!%p188_p2)   ;;  %2592 = vmatprep.subr.bf16.mxu0 (!%p188_p2), %v3015_v0  ;;  %v3018_v3 = vld [vmem:[%s3872_s1 + $0x8] sm:$0xff] (!%p188_p2)   ;;  %v3020_v5 = vld [vmem:[%s3872_s1 + $0x10] sm:$0xff] (!%p188_p2)   ;;  %vm620_vm1 = vcmask (!%p188_p2), 523264   ;;  %vm3096_vm2 = vmmov (!%p188_p2), 0  }
   0x7   : > { %2593 = vmatpush3.bf16.msra.mxu0 (!%p188_p2), %v3016_v1  ;;  %v3021_v6 = vld [vmem:[%s3872_s1 + $0x58] sm:$0xff] (!%p188_p2)   ;;  %v3023_v8 = vld [vmem:[%s3872_s1 + $0x60] sm:$0xff] (!%p188_p2)   ;;  %v3025_v11 = vld [vmem:[%s3872_s1 + $0x68] sm:$0xff] (!%p188_p2)   ;;  %622 = vst.msk [vmem:[#allocation2 + $0x8] sm:$0xff] (!%p188_p2), %vm620_vm1, %v3095_v32 }
   0x8   : > { %2594 = vmatprep.subr.bf16.mxu0 (!%p188_p2), %v3017_v2  ;;  %v3022_v7 = vld [vmem:[%s3872_s1 + $0x18] sm:$0xff] (!%p188_p2)   ;;  %v3029_v9 = vld [vmem:[%s3872_s1 + $0x80] sm:$0xff] (!%p188_p2)   ;;  %v3026_v12 = vld [vmem:[%s3872_s1 + $0x28] sm:$0xff] (!%p188_p2)   ;;  %623 = vst.msk [vmem:[#allocation2 + $0x10] sm:$0xff] (!%p188_p2), %vm620_vm1, %v3095_v32 }
   0x9   : > { %v3024_v10 = vld [vmem:[%s3872_s1 + $0x20] sm:$0xff] (!%p188_p2)   ;;  %2719 = vmatprep.subr.bf16.mxu1 (!%p188_p2), %v3029_v9  ;;  %v3032_v13 = vld [vmem:[%s3872_s1 + $0x88] sm:$0xff] (!%p188_p2)   ;;  %v3027_v14 = vld [vmem:[%s3872_s1 + $0x70] sm:$0xff] (!%p188_p2)   ;;  %621 = vst.msk [vmem:[#allocation2] sm:$0xff] (!%p188_p2), %vm620_vm1, %v3095_v32 }
   0xa   : > { %2720 = vmatpush3.bf16.msra.mxu1 (!%p188_p2), %v3029_v9  ;;  %v3028_v18 = vld [vmem:[%s3872_s1 + $0x30] sm:$0xff] (!%p188_p2)   ;;  %v3030_v19 = vld [vmem:[%s3872_s1 + $0x78] sm:$0xff] (!%p188_p2)   ;;  %v3049_v30 = vld [vmem:[%s3874_s3 + $0x20] sm:$0xff] (!%p188_p2)   ;;  %624 = vst.msk [vmem:[#allocation2 + $0x18] sm:$0xff] (!%p188_p2), %vm620_vm1, %v3095_v32 }
   0xb   : > { %2595 = vmatpush3.bf16.msra.mxu0 (!%p188_p2), %v3018_v3  ;;  %2721 = vmatprep.subr.bf16.mxu1 (!%p188_p2), %v3032_v13  ;;  %v3031_v21 = vld [vmem:[%s3872_s1 + $0x38] sm:$0xff] (!%p188_p2)   ;;  %v3050_v31 = vld [vmem:[%s3874_s3] sm:$0xff] (!%p188_p2)   ;;  %v3051_v33 = vld [vmem:[%s3874_s3 + $0x28] sm:$0xff] (!%p188_p2)   ;;  %625 = vst.msk [vmem:[#allocation2 + $0x20] sm:$0xff] (!%p188_p2), %vm620_vm1, %v3095_v32 }
   0xc   : > { %2596 = vmatprep.subr.bf16.mxu0 (!%p188_p2), %v3019_v4  ;;  %v3052_v34 = vld [vmem:[%s3874_s3 + $0x8] sm:$0xff] (!%p188_p2)   ;;  %626 = vst.msk [vmem:[#allocation2 + $0x28] sm:$0xff] (!%p188_p2), %vm620_vm1, %v3095_v32  ;;  %627 = vst.msk [vmem:[#allocation2 + $0x30] sm:$0xff] (!%p188_p2), %vm620_vm1, %v3095_v32  ;;  %v3053_v35 = vld [vmem:[%s3874_s3 + $0x30] sm:$0xff] (!%p188_p2)  }
   0xd   : > { %s3914_s19 = smov (!%p215_p3, %s2353_s19), 1  ;;  %628 = vst.msk [vmem:[#allocation2 + $0x38] sm:$0xff] %vm620_vm1, %v3095_v32  ;;  %629 = vst.msk [vmem:[#allocation2 + $0x40] sm:$0xff] %vm620_vm1, %v3095_v32  ;;  %v3054_v36 = vld [vmem:[%s3874_s3 + $0x10] sm:$0xff]   ;;  %v3055_v37 = vld [vmem:[%s3874_s3 + $0x38] sm:$0xff]  }
   0xe   : > { %s2983_s13 = smul.u32 96, %s3914_s19  ;;  %2722 = vmatpush3.bf16.msra.mxu1 %v3032_v13  ;;  %630 = vst.msk [vmem:[#allocation2 + $0x48] sm:$0xff] %vm620_vm1, %v3095_v32  ;;  %631 = vst.msk [vmem:[#allocation2 + $0x50] sm:$0xff] %vm620_vm1, %v3095_v32  ;;  %v3056_v38 = vld [vmem:[%s3874_s3 + $0x18] sm:$0xff]   ;;  %v3284_v48 = vld [vmem:[%s3873_s2] ss:$0 sm:$0xff] }
   0xf   : > { %2597 = vmatpush3.bf16.msra.mxu0 %v3020_v5  ;;  %2731 = vmatprep.subr.bf16.mxu1 %v3095_v32  ;;  %632 = vst.msk [vmem:[#allocation2 + $0x58] sm:$0xff] %vm620_vm1, %v3095_v32  ;;  %633 = vst.msk [vmem:[#allocation2 + $0x60] sm:$0xff] %vm620_vm1, %v3095_v32  ;;  %v3057_v13 = vld [vmem:[%s3874_s3 + $0x40] sm:$0xff]   ;;  %s2984_s21 = smul.u32 40, %s3914_s19 }
  0x10   : > { %2598 = vmatprep.subr.bf16.mxu0 %v3021_v6  ;;  %s3177_s24 = scalar_lea.vmem %s3871_s0, %s2983_s13 }
  0x11   : > { %v3035_v15 = vld [vmem:[%s3177_s24 + $0x4] ss:$12 sps:$4 sm:$0xff]   ;;  %v3036_v16 = vld [vmem:[%s3177_s24 + $0x8] ss:$12 sps:$4 sm:$0xff]   ;;  %v3037_v17 = vld [vmem:[%s3177_s24 + $0x20] ss:$12 sps:$4 sm:$0xff]   ;;  %s224_s23 = scalar_lea.vmem %s3876_s5, %s2984_s21 }
  0x12   : > { %498 = vmatprep.mubr.bf16.mxu0 %v3035_v15  ;;  %2723 = vmatprep.mubr.msk.bf16.mxu1 %vm453_vm0, %v3036_v16  ;;  %v3044_v20 = vld [vmem:[%s3177_s24 + $0x38] ss:$12 sps:$4 sm:$0xff]   ;;  %v3045_v22 = vld [vmem:[%s3177_s24 + $0x50] ss:$12 sps:$4 sm:$0xff]   ;;  %v3033_v23 = vld [vmem:[%s3177_s24] ss:$12 sps:$4 sm:$0xff]  }
  0x13   : > { %2599 = vmatpush3.bf16.msra.mxu0 %v3022_v7  ;;  %2724 = vmatmul.mubr.msk.bf16.vlgmr.msra.gmra.mrb[0].mxu1 %vm453_vm0, %v3037_v17  ;;  %v3038_v24 = vld [vmem:[%s3177_s24 + $0x1c] ss:$12 sps:$4 sm:$0xff]   ;;  %v3040_v25 = vld [vmem:[%s3177_s24 + $0x18] ss:$12 sps:$4 sm:$0xff]   ;;  %v3041_v26 = vld [vmem:[%s3177_s24 + $0x34] ss:$12 sps:$4 sm:$0xff]  }
  0x14   : > { %2600 = vmatprep.subr.bf16.mxu0 %v3023_v8  ;;  %2727 = vmatprep.mubr.msk.bf16.mxu1 %vm453_vm0, %v3044_v20  ;;  %v3043_v27 = vld [vmem:[%s3177_s24 + $0x30] ss:$12 sps:$4 sm:$0xff]   ;;  %v3046_v28 = vld [vmem:[%s3177_s24 + $0x4c] ss:$12 sps:$4 sm:$0xff]   ;;  %v3048_v29 = vld [vmem:[%s3177_s24 + $0x48] ss:$12 sps:$4 sm:$0xff]  }
  0x15   : > { %2732 = vmatpush3.bf16.msra.mxu1 %v3049_v30 }
  0x16   : > { %2733 = vmatprep.subr.bf16.mxu1 %v3095_v32 }
  0x17   : > { %2601 = vmatpush3.bf16.msra.mxu0 %v3024_v10  ;;  %v665_v10 = vld [vmem:[#allocation2 + $0x1] sm:$0xff] }
  0x18   : > { %2602 = vmatprep.subr.bf16.mxu0 %v3025_v11  ;;  %v642_v11 = vld [vmem:[#allocation2] sm:$0xff] }
  0x19   : > { %2734 = vmatpush3.bf16.msra.mxu1 %v3051_v33 }
  0x1a   : > { %2735 = vmatprep.subr.bf16.mxu1 %v3095_v32 }
  0x1b   : > { %2603 = vmatpush3.bf16.msra.mxu0 %v3026_v12  ;;  %2728 = vmatmul.mubr.msk.bf16.gmra.mrb[4].mxu1 %vm453_vm0, %v3045_v22 }
  0x1c   : > { %2604 = vmatprep.subr.bf16.mxu0 %v3027_v14  ;;  %2739 = vmatprep.mubr.msk.bf16.mxu1 %vm3096_vm2, %v3095_v32 }
  0x1d   : > { %2736 = vmatpush3.bf16.msra.mxu1 %v3053_v35 }
  0x1e   : > { %2737 = vmatprep.subr.bf16.mxu1 %v3095_v32 }
  0x1f   : > { %2605 = vmatpush3.bf16.msra.mxu0 %v3028_v18 }
  0x20   : > { %2606 = vmatprep.subr.bf16.mxu0 %v3030_v19 }
  0x21   : > { %2738 = vmatpush3.bf16.msra.mxu1 %v3055_v37 }
  0x22   : > { %2787 = vmatprep.subr.bf16.mxu1 %v3095_v32 }
  0x23   : > { %2607 = vmatpush3.bf16.msra.mxu0 %v3031_v21 }
  0x24   : > { %2759 = vmatprep.subr.bf16.mxu0 %v3095_v32 }
  0x26   : > { %499 = vmatmul.mubr.bf16.vlgmr.msra.gmra.mrb[0].mxu0 %v3033_v23 }
  0x27   : > { %506 = vmatprep.mubr.bf16.mxu0 %v3038_v24  ;;  %2760 = vmatpush3.bf16.msra.mxu0 %v3050_v31 }
  0x28   : > { %2761 = vmatprep.subr.bf16.mxu0 %v3095_v32 }
  0x2b   : > { %2762 = vmatpush3.bf16.msra.mxu0 %v3052_v34  ;;  %v3061_v34 = vld [vmem:[%s3874_s3 + $0x68] sm:$0xff]  }
  0x2c   : > { %2763 = vmatprep.subr.bf16.mxu0 %v3095_v32 }
  0x2e   : > { %507 = vmatmul.mubr.bf16.gmra.mrb[4].mxu0 %v3040_v25 }
  0x2f   : > { %514 = vmatprep.mubr.bf16.mxu0 %v3041_v26  ;;  %2764 = vmatpush3.bf16.msra.mxu0 %v3054_v36  ;;  %v3060_v26 = vld [vmem:[%s3874_s3 + $0x60] sm:$0xff]  }
  0x30   : > { %2765 = vmatprep.subr.bf16.mxu0 %v3095_v32 }
  0x33   : > { %2766 = vmatpush3.bf16.msra.mxu0 %v3056_v38 }
  0x34   : > { %2815 = vmatprep.subr.bf16.mxu0 %v3095_v32 }
  0x36   : > { %515 = vmatmul.mubr.bf16.gmra.mrb[8].mxu0 %v3043_v27 }
  0x37   : > { %522 = vmatprep.mubr.bf16.mxu0 %v3046_v28 }
  0x3e   : > { %523 = vmatmul.mubr.bf16.gmra.mrb[12].mxu0 %v3048_v29  ;;  %v3058_v29 = vld [vmem:[%s3874_s3 + $0x48] sm:$0xff]  }
  0x3f   : > { %2767 = vmatprep.mubr.msk.bf16.mxu0 %vm3096_vm2, %v3095_v32 }
  0xe6   : > { %v2725_v39 = vpop.f32.mrb[0].mxu1 }
  0xe7   : > { %v565_v40 = vpop.f32.mrb[1].mxu1 }
  0xe8   : > { %v2726_v41 = vpop.f32.mrb[2].mxu1 }
  0xe9   : > { %v568_v42 = vpop.f32.mrb[3].mxu1 }
  0xee   : > { %v3277_v43 = vpop.f32.mrb[4].mxu1 }
  0xef   : > { %v581_v44 = vpop.f32.mrb[5].mxu1 }
  0xf0   : > { %v3279_v46 = vpop.f32.mrb[6].mxu1 }
  0xf1   : > { %v584_v49 = vpop.f32.mrb[7].mxu1 }
  0xf9   : > { %v2608_v45 = vpop.f32.mrb[0].mxu0 }
  0xfa   : > { %v2609_v47 = vpop.f32.mrb[1].mxu0 }
  0xfb   : > { %v2610_v50 = vadd.f32 %v2609_v47, %v2608_v45  ;;  %v2611_v51 = vpop.f32.mrb[2].mxu0 }
  0xfc   : > { %v2612_v52 = vpop.f32.mrb[3].mxu0 }
  0xfd   : > { %v501_v53 = vadd.f32 %v2610_v50, %v3284_v48  ;;  %v2613_v54 = vadd.f32 %v2612_v52, %v2611_v51  ;;  %v3059_v50 = vld [vmem:[%s3874_s3 + $0x50] sm:$0xff]  }
  0xff   : > { %v566_v55 = vadd.f32 %v565_v40, %v501_v53  ;;  %v504_v56 = vadd.f32 %v2613_v54, %v3284_v48  ;;  %v3063_v54 = vld [vmem:[%s3874_s3 + $0x70] sm:$0xff]  }
 0x101   : > { %vm596_vm3 = vcmp.ge.f32.partialorder %v566_v55, 0.0  ;;  %v604_v57 = vmul.f32 0.2, %v566_v55  ;;  %v569_v58 = vadd.f32 %v568_v42, %v504_v56  ;;  %v2614_v59 = vpop.f32.mrb[4].mxu0 }
 0x102   : > { %v2615_v60 = vpop.f32.mrb[5].mxu0 }
 0x103   : > { %v612_v61 = vsel %vm596_vm3, %v566_v55, %v604_v57  ;;  %vm597_vm4 = vcmp.ge.f32.partialorder %v569_v58, 0.0  ;;  %v605_v62 = vmul.f32 0.2, %v569_v58  ;;  %v2616_v63 = vadd.f32 %v2615_v60, %v2614_v59  ;;  %v2617_v0 = vpop.f32.mrb[6].mxu0  ;;  %v3062_v57 = vld [vmem:[%s3874_s3 + $0x58] sm:$0xff]  }
 0x104   : > { %634 = vst.msk [vmem:[#allocation2 + $0xb] sm:$0xff] %vm620_vm1, %v612_v61  ;;  %v2618_v1 = vpop.f32.mrb[7].mxu0 }
 0x105   : > { %v613_v2 = vsel %vm597_vm4, %v569_v58, %v605_v62  ;;  %v509_v3 = vadd.f32 %v2616_v63, %v3284_v48  ;;  %v2619_v4 = vadd.f32 %v2618_v1, %v2617_v0 }
 0x106   : > { %635 = vst.msk [vmem:[#allocation2 + $0x15] sm:$0xff] %vm620_vm1, %v613_v2 }
 0x107   : > { %v574_v5 = vadd.f32 %v2725_v39, %v509_v3  ;;  %v512_v6 = vadd.f32 %v2619_v4, %v3284_v48 }
 0x109   : > { %vm598_vm5 = vcmp.ge.f32.partialorder %v574_v5, 0.0  ;;  %v606_v7 = vmul.f32 0.2, %v574_v5  ;;  %v577_v8 = vadd.f32 %v2726_v41, %v512_v6  ;;  %v2620_v9 = vpop.f32.mrb[8].mxu0 }
 0x10a   : > { %v2621_v12 = vpop.f32.mrb[9].mxu0 }
 0x10b   : > { %v614_v14 = vsel %vm598_vm5, %v574_v5, %v606_v7  ;;  %vm599_vm6 = vcmp.ge.f32.partialorder %v577_v8, 0.0  ;;  %v607_v15 = vmul.f32 0.2, %v577_v8  ;;  %v2622_v16 = vadd.f32 %v2621_v12, %v2620_v9  ;;  %v2623_v17 = vpop.f32.mrb[10].mxu0  ;;  %v666_v18 = vld [vmem:[#allocation2 + $0x9] sm:$0xff] }
 0x10c   : > { %v643_v19 = vld [vmem:[#allocation2 + $0x8] sm:$0xff]  ;;  %636 = vst.msk [vmem:[#allocation2 + $0x1f] sm:$0xff] %vm620_vm1, %v614_v14  ;;  %v2624_v20 = vpop.f32.mrb[11].mxu0  ;;  %v675_v21 = vpack.c.bf16 %v666_v18, %v665_v10  ;;  %v3065_v18 = vld [vmem:[%s3874_s3 + $0x80] sm:$0xff]  }
 0x10d   : > { %v652_v22 = vpack.c.bf16 %v643_v19, %v642_v11  ;;  %v615_v23 = vsel %vm599_vm6, %v577_v8, %v607_v15  ;;  %v2625_v24 = vadd.f32 %v2624_v20, %v2623_v17  ;;  %v517_v25 = vadd.f32 %v2622_v16, %v3284_v48  ;;  %v667_v36 = vld [vmem:[#allocation2 + $0x11] sm:$0xff]  ;;  %v913_v15 = vld [vmem:[#allocation2 + $0x2] sm:$0xff] }
 0x10e   : > { %637 = vst.msk [vmem:[#allocation2 + $0x29] sm:$0xff] %vm620_vm1, %v615_v23  ;;  %2740 = vmatmul.mubr.msk.bf16.vlgmr.msra.gmra.mrb[8].mxu1 %vm620_vm1, %v675_v21  ;;  %v644_v37 = vld [vmem:[#allocation2 + $0x10] sm:$0xff]  ;;  %v3068_v21 = vld [vmem:[%s3874_s3 + $0xa0] sm:$0xff]  }
 0x10f   : > { %2768 = vmatmul.mubr.msk.bf16.vlgmr.msra.gmra.mrb[16].mxu0 %vm620_vm1, %v652_v22  ;;  %v582_v27 = vadd.f32 %v581_v44, %v517_v25  ;;  %2788 = vmatpush3.bf16.msra.mxu1 %v3057_v13  ;;  %v520_v28 = vadd.f32 %v2625_v24, %v3284_v48  ;;  %v914_v16 = vld [vmem:[#allocation2 + $0xa] sm:$0xff]  ;;  %v1060_v17 = vld [vmem:[#allocation2 + $0x12] sm:$0xff] }
 0x110   : > { %2743 = vmatprep.mubr.msk.bf16.mxu1 %vm3096_vm2, %v3095_v32  ;;  %2771 = vmatprep.mubr.msk.bf16.mxu0 %vm3096_vm2, %v3095_v32  ;;  %v923_v19 = vpack.c.bf16 %v914_v16, %v913_v15  ;;  %v1069_v20 = vpack.c.bf16 %v1060_v17, %v914_v16  ;;  %v3066_v22 = vld [vmem:[%s3874_s3 + $0x88] sm:$0xff]  }
 0x111   : > { %2789 = vmatprep.subr.bf16.mxu1 %v3095_v32  ;;  %vm600_vm7 = vcmp.ge.f32.partialorder %v582_v27, 0.0  ;;  %v608_v30 = vmul.f32 0.2, %v582_v27  ;;  %v585_v31 = vadd.f32 %v584_v49, %v520_v28  ;;  %v2626_v33 = vpop.f32.mrb[12].mxu0  ;;  %2816 = vmatpush3.bf16.msra.mxu0 %v3060_v26  ;;  %v3069_v25 = vld [vmem:[%s3874_s3 + $0xa8] sm:$0xff]   ;;  %v3067_v28 = vld [vmem:[%s3874_s3 + $0x90] sm:$0xff]  }
 0x112   : > { %v2627_v35 = vpop.f32.mrb[13].mxu0  ;;  %2817 = vmatprep.subr.bf16.mxu0 %v3095_v32 }
 0x113   : > { %v616_v38 = vsel %vm600_vm7, %v582_v27, %v608_v30  ;;  %vm601_vm8 = vcmp.ge.f32.partialorder %v585_v31, 0.0  ;;  %v609_v39 = vmul.f32 0.2, %v585_v31  ;;  %v2628_v40 = vadd.f32 %v2627_v35, %v2626_v33  ;;  %v2629_v41 = vpop.f32.mrb[14].mxu0  ;;  %v668_v42 = vld [vmem:[#allocation2 + $0x19] sm:$0xff]  ;;  %2790 = vmatpush3.bf16.msra.mxu1 %v3058_v29  ;;  %v669_v63 = vld [vmem:[#allocation2 + $0x21] sm:$0xff] }
 0x114   : > { %v645_v44 = vld [vmem:[#allocation2 + $0x18] sm:$0xff]  ;;  %638 = vst.msk [vmem:[#allocation2 + $0x33] sm:$0xff] %vm620_vm1, %v616_v38  ;;  %v2630_v45 = vpop.f32.mrb[15].mxu0  ;;  %v676_v47 = vpack.c.bf16 %v668_v42, %v667_v36  ;;  %2791 = vmatprep.subr.bf16.mxu1 %v3095_v32  ;;  %v646_v0 = vld [vmem:[#allocation2 + $0x20] sm:$0xff]  ;;  %v3071_v29 = vld [vmem:[%s3874_s3 + $0xb0] sm:$0xff]  }
 0x115   : > { %v653_v49 = vpack.c.bf16 %v645_v44, %v644_v37  ;;  %v617_v51 = vsel %vm601_vm8, %v585_v31, %v609_v39  ;;  %v525_v52 = vadd.f32 %v2628_v40, %v3284_v48  ;;  %v2631_v53 = vadd.f32 %v2630_v45, %v2629_v41  ;;  %2818 = vmatpush3.bf16.msra.mxu0 %v3061_v34  ;;  %v647_v60 = vld [vmem:[#allocation2 + $0x28] sm:$0xff]  ;;  %v916_v23 = vld [vmem:[#allocation2 + $0x1a] sm:$0xff] }
 0x116   : > { %639 = vst.msk [vmem:[#allocation2 + $0x3d] sm:$0xff] %vm620_vm1, %v617_v51  ;;  %2744 = vmatmul.mubr.msk.bf16.gmra.mrb[12].mxu1 %vm620_vm1, %v676_v47  ;;  %2819 = vmatprep.subr.bf16.mxu0 %v3095_v32  ;;  %v1062_v24 = vld [vmem:[#allocation2 + $0x22] sm:$0xff]  ;;  %v924_v26 = vpack.c.bf16 %v916_v23, %v1060_v17  ;;  %v3070_v30 = vld [vmem:[%s3874_s3 + $0x98] sm:$0xff]   ;;  %v918_v31 = vld [vmem:[#allocation2 + $0x2a] sm:$0xff] }
 0x117   : > { %2772 = vmatmul.mubr.msk.bf16.gmra.mrb[20].mxu0 %vm620_vm1, %v653_v49  ;;  %v590_v55 = vadd.f32 %v3277_v43, %v525_v52  ;;  %v528_v56 = vadd.f32 %v2631_v53, %v3284_v48  ;;  %2747 = vmatprep.mubr.msk.bf16.mxu1 %vm3096_vm2, %v3095_v32  ;;  %v670_v43 = vld [vmem:[#allocation2 + $0x29] sm:$0xff]  ;;  %v3064_v48 = vld [vmem:[%s3874_s3 + $0x78] sm:$0xff]   ;;  %v1070_v27 = vpack.c.bf16 %v1062_v24, %v916_v23  ;;  %v3073_v52 = vld [vmem:[%s3874_s3 + $0xc0] sm:$0xff]  }
 0x118   : > { %2775 = vmatprep.mubr.msk.bf16.mxu0 %vm3096_vm2, %v3095_v32  ;;  %2792 = vmatpush3.bf16.msra.mxu1 %v3059_v50  ;;  %v677_v1 = vpack.c.bf16 %v670_v43, %v669_v63  ;;  %v3072_v34 = vld [vmem:[%s3874_s3 + $0xb8] sm:$0xff]   ;;  %v925_v35 = vpack.c.bf16 %v918_v31, %v1062_v24  ;;  %v1205_v50 = vld [vmem:[#allocation2 + $0xb] sm:$0xff] }
 0x119   : > { %vm602_vm9 = vcmp.ge.f32.partialorder %v590_v55, 0.0  ;;  %v610_v58 = vmul.f32 0.2, %v590_v55  ;;  %v593_v59 = vadd.f32 %v3279_v46, %v528_v56  ;;  %2793 = vmatprep.subr.bf16.mxu1 %v3095_v32  ;;  %2820 = vmatpush3.bf16.msra.mxu0 %v3063_v54  ;;  %v654_v46 = vpack.c.bf16 %v647_v60, %v646_v0  ;;  %v1206_v47 = vld [vmem:[#allocation2 + $0x13] sm:$0xff]  ;;  %v3074_v56 = vld [vmem:[%s3874_s3 + $0xc8] sm:$0xff]   ;;  %v1207_v43 = vld [vmem:[#allocation2 + $0x1b] sm:$0xff] }
 0x11a   : > { %2821 = vmatprep.subr.bf16.mxu0 %v3095_v32  ;;  %v3428_v49 = vld [vmem:[#allocation2 + $0x14] sm:$0xff]  ;;  %v1351_v51 = vld [vmem:[#allocation2 + $0xc] sm:$0xff]  ;;  %v1215_v53 = vpack.c.bf16 %v1206_v47, %v1205_v50  ;;  %v1353_v60 = vld [vmem:[#allocation2 + $0x1c] sm:$0xff] }
 0x11b   : > { %v618_v61 = vsel %vm602_vm9, %v590_v55, %v610_v58  ;;  %vm603_vm10 = vcmp.ge.f32.partialorder %v593_v59, 0.0  ;;  %v611_v62 = vmul.f32 0.2, %v593_v59  ;;  %v671_v3 = vld [vmem:[#allocation2 + $0x31] sm:$0xff]  ;;  %v1361_v54 = vpack.c.bf16 %v3428_v49, %v1351_v51  ;;  %v3076_v55 = vld [vmem:[%s3874_s3 + $0xe0] sm:$0xff]   ;;  %v3082_v24 = vld [vmem:[%s3874_s3 + $0x108] sm:$0xff]  }
 0x11c   : > { %640 = vst.msk [vmem:[#allocation2 + $0x47] sm:$0xff] %vm620_vm1, %v618_v61  ;;  %2794 = vmatpush3.bf16.msra.mxu1 %v3062_v57  ;;  %v648_v6 = vld [vmem:[#allocation2 + $0x30] sm:$0xff]  ;;  %v1208_v57 = vld [vmem:[#allocation2 + $0x23] sm:$0xff]  ;;  %v3078_v0 = vld [vmem:[%s3874_s3 + $0xd8] sm:$0xff]  }
 0x11d   : > { %v619_v2 = vsel %vm603_vm10, %v593_v59, %v611_v62  ;;  %2822 = vmatpush3.bf16.msra.mxu0 %v3064_v48  ;;  %2843 = vmatprep.subr.bf16.mxu1 %v3095_v32  ;;  %v672_v4 = vld [vmem:[#allocation2 + $0x39] sm:$0xff]  ;;  %v3447_v58 = vld [vmem:[#allocation2 + $0x24] sm:$0xff]  ;;  %v1216_v48 = vpack.c.bf16 %v1208_v57, %v1207_v43  ;;  %v3075_v62 = vld [vmem:[%s3874_s3 + $0xd0] sm:$0xff]  }
 0x11e   : > { %641 = vst.msk [vmem:[#allocation2 + $0x51] sm:$0xff] %vm620_vm1, %v619_v2  ;;  %2748 = vmatmul.mubr.msk.bf16.gmra.mrb[16].mxu1 %vm620_vm1, %v677_v1  ;;  %2871 = vmatprep.subr.bf16.mxu0 %v3095_v32  ;;  %v649_v5 = vld [vmem:[#allocation2 + $0x38] sm:$0xff]  ;;  %v678_v7 = vpack.c.bf16 %v672_v4, %v671_v3  ;;  %v3077_v59 = vld [vmem:[%s3874_s3 + $0xe8] sm:$0xff]   ;;  %v1362_v61 = vpack.c.bf16 %v3447_v58, %v1353_v60  ;;  %v3079_v63 = vld [vmem:[%s3874_s3 + $0xf0] sm:$0xff]  }
 0x11f   : > { %2776 = vmatmul.mubr.msk.bf16.gmra.mrb[24].mxu0 %vm620_vm1, %v654_v46  ;;  %2751 = vmatprep.mubr.msk.bf16.mxu1 %vm3096_vm2, %v3095_v32  ;;  %v655_v8 = vpack.c.bf16 %v649_v5, %v648_v6  ;;  %v1064_v33 = vld [vmem:[#allocation2 + $0x32] sm:$0xff]  ;;  %v920_v37 = vld [vmem:[#allocation2 + $0x3a] sm:$0xff] }
 0x120   : > { %2779 = vmatprep.mubr.msk.bf16.mxu0 %vm3096_vm2, %v3095_v32  ;;  %v1071_v36 = vpack.c.bf16 %v1064_v33, %v918_v31  ;;  %v926_v39 = vpack.c.bf16 %v920_v37, %v1064_v33  ;;  %v3080_v1 = vld [vmem:[%s3874_s3 + $0xf8] sm:$0xff]   ;;  %v1355_v2 = vld [vmem:[#allocation2 + $0x2c] sm:$0xff] }
 0x121   : > { %v1210_v46 = vld [vmem:[#allocation2 + $0x33] sm:$0xff]  ;;  %v1209_v4 = vld [vmem:[#allocation2 + $0x2b] sm:$0xff]  ;;  %v1648_v33 = vld [vmem:[#allocation2 + $0x3d] sm:$0xff] }
 0x122   : > { %v3474_v3 = vld [vmem:[#allocation2 + $0x34] sm:$0xff]  ;;  %v1217_v5 = vpack.c.bf16 %v1210_v46, %v1209_v4  ;;  %v1790_v47 = vld [vmem:[#allocation2 + $0x1e] sm:$0xff] }
 0x123   : > { %v673_v9 = vld [vmem:[#allocation2 + $0x41] sm:$0xff]  ;;  %v674_v10 = vld [vmem:[#allocation2 + $0x49] sm:$0xff]  ;;  %v1363_v6 = vpack.c.bf16 %v3474_v3, %v1355_v2  ;;  %v1647_v31 = vld [vmem:[#allocation2 + $0x35] sm:$0xff] }
 0x124   : > { %v650_v11 = vld [vmem:[#allocation2 + $0x40] sm:$0xff]  ;;  %v651_v12 = vld [vmem:[#allocation2 + $0x48] sm:$0xff]  ;;  %v679_v13 = vpack.c.bf16 %v674_v10, %v673_v9 }
 0x125   : > { %v656_v14 = vpack.c.bf16 %v651_v12, %v650_v11  ;;  %v1066_v38 = vld [vmem:[#allocation2 + $0x42] sm:$0xff]  ;;  %v922_v41 = vld [vmem:[#allocation2 + $0x4a] sm:$0xff]  ;;  %v1068_v42 = vld [vmem:[#allocation2 + $0x52] sm:$0xff] }
 0x126   : > { %2752 = vmatmul.mubr.msk.bf16.gmra.mrb[20].mxu1 %vm620_vm1, %v678_v7  ;;  %v1072_v40 = vpack.c.bf16 %v1066_v38, %v920_v37  ;;  %v927_v44 = vpack.c.bf16 %v922_v41, %v1066_v38  ;;  %v1073_v45 = vpack.c.bf16 %v1068_v42, %v922_v41  ;;  %v1212_v7 = vld [vmem:[#allocation2 + $0x43] sm:$0xff]  ;;  %v1211_v9 = vld [vmem:[#allocation2 + $0x3b] sm:$0xff]  ;;  %v1359_v15 = vld [vmem:[#allocation2 + $0x4c] sm:$0xff] }
 0x127   : > { %2780 = vmatmul.mubr.msk.bf16.gmra.mrb[28].mxu0 %vm620_vm1, %v655_v8  ;;  %2755 = vmatprep.mubr.msk.bf16.mxu1 %vm3096_vm2, %v3095_v32  ;;  %v1358_v8 = vld [vmem:[#allocation2 + $0x44] sm:$0xff]  ;;  %v1357_v10 = vld [vmem:[#allocation2 + $0x3c] sm:$0xff]  ;;  %v1218_v11 = vpack.c.bf16 %v1212_v7, %v1211_v9  ;;  %v1360_v16 = vld [vmem:[#allocation2 + $0x54] sm:$0xff] }
 0x128   : > { %2783 = vmatprep.mubr.msk.bf16.mxu0 %vm3096_vm2, %v3095_v32  ;;  %v1364_v12 = vpack.c.bf16 %v1358_v8, %v1357_v10  ;;  %v1649_v37 = vld [vmem:[#allocation2 + $0x45] sm:$0xff]  ;;  %v1510_v38 = vpack.c.bf16 %v1359_v15, %v1358_v8  ;;  %v1651_v41 = vld [vmem:[#allocation2 + $0x55] sm:$0xff]  ;;  %v1652_v42 = vld [vmem:[#allocation2 + $0x5d] sm:$0xff] }
 0x129   : > { %v1792_v51 = vld [vmem:[#allocation2 + $0x2e] sm:$0xff]  ;;  %v1797_v43 = vld [vmem:[#allocation2 + $0x56] sm:$0xff] }
 0x12a   : > { %v1796_v57 = vld [vmem:[#allocation2 + $0x4e] sm:$0xff] }
 0x12e   : > { %2756 = vmatmul.mubr.msk.bf16.gmra.mrb[24].mxu1 %vm620_vm1, %v679_v13  ;;  %v1213_v13 = vld [vmem:[#allocation2 + $0x4b] sm:$0xff] }
 0x12f   : > { %2784 = vmatmul.mubr.msk.bf16.gmra.mrb[32].mxu0 %vm620_vm1, %v656_v14  ;;  %2795 = vmatprep.mubr.msk.bf16.mxu1 %vm3096_vm2, %v3095_v32  ;;  %v1214_v14 = vld [vmem:[#allocation2 + $0x53] sm:$0xff] }
 0x130   : > { %2823 = vmatprep.mubr.msk.bf16.mxu0 %vm3096_vm2, %v3095_v32  ;;  %v1219_v17 = vpack.c.bf16 %v1214_v14, %v1213_v13 }
 0x136   : > { %2796 = vmatmul.mubr.msk.bf16.vlgmr.msra.gmra.mrb[28].mxu1 %vm620_vm1, %v923_v19  ;;  %v1644_v19 = vld [vmem:[#allocation2 + $0x1d] sm:$0xff] }
 0x137   : > { %2824 = vmatmul.mubr.msk.bf16.vlgmr.msra.gmra.mrb[36].mxu0 %vm620_vm1, %v1069_v20  ;;  %2844 = vmatpush3.bf16.msra.mxu1 %v3065_v18  ;;  %v1365_v18 = vpack.c.bf16 %v1360_v16, %v1359_v15  ;;  %v1643_v20 = vld [vmem:[#allocation2 + $0x15] sm:$0xff] }
 0x138   : > { %2799 = vmatprep.mubr.msk.bf16.mxu1 %vm3096_vm2, %v3095_v32  ;;  %2827 = vmatprep.mubr.msk.bf16.mxu0 %vm3096_vm2, %v3095_v32  ;;  %v1653_v23 = vpack.c.bf16 %v1644_v19, %v1643_v20 }
 0x139   : > { %2845 = vmatprep.subr.bf16.mxu1 %v3095_v32  ;;  %2872 = vmatpush3.bf16.msra.mxu0 %v3068_v21  ;;  %v3081_v21 = vld [vmem:[%s3874_s3 + $0x100] sm:$0xff]  }
 0x13a   : > { %2873 = vmatprep.subr.bf16.mxu0 %v3095_v32 }
 0x13b   : > { %2846 = vmatpush3.bf16.msra.mxu1 %v3066_v22  ;;  %v1507_v22 = vpack.c.bf16 %v1353_v60, %v3428_v49  ;;  %v1789_v49 = vld [vmem:[#allocation2 + $0x16] sm:$0xff]  ;;  %v1798_v60 = vld [vmem:[#allocation2 + $0x5e] sm:$0xff] }
 0x13c   : > { %2847 = vmatprep.subr.bf16.mxu1 %v3095_v32  ;;  %v1799_v50 = vpack.c.bf16 %v1790_v47, %v1789_v49 }
 0x13d   : > { %2874 = vmatpush3.bf16.msra.mxu0 %v3069_v25  ;;  %v1646_v25 = vld [vmem:[#allocation2 + $0x2d] sm:$0xff] }
 0x13e   : > { %2800 = vmatmul.mubr.msk.bf16.gmra.mrb[32].mxu1 %vm620_vm1, %v924_v26  ;;  %2875 = vmatprep.subr.bf16.mxu0 %v3095_v32  ;;  %v1645_v26 = vld [vmem:[#allocation2 + $0x25] sm:$0xff] }
 0x13f   : > { %2828 = vmatmul.mubr.msk.bf16.gmra.mrb[40].mxu0 %vm620_vm1, %v1070_v27  ;;  %2803 = vmatprep.mubr.msk.bf16.mxu1 %vm3096_vm2, %v3095_v32  ;;  %v1508_v27 = vpack.c.bf16 %v1355_v2, %v3447_v58  ;;  %v1795_v58 = vld [vmem:[#allocation2 + $0x46] sm:$0xff] }
 0x140   : > { %2831 = vmatprep.mubr.msk.bf16.mxu0 %vm3096_vm2, %v3095_v32  ;;  %2848 = vmatpush3.bf16.msra.mxu1 %v3067_v28  ;;  %v1654_v28 = vpack.c.bf16 %v1646_v25, %v1645_v26 }
 0x141   : > { %2849 = vmatprep.subr.bf16.mxu1 %v3095_v32  ;;  %2876 = vmatpush3.bf16.msra.mxu0 %v3071_v29  ;;  %v3083_v29 = vld [vmem:[%s3874_s3 + $0x110] sm:$0xff]  }
 0x142   : > { %2877 = vmatprep.subr.bf16.mxu0 %v3095_v32 }
 0x144   : > { %2850 = vmatpush3.bf16.msra.mxu1 %v3070_v30  ;;  %v3084_v30 = vld [vmem:[%s3874_s3 + $0x118] sm:$0xff]  }
 0x145   : > { %2878 = vmatpush3.bf16.msra.mxu0 %v3072_v34  ;;  %2899 = vmatprep.subr.bf16.mxu1 %v3095_v32  ;;  %v1509_v34 = vpack.c.bf16 %v1357_v10, %v3474_v3 }
 0x146   : > { %2804 = vmatmul.mubr.msk.bf16.gmra.mrb[36].mxu1 %vm620_vm1, %v925_v35  ;;  %2927 = vmatprep.subr.bf16.mxu0 %v3095_v32  ;;  %v1655_v35 = vpack.c.bf16 %v1648_v33, %v1647_v31 }
 0x147   : > { %2832 = vmatmul.mubr.msk.bf16.gmra.mrb[44].mxu0 %vm620_vm1, %v1071_v36  ;;  %2807 = vmatprep.mubr.msk.bf16.mxu1 %vm3096_vm2, %v3095_v32  ;;  %v1650_v36 = vld [vmem:[#allocation2 + $0x4d] sm:$0xff] }
 0x148   : > { %2835 = vmatprep.mubr.msk.bf16.mxu0 %vm3096_vm2, %v3095_v32 }
 0x14e   : > { %2808 = vmatmul.mubr.msk.bf16.gmra.mrb[40].mxu1 %vm620_vm1, %v926_v39  ;;  %v1656_v39 = vpack.c.bf16 %v1650_v36, %v1649_v37 }
 0x14f   : > { %2836 = vmatmul.mubr.msk.bf16.gmra.mrb[48].mxu0 %vm620_vm1, %v1072_v40  ;;  %2811 = vmatprep.mubr.msk.bf16.mxu1 %vm3096_vm2, %v3095_v32  ;;  %v1506_v40 = vld [vmem:[#allocation2 + $0x5c] sm:$0xff] }
 0x150   : > { %2839 = vmatprep.mubr.msk.bf16.mxu0 %vm3096_vm2, %v3095_v32 }
 0x156   : > { %2812 = vmatmul.mubr.msk.bf16.gmra.mrb[44].mxu1 %vm620_vm1, %v927_v44  ;;  %v1511_v44 = vpack.c.bf16 %v1506_v40, %v1360_v16 }
 0x157   : > { %2840 = vmatmul.mubr.msk.bf16.gmra.mrb[52].mxu0 %vm620_vm1, %v1073_v45  ;;  %2851 = vmatprep.mubr.msk.bf16.mxu1 %vm3096_vm2, %v3095_v32  ;;  %v1657_v45 = vpack.c.bf16 %v1652_v42, %v1651_v41 }
 0x158   : > { %2879 = vmatprep.mubr.msk.bf16.mxu0 %vm3096_vm2, %v3095_v32 }
 0x15e   : > { %2852 = vmatmul.mubr.msk.bf16.vlgmr.msra.gmra.mrb[48].mxu1 %vm620_vm1, %v1215_v53 }
 0x15f   : > { %2880 = vmatmul.mubr.msk.bf16.vlgmr.msra.gmra.mrb[56].mxu0 %vm620_vm1, %v1361_v54  ;;  %2900 = vmatpush3.bf16.msra.mxu1 %v3073_v52  ;;  %v1791_v52 = vld [vmem:[#allocation2 + $0x26] sm:$0xff]  ;;  %v1793_v54 = vld [vmem:[#allocation2 + $0x36] sm:$0xff] }
 0x160   : > { %2855 = vmatprep.mubr.msk.bf16.mxu1 %vm3096_vm2, %v3095_v32  ;;  %2883 = vmatprep.mubr.msk.bf16.mxu0 %vm3096_vm2, %v3095_v32  ;;  %v1800_v53 = vpack.c.bf16 %v1792_v51, %v1791_v52 }
 0x161   : > { %2901 = vmatprep.subr.bf16.mxu1 %v3095_v32  ;;  %2928 = vmatpush3.bf16.msra.mxu0 %v3076_v55  ;;  %v1794_v55 = vld [vmem:[#allocation2 + $0x3e] sm:$0xff] }
 0x162   : > { %2929 = vmatprep.subr.bf16.mxu0 %v3095_v32 }
 0x163   : > { %2902 = vmatpush3.bf16.msra.mxu1 %v3074_v56  ;;  %v1801_v56 = vpack.c.bf16 %v1794_v55, %v1793_v54 }
 0x164   : > { %2903 = vmatprep.subr.bf16.mxu1 %v3095_v32 }
 0x165   : > { %2930 = vmatpush3.bf16.msra.mxu0 %v3077_v59  ;;  %v1802_v59 = vpack.c.bf16 %v1796_v57, %v1795_v58 }
 0x166   : > { %2856 = vmatmul.mubr.msk.bf16.gmra.mrb[52].mxu1 %vm620_vm1, %v1216_v48  ;;  %2931 = vmatprep.subr.bf16.mxu0 %v3095_v32  ;;  %v1803_v48 = vpack.c.bf16 %v1798_v60, %v1797_v43 }
 0x167   : > { %2884 = vmatmul.mubr.msk.bf16.gmra.mrb[60].mxu0 %vm620_vm1, %v1362_v61  ;;  %2859 = vmatprep.mubr.msk.bf16.mxu1 %vm3096_vm2, %v3095_v32 }
 0x168   : > { %2887 = vmatprep.mubr.msk.bf16.mxu0 %vm3096_vm2, %v3095_v32  ;;  %2904 = vmatpush3.bf16.msra.mxu1 %v3075_v62 }
 0x169   : > { %2905 = vmatprep.subr.bf16.mxu1 %v3095_v32  ;;  %2932 = vmatpush3.bf16.msra.mxu0 %v3079_v63 }
 0x16a   : > { %2933 = vmatprep.subr.bf16.mxu0 %v3095_v32 }
 0x16c   : > { %2906 = vmatpush3.bf16.msra.mxu1 %v3078_v0 }
 0x16d   : > { %2934 = vmatpush3.bf16.msra.mxu0 %v3080_v1  ;;  %2955 = vmatprep.subr.bf16.mxu1 %v3095_v32 }
 0x16e   : > { %2860 = vmatmul.mubr.msk.bf16.gmra.mrb[56].mxu1 %vm620_vm1, %v1217_v5 }
 0x16f   : > { %2888 = vmatmul.mubr.msk.bf16.gmra.mrb[64].mxu0 %vm620_vm1, %v1363_v6  ;;  %2863 = vmatprep.mubr.msk.bf16.mxu1 %vm3096_vm2, %v3095_v32 }
 0x170   : > { %2891 = vmatprep.mubr.msk.bf16.mxu0 %vm3096_vm2, %v3095_v32 }
 0x176   : > { %2864 = vmatmul.mubr.msk.bf16.gmra.mrb[60].mxu1 %vm620_vm1, %v1218_v11 }
 0x177   : > { %2892 = vmatmul.mubr.msk.bf16.gmra.mrb[68].mxu0 %vm620_vm1, %v1364_v12  ;;  %2867 = vmatprep.mubr.msk.bf16.mxu1 %vm3096_vm2, %v3095_v32 }
 0x178   : > { %2895 = vmatprep.mubr.msk.bf16.mxu0 %vm3096_vm2, %v3095_v32 }
 0x17e   : > { %2868 = vmatmul.mubr.msk.bf16.gmra.mrb[64].mxu1 %vm620_vm1, %v1219_v17 }
 0x17f   : > { %2896 = vmatmul.mubr.msk.bf16.gmra.mrb[72].mxu0 %vm620_vm1, %v1365_v18  ;;  %2907 = vmatprep.mubr.msk.bf16.mxu1 %vm3096_vm2, %v3095_v32 }
 0x180   : > { %2935 = vmatprep.mubr.msk.bf16.mxu0 %vm3096_vm2, %v3095_v32 }
 0x186   : > { %2908 = vmatmul.mubr.msk.bf16.vlgmr.msra.gmra.mrb[68].mxu1 %vm620_vm1, %v1507_v22 }
 0x187   : > { %2936 = vmatmul.mubr.msk.bf16.vlgmr.msra.gmra.mrb[76].mxu0 %vm620_vm1, %v1653_v23  ;;  %2956 = vmatpush3.bf16.msra.mxu1 %v3081_v21 }
 0x188   : > { %2911 = vmatprep.mubr.msk.bf16.mxu1 %vm3096_vm2, %v3095_v32  ;;  %2939 = vmatprep.mubr.msk.bf16.mxu0 %vm3096_vm2, %v3095_v32 }
 0x189   : > { %2957 = vmatprep.subr.bf16.mxu1 %v3095_v32 }
 0x18b   : > { %2958 = vmatpush3.bf16.msra.mxu1 %v3082_v24 }
 0x18c   : > { %2959 = vmatprep.subr.bf16.mxu1 %v3095_v32 }
 0x18e   : > { %2912 = vmatmul.mubr.msk.bf16.gmra.mrb[72].mxu1 %vm620_vm1, %v1508_v27 }
 0x18f   : > { %2940 = vmatmul.mubr.msk.bf16.gmra.mrb[80].mxu0 %vm620_vm1, %v1654_v28  ;;  %2915 = vmatprep.mubr.msk.bf16.mxu1 %vm3096_vm2, %v3095_v32 }
 0x190   : > { %2943 = vmatprep.mubr.msk.bf16.mxu0 %vm3096_vm2, %v3095_v32  ;;  %2960 = vmatpush3.bf16.msra.mxu1 %v3083_v29 }
 0x191   : > { %2961 = vmatprep.subr.bf16.mxu1 %v3095_v32 }
 0x194   : > { %2962 = vmatpush3.bf16.msra.mxu1 %v3084_v30 }
 0x196   : > { %2916 = vmatmul.mubr.msk.bf16.gmra.mrb[76].mxu1 %vm620_vm1, %v1509_v34 }
 0x197   : > { %2944 = vmatmul.mubr.msk.bf16.gmra.mrb[84].mxu0 %vm620_vm1, %v1655_v35  ;;  %2919 = vmatprep.mubr.msk.bf16.mxu1 %vm3096_vm2, %v3095_v32 }
 0x198   : > { %2947 = vmatprep.mubr.msk.bf16.mxu0 %vm3096_vm2, %v3095_v32 }
 0x19e   : > { %2920 = vmatmul.mubr.msk.bf16.gmra.mrb[80].mxu1 %vm620_vm1, %v1510_v38 }
 0x19f   : > { %2948 = vmatmul.mubr.msk.bf16.gmra.mrb[88].mxu0 %vm620_vm1, %v1656_v39  ;;  %2923 = vmatprep.mubr.msk.bf16.mxu1 %vm3096_vm2, %v3095_v32 }
 0x1a0   : > { %2951 = vmatprep.mubr.msk.bf16.mxu0 %vm3096_vm2, %v3095_v32 }
 0x1a6   : > { %2924 = vmatmul.mubr.msk.bf16.gmra.mrb[84].mxu1 %vm620_vm1, %v1511_v44 }
 0x1a7   : > { %2952 = vmatmul.mubr.msk.bf16.gmra.mrb[92].mxu0 %vm620_vm1, %v1657_v45  ;;  %2963 = vmatprep.mubr.msk.bf16.mxu1 %vm3096_vm2, %v3095_v32 }
 0x1ae   : > { %2964 = vmatmul.mubr.msk.bf16.vlgmr.msra.gmra.mrb[88].mxu1 %vm620_vm1, %v1799_v50 }
 0x1af   : > { %2967 = vmatprep.mubr.msk.bf16.mxu1 %vm3096_vm2, %v3095_v32 }
 0x1b6   : > { %2968 = vmatmul.mubr.msk.bf16.gmra.mrb[92].mxu1 %vm620_vm1, %v1800_v53 }
 0x1b7   : > { %2971 = vmatprep.mubr.msk.bf16.mxu1 %vm3096_vm2, %v3095_v32 }
 0x1be   : > { %2972 = vmatmul.mubr.msk.bf16.gmra.mrb[96].mxu1 %vm620_vm1, %v1801_v56 }
 0x1bf   : > { %2975 = vmatprep.mubr.msk.bf16.mxu1 %vm3096_vm2, %v3095_v32 }
 0x1c6   : > { %2976 = vmatmul.mubr.msk.bf16.gmra.mrb[100].mxu1 %vm620_vm1, %v1802_v59 }
 0x1c7   : > { %2979 = vmatprep.mubr.msk.bf16.mxu1 %vm3096_vm2, %v3095_v32 }
 0x1ce   : > { %2980 = vmatmul.mubr.msk.bf16.gmra.mrb[104].mxu1 %vm620_vm1, %v1803_v48 }
 0x1e1   : > { %v762_v61 = vpop.f32.mrb[8].mxu1 }
 0x1e2   : > { %v874_v62 = vpop.f32.mrb[16].mxu0  ;;  %v2741_v0 = vpop.f32.mrb[9].mxu1 }
 0x1e3   : > { %v875_v63 = vadd.f32 %v874_v62, %v762_v61  ;;  %v2769_v1 = vpop.f32.mrb[17].mxu0  ;;  %v765_v46 = vpop.f32.mrb[10].mxu1 }
 0x1e4   : > { %v877_v2 = vpop.f32.mrb[18].mxu0  ;;  %v2742_v4 = vpop.f32.mrb[11].mxu1 }
 0x1e5   : > { %v878_v3 = vadd.f32 %v877_v2, %v765_v46  ;;  %v2770_v5 = vpop.f32.mrb[19].mxu0 }
 0x1e9   : > { %v770_v6 = vpop.f32.mrb[12].mxu1 }
 0x1ea   : > { %v882_v7 = vpop.f32.mrb[20].mxu0  ;;  %v2745_v9 = vpop.f32.mrb[13].mxu1 }
 0x1eb   : > { %v883_v8 = vadd.f32 %v882_v7, %v770_v6  ;;  %v2773_v32 = vpop.f32.mrb[21].mxu0  ;;  %v773_v10 = vpop.f32.mrb[14].mxu1 }
 0x1ec   : > { %v885_v11 = vpop.f32.mrb[22].mxu0  ;;  %v2746_v13 = vpop.f32.mrb[15].mxu1 }
 0x1ed   : > { %v886_v12 = vadd.f32 %v885_v11, %v773_v10  ;;  %v2774_v14 = vpop.f32.mrb[23].mxu0 }
 0x1f1   : > { %v778_v15 = vpop.f32.mrb[16].mxu1 }
 0x1f2   : > { %v890_v16 = vpop.f32.mrb[24].mxu0  ;;  %v2749_v18 = vpop.f32.mrb[17].mxu1 }
 0x1f3   : > { %v891_v17 = vadd.f32 %v890_v16, %v778_v15  ;;  %v2777_v19 = vpop.f32.mrb[25].mxu0  ;;  %v781_v20 = vpop.f32.mrb[18].mxu1 }
 0x1f4   : > { %v893_v21 = vpop.f32.mrb[26].mxu0  ;;  %v2750_v23 = vpop.f32.mrb[19].mxu1 }
 0x1f5   : > { %v894_v22 = vadd.f32 %v893_v21, %v781_v20  ;;  %v2778_v24 = vpop.f32.mrb[27].mxu0 }
 0x1f9   : > { %v786_v25 = vpop.f32.mrb[20].mxu1 }
 0x1fa   : > { %v898_v26 = vpop.f32.mrb[28].mxu0  ;;  %v2753_v28 = vpop.f32.mrb[21].mxu1 }
 0x1fb   : > { %v899_v27 = vadd.f32 %v898_v26, %v786_v25  ;;  %v2781_v29 = vpop.f32.mrb[29].mxu0  ;;  %v789_v30 = vpop.f32.mrb[22].mxu1 }
 0x1fc   : > { %v901_v31 = vpop.f32.mrb[30].mxu0  ;;  %v2754_v34 = vpop.f32.mrb[23].mxu1 }
 0x1fd   : > { %v902_v33 = vadd.f32 %v901_v31, %v789_v30  ;;  %v2782_v35 = vpop.f32.mrb[31].mxu0 }
 0x201   : > { %v794_v36 = vpop.f32.mrb[24].mxu1 }
 0x202   : > { %v906_v37 = vpop.f32.mrb[32].mxu0  ;;  %v2757_v39 = vpop.f32.mrb[25].mxu1 }
 0x203   : > { %v907_v38 = vadd.f32 %v906_v37, %v794_v36  ;;  %v2785_v40 = vpop.f32.mrb[33].mxu0  ;;  %v797_v41 = vpop.f32.mrb[26].mxu1 }
 0x204   : > { %v909_v42 = vpop.f32.mrb[34].mxu0  ;;  %v2758_v45 = vpop.f32.mrb[27].mxu1 }
 0x205   : > { %v910_v44 = vadd.f32 %v909_v42, %v797_v41  ;;  %v2786_v47 = vpop.f32.mrb[35].mxu0 }
 0x209   : > { %v1010_v49 = vpop.f32.mrb[28].mxu1 }
 0x20a   : > { %v1156_v50 = vpop.f32.mrb[36].mxu0  ;;  %v1049_v51 = vadd.f32 %v1010_v49, %v875_v63  ;;  %v2797_v52 = vpop.f32.mrb[29].mxu1 }
 0x20b   : > { %v2825_v53 = vpop.f32.mrb[37].mxu0  ;;  %v1013_v54 = vpop.f32.mrb[30].mxu1 }
 0x20c   : > { %v1159_v55 = vpop.f32.mrb[38].mxu0  ;;  %v1195_v56 = vadd.f32 %v1156_v50, %v1049_v51  ;;  %v1050_v57 = vadd.f32 %v1013_v54, %v878_v3  ;;  %v2798_v58 = vpop.f32.mrb[31].mxu1 }
 0x20d   : > { %v2826_v59 = vpop.f32.mrb[39].mxu0 }
 0x20e   : > { %v1196_v43 = vadd.f32 %v1159_v55, %v1050_v57 }
 0x211   : > { %v1018_v60 = vpop.f32.mrb[32].mxu1 }
 0x212   : > { %v1164_v48 = vpop.f32.mrb[40].mxu0  ;;  %v1051_v61 = vadd.f32 %v1018_v60, %v883_v8  ;;  %v2801_v62 = vpop.f32.mrb[33].mxu1 }
 0x213   : > { %v2829_v0 = vpop.f32.mrb[41].mxu0  ;;  %v1021_v1 = vpop.f32.mrb[34].mxu1 }
 0x214   : > { %v1167_v46 = vpop.f32.mrb[42].mxu0  ;;  %v1197_v2 = vadd.f32 %v1164_v48, %v1051_v61  ;;  %v1052_v4 = vadd.f32 %v1021_v1, %v886_v12  ;;  %v2802_v5 = vpop.f32.mrb[35].mxu1 }
 0x215   : > { %v2830_v63 = vpop.f32.mrb[43].mxu0 }
 0x216   : > { %v1198_v6 = vadd.f32 %v1167_v46, %v1052_v4 }
 0x219   : > { %v1026_v7 = vpop.f32.mrb[36].mxu1 }
 0x21a   : > { %v1172_v9 = vpop.f32.mrb[44].mxu0  ;;  %v1053_v32 = vadd.f32 %v1026_v7, %v891_v17  ;;  %v2805_v10 = vpop.f32.mrb[37].mxu1 }
 0x21b   : > { %v2833_v3 = vpop.f32.mrb[45].mxu0  ;;  %v1029_v11 = vpop.f32.mrb[38].mxu1 }
 0x21c   : > { %v1175_v13 = vpop.f32.mrb[46].mxu0  ;;  %v1199_v14 = vadd.f32 %v1172_v9, %v1053_v32  ;;  %v1054_v15 = vadd.f32 %v1029_v11, %v894_v22  ;;  %v2806_v16 = vpop.f32.mrb[39].mxu1 }
 0x21d   : > { %v2834_v8 = vpop.f32.mrb[47].mxu0 }
 0x21e   : > { %v1200_v18 = vadd.f32 %v1175_v13, %v1054_v15 }
 0x221   : > { %v1034_v19 = vpop.f32.mrb[40].mxu1 }
 0x222   : > { %v1180_v20 = vpop.f32.mrb[48].mxu0  ;;  %v1055_v21 = vadd.f32 %v1034_v19, %v899_v27  ;;  %v2809_v23 = vpop.f32.mrb[41].mxu1 }
 0x223   : > { %v2837_v12 = vpop.f32.mrb[49].mxu0  ;;  %v1037_v24 = vpop.f32.mrb[42].mxu1 }
 0x224   : > { %v1183_v25 = vpop.f32.mrb[50].mxu0  ;;  %v1201_v26 = vadd.f32 %v1180_v20, %v1055_v21  ;;  %v1056_v28 = vadd.f32 %v1037_v24, %v902_v33  ;;  %v2810_v29 = vpop.f32.mrb[43].mxu1 }
 0x225   : > { %v2838_v17 = vpop.f32.mrb[51].mxu0 }
 0x226   : > { %v1202_v30 = vadd.f32 %v1183_v25, %v1056_v28 }
 0x229   : > { %v1042_v31 = vpop.f32.mrb[44].mxu1 }
 0x22a   : > { %v1188_v34 = vpop.f32.mrb[52].mxu0  ;;  %v1057_v35 = vadd.f32 %v1042_v31, %v907_v38  ;;  %v2813_v36 = vpop.f32.mrb[45].mxu1 }
 0x22b   : > { %v2841_v22 = vpop.f32.mrb[53].mxu0  ;;  %v1045_v37 = vpop.f32.mrb[46].mxu1 }
 0x22c   : > { %v1191_v39 = vpop.f32.mrb[54].mxu0  ;;  %v1203_v40 = vadd.f32 %v1188_v34, %v1057_v35  ;;  %v1058_v41 = vadd.f32 %v1045_v37, %v910_v44  ;;  %v2814_v42 = vpop.f32.mrb[47].mxu1 }
 0x22d   : > { %v2842_v27 = vpop.f32.mrb[55].mxu0 }
 0x22e   : > { %v1204_v45 = vadd.f32 %v1191_v39, %v1058_v41 }
 0x231   : > { %v1302_v47 = vpop.f32.mrb[48].mxu1 }
 0x232   : > { %v1448_v49 = vpop.f32.mrb[56].mxu0  ;;  %v1341_v50 = vadd.f32 %v1302_v47, %v1195_v56  ;;  %v2853_v51 = vpop.f32.mrb[49].mxu1 }
 0x233   : > { %v2881_v33 = vpop.f32.mrb[57].mxu0  ;;  %v1305_v52 = vpop.f32.mrb[50].mxu1 }
 0x234   : > { %v1451_v53 = vpop.f32.mrb[58].mxu0  ;;  %v1487_v54 = vadd.f32 %v1448_v49, %v1341_v50  ;;  %v1342_v55 = vadd.f32 %v1305_v52, %v1196_v43  ;;  %v2854_v57 = vpop.f32.mrb[51].mxu1 }
 0x235   : > { %v2882_v38 = vpop.f32.mrb[59].mxu0  ;;  %v1952_v57 = vlaneseq }
 0x236   : > { %v1488_v58 = vadd.f32 %v1451_v53, %v1342_v55 }
 0x239   : > { %v1310_v59 = vpop.f32.mrb[52].mxu1 }
 0x23a   : > { %v1456_v60 = vpop.f32.mrb[60].mxu0  ;;  %v1343_v48 = vadd.f32 %v1310_v59, %v1197_v2  ;;  %v2857_v61 = vpop.f32.mrb[53].mxu1 }
 0x23b   : > { %v2885_v44 = vpop.f32.mrb[61].mxu0  ;;  %v1313_v62 = vpop.f32.mrb[54].mxu1 }
 0x23c   : > { %v1459_v0 = vpop.f32.mrb[62].mxu0  ;;  %v1489_v1 = vadd.f32 %v1456_v60, %v1343_v48  ;;  %v1344_v46 = vadd.f32 %v1313_v62, %v1198_v6  ;;  %v2858_v4 = vpop.f32.mrb[55].mxu1 }
 0x23d   : > { %v2886_v56 = vpop.f32.mrb[63].mxu0 }
 0x23e   : > { %v1490_v5 = vadd.f32 %v1459_v0, %v1344_v46 }
 0x241   : > { %v1318_v63 = vpop.f32.mrb[56].mxu1 }
 0x242   : > { %v1464_v7 = vpop.f32.mrb[64].mxu0  ;;  %v1345_v9 = vadd.f32 %v1318_v63, %v1199_v14  ;;  %v2861_v32 = vpop.f32.mrb[57].mxu1 }
 0x243   : > { %v2889_v43 = vpop.f32.mrb[65].mxu0  ;;  %v1321_v10 = vpop.f32.mrb[58].mxu1 }
 0x244   : > { %v1467_v3 = vpop.f32.mrb[66].mxu0  ;;  %v1491_v11 = vadd.f32 %v1464_v7, %v1345_v9  ;;  %v1346_v13 = vadd.f32 %v1321_v10, %v1200_v18  ;;  %v2862_v15 = vpop.f32.mrb[59].mxu1 }
 0x245   : > { %v2890_v2 = vpop.f32.mrb[67].mxu0 }
 0x246   : > { %v3557_v16 = vadd.f32 %v1467_v3, %v1346_v13 }
 0x249   : > { %v1326_v8 = vpop.f32.mrb[60].mxu1 }
 0x24a   : > { %v1472_v19 = vpop.f32.mrb[68].mxu0  ;;  %v1347_v20 = vadd.f32 %v1326_v8, %v1201_v26  ;;  %v2865_v6 = vpop.f32.mrb[61].mxu1 }
 0x24b   : > { %v2893_v21 = vpop.f32.mrb[69].mxu0  ;;  %v1329_v23 = vpop.f32.mrb[62].mxu1 }
 0x24c   : > { %v1475_v12 = vpop.f32.mrb[70].mxu0  ;;  %v3559_v24 = vadd.f32 %v1472_v19, %v1347_v20  ;;  %v1348_v14 = vadd.f32 %v1329_v23, %v1202_v30  ;;  %v2866_v25 = vpop.f32.mrb[63].mxu1 }
 0x24d   : > { %v2894_v28 = vpop.f32.mrb[71].mxu0 }
 0x24e   : > { %v3561_v29 = vadd.f32 %v1475_v12, %v1348_v14 }
 0x251   : > { %v1334_v17 = vpop.f32.mrb[64].mxu1 }
 0x252   : > { %v1480_v18 = vpop.f32.mrb[72].mxu0  ;;  %v1349_v31 = vadd.f32 %v1334_v17, %v1203_v40  ;;  %v2869_v34 = vpop.f32.mrb[65].mxu1 }
 0x253   : > { %v2897_v35 = vpop.f32.mrb[73].mxu0  ;;  %v1337_v36 = vpop.f32.mrb[66].mxu1 }
 0x254   : > { %v1483_v22 = vpop.f32.mrb[74].mxu0  ;;  %v3563_v37 = vadd.f32 %v1480_v18, %v1349_v31  ;;  %v1350_v26 = vadd.f32 %v1337_v36, %v1204_v45  ;;  %v2870_v39 = vpop.f32.mrb[67].mxu1  ;;  %v3571_v45 = vshrl.u32 %v1952_v57, 7 }
 0x255   : > { %v2898_v41 = vpop.f32.mrb[75].mxu0 }
 0x256   : > { %v3565_v42 = vadd.f32 %v1483_v22, %v1350_v26  ;;  %v3579_v7 = vmul.u32.u64.low 3435973837, %v3571_v45  ;;  %v3580_v9 = vmul.u32.u64.high 3435973837, %v3571_v45, %v3579_v7  ;;  %v3586_v3 = vadd.s32 16, %v3571_v45 }
 0x257   : > { %v3589_v19 = vadd.s32 24, %v3571_v45 }
 0x258   : > { %v3595_v12 = vmul.u32.u64.low 3435973837, %v3586_v3  ;;  %v3596_v14 = vmul.u32.u64.high 3435973837, %v3586_v3, %v3595_v12 }
 0x259   : > { %v1594_v27 = vpop.f32.mrb[68].mxu1  ;;  %v3602_v28 = vmul.u32.u64.low 3435973837, %v3589_v19  ;;  %v3603_v17 = vmul.u32.u64.high 3435973837, %v3589_v19, %v3602_v28 }
 0x25a   : > { %v1740_v30 = vpop.f32.mrb[76].mxu0  ;;  %v1633_v47 = vadd.f32 %v1594_v27, %v1487_v54  ;;  %v2909_v49 = vpop.f32.mrb[69].mxu1  ;;  %v3611_v27 = vadd.s32 40, %v3571_v45  ;;  %v3665_v28 = vld [vmem:[%s3875_s4] ss:$0 sm:$0xff] }
 0x25b   : > { %v2937_v50 = vpop.f32.mrb[77].mxu0  ;;  %v1597_v51 = vpop.f32.mrb[70].mxu1  ;;  %v2002_v57 = vshrl.u32 %v3603_v17, 3 }
 0x25c   : > { %v1743_v33 = vpop.f32.mrb[78].mxu0  ;;  %v3567_v52 = vadd.f32 %v1740_v30, %v1633_v47  ;;  %v1634_v40 = vadd.f32 %v1597_v51, %v1488_v58  ;;  %v2910_v53 = vpop.f32.mrb[71].mxu1  ;;  %v1954_v58 = vadd.s32 8, %v3571_v45 }
 0x25d   : > { %v2938_v55 = vpop.f32.mrb[79].mxu0 }
 0x25e   : > { %v3569_v38 = vadd.f32 %v1743_v33, %v1634_v40  ;;  %v3582_v32 = vmul.u32.u64.low 3435973837, %v1954_v58  ;;  %v3583_v43 = vmul.u32.u64.high 3435973837, %v1954_v58, %v3582_v32  ;;  %v1991_v33 = vshrl.u32 %v3596_v14, 3 }
 0x25f   : > { %v3634_v32 = vadd.s32 56, %v3571_v45 }
 0x260   : > { %v1980_v18 = vshrl.u32 %v3583_v43, 3 }
 0x261   : > { %v1602_v59 = vpop.f32.mrb[72].mxu1  ;;  %v3659_v12 = vmul.u32.u64.low 3435973837, %v3634_v32  ;;  %v3660_v14 = vmul.u32.u64.high 3435973837, %v3634_v32, %v3659_v12 }
 0x262   : > { %v1748_v60 = vpop.f32.mrb[80].mxu0  ;;  %v1635_v48 = vadd.f32 %v1602_v59, %v1489_v1  ;;  %v2913_v61 = vpop.f32.mrb[73].mxu1  ;;  %v1981_v51 = vmul.u32 10, %v1980_v18 }
 0x263   : > { %v2941_v44 = vpop.f32.mrb[81].mxu0  ;;  %v1605_v54 = vpop.f32.mrb[74].mxu1 }
 0x264   : > { %v1751_v62 = vpop.f32.mrb[82].mxu0  ;;  %v3573_v0 = vadd.f32 %v1748_v60, %v1635_v48  ;;  %v1636_v46 = vadd.f32 %v1605_v54, %v1490_v5  ;;  %v2914_v4 = vpop.f32.mrb[75].mxu1  ;;  %v3626_v59 = vmul.u32.u64.low 3435973837, %v3611_v27  ;;  %v3627_v60 = vmul.u32.u64.high 3435973837, %v3611_v27, %v3626_v59 }
 0x265   : > { %v2942_v56 = vpop.f32.mrb[83].mxu0  ;;  %v1992_v44 = vmul.u32 10, %v1991_v33  ;;  %v3631_v4 = vadd.s32 48, %v3571_v45 }
 0x266   : > { %v3576_v63 = vadd.f32 %v1751_v62, %v1636_v46 }
 0x269   : > { %v1610_v1 = vpop.f32.mrb[76].mxu1 }
 0x26a   : > { %v1756_v10 = vpop.f32.mrb[84].mxu0  ;;  %v1637_v13 = vadd.f32 %v1610_v1, %v1491_v11  ;;  %v2917_v5 = vpop.f32.mrb[77].mxu1  ;;  %v1969_v11 = vshrl.u32 %v3580_v9, 3  ;;  %v2003_v9 = vmul.u32 10, %v2002_v57 }
 0x26b   : > { %v2945_v15 = vpop.f32.mrb[85].mxu0  ;;  %v1613_v2 = vpop.f32.mrb[78].mxu1 }
 0x26c   : > { %v1759_v8 = vpop.f32.mrb[86].mxu0  ;;  %v3591_v20 = vadd.f32 %v1756_v10, %v1637_v13  ;;  %v1638_v6 = vadd.f32 %v1613_v2, %v3557_v16  ;;  %v2918_v21 = vpop.f32.mrb[79].mxu1  ;;  %v3607_v16 = vadd.s32 32, %v3571_v45  ;;  %v1970_v41 = vmul.u32 10, %v1969_v11 }
 0x26d   : > { %v2946_v23 = vpop.f32.mrb[87].mxu0  ;;  %v1993_v13 = vsub.s32 %v3586_v3, %v1992_v44  ;;  %v2004_v3 = vsub.s32 %v3589_v19, %v2003_v9 }
 0x26e   : > { %v3598_v25 = vadd.f32 %v1759_v8, %v1638_v6  ;;  %v1971_v55 = vsub.s32 %v3571_v45, %v1970_v41  ;;  %v2024_v23 = vshrl.u32 %v3627_v60, 3 }
 0x26f   : > { %vm2075_vm1 = vcmp.ne.s32.totalorder %v1993_v13, 0  ;;  %vm2085_vm2 = vcmp.lt.s32.totalorder %v1993_v13, 0  ;;  %vm2076_vm3 = vcmp.ne.s32.totalorder %v2004_v3, 0  ;;  %vm2086_vm4 = vcmp.lt.s32.totalorder %v2004_v3, 0 }
 0x270   : > { %vm2073_vm11 = vcmp.ne.s32.totalorder %v1971_v55, 0  ;;  %vm2083_vm12 = vcmp.lt.s32.totalorder %v1971_v55, 0  ;;  %vm3681_vm5 = vmand %vm2085_vm2, %vm2075_vm1  ;;  %v2106_v33 = vadd.s32 10, %v2004_v3 }
 0x271   : > { %v1618_v31 = vpop.f32.mrb[80].mxu1  ;;  %vm3644_vm15 = vmand %vm2083_vm12, %vm2073_vm11 }
 0x272   : > { %v1764_v34 = vpop.f32.mrb[88].mxu0  ;;  %v1639_v35 = vadd.f32 %v1618_v31, %v3559_v24  ;;  %v2921_v36 = vpop.f32.mrb[81].mxu1  ;;  %v3618_v40 = vmul.u32.u64.low 3435973837, %v3607_v16  ;;  %v3619_v24 = vmul.u32.u64.high 3435973837, %v3607_v16, %v3618_v40  ;;  %vm3700_vm8 = vmand %vm2086_vm4, %vm2076_vm3 }
 0x273   : > { %v2949_v22 = vpop.f32.mrb[89].mxu0  ;;  %v1621_v26 = vpop.f32.mrb[82].mxu1 }
 0x274   : > { %v1767_v39 = vpop.f32.mrb[90].mxu0  ;;  %v3613_v30 = vadd.f32 %v1764_v34, %v1639_v35  ;;  %v1640_v47 = vadd.f32 %v1621_v26, %v3561_v29  ;;  %v2922_v49 = vpop.f32.mrb[83].mxu1  ;;  %v1982_v29 = vsub.s32 %v1954_v58, %v1981_v51  ;;  %v2013_v5 = vshrl.u32 %v3619_v24, 3 }
 0x275   : > { %v2950_v50 = vpop.f32.mrb[91].mxu0  ;;  %v3673_v35 = vadd.s32 64, %v3571_v45  ;;  %v2105_v22 = vadd.s32 10, %v1993_v13  ;;  %v2025_v26 = vmul.u32 10, %v2024_v23  ;;  %v3686_v49 = vadd.s32 72, %v3571_v45 }
 0x276   : > { %v3621_v53 = vadd.f32 %v1767_v39, %v1640_v47  ;;  %vm2074_vm13 = vcmp.ne.s32.totalorder %v1982_v29, 0  ;;  %vm2084_vm14 = vcmp.lt.s32.totalorder %v1982_v29, 0  ;;  %v2104_v8 = vadd.s32 10, %v1982_v29 }
 0x277   : > { %vm3652_vm0 = vmand %vm2084_vm14, %vm2074_vm13  ;;  %v2014_v17 = vmul.u32 10, %v2013_v5  ;;  %v2115_v59 = vsel %vm3681_vm5, %v2105_v22, %v1993_v13  ;;  %v2026_v60 = vsub.s32 %v3611_v27, %v2025_v26 }
 0x278   : > { %v2114_v34 = vsel %vm3652_vm0, %v2104_v8, %v1982_v29  ;;  %vm3726_vm11 = vcmp.lt.s32.totalorder %v2115_v59, 8 }
 0x279   : > { %v1626_v48 = vpop.f32.mrb[84].mxu1  ;;  %vm3692_vm7 = vcmp.lt.s32.totalorder %v2114_v34, 8  ;;  %vm2078_vm12 = vcmp.ne.s32.totalorder %v2026_v60, 0  ;;  %vm2088_vm13 = vcmp.lt.s32.totalorder %v2026_v60, 0  ;;  %v2108_v8 = vadd.s32 10, %v2026_v60 }
 0x27a   : > { %v1772_v61 = vpop.f32.mrb[92].mxu0  ;;  %v1641_v54 = vadd.f32 %v1626_v48, %v3563_v37  ;;  %v2925_v62 = vpop.f32.mrb[85].mxu1  ;;  %v2103_v37 = vadd.s32 10, %v1971_v55  ;;  %vm3749_vm0 = vmand %vm2088_vm13, %vm2078_vm12 }
 0x27b   : > { %v2953_v46 = vpop.f32.mrb[93].mxu0  ;;  %v1629_v56 = vpop.f32.mrb[86].mxu1 }
 0x27c   : > { %v1775_v7 = vpop.f32.mrb[94].mxu0  ;;  %v3636_v43 = vadd.f32 %v1772_v61, %v1641_v54  ;;  %v1642_v58 = vadd.f32 %v1629_v56, %v3565_v42  ;;  %v2926_v1 = vpop.f32.mrb[87].mxu1  ;;  %v3649_v6 = vmul.u32.u64.low 3435973837, %v3631_v4  ;;  %v3650_v42 = vmul.u32.u64.high 3435973837, %v3631_v4, %v3649_v6 }
 0x27d   : > { %v2954_v10 = vpop.f32.mrb[95].mxu0  ;;  %v2113_v19 = vsel %vm3644_vm15, %v2103_v37, %v1971_v55  ;;  %v3706_v55 = vmul.u32.u64.low 3435973837, %v3673_v35  ;;  %v3707_v57 = vmul.u32.u64.high 3435973837, %v3673_v35, %v3706_v55  ;;  %v2116_v46 = vsel %vm3700_vm8, %v2106_v33, %v2004_v3 }
 0x27e   : > { %v3641_v15 = vadd.f32 %v1775_v7, %v1642_v58  ;;  %vm3688_vm6 = vcmp.lt.s32.totalorder %v2113_v19, 8  ;;  %v2035_v45 = vshrl.u32 %v3650_v42, 3  ;;  %vm3734_vm14 = vcmp.lt.s32.totalorder %v2116_v46, 8 }
 0x27f   : > { %v3720_v61 = vmul.u32.u64.low 3435973837, %v3686_v49  ;;  %v3721_v44 = vmul.u32.u64.high 3435973837, %v3686_v49, %v3720_v61  ;;  %v2057_v3 = vshrl.u32 %v3707_v57, 3 }
 0x280   : > { %v2036_v7 = vmul.u32 10, %v2035_v45 }
 0x281   : > { %v1886_v11 = vpop.f32.mrb[88].mxu1 }
 0x282   : > { %v1925_v18 = vadd.f32 %v1886_v11, %v3567_v52  ;;  %v2965_v31 = vpop.f32.mrb[89].mxu1  ;;  %v2037_v21 = vsub.s32 %v3631_v4, %v2036_v7 }
 0x283   : > { %v1889_v36 = vpop.f32.mrb[90].mxu1  ;;  %v2118_v31 = vsel %vm3749_vm0, %v2108_v8, %v2026_v60 }
 0x284   : > { %v3676_v39 = vadd.f32 %v3665_v28, %v1925_v18  ;;  %v1926_v52 = vadd.f32 %v1889_v36, %v3569_v38  ;;  %v2966_v41 = vpop.f32.mrb[91].mxu1  ;;  %v2015_v38 = vsub.s32 %v3607_v16, %v2014_v17  ;;  %v2046_v16 = vshrl.u32 %v3660_v14, 3 }
 0x285   : > { %v2068_v17 = vshrl.u32 %v3721_v44, 3  ;;  %vm2079_vm1 = vcmp.ne.s32.totalorder %v2037_v21, 0  ;;  %vm2089_vm2 = vcmp.lt.s32.totalorder %v2037_v21, 0  ;;  %v2109_v26 = vadd.s32 10, %v2037_v21 }
 0x286   : > { %v3698_v40 = vadd.f32 %v3665_v28, %v1926_v52  ;;  %v2133_v29 = vsel %vm3688_vm6, %v3676_v39, 0.0  ;;  %vm2077_vm9 = vcmp.ne.s32.totalorder %v2015_v38, 0  ;;  %vm2087_vm10 = vcmp.lt.s32.totalorder %v2015_v38, 0 }
 0x287   : > { %v2047_v1 = vmul.u32 10, %v2046_v16  ;;  %v2107_v5 = vadd.s32 10, %v2015_v38  ;;  %vm3739_vm15 = vmand %vm2087_vm10, %vm2077_vm9  ;;  %v2069_v33 = vmul.u32 10, %v2068_v17  ;;  %vm3773_vm8 = vcmp.lt.s32.totalorder %v2118_v31, 8 }
 0x288   : > { %v2134_v48 = vsel %vm3692_vm7, %v3698_v40, 0.0  ;;  %vm3777_vm9 = vmand %vm2089_vm2, %vm2079_vm1 }
 0x289   : > { %v2143_v54 = vadd.f32 %v2134_v48, %v2133_v29  ;;  %v1894_v62 = vpop.f32.mrb[92].mxu1  ;;  %v2048_v12 = vsub.s32 %v3634_v32, %v2047_v1  ;;  %v2117_v11 = vsel %vm3739_vm15, %v2107_v5, %v2015_v38  ;;  %v2058_v32 = vmul.u32 10, %v2057_v3 }
 0x28a   : > { %v1927_v27 = vadd.f32 %v1894_v62, %v3573_v0  ;;  %v2969_v56 = vpop.f32.mrb[93].mxu1  ;;  %vm3765_vm3 = vcmp.lt.s32.totalorder %v2117_v11, 8  ;;  %v2119_v16 = vsel %vm3777_vm9, %v2109_v26, %v2037_v21  ;;  %v2070_v29 = vsub.s32 %v3686_v49, %v2069_v33 }
 0x28b   : > { %v1897_v58 = vpop.f32.mrb[94].mxu1  ;;  %vm2080_vm4 = vcmp.ne.s32.totalorder %v2048_v12, 0  ;;  %vm2090_vm5 = vcmp.lt.s32.totalorder %v2048_v12, 0  ;;  %v2110_v55 = vadd.s32 10, %v2048_v12  ;;  %vm3798_vm15 = vcmp.lt.s32.totalorder %v2119_v16, 8 }
 0x28c   : > { %v3731_v10 = vadd.f32 %v3665_v28, %v1927_v27  ;;  %v1928_v37 = vadd.f32 %v1897_v58, %v3576_v63  ;;  %v2970_v13 = vpop.f32.mrb[95].mxu1  ;;  %vm3786_vm10 = vmand %vm2090_vm5, %vm2080_vm4  ;;  %vm2082_vm0 = vcmp.ne.s32.totalorder %v2070_v29, 0  ;;  %vm2092_vm1 = vcmp.lt.s32.totalorder %v2070_v29, 0 }
 0x28d   : > { %vm2102_vm5 = vmand %vm2092_vm1, %vm2082_vm0 }
 0x28e   : > { %v2135_v6 = vsel %vm3726_vm11, %v3731_v10, 0.0  ;;  %v3747_v42 = vadd.f32 %v3665_v28, %v1928_v37  ;;  %v2112_v37 = vadd.s32 10, %v2070_v29 }
 0x28f   : > { %v2144_v23 = vadd.f32 %v2143_v54, %v2135_v6 }
 0x290   : > { %v2136_v14 = vsel %vm3734_vm14, %v3747_v42, 0.0  ;;  %v2122_v21 = vsel %vm2102_vm5, %v2112_v37, %v2070_v29 }
 0x291   : > { %v2145_v18 = vadd.f32 %v2144_v23, %v2136_v14  ;;  %v1902_v19 = vpop.f32.mrb[96].mxu1 }
 0x292   : > { %v1929_v4 = vadd.f32 %v1902_v19, %v3591_v20  ;;  %v2973_v34 = vpop.f32.mrb[97].mxu1 }
 0x293   : > { %v1905_v22 = vpop.f32.mrb[98].mxu1 }
 0x294   : > { %v3770_v52 = vadd.f32 %v3665_v28, %v1929_v4  ;;  %v1930_v41 = vadd.f32 %v1905_v22, %v3598_v25  ;;  %v2974_v47 = vpop.f32.mrb[99].mxu1  ;;  %v2059_v25 = vsub.s32 %v3673_v35, %v2058_v32  ;;  %v2120_v35 = vsel %vm3786_vm10, %v2110_v55, %v2048_v12 }
 0x295   : > { %vm3804_vm2 = vcmp.lt.s32.totalorder %v2120_v35, 8  ;;  %vm3820_vm10 = vcmp.lt.s32.totalorder %v2122_v21, 8 }
 0x296   : > { %v2137_v24 = vsel %vm3765_vm3, %v3770_v52, 0.0  ;;  %v1947_v45 = vadd.f32 %v3665_v28, %v1930_v41  ;;  %vm2081_vm12 = vcmp.ne.s32.totalorder %v2059_v25, 0  ;;  %vm2091_vm13 = vcmp.lt.s32.totalorder %v2059_v25, 0 }
 0x297   : > { %v2146_v57 = vadd.f32 %v2145_v18, %v2137_v24  ;;  %v2111_v27 = vadd.s32 10, %v2059_v25  ;;  %vm2101_vm4 = vmand %vm2091_vm13, %vm2081_vm12 }
 0x298   : > { %v2138_v60 = vsel %vm3773_vm8, %v1947_v45, 0.0 }
 0x299   : > { %v2147_v48 = vadd.f32 %v2146_v57, %v2138_v60  ;;  %v1910_v61 = vpop.f32.mrb[100].mxu1 }
 0x29a   : > { %v1931_v44 = vadd.f32 %v1910_v61, %v3613_v30  ;;  %v2977_v54 = vpop.f32.mrb[101].mxu1 }
 0x29b   : > { %v1913_v46 = vpop.f32.mrb[102].mxu1 }
 0x29c   : > { %v1948_v56 = vadd.f32 %v3665_v28, %v1931_v44  ;;  %v1932_v49 = vadd.f32 %v1913_v46, %v3621_v53  ;;  %v2978_v7 = vpop.f32.mrb[103].mxu1  ;;  %v2121_v53 = vsel %vm2101_vm4, %v2111_v27, %v2059_v25 }
 0x29d   : > { %vm3814_vm9 = vcmp.lt.s32.totalorder %v2121_v53, 8 }
 0x29e   : > { %v2139_v58 = vsel %vm3798_vm15, %v1948_v56, 0.0  ;;  %v1949_v1 = vadd.f32 %v3665_v28, %v1932_v49 }
 0x29f   : > { %v2148_v13 = vadd.f32 %v2147_v48, %v2139_v58 }
 0x2a0   : > { %v2140_v5 = vsel %vm3804_vm2, %v1949_v1, 0.0 }
 0x2a1   : > { %v2149_v2 = vadd.f32 %v2148_v13, %v2140_v5  ;;  %v1918_v8 = vpop.f32.mrb[104].mxu1 }
 0x2a2   : > { %v1933_v6 = vadd.f32 %v1918_v8, %v3636_v43  ;;  %v2981_v63 = vpop.f32.mrb[105].mxu1 }
 0x2a3   : > { %v1921_v23 = vpop.f32.mrb[106].mxu1 }
 0x2a4   : > { %v1950_v12 = vadd.f32 %v3665_v28, %v1933_v6  ;;  %v1934_v14 = vadd.f32 %v1921_v23, %v3641_v15  ;;  %v2982_v11 = vpop.f32.mrb[107].mxu1 }
 0x2a6   : > { %v2141_v18 = vsel %vm3814_vm9, %v1950_v12, 0.0  ;;  %v1951_v43 = vadd.f32 %v3665_v28, %v1934_v14 }
 0x2a7   : > { %v2150_v19 = vadd.f32 %v2149_v2, %v2141_v18 }
 0x2a8   : > { %v2142_v31 = vsel %vm3820_vm10, %v1951_v43, 0.0 }
 0x2a9   : > { %v2151_v4 = vadd.f32 %v2150_v19, %v2142_v31 }
 0x2ab   : > { %v2152_v34 = vrot.slane %v2151_v4, 4 }
 0x2ad   : > { %v2153_v32 = vadd.f32 %v2152_v34, %v2151_v4 }
 0x2af   : > { %v2154_v22 = vrot.slane %v2153_v32, 2 }
 0x2b1   : > { %v2155_v26 = vadd.f32 %v2154_v22, %v2153_v32 }
 0x2b3   : > { %v2156_v15 = vrot.slane %v2155_v26, 1 }
 0x2b5   : > { %v2157_v41 = vadd.f32 %v2156_v15, %v2155_v26 }
 0x2b7   : > { %v2158_v47 = vmul.f32 0.015625, %v2157_v41 }
 0x2b9   : > { %v2159_v33 = vsub.f32 %v3676_v39, %v2158_v47  ;;  %v2160_v38 = vsub.f32 %v3698_v40, %v2158_v47  ;;  %v2161_v24 = vsub.f32 %v3731_v10, %v2158_v47  ;;  %v2162_v28 = vsub.f32 %v3747_v42, %v2158_v47 }
 0x2ba   : > { %v2163_v55 = vsub.f32 %v3770_v52, %v2158_v47  ;;  %v2164_v25 = vsub.f32 %v1947_v45, %v2158_v47  ;;  %v2165_v57 = vsub.f32 %v1948_v56, %v2158_v47  ;;  %v2166_v59 = vsub.f32 %v1949_v1, %v2158_v47 }
 0x2bb   : > { %v2167_v60 = vsub.f32 %v1950_v12, %v2158_v47  ;;  %v2168_v16 = vsub.f32 %v1951_v43, %v2158_v47  ;;  %v2169_v29 = vsel %vm3688_vm6, %v2159_v33, 0.0  ;;  %v2170_v48 = vsel %vm3692_vm7, %v2160_v38, 0.0 }
 0x2bc   : > { %v2171_v39 = vsel %vm3726_vm11, %v2161_v24, 0.0  ;;  %v2179_v40 = vmul.f32 %v2169_v29, %v2169_v29  ;;  %v2180_v10 = vmul.f32 %v2170_v48, %v2170_v48  ;;  %v2172_v42 = vsel %vm3734_vm14, %v2162_v28, 0.0 }
 0x2bd   : > { %v2181_v52 = vmul.f32 %v2171_v39, %v2171_v39  ;;  %v2173_v61 = vsel %vm3765_vm3, %v2163_v55, 0.0  ;;  %v2182_v44 = vmul.f32 %v2172_v42, %v2172_v42  ;;  %v2174_v50 = vsel %vm3773_vm8, %v2164_v25, 0.0 }
 0x2be   : > { %v2189_v45 = vadd.f32 %v2180_v10, %v2179_v40  ;;  %v2183_v51 = vmul.f32 %v2173_v61, %v2173_v61  ;;  %v2175_v9 = vsel %vm3798_vm15, %v2165_v57, 0.0  ;;  %v2184_v46 = vmul.f32 %v2174_v50, %v2174_v50 }
 0x2bf   : > { %v2176_v0 = vsel %vm3804_vm2, %v2166_v59, 0.0  ;;  %v2185_v56 = vmul.f32 %v2175_v9, %v2175_v9  ;;  %v2177_v36 = vsel %vm3814_vm9, %v2167_v60, 0.0  ;;  %v2178_v20 = vsel %vm3820_vm10, %v2168_v16, 0.0 }
 0x2c0   : > { %v2190_v54 = vadd.f32 %v2189_v45, %v2181_v52  ;;  %v2186_v7 = vmul.f32 %v2176_v0, %v2176_v0  ;;  %v2187_v1 = vmul.f32 %v2177_v36, %v2177_v36  ;;  %v2188_v13 = vmul.f32 %v2178_v20, %v2178_v20 }
 0x2c2   : > { %v2191_v35 = vadd.f32 %v2190_v54, %v2182_v44 }
 0x2c4   : > { %v2192_v27 = vadd.f32 %v2191_v35, %v2183_v51 }
 0x2c6   : > { %v2193_v49 = vadd.f32 %v2192_v27, %v2184_v46 }
 0x2c8   : > { %v2194_v58 = vadd.f32 %v2193_v49, %v2185_v56 }
 0x2ca   : > { %v2195_v37 = vadd.f32 %v2194_v58, %v2186_v7 }
 0x2cc   : > { %v2196_v62 = vadd.f32 %v2195_v37, %v2187_v1 }
 0x2ce   : > { %v2197_v5 = vadd.f32 %v2196_v62, %v2188_v13 }
 0x2d0   : > { %v2198_v53 = vrot.slane %v2197_v5, 4 }
 0x2d2   : > { %v2199_v2 = vadd.f32 %v2198_v53, %v2197_v5 }
 0x2d4   : > { %v2200_v8 = vrot.slane %v2199_v2, 2 }
 0x2d6   : > { %v2201_v30 = vadd.f32 %v2200_v8, %v2199_v2 }
 0x2d8   : > { %v2202_v6 = vrot.slane %v2201_v30, 1 }
 0x2da   : > { %v2203_v63 = vadd.f32 %v2202_v6, %v2201_v30 }
 0x2dc   : > { %v2204_v21 = vmul.f32 0.015625, %v2203_v63 }
 0x2de   : > { %v2205_v23 = vmax.f32 %v2204_v21, 0.0 }
 0x2e0   : > { %v2206_v3 = vadd.f32 1e-05, %v2205_v23 }
 0x2e2   : > { %3085 = vrsqrt.f32 %v2206_v3 }
 0x2ec   : > { %v3086_v12 = vpop.eup %3085 }
 0x2ed   : > { %v2208_v14 = vmul.f32 %v3086_v12, %v2159_v33  ;;  %v2209_v11 = vmul.f32 %v3086_v12, %v2160_v38  ;;  %v2210_v17 = vmul.f32 %v3086_v12, %v2161_v24  ;;  %v2211_v18 = vmul.f32 %v3086_v12, %v2162_v28 }
 0x2ee   : > { %v2212_v43 = vmul.f32 %v3086_v12, %v2163_v55  ;;  %v2213_v19 = vmul.f32 %v3086_v12, %v2164_v25  ;;  %v2214_v31 = vmul.f32 %v3086_v12, %v2165_v57  ;;  %v2215_v4 = vmul.f32 %v3086_v12, %v2166_v59 }
 0x2ef   : > { %v2216_v34 = vmul.f32 %v3086_v12, %v2167_v60  ;;  %v2217_v32 = vmul.f32 %v3086_v12, %v2168_v16  ;;  %vm2218_vm6 = vcmp.ge.f32.partialorder %v2208_v14, 0.0  ;;  %vm2219_vm7 = vcmp.ge.f32.partialorder %v2209_v11, 0.0 }
 0x2f0   : > { %vm2220_vm11 = vcmp.ge.f32.partialorder %v2210_v17, 0.0  ;;  %vm2221_vm14 = vcmp.ge.f32.partialorder %v2211_v18, 0.0  ;;  %vm2222_vm3 = vcmp.ge.f32.partialorder %v2212_v43, 0.0  ;;  %vm2223_vm8 = vcmp.ge.f32.partialorder %v2213_v19, 0.0 }
 0x2f1   : > { %vm2224_vm12 = vcmp.ge.f32.partialorder %v2214_v31, 0.0  ;;  %vm2225_vm13 = vcmp.ge.f32.partialorder %v2215_v4, 0.0  ;;  %vm2226_vm15 = vcmp.ge.f32.partialorder %v2216_v34, 0.0  ;;  %vm2227_vm0 = vcmp.ge.f32.partialorder %v2217_v32, 0.0 }
 0x2f2   : > { %v2228_v22 = vmul.f32 0.2, %v2208_v14  ;;  %v2229_v26 = vmul.f32 0.2, %v2209_v11  ;;  %v2230_v15 = vmul.f32 0.2, %v2210_v17 }
 0x2f3   : > { %v2231_v41 = vmul.f32 0.2, %v2211_v18  ;;  %v2232_v47 = vmul.f32 0.2, %v2212_v43  ;;  %v2233_v33 = vmul.f32 0.2, %v2213_v19 }
 0x2f4   : > { %v2234_v38 = vmul.f32 0.2, %v2214_v31  ;;  %v2235_v24 = vmul.f32 0.2, %v2215_v4  ;;  %v2236_v28 = vmul.f32 0.2, %v2216_v34  ;;  %v2238_v55 = vsel %vm2218_vm6, %v2208_v14, %v2228_v22 }
 0x2f5   : > { %v2237_v25 = vmul.f32 0.2, %v2217_v32  ;;  %v2239_v57 = vsel %vm2219_vm7, %v2209_v11, %v2229_v26  ;;  %v2240_v59 = vsel %vm2220_vm11, %v2210_v17, %v2230_v15  ;;  %v2241_v60 = vsel %vm2221_vm14, %v2211_v18, %v2231_v41 }
 0x2f6   : > { %v2242_v16 = vsel %vm2222_vm3, %v2212_v43, %v2232_v47  ;;  %v2243_v29 = vsel %vm2223_vm8, %v2213_v19, %v2233_v33  ;;  %v2244_v48 = vsel %vm2224_vm12, %v2214_v31, %v2234_v38  ;;  %v2245_v39 = vsel %vm2225_vm13, %v2215_v4, %v2235_v24 }
 0x2f7   : > { %v2246_v40 = vsel %vm2226_vm15, %v2216_v34, %v2236_v28  ;;  %v2247_v10 = vsel %vm2227_vm0, %v2217_v32, %v2237_v25  ;;  %v2566_v42 = vpack.c.bf16 %v2239_v57, %v2238_v55  ;;  %v2571_v52 = vpack.c.bf16 %v2241_v60, %v2240_v59 }
 0x2f8   : > { %v2576_v45 = vpack.c.bf16 %v2243_v29, %v2242_v16  ;;  %v2581_v61 = vpack.c.bf16 %v2245_v39, %v2244_v48  ;;  %v2586_v44 = vpack.c.bf16 %v2247_v10, %v2246_v40 }
 0x2f9   : > { %2567 = vst [vmem:[%s224_s23] sm:$0xff] %v2566_v42   ;;  %2588 = vst [vmem:[%s224_s23 + $0x8] sm:$0xff] %v2571_v52  }
 0x2fa   : > { %2589 = vst [vmem:[%s224_s23 + $0x10] sm:$0xff] %v2576_v45   ;;  %2590 = vst [vmem:[%s224_s23 + $0x18] sm:$0xff] %v2581_v61  }
 0x2fb   : > { %2591 = vst [vmem:[%s224_s23 + $0x20] sm:$0xff] %v2586_v44  }
 0x2fc PF: > { %s15_s18 = sadd.s32 1, %s3093_s18  }
 0x2fd   : > { %p12_p4 = scmp.ge.s32.totalorder %s15_s18, 4  }
 0x2ff   :  { %14 = sbr.rel (!%p12_p4) target bundleno = 1 (0x1), region = 78 }

// kernel: discriminator_forward.5
= control target key start
LH: loop header
LB: loop body
LE: loop exit
PB: predicated region body
PF: predicated region fallthrough
CT: control target
= control target key end

     0   :  { %s12092_s30 = smov 0   ;;  %s15298_s0 = inlined_call_operand.vmem [shape: bf16[2,16,1152], index: 0, kind: input, shape index: {}]   ;;  %s15299_s1 = inlined_call_operand.vmem [shape: bf16[1152,256], index: 1, kind: input, shape index: {}]   ;;  %s15300_s2 = inlined_call_operand.vmem [shape: f32[1,256], index: 2, kind: input, shape index: {}]   ;;  %s15301_s3 = inlined_call_operand.vmem [shape: bf16[9,256,256], index: 3, kind: input, shape index: {}]   ;;  %s15302_s4 = inlined_call_operand.vmem [shape: f32[1,256], index: 4, kind: input, shape index: {}]   ;;  %s15303_s5 = inlined_call_operand.vmem [shape: bf16[9,256,256], index: 5, kind: input, shape index: {}]   ;;  %s15304_s6 = inlined_call_operand.vmem [shape: f32[1,256], index: 6, kind: input, shape index: {}]   ;;  %s15305_s7 = inlined_call_operand.vmem [shape: bf16[9,256,128], index: 7, kind: input, shape index: {}]   ;;  %s15306_s8 = inlined_call_operand.vmem [shape: f32[1,128], index: 8, kind: input, shape index: {}]   ;;  %s15307_s9 = inlined_call_operand.vmem [shape: f32[2,24,128], index: 9, kind: output, shape index: {}]  }
   0x1 LB: > { %s8780_s10 = sadd.s32 4294967295, %s12038_s30   ;;  %p8784_p0 = scmp.ge.s32.totalorder %s12038_s30, 1  ;;  %s12038_s30 = sphi %s12092_s30, %s19_s30  }
   0x2   : > { %p287_p1 = scmp.lt.s32.totalorder %s12038_s30, 3 }
   0x4   : > { %p288_p2 = pnand %p8784_p0, %p287_p1 }
   0x5   : > { %v10785_v0 = vld [vmem:[%s15299_s1 + $0x4] ss:$8 sps:$4 sm:$0xff] (!%p288_p2)   ;;  %v10787_v1 = vld [vmem:[%s15299_s1] ss:$8 sps:$4 sm:$0xff] (!%p288_p2)   ;;  %v10788_v2 = vld [vmem:[%s15299_s1 + $0x14] ss:$8 sps:$4 sm:$0xff] (!%p288_p2)  }
   0x6   : > { %291 = sbr.rel (%p288_p2) target bundleno = 2660 (0xa64), region = 56  ;;  %1266 = vmatprep.subr.bf16.mxu0 (!%p288_p2), %v10785_v0  ;;  %v10790_v3 = vld [vmem:[%s15299_s1 + $0x10] ss:$8 sps:$4 sm:$0xff] (!%p288_p2)   ;;  %v10791_v4 = vld [vmem:[%s15299_s1 + $0x24] ss:$8 sps:$4 sm:$0xff] (!%p288_p2)   ;;  %p323_p3 = scmp.lt.s32.totalorder (!%p288_p2), %s8780_s10, 1 }
   0x7   : > { %1267 = vmatpush1.bf16.msra.mxu0 (!%p288_p2), %v10787_v1  ;;  %v10793_v5 = vld [vmem:[%s15299_s1 + $0x20] ss:$8 sps:$4 sm:$0xff] (!%p288_p2)   ;;  %v10794_v6 = vld [vmem:[%s15299_s1 + $0x34] ss:$8 sps:$4 sm:$0xff] (!%p288_p2)   ;;  %v10796_v7 = vld [vmem:[%s15299_s1 + $0x30] ss:$8 sps:$4 sm:$0xff] (!%p288_p2)  }
   0x8   : > { %1268 = vmatprep.subr.bf16.mxu0 (!%p288_p2), %v10788_v2  ;;  %v10797_v8 = vld [vmem:[%s15299_s1 + $0x44] ss:$8 sps:$4 sm:$0xff] (!%p288_p2)   ;;  %v10799_v9 = vld [vmem:[%s15299_s1 + $0x40] ss:$8 sps:$4 sm:$0xff] (!%p288_p2)   ;;  %v10800_v10 = vld [vmem:[%s15299_s1 + $0x54] ss:$8 sps:$4 sm:$0xff] (!%p288_p2)  }
   0x9   : > { %v10802_v11 = vld [vmem:[%s15299_s1 + $0x50] ss:$8 sps:$4 sm:$0xff] (!%p288_p2)   ;;  %v10803_v12 = vld [vmem:[%s15299_s1 + $0x64] ss:$8 sps:$4 sm:$0xff] (!%p288_p2)   ;;  %v10805_v14 = vld [vmem:[%s15299_s1 + $0x60] ss:$8 sps:$4 sm:$0xff] (!%p288_p2)  }
   0xa   : > { %v10806_v15 = vld [vmem:[%s15299_s1 + $0x74] ss:$8 sps:$4 sm:$0xff] (!%p288_p2)   ;;  %v10808_v16 = vld [vmem:[%s15299_s1 + $0x70] ss:$8 sps:$4 sm:$0xff] (!%p288_p2)   ;;  %v10809_v17 = vld [vmem:[%s15299_s1 + $0x84] ss:$8 sps:$4 sm:$0xff] (!%p288_p2)  }
   0xb   : > { %1269 = vmatpush1.bf16.msra.mxu0 (!%p288_p2), %v10790_v3  ;;  %v10811_v18 = vld [vmem:[%s15299_s1 + $0x80] ss:$8 sps:$4 sm:$0xff] (!%p288_p2)   ;;  %v10812_v19 = vld [vmem:[%s15299_s1 + $0x94] ss:$8 sps:$4 sm:$0xff] (!%p288_p2)   ;;  %v10814_v20 = vld [vmem:[%s15299_s1 + $0x90] ss:$8 sps:$4 sm:$0xff] (!%p288_p2)  }
   0xc   : > { %1270 = vmatprep.subr.bf16.mxu0 (!%p288_p2), %v10791_v4  ;;  %v10815_v21 = vld [vmem:[%s15299_s1 + $0xa4] ss:$8 sps:$4 sm:$0xff] (!%p288_p2)   ;;  %v10817_v22 = vld [vmem:[%s15299_s1 + $0xa0] ss:$8 sps:$4 sm:$0xff] (!%p288_p2)   ;;  %v10818_v23 = vld [vmem:[%s15299_s1 + $0xb4] ss:$8 sps:$4 sm:$0xff] (!%p288_p2)  }
   0xd   : > { %s15315_s10 = smov (!%p323_p3, %s8780_s10), 1  ;;  %v10820_v24 = vld [vmem:[%s15299_s1 + $0xb0] ss:$8 sps:$4 sm:$0xff]   ;;  %v10821_v25 = vld [vmem:[%s15299_s1 + $0xc4] ss:$8 sps:$4 sm:$0xff]   ;;  %vm2185_vm5 = vcmask 1046528  }
   0xe   : > { %s10767_s12 = smul.u32 72, %s15315_s10  ;;  %v10823_v26 = vld [vmem:[%s15299_s1 + $0xc0] ss:$8 sps:$4 sm:$0xff]   ;;  %v10824_v27 = vld [vmem:[%s15299_s1 + $0xd4] ss:$8 sps:$4 sm:$0xff]   ;;  %vm2458_vm6 = vcmask 1044480  }
   0xf   : > { %1271 = vmatpush1.bf16.msra.mxu0 %v10793_v5  ;;  %v10826_v28 = vld [vmem:[%s15299_s1 + $0xd0] ss:$8 sps:$4 sm:$0xff]   ;;  %v10827_v29 = vld [vmem:[%s15299_s1 + $0xe4] ss:$8 sps:$4 sm:$0xff]   ;;  %v10829_v30 = vld [vmem:[%s15299_s1 + $0xe0] ss:$8 sps:$4 sm:$0xff]  }
  0x10   : > { %1272 = vmatprep.subr.bf16.mxu0 %v10794_v6  ;;  %s12142_s19 = scalar_lea.vmem %s15298_s0, %s10767_s12  ;;  %v10830_v31 = vld [vmem:[%s15299_s1 + $0xf4] ss:$8 sps:$4 sm:$0xff]   ;;  %v10832_v32 = vld [vmem:[%s15299_s1 + $0xf0] ss:$8 sps:$4 sm:$0xff]   ;;  %v10838_v33 = vld [vmem:[%s15299_s1 + $0x104] ss:$8 sps:$4 sm:$0xff]  }
  0x11   : > { %v10835_v13 = vld [vmem:[%s12142_s19 + $0x4] ss:$36 sps:$4 sm:$0xff]   ;;  %v10886_v36 = vld [vmem:[%s12142_s19 + $0xc] ss:$36 sps:$4 sm:$0xff]   ;;  %v10841_v37 = vld [vmem:[%s15299_s1 + $0x114] ss:$8 sps:$4 sm:$0xff]  }
  0x12   : > { %1298 = vmatprep.mubr.bf16.mxu0 %v10835_v13  ;;  %v10833_v34 = vld [vmem:[%s12142_s19] ss:$36 sps:$4 sm:$0xff]   ;;  %v10839_v38 = vld [vmem:[%s15299_s1 + $0x110] ss:$8 sps:$4 sm:$0xff]   ;;  %v10847_v41 = vld [vmem:[%s15299_s1 + $0x134] ss:$8 sps:$4 sm:$0xff]  }
  0x13   : > { %1273 = vmatpush1.bf16.msra.mxu0 %v10796_v7  ;;  %v10836_v35 = vld [vmem:[%s15299_s1 + $0x100] ss:$8 sps:$4 sm:$0xff]   ;;  %v10844_v39 = vld [vmem:[%s15299_s1 + $0x124] ss:$8 sps:$4 sm:$0xff]   ;;  %v10845_v42 = vld [vmem:[%s15299_s1 + $0x130] ss:$8 sps:$4 sm:$0xff]  }
  0x14   : > { %1274 = vmatprep.subr.bf16.mxu0 %v10797_v8  ;;  %v10842_v40 = vld [vmem:[%s15299_s1 + $0x120] ss:$8 sps:$4 sm:$0xff]   ;;  %v10850_v43 = vld [vmem:[%s15299_s1 + $0x144] ss:$8 sps:$4 sm:$0xff]   ;;  %v10853_v45 = vld [vmem:[%s15299_s1 + $0x154] ss:$8 sps:$4 sm:$0xff]  }
  0x15   : > { %v10848_v44 = vld [vmem:[%s15299_s1 + $0x140] ss:$8 sps:$4 sm:$0xff]   ;;  %v10851_v46 = vld [vmem:[%s15299_s1 + $0x150] ss:$8 sps:$4 sm:$0xff]   ;;  %v10856_v47 = vld [vmem:[%s15299_s1 + $0x164] ss:$8 sps:$4 sm:$0xff]  }
  0x16   : > { %v10854_v48 = vld [vmem:[%s15299_s1 + $0x160] ss:$8 sps:$4 sm:$0xff]   ;;  %v10859_v49 = vld [vmem:[%s15299_s1 + $0x174] ss:$8 sps:$4 sm:$0xff]   ;;  %v10857_v50 = vld [vmem:[%s15299_s1 + $0x170] ss:$8 sps:$4 sm:$0xff]  }
  0x17   : > { %1275 = vmatpush1.bf16.msra.mxu0 %v10799_v9  ;;  %v10862_v51 = vld [vmem:[%s15299_s1 + $0x184] ss:$8 sps:$4 sm:$0xff]   ;;  %v10860_v52 = vld [vmem:[%s15299_s1 + $0x180] ss:$8 sps:$4 sm:$0xff]   ;;  %v10865_v53 = vld [vmem:[%s15299_s1 + $0x194] ss:$8 sps:$4 sm:$0xff]  }
  0x18   : > { %1276 = vmatprep.subr.bf16.mxu0 %v10800_v10  ;;  %v10863_v54 = vld [vmem:[%s15299_s1 + $0x190] ss:$8 sps:$4 sm:$0xff]   ;;  %v10868_v55 = vld [vmem:[%s15299_s1 + $0x1a4] ss:$8 sps:$4 sm:$0xff]   ;;  %v10866_v56 = vld [vmem:[%s15299_s1 + $0x1a0] ss:$8 sps:$4 sm:$0xff]  }
  0x19   : > { %v10871_v57 = vld [vmem:[%s15299_s1 + $0x1b4] ss:$8 sps:$4 sm:$0xff]   ;;  %v10869_v58 = vld [vmem:[%s15299_s1 + $0x1b0] ss:$8 sps:$4 sm:$0xff]   ;;  %v10874_v59 = vld [vmem:[%s15299_s1 + $0x1c4] ss:$8 sps:$4 sm:$0xff]  }
  0x1a   : > { %v10872_v60 = vld [vmem:[%s15299_s1 + $0x1c0] ss:$8 sps:$4 sm:$0xff]   ;;  %v10877_v61 = vld [vmem:[%s15299_s1 + $0x1d4] ss:$8 sps:$4 sm:$0xff]   ;;  %v10875_v62 = vld [vmem:[%s15299_s1 + $0x1d0] ss:$8 sps:$4 sm:$0xff]  }
  0x1b   : > { %1277 = vmatpush1.bf16.msra.mxu0 %v10802_v11  ;;  %v10880_v63 = vld [vmem:[%s15299_s1 + $0x1e4] ss:$8 sps:$4 sm:$0xff]   ;;  %v10878_v0 = vld [vmem:[%s15299_s1 + $0x1e0] ss:$8 sps:$4 sm:$0xff]   ;;  %v10883_v1 = vld [vmem:[%s15299_s1 + $0x1f4] ss:$8 sps:$4 sm:$0xff]  }
  0x1c   : > { %1278 = vmatprep.subr.bf16.mxu0 %v10803_v12  ;;  %v10881_v2 = vld [vmem:[%s15299_s1 + $0x1f0] ss:$8 sps:$4 sm:$0xff]   ;;  %v10889_v3 = vld [vmem:[%s15299_s1 + $0x204] ss:$8 sps:$4 sm:$0xff]   ;;  %v10887_v5 = vld [vmem:[%s15299_s1 + $0x200] ss:$8 sps:$4 sm:$0xff]  }
  0x1d   : > { %v10884_v4 = vld [vmem:[%s12142_s19 + $0x8] ss:$36 sps:$4 sm:$0xff]   ;;  %v10937_v6 = vld [vmem:[%s12142_s19 + $0x14] ss:$36 sps:$4 sm:$0xff]   ;;  %vm1683_vm4 = vsmask.f32 7424 }
  0x1e   : > { %v10892_v7 = vld [vmem:[%s15299_s1 + $0x214] ss:$8 sps:$4 sm:$0xff]   ;;  %v10890_v8 = vld [vmem:[%s15299_s1 + $0x210] ss:$8 sps:$4 sm:$0xff]   ;;  %v10895_v9 = vld [vmem:[%s15299_s1 + $0x224] ss:$8 sps:$4 sm:$0xff]  }
  0x1f   : > { %1279 = vmatpush1.bf16.msra.mxu0 %v10805_v14  ;;  %v10893_v10 = vld [vmem:[%s15299_s1 + $0x220] ss:$8 sps:$4 sm:$0xff]   ;;  %v10898_v11 = vld [vmem:[%s15299_s1 + $0x234] ss:$8 sps:$4 sm:$0xff]   ;;  %v10896_v12 = vld [vmem:[%s15299_s1 + $0x230] ss:$8 sps:$4 sm:$0xff]  }
  0x20   : > { %1280 = vmatprep.subr.bf16.mxu0 %v10806_v15  ;;  %v10901_v13 = vld [vmem:[%s15299_s1 + $0x244] ss:$8 sps:$4 sm:$0xff]   ;;  %v10899_v14 = vld [vmem:[%s15299_s1 + $0x240] ss:$8 sps:$4 sm:$0xff]   ;;  %v10904_v15 = vld [vmem:[%s15299_s1 + $0x254] ss:$8 sps:$4 sm:$0xff]  }
  0x21   : > { %vm2727_vm7 = vsmask.f32 4352  ;;  %vm3288_vm8 = vcmask 1045504   ;;  %vm3557_vm9 = vsmask.f32 5376  ;;  %s10768_s17 = smul.u32 24, %s15315_s10 }
  0x23   : > { %1281 = vmatpush1.bf16.msra.mxu0 %v10808_v16  ;;  %v10902_v16 = vld [vmem:[%s15299_s1 + $0x250] ss:$8 sps:$4 sm:$0xff]   ;;  %s332_s23 = scalar_lea.vmem %s15307_s9, %s10768_s17 }
  0x24   : > { %1282 = vmatprep.subr.bf16.mxu0 %v10809_v17  ;;  %v10907_v17 = vld [vmem:[%s15299_s1 + $0x264] ss:$8 sps:$4 sm:$0xff]  }
  0x27   : > { %1283 = vmatpush1.bf16.msra.mxu0 %v10811_v18  ;;  %v10905_v18 = vld [vmem:[%s15299_s1 + $0x260] ss:$8 sps:$4 sm:$0xff]  }
  0x28   : > { %1284 = vmatprep.subr.bf16.mxu0 %v10812_v19  ;;  %v10910_v19 = vld [vmem:[%s15299_s1 + $0x274] ss:$8 sps:$4 sm:$0xff]  }
  0x2b   : > { %1285 = vmatpush1.bf16.msra.mxu0 %v10814_v20  ;;  %v10908_v20 = vld [vmem:[%s15299_s1 + $0x270] ss:$8 sps:$4 sm:$0xff]  }
  0x2c   : > { %1286 = vmatprep.subr.bf16.mxu0 %v10815_v21  ;;  %v10913_v21 = vld [vmem:[%s15299_s1 + $0x284] ss:$8 sps:$4 sm:$0xff]  }
  0x2f   : > { %1287 = vmatpush1.bf16.msra.mxu0 %v10817_v22  ;;  %v10911_v22 = vld [vmem:[%s15299_s1 + $0x280] ss:$8 sps:$4 sm:$0xff]  }
  0x30   : > { %1288 = vmatprep.subr.bf16.mxu0 %v10818_v23  ;;  %v10916_v23 = vld [vmem:[%s15299_s1 + $0x294] ss:$8 sps:$4 sm:$0xff]  }
  0x33   : > { %1289 = vmatpush1.bf16.msra.mxu0 %v10820_v24  ;;  %v11014_v24 = vld [vmem:[%s15301_s3 + $0x104] ss:$8 sps:$4 sm:$0xff]  }
  0x34   : > { %1290 = vmatprep.subr.bf16.mxu0 %v10821_v25  ;;  %v11016_v25 = vld [vmem:[%s15301_s3 + $0x100] ss:$8 sps:$4 sm:$0xff]   ;;  %1878 = vmatprep.subr.bf16.mxu1 %v11014_v24 }
  0x35   : > { %1879 = vmatpush1.bf16.msra.mxu1 %v11016_v25  ;;  %v10980_v24 = vld [vmem:[%s15299_s1 + $0x3e0] ss:$8 sps:$4 sm:$0xff]   ;;  %v10985_v25 = vld [vmem:[%s15299_s1 + $0x3f4] ss:$8 sps:$4 sm:$0xff]  }
  0x37   : > { %1291 = vmatpush1.bf16.msra.mxu0 %v10823_v26  ;;  %v11017_v26 = vld [vmem:[%s15301_s3 + $0x114] ss:$8 sps:$4 sm:$0xff]  }
  0x38   : > { %1292 = vmatprep.subr.bf16.mxu0 %v10824_v27  ;;  %v10914_v27 = vld [vmem:[%s15299_s1 + $0x290] ss:$8 sps:$4 sm:$0xff]   ;;  %1880 = vmatprep.subr.bf16.mxu1 %v11017_v26 }
  0x39   : > { %v10983_v26 = vld [vmem:[%s15299_s1 + $0x3f0] ss:$8 sps:$4 sm:$0xff]  }
  0x3b   : > { %1293 = vmatpush1.bf16.msra.mxu0 %v10826_v28  ;;  %v10919_v28 = vld [vmem:[%s15299_s1 + $0x2a4] ss:$8 sps:$4 sm:$0xff]  }
  0x3c   : > { %1294 = vmatprep.subr.bf16.mxu0 %v10827_v29  ;;  %v11019_v29 = vld [vmem:[%s15301_s3 + $0x110] ss:$8 sps:$4 sm:$0xff]  }
  0x3d   : > { %1881 = vmatpush1.bf16.msra.mxu1 %v11019_v29  ;;  %v10989_v29 = vld [vmem:[%s15299_s1 + $0x400] ss:$8 sps:$4 sm:$0xff]  }
  0x3f   : > { %1295 = vmatpush1.bf16.msra.mxu0 %v10829_v30  ;;  %v11020_v30 = vld [vmem:[%s15301_s3 + $0x124] ss:$8 sps:$4 sm:$0xff]  }
  0x40   : > { %1296 = vmatprep.subr.bf16.mxu0 %v10830_v31  ;;  %v10917_v31 = vld [vmem:[%s15299_s1 + $0x2a0] ss:$8 sps:$4 sm:$0xff]   ;;  %1882 = vmatprep.subr.bf16.mxu1 %v11020_v30  ;;  %v10994_v30 = vld [vmem:[%s15299_s1 + $0x414] ss:$8 sps:$4 sm:$0xff]  }
  0x43   : > { %1297 = vmatpush1.bf16.msra.mxu0 %v10832_v32  ;;  %v10922_v32 = vld [vmem:[%s15299_s1 + $0x2b4] ss:$8 sps:$4 sm:$0xff]  }
  0x44   : > { %1309 = vmatprep.subr.bf16.mxu0 %v10838_v33  ;;  %v11022_v33 = vld [vmem:[%s15301_s3 + $0x120] ss:$8 sps:$4 sm:$0xff]  }
  0x45   : > { %1883 = vmatpush1.bf16.msra.mxu1 %v11022_v33  ;;  %v12040_v33 = vmov 0  }
  0x46   : > { %1299 = vmatmul.mubr.bf16.vlgmr.msra.gmra.mrb[0].mxu0 %v10833_v34  ;;  %v11023_v34 = vld [vmem:[%s15301_s3 + $0x134] ss:$8 sps:$4 sm:$0xff]  }
  0x47   : > { %1310 = vmatpush1.bf16.msra.mxu0 %v10836_v35  ;;  %1341 = vmatprep.mubr.bf16.mxu0 %v10886_v36  ;;  %v10920_v35 = vld [vmem:[%s15299_s1 + $0x2b0] ss:$8 sps:$4 sm:$0xff]   ;;  %v10925_v36 = vld [vmem:[%s15299_s1 + $0x2c4] ss:$8 sps:$4 sm:$0xff]  }
  0x48   : > { %1311 = vmatprep.subr.bf16.mxu0 %v10841_v37  ;;  %v11025_v37 = vld [vmem:[%s15301_s3 + $0x130] ss:$8 sps:$4 sm:$0xff]   ;;  %1884 = vmatprep.subr.bf16.mxu1 %v11023_v34  ;;  %v10995_v34 = vld [vmem:[%s15299_s1 + $0x420] ss:$8 sps:$4 sm:$0xff]  }
  0x49   : > { %1885 = vmatpush1.bf16.msra.mxu1 %v11025_v37  ;;  %v11003_v37 = vld [vmem:[%s15299_s1 + $0x444] ss:$8 sps:$4 sm:$0xff]  }
  0x4b   : > { %1312 = vmatpush1.bf16.msra.mxu0 %v10839_v38  ;;  %v11026_v38 = vld [vmem:[%s15301_s3 + $0x144] ss:$8 sps:$4 sm:$0xff]  }
  0x4c   : > { %1313 = vmatprep.subr.bf16.mxu0 %v10844_v39  ;;  %v10923_v39 = vld [vmem:[%s15299_s1 + $0x2c0] ss:$8 sps:$4 sm:$0xff]   ;;  %1886 = vmatprep.subr.bf16.mxu1 %v11026_v38 }
  0x4d   : > { %v11001_v38 = vld [vmem:[%s15299_s1 + $0x440] ss:$8 sps:$4 sm:$0xff]  }
  0x4f   : > { %1314 = vmatpush1.bf16.msra.mxu0 %v10842_v40  ;;  %v10928_v40 = vld [vmem:[%s15299_s1 + $0x2d4] ss:$8 sps:$4 sm:$0xff]  }
  0x50   : > { %1315 = vmatprep.subr.bf16.mxu0 %v10847_v41  ;;  %v11028_v41 = vld [vmem:[%s15301_s3 + $0x140] ss:$8 sps:$4 sm:$0xff]  }
  0x51   : > { %1887 = vmatpush1.bf16.msra.mxu1 %v11028_v41  ;;  %v11009_v41 = vld [vmem:[%s15299_s1 + $0x464] ss:$8 sps:$4 sm:$0xff]  }
  0x53   : > { %1316 = vmatpush1.bf16.msra.mxu0 %v10845_v42  ;;  %v11029_v42 = vld [vmem:[%s15301_s3 + $0x154] ss:$8 sps:$4 sm:$0xff]  }
  0x54   : > { %1317 = vmatprep.subr.bf16.mxu0 %v10850_v43  ;;  %v10926_v43 = vld [vmem:[%s15299_s1 + $0x2d0] ss:$8 sps:$4 sm:$0xff]   ;;  %1888 = vmatprep.subr.bf16.mxu1 %v11029_v42  ;;  %v11007_v42 = vld [vmem:[%s15299_s1 + $0x460] ss:$8 sps:$4 sm:$0xff]  }
  0x57   : > { %1318 = vmatpush1.bf16.msra.mxu0 %v10848_v44  ;;  %v10931_v44 = vld [vmem:[%s15299_s1 + $0x2e4] ss:$8 sps:$4 sm:$0xff]  }
  0x58   : > { %1319 = vmatprep.subr.bf16.mxu0 %v10853_v45  ;;  %v11031_v45 = vld [vmem:[%s15301_s3 + $0x150] ss:$8 sps:$4 sm:$0xff]  }
  0x59   : > { %1889 = vmatpush1.bf16.msra.mxu1 %v11031_v45  ;;  %v11013_v45 = vld [vmem:[%s12142_s19 + $0x20] ss:$36 sps:$4 sm:$0xff]  }
  0x5b   : > { %1320 = vmatpush1.bf16.msra.mxu0 %v10851_v46  ;;  %v11032_v46 = vld [vmem:[%s15301_s3 + $0x164] ss:$8 sps:$4 sm:$0xff]  }
  0x5c   : > { %1321 = vmatprep.subr.bf16.mxu0 %v10856_v47  ;;  %v10929_v47 = vld [vmem:[%s15299_s1 + $0x2e0] ss:$8 sps:$4 sm:$0xff]   ;;  %1890 = vmatprep.subr.bf16.mxu1 %v11032_v46  ;;  %v11044_v46 = vld [vmem:[%s15301_s3 + $0x1a4] ss:$8 sps:$4 sm:$0xff]  }
  0x5f   : > { %1322 = vmatpush1.bf16.msra.mxu0 %v10854_v48  ;;  %v10934_v48 = vld [vmem:[%s15299_s1 + $0x2f4] ss:$8 sps:$4 sm:$0xff]  }
  0x60   : > { %1323 = vmatprep.subr.bf16.mxu0 %v10859_v49  ;;  %v11034_v49 = vld [vmem:[%s15301_s3 + $0x160] ss:$8 sps:$4 sm:$0xff]  }
  0x61   : > { %1891 = vmatpush1.bf16.msra.mxu1 %v11034_v49  ;;  %v12041_v49 = vmov 0.0  }
  0x62   : > { %1493 = vst [vmem:[#allocation2] sm:$0xff] %v12041_v49  ;;  %1495 = vst [vmem:[#allocation2 + $0x10] sm:$0xff] %v12041_v49 }
  0x63   : > { %1324 = vmatpush1.bf16.msra.mxu0 %v10857_v50  ;;  %v11035_v50 = vld [vmem:[%s15301_s3 + $0x174] ss:$8 sps:$4 sm:$0xff]   ;;  %1497 = vst [vmem:[#allocation2 + $0x20] sm:$0xff] %v12041_v49  ;;  %1494 = vst [vmem:[#allocation2 + $0x8] sm:$0xff] %v12041_v49 }
  0x64   : > { %1325 = vmatprep.subr.bf16.mxu0 %v10862_v51  ;;  %v10932_v51 = vld [vmem:[%s15299_s1 + $0x2f0] ss:$8 sps:$4 sm:$0xff]   ;;  %1892 = vmatprep.subr.bf16.mxu1 %v11035_v50  ;;  %1496 = vst [vmem:[#allocation2 + $0x18] sm:$0xff] %v12041_v49  ;;  %1498 = vst [vmem:[#allocation2 + $0x28] sm:$0xff] %v12041_v49 }
  0x65   : > { %1499 = vst [vmem:[#allocation2 + $0x30] sm:$0xff] %v12041_v49  ;;  %1500 = vst [vmem:[#allocation2 + $0x38] sm:$0xff] %v12041_v49  ;;  %v11049_v50 = vld [vmem:[%s15301_s3 + $0x1b0] ss:$8 sps:$4 sm:$0xff]  }
  0x66   : > { %1501 = vst [vmem:[#allocation2 + $0x40] sm:$0xff] %v12041_v49  ;;  %1502 = vst [vmem:[#allocation2 + $0x48] sm:$0xff] %v12041_v49 }
  0x67   : > { %1326 = vmatpush1.bf16.msra.mxu0 %v10860_v52  ;;  %v10940_v52 = vld [vmem:[%s15299_s1 + $0x304] ss:$8 sps:$4 sm:$0xff]   ;;  %1503 = vst [vmem:[#allocation3] sm:$0xff] %v12041_v49  ;;  %1504 = vst [vmem:[#allocation3 + $0x8] sm:$0xff] %v12041_v49 }
  0x68   : > { %1327 = vmatprep.subr.bf16.mxu0 %v10865_v53  ;;  %v11037_v53 = vld [vmem:[%s15301_s3 + $0x170] ss:$8 sps:$4 sm:$0xff]   ;;  %1509 = vst [vmem:[#allocation3 + $0x30] sm:$0xff] %v12041_v49  ;;  %1510 = vst [vmem:[#allocation3 + $0x38] sm:$0xff] %v12041_v49 }
  0x69   : > { %1893 = vmatpush1.bf16.msra.mxu1 %v11037_v53  ;;  %1511 = vst [vmem:[#allocation3 + $0x40] sm:$0xff] %v12041_v49  ;;  %1512 = vst [vmem:[#allocation3 + $0x48] sm:$0xff] %v12041_v49  ;;  %v11053_v53 = vld [vmem:[%s15301_s3 + $0x1d4] ss:$8 sps:$4 sm:$0xff]  }
  0x6b   : > { %1328 = vmatpush1.bf16.msra.mxu0 %v10863_v54  ;;  %v10935_v54 = vld [vmem:[%s12142_s19 + $0x10] ss:$36 sps:$4 sm:$0xff]  }
  0x6c   : > { %1329 = vmatprep.subr.bf16.mxu0 %v10868_v55  ;;  %v11038_v55 = vld [vmem:[%s15301_s3 + $0x184] ss:$8 sps:$4 sm:$0xff]  }
  0x6d   : > { %1894 = vmatprep.subr.bf16.mxu1 %v11038_v55  ;;  %v11056_v55 = vld [vmem:[%s15301_s3 + $0x1e4] ss:$8 sps:$4 sm:$0xff]  }
  0x6f   : > { %1330 = vmatpush1.bf16.msra.mxu0 %v10866_v56  ;;  %v10938_v56 = vld [vmem:[%s15299_s1 + $0x300] ss:$8 sps:$4 sm:$0xff]  }
  0x70   : > { %1331 = vmatprep.subr.bf16.mxu0 %v10871_v57  ;;  %v10988_v57 = vld [vmem:[%s12142_s19 + $0x1c] ss:$36 sps:$4 sm:$0xff]  }
  0x73   : > { %1332 = vmatpush1.bf16.msra.mxu0 %v10869_v58  ;;  %v10943_v58 = vld [vmem:[%s15299_s1 + $0x314] ss:$8 sps:$4 sm:$0xff]  }
  0x74   : > { %1333 = vmatprep.subr.bf16.mxu0 %v10874_v59  ;;  %v11040_v59 = vld [vmem:[%s15301_s3 + $0x180] ss:$8 sps:$4 sm:$0xff]  }
  0x75   : > { %1895 = vmatpush1.bf16.msra.mxu1 %v11040_v59  ;;  %v11064_v59 = vld [vmem:[%s15301_s3 + $0x4] ss:$8 sps:$4 sm:$0xff]  }
  0x77   : > { %1334 = vmatpush1.bf16.msra.mxu0 %v10872_v60  ;;  %v11041_v60 = vld [vmem:[%s15301_s3 + $0x194] ss:$8 sps:$4 sm:$0xff]  }
  0x78   : > { %1335 = vmatprep.subr.bf16.mxu0 %v10877_v61  ;;  %v10941_v61 = vld [vmem:[%s15299_s1 + $0x310] ss:$8 sps:$4 sm:$0xff]   ;;  %1896 = vmatprep.subr.bf16.mxu1 %v11041_v60  ;;  %v490_v60 = vlaneseq }
  0x7b   : > { %1336 = vmatpush1.bf16.msra.mxu0 %v10875_v62  ;;  %v10946_v62 = vld [vmem:[%s15299_s1 + $0x324] ss:$8 sps:$4 sm:$0xff]  }
  0x7c   : > { %1337 = vmatprep.subr.bf16.mxu0 %v10880_v63  ;;  %v11043_v63 = vld [vmem:[%s15301_s3 + $0x190] ss:$8 sps:$4 sm:$0xff]  }
  0x7d   : > { %1897 = vmatpush1.bf16.msra.mxu1 %v11043_v63  ;;  %v488_v63 = vld [vmem:[%s15300_s2] sm:$0x3] }
  0x7e   : > { %1898 = vmatprep.subr.bf16.mxu1 %v11044_v46 }
  0x7f   : > { %1338 = vmatpush1.bf16.msra.mxu0 %v10878_v0  ;;  %v10944_v0 = vld [vmem:[%s15299_s1 + $0x320] ss:$8 sps:$4 sm:$0xff]  }
  0x80   : > { %1339 = vmatprep.subr.bf16.mxu0 %v10883_v1  ;;  %v10949_v1 = vld [vmem:[%s15299_s1 + $0x334] ss:$8 sps:$4 sm:$0xff]  }
  0x83   : > { %1340 = vmatpush1.bf16.msra.mxu0 %v10881_v2  ;;  %v10947_v2 = vld [vmem:[%s15299_s1 + $0x330] ss:$8 sps:$4 sm:$0xff]  }
  0x84   : > { %1352 = vmatprep.subr.bf16.mxu0 %v10889_v3  ;;  %v10952_v3 = vld [vmem:[%s15299_s1 + $0x344] ss:$8 sps:$4 sm:$0xff]  }
  0x86   : > { %1342 = vmatmul.mubr.bf16.vlgmr.msra.gmra.mrb[0].mxu0 %v10884_v4  ;;  %v10950_v4 = vld [vmem:[%s15299_s1 + $0x340] ss:$8 sps:$4 sm:$0xff]  }
  0x87   : > { %1353 = vmatpush1.bf16.msra.mxu0 %v10887_v5  ;;  %1384 = vmatprep.mubr.bf16.mxu0 %v10937_v6  ;;  %v10955_v5 = vld [vmem:[%s15299_s1 + $0x354] ss:$8 sps:$4 sm:$0xff]   ;;  %v10953_v6 = vld [vmem:[%s15299_s1 + $0x350] ss:$8 sps:$4 sm:$0xff]  }
  0x88   : > { %1354 = vmatprep.subr.bf16.mxu0 %v10892_v7  ;;  %v10958_v7 = vld [vmem:[%s15299_s1 + $0x364] ss:$8 sps:$4 sm:$0xff]  }
  0x8b   : > { %1355 = vmatpush1.bf16.msra.mxu0 %v10890_v8  ;;  %v10956_v8 = vld [vmem:[%s15299_s1 + $0x360] ss:$8 sps:$4 sm:$0xff]  }
  0x8c   : > { %1356 = vmatprep.subr.bf16.mxu0 %v10895_v9  ;;  %v10961_v9 = vld [vmem:[%s15299_s1 + $0x374] ss:$8 sps:$4 sm:$0xff]  }
  0x8f   : > { %1357 = vmatpush1.bf16.msra.mxu0 %v10893_v10  ;;  %v10959_v10 = vld [vmem:[%s15299_s1 + $0x370] ss:$8 sps:$4 sm:$0xff]  }
  0x90   : > { %1358 = vmatprep.subr.bf16.mxu0 %v10898_v11  ;;  %v10964_v11 = vld [vmem:[%s15299_s1 + $0x384] ss:$8 sps:$4 sm:$0xff]  }
  0x93   : > { %1359 = vmatpush1.bf16.msra.mxu0 %v10896_v12  ;;  %v10962_v12 = vld [vmem:[%s15299_s1 + $0x380] ss:$8 sps:$4 sm:$0xff]  }
  0x94   : > { %1360 = vmatprep.subr.bf16.mxu0 %v10901_v13  ;;  %v10967_v13 = vld [vmem:[%s15299_s1 + $0x394] ss:$8 sps:$4 sm:$0xff]  }
  0x97   : > { %1361 = vmatpush1.bf16.msra.mxu0 %v10899_v14  ;;  %v10965_v14 = vld [vmem:[%s15299_s1 + $0x390] ss:$8 sps:$4 sm:$0xff]  }
  0x98   : > { %1362 = vmatprep.subr.bf16.mxu0 %v10904_v15  ;;  %v10970_v15 = vld [vmem:[%s15299_s1 + $0x3a4] ss:$8 sps:$4 sm:$0xff]  }
  0x9b   : > { %1363 = vmatpush1.bf16.msra.mxu0 %v10902_v16  ;;  %v10968_v16 = vld [vmem:[%s15299_s1 + $0x3a0] ss:$8 sps:$4 sm:$0xff]  }
  0x9c   : > { %1364 = vmatprep.subr.bf16.mxu0 %v10907_v17  ;;  %v10973_v17 = vld [vmem:[%s15299_s1 + $0x3b4] ss:$8 sps:$4 sm:$0xff]  }
  0x9f   : > { %1365 = vmatpush1.bf16.msra.mxu0 %v10905_v18  ;;  %v10971_v18 = vld [vmem:[%s15299_s1 + $0x3b0] ss:$8 sps:$4 sm:$0xff]  }
  0xa0   : > { %1366 = vmatprep.subr.bf16.mxu0 %v10910_v19  ;;  %v10976_v19 = vld [vmem:[%s15299_s1 + $0x3c4] ss:$8 sps:$4 sm:$0xff]  }
  0xa3   : > { %1367 = vmatpush1.bf16.msra.mxu0 %v10908_v20  ;;  %v10974_v20 = vld [vmem:[%s15299_s1 + $0x3c0] ss:$8 sps:$4 sm:$0xff]  }
  0xa4   : > { %1368 = vmatprep.subr.bf16.mxu0 %v10913_v21  ;;  %v10979_v21 = vld [vmem:[%s15299_s1 + $0x3d4] ss:$8 sps:$4 sm:$0xff]  }
  0xa7   : > { %1369 = vmatpush1.bf16.msra.mxu0 %v10911_v22  ;;  %v10977_v22 = vld [vmem:[%s15299_s1 + $0x3d0] ss:$8 sps:$4 sm:$0xff]  }
  0xa8   : > { %1370 = vmatprep.subr.bf16.mxu0 %v10916_v23  ;;  %v10982_v23 = vld [vmem:[%s15299_s1 + $0x3e4] ss:$8 sps:$4 sm:$0xff]  }
  0xab   : > { %1371 = vmatpush1.bf16.msra.mxu0 %v10914_v27  ;;  %v10991_v27 = vld [vmem:[%s15299_s1 + $0x404] ss:$8 sps:$4 sm:$0xff]  }
  0xac   : > { %1372 = vmatprep.subr.bf16.mxu0 %v10919_v28  ;;  %v10986_v28 = vld [vmem:[%s12142_s19 + $0x18] ss:$36 sps:$4 sm:$0xff]  }
  0xaf   : > { %1373 = vmatpush1.bf16.msra.mxu0 %v10917_v31  ;;  %v10992_v31 = vld [vmem:[%s15299_s1 + $0x410] ss:$8 sps:$4 sm:$0xff]  }
  0xb0   : > { %1374 = vmatprep.subr.bf16.mxu0 %v10922_v32  ;;  %v10997_v32 = vld [vmem:[%s15299_s1 + $0x424] ss:$8 sps:$4 sm:$0xff]  }
  0xb3   : > { %1375 = vmatpush1.bf16.msra.mxu0 %v10920_v35  ;;  %v11000_v35 = vld [vmem:[%s15299_s1 + $0x434] ss:$8 sps:$4 sm:$0xff]  }
  0xb4   : > { %1376 = vmatprep.subr.bf16.mxu0 %v10925_v36  ;;  %v10998_v36 = vld [vmem:[%s15299_s1 + $0x430] ss:$8 sps:$4 sm:$0xff]  }
  0xb7   : > { %1377 = vmatpush1.bf16.msra.mxu0 %v10923_v39  ;;  %v11006_v39 = vld [vmem:[%s15299_s1 + $0x454] ss:$8 sps:$4 sm:$0xff]  }
  0xb8   : > { %1378 = vmatprep.subr.bf16.mxu0 %v10928_v40  ;;  %v11004_v40 = vld [vmem:[%s15299_s1 + $0x450] ss:$8 sps:$4 sm:$0xff]  }
  0xbb   : > { %1379 = vmatpush1.bf16.msra.mxu0 %v10926_v43  ;;  %v11012_v43 = vld [vmem:[%s15299_s1 + $0x474] ss:$8 sps:$4 sm:$0xff]  }
  0xbc   : > { %1380 = vmatprep.subr.bf16.mxu0 %v10931_v44  ;;  %v11010_v44 = vld [vmem:[%s15299_s1 + $0x470] ss:$8 sps:$4 sm:$0xff]  }
  0xbf   : > { %1381 = vmatpush1.bf16.msra.mxu0 %v10929_v47  ;;  %v11046_v47 = vld [vmem:[%s15301_s3 + $0x1a0] ss:$8 sps:$4 sm:$0xff]  }
  0xc0   : > { %1382 = vmatprep.subr.bf16.mxu0 %v10934_v48  ;;  %1899 = vmatpush1.bf16.msra.mxu1 %v11046_v47  ;;  %v11047_v48 = vld [vmem:[%s15301_s3 + $0x1b4] ss:$8 sps:$4 sm:$0xff]  }
  0xc1   : > { %1900 = vmatprep.subr.bf16.mxu1 %v11047_v48 }
  0xc3   : > { %1383 = vmatpush1.bf16.msra.mxu0 %v10932_v51  ;;  %v11050_v51 = vld [vmem:[%s15301_s3 + $0x1c4] ss:$8 sps:$4 sm:$0xff]  }
  0xc4   : > { %1395 = vmatprep.subr.bf16.mxu0 %v10940_v52  ;;  %1901 = vmatpush1.bf16.msra.mxu1 %v11049_v50  ;;  %v11052_v52 = vld [vmem:[%s15301_s3 + $0x1c0] ss:$8 sps:$4 sm:$0xff]  }
  0xc5   : > { %1902 = vmatprep.subr.bf16.mxu1 %v11050_v51 }
  0xc6   : > { %1385 = vmatmul.mubr.bf16.vlgmr.msra.gmra.mrb[0].mxu0 %v10935_v54  ;;  %v11055_v54 = vld [vmem:[%s15301_s3 + $0x1d0] ss:$8 sps:$4 sm:$0xff]  }
  0xc7   : > { %1396 = vmatpush1.bf16.msra.mxu0 %v10938_v56  ;;  %1427 = vmatprep.mubr.bf16.mxu0 %v10988_v57  ;;  %v11058_v56 = vld [vmem:[%s15301_s3 + $0x1e0] ss:$8 sps:$4 sm:$0xff]   ;;  %v11059_v57 = vld [vmem:[%s15301_s3 + $0x1f4] ss:$8 sps:$4 sm:$0xff]  }
  0xc8   : > { %1397 = vmatprep.subr.bf16.mxu0 %v10943_v58  ;;  %1903 = vmatpush1.bf16.msra.mxu1 %v11052_v52  ;;  %v11061_v58 = vld [vmem:[%s15301_s3 + $0x1f0] ss:$8 sps:$4 sm:$0xff]   ;;  %v11062_v52 = vld [vmem:[%s15301_s3] ss:$8 sps:$4 sm:$0xff]  }
  0xc9   : > { %1904 = vmatprep.subr.bf16.mxu1 %v11053_v53 }
  0xcb   : > { %1398 = vmatpush1.bf16.msra.mxu0 %v10941_v61  ;;  %v12648_v61 = vshrl.u32 %v490_v60, 7 }
  0xcc   : > { %1399 = vmatprep.subr.bf16.mxu0 %v10946_v62  ;;  %1905 = vmatpush1.bf16.msra.mxu1 %v11055_v54 }
  0xcd   : > { %1906 = vmatprep.subr.bf16.mxu1 %v11056_v55  ;;  %v12651_v62 = vsub.s32 0, %v12648_v61  ;;  %v11067_v55 = vld [vmem:[%s15301_s3 + $0x14] ss:$8 sps:$4 sm:$0xff]  }
  0xcf   : > { %1400 = vmatpush1.bf16.msra.mxu0 %v10944_v0  ;;  %v12657_v0 = vsub.s32 1, %v12648_v61 }
  0xd0   : > { %1401 = vmatprep.subr.bf16.mxu0 %v10949_v1  ;;  %1907 = vmatpush1.bf16.msra.mxu1 %v11058_v56  ;;  %v493_v1 = vrot.slane %v488_v63, %v12651_v62 }
  0xd1   : > { %1908 = vmatprep.subr.bf16.mxu1 %v11059_v57  ;;  %v11065_v57 = vld [vmem:[%s15301_s3 + $0x10] ss:$8 sps:$4 sm:$0xff]  }
  0xd3   : > { %1402 = vmatpush1.bf16.msra.mxu0 %v10947_v2  ;;  %v497_v2 = vrot.slane %v488_v63, %v12657_v0  ;;  %v11068_v63 = vld [vmem:[%s15301_s3 + $0x20] ss:$8 sps:$4 sm:$0xff]  }
  0xd4   : > { %1403 = vmatprep.subr.bf16.mxu0 %v10952_v3  ;;  %1909 = vmatpush1.bf16.msra.mxu1 %v11061_v58  ;;  %v11070_v58 = vld [vmem:[%s15301_s3 + $0x24] ss:$8 sps:$4 sm:$0xff]  }
  0xd5   : > { %2089 = vmatprep.subr.bf16.mxu1 %v11064_v59 }
  0xd7   : > { %1404 = vmatpush1.bf16.msra.mxu0 %v10950_v4 }
  0xd8   : > { %1405 = vmatprep.subr.bf16.mxu0 %v10955_v5 }
  0xdb   : > { %1406 = vmatpush1.bf16.msra.mxu0 %v10953_v6 }
  0xdc   : > { %1407 = vmatprep.subr.bf16.mxu0 %v10958_v7 }
  0xdf   : > { %1408 = vmatpush1.bf16.msra.mxu0 %v10956_v8 }
  0xe0   : > { %1409 = vmatprep.subr.bf16.mxu0 %v10961_v9 }
  0xe3   : > { %1410 = vmatpush1.bf16.msra.mxu0 %v10959_v10 }
  0xe4   : > { %1411 = vmatprep.subr.bf16.mxu0 %v10964_v11 }
  0xe7   : > { %1412 = vmatpush1.bf16.msra.mxu0 %v10962_v12 }
  0xe8   : > { %1413 = vmatprep.subr.bf16.mxu0 %v10967_v13 }
  0xeb   : > { %1414 = vmatpush1.bf16.msra.mxu0 %v10965_v14 }
  0xec   : > { %1415 = vmatprep.subr.bf16.mxu0 %v10970_v15 }
  0xef   : > { %1416 = vmatpush1.bf16.msra.mxu0 %v10968_v16 }
  0xf0   : > { %1417 = vmatprep.subr.bf16.mxu0 %v10973_v17 }
  0xf3   : > { %1418 = vmatpush1.bf16.msra.mxu0 %v10971_v18 }
  0xf4   : > { %1419 = vmatprep.subr.bf16.mxu0 %v10976_v19 }
  0xf7   : > { %1420 = vmatpush1.bf16.msra.mxu0 %v10974_v20 }
  0xf8   : > { %1421 = vmatprep.subr.bf16.mxu0 %v10979_v21 }
  0xfb   : > { %1422 = vmatpush1.bf16.msra.mxu0 %v10977_v22 }
  0xfc   : > { %1423 = vmatprep.subr.bf16.mxu0 %v10982_v23 }
  0xff   : > { %1424 = vmatpush1.bf16.msra.mxu0 %v10980_v24 }
 0x100   : > { %1425 = vmatprep.subr.bf16.mxu0 %v10985_v25 }
 0x103   : > { %1426 = vmatpush1.bf16.msra.mxu0 %v10983_v26 }
 0x104   : > { %1438 = vmatprep.subr.bf16.mxu0 %v10991_v27 }
 0x106   : > { %1428 = vmatmul.mubr.bf16.vlgmr.msra.gmra.mrb[0].mxu0 %v10986_v28 }
 0x107   : > { %1439 = vmatpush1.bf16.msra.mxu0 %v10989_v29  ;;  %1470 = vmatprep.mubr.bf16.mxu0 %v12040_v33  ;;  %v1644_v29 = vld [vmem:[#allocation2 + $0x30] sm:$0x1]  ;;  %v1645_v33 = vld [vmem:[#allocation2 + $0x38] sm:$0x1] }
 0x108   : > { %1440 = vmatprep.subr.bf16.mxu0 %v10994_v30 }
 0x10b   : > { %1441 = vmatpush1.bf16.msra.mxu0 %v10992_v31 }
 0x10c   : > { %1442 = vmatprep.subr.bf16.mxu0 %v10997_v32 }
 0x10f   : > { %1443 = vmatpush1.bf16.msra.mxu0 %v10995_v34 }
 0x110   : > { %1444 = vmatprep.subr.bf16.mxu0 %v11000_v35 }
 0x113   : > { %1445 = vmatpush1.bf16.msra.mxu0 %v10998_v36 }
 0x114   : > { %1446 = vmatprep.subr.bf16.mxu0 %v11003_v37 }
 0x117   : > { %1447 = vmatpush1.bf16.msra.mxu0 %v11001_v38 }
 0x118   : > { %1448 = vmatprep.subr.bf16.mxu0 %v11006_v39 }
 0x11b   : > { %1449 = vmatpush1.bf16.msra.mxu0 %v11004_v40 }
 0x11c   : > { %1450 = vmatprep.subr.bf16.mxu0 %v11009_v41 }
 0x11f   : > { %1451 = vmatpush1.bf16.msra.mxu0 %v11007_v42 }
 0x120   : > { %1452 = vmatprep.subr.bf16.mxu0 %v11012_v43 }
 0x123   : > { %1453 = vmatpush1.bf16.msra.mxu0 %v11010_v44 }
 0x126   : > { %1471 = vmatmul.mubr.bf16.vlgmr.msra.gmra.mrb[0].mxu0 %v11013_v45 }
 0x1f9   : > { %v1472_v3 = vpop.f32.mrb[0].mxu0 }
 0x1fa   : > { %v10683_v4 = vadd.f32 %v1472_v3, %v493_v1  ;;  %v1474_v5 = vpop.f32.mrb[1].mxu0 }
 0x1fb   : > { %v10684_v6 = vadd.f32 %v1474_v5, %v497_v2  ;;  %v1476_v7 = vpop.f32.mrb[2].mxu0  ;;  %v11076_v5 = vld [vmem:[%s15301_s3 + $0x44] ss:$8 sps:$4 sm:$0xff]  }
 0x1fc   : > { %vm1481_vm0 = vcmp.ge.f32.partialorder %v10683_v4, 0.0  ;;  %v1485_v8 = vmul.f32 0.2, %v10683_v4  ;;  %v10685_v9 = vadd.f32 %v1476_v7, %v493_v1  ;;  %v1478_v10 = vpop.f32.mrb[3].mxu0  ;;  %v11079_v7 = vld [vmem:[%s15301_s3 + $0x54] ss:$8 sps:$4 sm:$0xff]  }
 0x1fd   : > { %vm1482_vm1 = vcmp.ge.f32.partialorder %v10684_v6, 0.0  ;;  %v1486_v11 = vmul.f32 0.2, %v10684_v6  ;;  %v10686_v12 = vadd.f32 %v1478_v10, %v497_v2  ;;  %v11073_v2 = vld [vmem:[%s15301_s3 + $0x34] ss:$8 sps:$4 sm:$0xff]  }
 0x1fe   : > { %v1489_v13 = vsel %vm1481_vm0, %v10683_v4, %v1485_v8  ;;  %vm1483_vm2 = vcmp.ge.f32.partialorder %v10685_v9, 0.0  ;;  %v1487_v14 = vmul.f32 0.2, %v10685_v9  ;;  %v11071_v4 = vld [vmem:[%s15301_s3 + $0x30] ss:$8 sps:$4 sm:$0xff]  }
 0x1ff   : > { %v1515_v15 = vrot.slane %v1489_v13, 1  ;;  %v1523_v16 = vrot.slane %v1489_v13, 7  ;;  %v1490_v17 = vsel %vm1482_vm1, %v10684_v6, %v1486_v11  ;;  %vm1484_vm3 = vcmp.ge.f32.partialorder %v10686_v12, 0.0  ;;  %v11074_v6 = vld [vmem:[%s15301_s3 + $0x40] ss:$8 sps:$4 sm:$0xff]  }
 0x200   : > { %v1516_v18 = vrot.slane %v1490_v17, 1  ;;  %v1524_v19 = vrot.slane %v1490_v17, 7  ;;  %v1491_v20 = vsel %vm1483_vm2, %v10685_v9, %v1487_v14  ;;  %v1488_v21 = vmul.f32 0.2, %v10686_v12  ;;  %v11077_v8 = vld [vmem:[%s15301_s3 + $0x50] ss:$8 sps:$4 sm:$0xff]  }
 0x201   : > { %1519 = vst [vmem:[#allocation2 + $0x10] ss:$-12 sps:$4 sm:$0x87] %v1515_v15   ;;  %1527 = vst [vmem:[#allocation2 + $0x20] ss:$-12 sps:$4 sm:$0xe1] %v1523_v16  }
 0x202   : > { %v1533_v22 = vrot.slane %v1491_v20, 5  ;;  %v1539_v23 = vrot.slane %v1491_v20, 3  ;;  %1520 = vst [vmem:[#allocation2 + $0x18] ss:$-12 sps:$4 sm:$0x87] %v1516_v18   ;;  %v1492_v24 = vsel %vm1484_vm3, %v10686_v12, %v1488_v21 }
 0x203   : > { %1528 = vst [vmem:[#allocation2 + $0x28] ss:$-12 sps:$4 sm:$0xe1] %v1524_v19   ;;  %v1534_v25 = vrot.slane %v1492_v24, 5  ;;  %v1540_v26 = vrot.slane %v1492_v24, 3 }
 0x204   : > { %1537 = vst [vmem:[#allocation2 + $0x20] sm:$0x78] %v1533_v22  ;;  %1543 = vst [vmem:[#allocation2 + $0x30] sm:$0x1e] %v1539_v23  ;;  %v11082_v9 = vld [vmem:[%s15301_s3 + $0x64] ss:$8 sps:$4 sm:$0xff]  }
 0x205   : > { %1538 = vst [vmem:[#allocation2 + $0x28] sm:$0x78] %v1534_v25  ;;  %1544 = vst [vmem:[#allocation2 + $0x38] sm:$0x1e] %v1540_v26  ;;  %v11080_v10 = vld [vmem:[%s15301_s3 + $0x60] ss:$8 sps:$4 sm:$0xff]  }
 0x206   : > { %v11085_v11 = vld [vmem:[%s15301_s3 + $0x74] ss:$8 sps:$4 sm:$0xff]   ;;  %v11083_v12 = vld [vmem:[%s15301_s3 + $0x70] ss:$8 sps:$4 sm:$0xff]   ;;  %v11088_v13 = vld [vmem:[%s15301_s3 + $0x84] ss:$8 sps:$4 sm:$0xff]  }
 0x207   : > { %v11086_v14 = vld [vmem:[%s15301_s3 + $0x80] ss:$8 sps:$4 sm:$0xff]   ;;  %v11091_v15 = vld [vmem:[%s15301_s3 + $0x94] ss:$8 sps:$4 sm:$0xff]   ;;  %v11089_v16 = vld [vmem:[%s15301_s3 + $0x90] ss:$8 sps:$4 sm:$0xff]  }
 0x208   : > { %v12661_v27 = vld [vmem:[#allocation2 + $0x10] sm:$0xff]  ;;  %v1642_v28 = vld [vmem:[#allocation2] sm:$0xfe] }
 0x209   : > { %v1643_v31 = vld [vmem:[#allocation2 + $0x8] sm:$0xfe]  ;;  %v1646_v32 = vpack.c.bf16 %v12661_v27, %v1642_v28  ;;  %v11097_v19 = vld [vmem:[%s15301_s3 + $0xb4] ss:$8 sps:$4 sm:$0xff]   ;;  %v11095_v20 = vld [vmem:[%s15301_s3 + $0xb0] ss:$8 sps:$4 sm:$0xff]  }
 0x20a   : > { %v12663_v30 = vld [vmem:[#allocation2 + $0x18] sm:$0xff]  ;;  %v1601_v60 = vld [vmem:[#allocation2 + $0x8] sm:$0xff] }
 0x20b   : > { %v1647_v34 = vpack.c.bf16 %v12663_v30, %v1643_v31  ;;  %v12667_v35 = vld [vmem:[#allocation2 + $0x20] sm:$0xff]  ;;  %v1687_v37 = vshll.u32 %v1646_v32, 16  ;;  %v1685_v45 = vshrl.u32 %v1646_v32, 16  ;;  %v1607_v3 = vpack.c.bf16 %v12663_v30, %v1601_v60  ;;  %v11103_v23 = vld [vmem:[%s15301_s3 + $0xd4] ss:$8 sps:$4 sm:$0xff]  }
 0x20c   : > { %v1648_v36 = vpack.c.bf16 %v1644_v29, %v12667_v35  ;;  %v12670_v38 = vld [vmem:[#allocation2 + $0x28] sm:$0xff]  ;;  %v11101_v24 = vld [vmem:[%s15301_s3 + $0xd0] ss:$8 sps:$4 sm:$0xff]   ;;  %v11109_v28 = vld [vmem:[%s15301_s3 + $0xf4] ss:$8 sps:$4 sm:$0xff]  }
 0x20d   : > { %v1699_v39 = vshll.u32 %v1647_v34, 16  ;;  %v1649_v40 = vpack.c.bf16 %v1645_v33, %v12670_v38  ;;  %v1689_v41 = vrot.slane %v1687_v37, 1  ;;  %v1697_v43 = vshrl.u32 %v1647_v34, 16  ;;  %v11094_v17 = vld [vmem:[%s15301_s3 + $0xa4] ss:$8 sps:$4 sm:$0xff]  }
 0x20e   : > { %v1692_v42 = vshll.u32 %v1648_v36, 16  ;;  %v1708_v59 = vshrl.u32 %v1648_v36, 16  ;;  %v11092_v18 = vld [vmem:[%s15301_s3 + $0xa0] ss:$8 sps:$4 sm:$0xff]   ;;  %v11100_v21 = vld [vmem:[%s15301_s3 + $0xc4] ss:$8 sps:$4 sm:$0xff]  }
 0x20f   : > { %v1701_v44 = vrot.slane %v1699_v39, 1  ;;  %v1704_v46 = vshll.u32 %v1649_v40, 16  ;;  %v1690_v48 = vor.u32 %v1689_v41, %v1685_v45  ;;  %v1711_v51 = vshrl.u32 %v1649_v40, 16  ;;  %v11098_v22 = vld [vmem:[%s15301_s3 + $0xc0] ss:$8 sps:$4 sm:$0xff]  }
 0x210   : > { %v1694_v49 = vrot.slane %v1692_v42, 1  ;;  %v11106_v25 = vld [vmem:[%s15301_s3 + $0xe4] ss:$8 sps:$4 sm:$0xff]   ;;  %v11104_v26 = vld [vmem:[%s15301_s3 + $0xe0] ss:$8 sps:$4 sm:$0xff]   ;;  %v1609_v39 = vpack.c.bf16 %v12670_v38, %v12670_v38 }
 0x211   : > { %v1702_v47 = vor.u32 %v1701_v44, %v1697_v43  ;;  %v1706_v50 = vrot.slane %v1704_v46, 1  ;;  %v11107_v29 = vld [vmem:[%s15301_s3 + $0xf0] ss:$8 sps:$4 sm:$0xff]   ;;  %v11112_v31 = vld [vmem:[%s15301_s3 + $0x204] ss:$8 sps:$4 sm:$0xff]  }
 0x212   : > { %v1695_v56 = vsel %vm1683_vm4, %v1690_v48, %v1694_v49  ;;  %v1710_v1 = vor.u32 %v1708_v59, %v1694_v49  ;;  %v1600_v32 = vld [vmem:[#allocation2] sm:$0xff]  ;;  %v2143_v34 = vld [vmem:[#allocation2 + $0x38] sm:$0x3]  ;;  %v11115_v37 = vld [vmem:[%s15301_s3 + $0x214] ss:$8 sps:$4 sm:$0xff]  }
 0x213   : > { %v1707_v53 = vsel %vm1683_vm4, %v1702_v47, %v1706_v50  ;;  %v1713_v54 = vor.u32 %v1711_v51, %v1706_v50  ;;  %v11110_v33 = vld [vmem:[%s15301_s3 + $0x200] ss:$8 sps:$4 sm:$0xff]   ;;  %v1606_v36 = vpack.c.bf16 %v12661_v27, %v1600_v32  ;;  %v2147_v41 = vpack.c.bf16 %v2143_v34, %v12670_v38  ;;  %v11113_v42 = vld [vmem:[%s15301_s3 + $0x210] ss:$8 sps:$4 sm:$0xff]   ;;  %v11118_v43 = vld [vmem:[%s15301_s3 + $0x224] ss:$8 sps:$4 sm:$0xff]  }
 0x214   : > { %1910 = vmatprep.mubr.bf16.mxu1 %v1707_v53  ;;  %v2141_v40 = vld [vmem:[#allocation2 + $0x8] sm:$0xfc]  ;;  %v1608_v47 = vpack.c.bf16 %v12667_v35, %v12667_v35  ;;  %v11121_v49 = vld [vmem:[%s15301_s3 + $0x234] ss:$8 sps:$4 sm:$0xff]   ;;  %v11119_v51 = vld [vmem:[%s15301_s3 + $0x230] ss:$8 sps:$4 sm:$0xff]  }
 0x215   : > { %1911 = vmatmul.mubr.bf16.vlgmr.msra.gmra.mrb[0].mxu1 %v1695_v56  ;;  %v2145_v44 = vpack.c.bf16 %v12663_v30, %v2141_v40  ;;  %v12789_v45 = vrot.slane %v2147_v41, 1  ;;  %v11116_v46 = vld [vmem:[%s15301_s3 + $0x220] ss:$8 sps:$4 sm:$0xff]   ;;  %v11130_v56 = vld [vmem:[%s15301_s3 + $0x264] ss:$8 sps:$4 sm:$0xff]  }
 0x216   : > { %2090 = vmatpush1.bf16.msra.mxu1 %v11062_v52  ;;  %1920 = vmatprep.mubr.bf16.mxu1 %v1713_v54  ;;  %v11124_v52 = vld [vmem:[%s15301_s3 + $0x244] ss:$8 sps:$4 sm:$0xff]   ;;  %v11122_v53 = vld [vmem:[%s15301_s3 + $0x240] ss:$8 sps:$4 sm:$0xff]   ;;  %v11127_v54 = vld [vmem:[%s15301_s3 + $0x254] ss:$8 sps:$4 sm:$0xff]  }
 0x217   : > { %2091 = vmatprep.subr.bf16.mxu1 %v11067_v55  ;;  %v2189_v48 = vrot.slane %v2145_v44, 1  ;;  %v11125_v55 = vld [vmem:[%s15301_s3 + $0x250] ss:$8 sps:$4 sm:$0xff]   ;;  %v11136_v60 = vld [vmem:[%s15301_s3 + $0x284] ss:$8 sps:$4 sm:$0xff]  }
 0x218   : > { %v11131_v59 = vld [vmem:[%s15301_s3 + $0x270] ss:$8 sps:$4 sm:$0xff]   ;;  %v11164_v34 = vld [vmem:[%s15301_s3 + $0x320] ss:$8 sps:$4 sm:$0xff]   ;;  %v11172_v41 = vld [vmem:[%s15301_s3 + $0x344] ss:$8 sps:$4 sm:$0xff]  }
 0x219   : > { %v2191_v50 = vsel %vm2185_vm5, %v2189_v48, %v12789_v45  ;;  %v11167_v40 = vld [vmem:[%s15301_s3 + $0x330] ss:$8 sps:$4 sm:$0xff]  }
 0x21a   : > { %2092 = vmatpush1.bf16.msra.mxu1 %v11065_v57  ;;  %v11128_v57 = vld [vmem:[%s15301_s3 + $0x260] ss:$8 sps:$4 sm:$0xff]   ;;  %v11173_v44 = vld [vmem:[%s15301_s3 + $0x350] ss:$8 sps:$4 sm:$0xff]  }
 0x21b   : > { %2093 = vmatprep.subr.bf16.mxu1 %v11070_v58  ;;  %v11133_v58 = vld [vmem:[%s15301_s3 + $0x274] ss:$8 sps:$4 sm:$0xff]   ;;  %v11179_v48 = vld [vmem:[%s15301_s3 + $0x370] ss:$8 sps:$4 sm:$0xff]  }
 0x21d   : > { %1921 = vmatmul.mubr.bf16.gmra.mrb[4].mxu1 %v1710_v1  ;;  %v11139_v1 = vld [vmem:[%s15301_s3 + $0x294] ss:$8 sps:$4 sm:$0xff]  }
 0x21e   : > { %2094 = vmatpush1.bf16.msra.mxu1 %v11068_v63  ;;  %2121 = vmatprep.mubr.bf16.mxu1 %v1607_v3  ;;  %v11134_v63 = vld [vmem:[%s15301_s3 + $0x280] ss:$8 sps:$4 sm:$0xff]   ;;  %v11142_v3 = vld [vmem:[%s15301_s3 + $0x2a4] ss:$8 sps:$4 sm:$0xff]  }
 0x21f   : > { %2095 = vmatprep.subr.bf16.mxu1 %v11073_v2  ;;  %v11137_v2 = vld [vmem:[%s15301_s3 + $0x290] ss:$8 sps:$4 sm:$0xff]  }
 0x222   : > { %2096 = vmatpush1.bf16.msra.mxu1 %v11071_v4  ;;  %v11140_v4 = vld [vmem:[%s15301_s3 + $0x2a0] ss:$8 sps:$4 sm:$0xff]  }
 0x223   : > { %2097 = vmatprep.subr.bf16.mxu1 %v11076_v5  ;;  %v11145_v5 = vld [vmem:[%s15301_s3 + $0x2b4] ss:$8 sps:$4 sm:$0xff]  }
 0x226   : > { %2098 = vmatpush1.bf16.msra.mxu1 %v11074_v6  ;;  %v11143_v6 = vld [vmem:[%s15301_s3 + $0x2b0] ss:$8 sps:$4 sm:$0xff]  }
 0x227   : > { %2099 = vmatprep.subr.bf16.mxu1 %v11079_v7  ;;  %v11148_v7 = vld [vmem:[%s15301_s3 + $0x2c4] ss:$8 sps:$4 sm:$0xff]  }
 0x22a   : > { %2100 = vmatpush1.bf16.msra.mxu1 %v11077_v8  ;;  %v11146_v8 = vld [vmem:[%s15301_s3 + $0x2c0] ss:$8 sps:$4 sm:$0xff]  }
 0x22b   : > { %2101 = vmatprep.subr.bf16.mxu1 %v11082_v9  ;;  %v11151_v9 = vld [vmem:[%s15301_s3 + $0x2d4] ss:$8 sps:$4 sm:$0xff]  }
 0x22e   : > { %2102 = vmatpush1.bf16.msra.mxu1 %v11080_v10  ;;  %v11149_v10 = vld [vmem:[%s15301_s3 + $0x2d0] ss:$8 sps:$4 sm:$0xff]  }
 0x22f   : > { %2103 = vmatprep.subr.bf16.mxu1 %v11085_v11  ;;  %v11154_v11 = vld [vmem:[%s15301_s3 + $0x2e4] ss:$8 sps:$4 sm:$0xff]  }
 0x232   : > { %2104 = vmatpush1.bf16.msra.mxu1 %v11083_v12  ;;  %v2142_v12 = vld [vmem:[#allocation2 + $0x30] sm:$0x3] }
 0x233   : > { %2105 = vmatprep.subr.bf16.mxu1 %v11088_v13  ;;  %v11152_v13 = vld [vmem:[%s15301_s3 + $0x2e0] ss:$8 sps:$4 sm:$0xff]  }
 0x236   : > { %2106 = vmatpush1.bf16.msra.mxu1 %v11086_v14  ;;  %v11157_v14 = vld [vmem:[%s15301_s3 + $0x2f4] ss:$8 sps:$4 sm:$0xff]  }
 0x237   : > { %2107 = vmatprep.subr.bf16.mxu1 %v11091_v15  ;;  %v2140_v15 = vld [vmem:[#allocation2] sm:$0xfc] }
 0x23a   : > { %2108 = vmatpush1.bf16.msra.mxu1 %v11089_v16  ;;  %v2146_v16 = vpack.c.bf16 %v2142_v12, %v12667_v35 }
 0x23b   : > { %2109 = vmatprep.subr.bf16.mxu1 %v11094_v17  ;;  %v11155_v17 = vld [vmem:[%s15301_s3 + $0x2f0] ss:$8 sps:$4 sm:$0xff]  }
 0x23e   : > { %2110 = vmatpush1.bf16.msra.mxu1 %v11092_v18  ;;  %v2144_v18 = vpack.c.bf16 %v12661_v27, %v2140_v15 }
 0x23f   : > { %2111 = vmatprep.subr.bf16.mxu1 %v11097_v19  ;;  %v11160_v19 = vld [vmem:[%s15301_s3 + $0x304] ss:$8 sps:$4 sm:$0xff]  }
 0x242   : > { %2112 = vmatpush1.bf16.msra.mxu1 %v11095_v20  ;;  %v2187_v20 = vrot.slane %v2146_v16, 1 }
 0x243   : > { %2113 = vmatprep.subr.bf16.mxu1 %v11100_v21  ;;  %v2186_v21 = vrot.slane %v2144_v18, 1  ;;  %v11211_v18 = vld [vmem:[%s15301_s3 + $0x414] ss:$8 sps:$4 sm:$0xff]  }
 0x246   : > { %2114 = vmatpush1.bf16.msra.mxu1 %v11098_v22  ;;  %v11158_v22 = vld [vmem:[%s15301_s3 + $0x300] ss:$8 sps:$4 sm:$0xff]  }
 0x247   : > { %2115 = vmatprep.subr.bf16.mxu1 %v11103_v23  ;;  %v2416_v23 = vld [vmem:[#allocation2 + $0x38] sm:$0x3f] }
 0x24a   : > { %2116 = vmatpush1.bf16.msra.mxu1 %v11101_v24  ;;  %v11163_v24 = vld [vmem:[%s15301_s3 + $0x314] ss:$8 sps:$4 sm:$0xff]  }
 0x24b   : > { %2117 = vmatprep.subr.bf16.mxu1 %v11106_v25  ;;  %v2188_v25 = vsel %vm2185_vm5, %v2186_v21, %v2187_v20 }
 0x24e   : > { %2118 = vmatpush1.bf16.msra.mxu1 %v11104_v26  ;;  %v2414_v26 = vld [vmem:[#allocation2 + $0x8] sm:$0xc0] }
 0x24f   : > { %2119 = vmatprep.subr.bf16.mxu1 %v11109_v28  ;;  %v2420_v28 = vpack.c.bf16 %v2416_v23, %v12670_v38  ;;  %v2418_v32 = vpack.c.bf16 %v12663_v30, %v2414_v26 }
 0x252   : > { %2120 = vmatpush1.bf16.msra.mxu1 %v11107_v29  ;;  %v11161_v29 = vld [vmem:[%s15301_s3 + $0x310] ss:$8 sps:$4 sm:$0xff]  }
 0x253   : > { %2356 = vmatprep.subr.bf16.mxu1 %v11112_v31  ;;  %v11166_v31 = vld [vmem:[%s15301_s3 + $0x324] ss:$8 sps:$4 sm:$0xff]  }
 0x255   : > { %2122 = vmatmul.mubr.bf16.vlgmr.msra.gmra.mrb[0].mxu1 %v1606_v36  ;;  %v2462_v36 = vrot.slane %v2418_v32, 3 }
 0x256   : > { %2131 = vmatprep.mubr.bf16.mxu1 %v1609_v39  ;;  %2357 = vmatpush1.bf16.msra.mxu1 %v11110_v33  ;;  %v12897_v33 = vrot.slane %v2420_v28, 3 }
 0x257   : > { %2358 = vmatprep.subr.bf16.mxu1 %v11115_v37  ;;  %v11169_v37 = vld [vmem:[%s15301_s3 + $0x334] ss:$8 sps:$4 sm:$0xff]  }
 0x258   : > { %v2464_v39 = vsel %vm2458_vm6, %v2462_v36, %v12897_v33  ;;  %v11215_v36 = vld [vmem:[%s15301_s3 + $0x430] ss:$8 sps:$4 sm:$0xff]  }
 0x25a   : > { %2359 = vmatpush1.bf16.msra.mxu1 %v11113_v42  ;;  %v11170_v42 = vld [vmem:[%s15301_s3 + $0x340] ss:$8 sps:$4 sm:$0xff]  }
 0x25b   : > { %2360 = vmatprep.subr.bf16.mxu1 %v11118_v43  ;;  %v11175_v43 = vld [vmem:[%s15301_s3 + $0x354] ss:$8 sps:$4 sm:$0xff]  }
 0x25d   : > { %2132 = vmatmul.mubr.bf16.gmra.mrb[8].mxu1 %v1608_v47  ;;  %v11181_v47 = vld [vmem:[%s15301_s3 + $0x374] ss:$8 sps:$4 sm:$0xff]  }
 0x25e   : > { %2361 = vmatpush1.bf16.msra.mxu1 %v11116_v46  ;;  %2388 = vmatprep.mubr.bf16.mxu1 %v2191_v50  ;;  %v11176_v46 = vld [vmem:[%s15301_s3 + $0x360] ss:$8 sps:$4 sm:$0xff]  }
 0x25f   : > { %2362 = vmatprep.subr.bf16.mxu1 %v11121_v49  ;;  %v11184_v49 = vld [vmem:[%s15301_s3 + $0x384] ss:$8 sps:$4 sm:$0xff]   ;;  %v11182_v50 = vld [vmem:[%s15301_s3 + $0x380] ss:$8 sps:$4 sm:$0xff]  }
 0x262   : > { %2363 = vmatpush1.bf16.msra.mxu1 %v11119_v51  ;;  %v11187_v51 = vld [vmem:[%s15301_s3 + $0x394] ss:$8 sps:$4 sm:$0xff]  }
 0x263   : > { %2364 = vmatprep.subr.bf16.mxu1 %v11124_v52  ;;  %v11185_v52 = vld [vmem:[%s15301_s3 + $0x390] ss:$8 sps:$4 sm:$0xff]  }
 0x266   : > { %2365 = vmatpush1.bf16.msra.mxu1 %v11122_v53  ;;  %v11190_v53 = vld [vmem:[%s15301_s3 + $0x3a4] ss:$8 sps:$4 sm:$0xff]  }
 0x267   : > { %2366 = vmatprep.subr.bf16.mxu1 %v11127_v54  ;;  %v11188_v54 = vld [vmem:[%s15301_s3 + $0x3a0] ss:$8 sps:$4 sm:$0xff]  }
 0x26a   : > { %2367 = vmatpush1.bf16.msra.mxu1 %v11125_v55  ;;  %v11193_v55 = vld [vmem:[%s15301_s3 + $0x3b4] ss:$8 sps:$4 sm:$0xff]  }
 0x26b   : > { %2368 = vmatprep.subr.bf16.mxu1 %v11130_v56  ;;  %v11191_v56 = vld [vmem:[%s15301_s3 + $0x3b0] ss:$8 sps:$4 sm:$0xff]  }
 0x26e   : > { %2369 = vmatpush1.bf16.msra.mxu1 %v11128_v57  ;;  %v11196_v57 = vld [vmem:[%s15301_s3 + $0x3c4] ss:$8 sps:$4 sm:$0xff]  }
 0x26f   : > { %2370 = vmatprep.subr.bf16.mxu1 %v11133_v58  ;;  %v11194_v58 = vld [vmem:[%s15301_s3 + $0x3c0] ss:$8 sps:$4 sm:$0xff]  }
 0x272   : > { %2371 = vmatpush1.bf16.msra.mxu1 %v11131_v59  ;;  %v11199_v59 = vld [vmem:[%s15301_s3 + $0x3d4] ss:$8 sps:$4 sm:$0xff]  }
 0x273   : > { %2372 = vmatprep.subr.bf16.mxu1 %v11136_v60  ;;  %v11197_v60 = vld [vmem:[%s15301_s3 + $0x3d0] ss:$8 sps:$4 sm:$0xff]  }
 0x276   : > { %2373 = vmatpush1.bf16.msra.mxu1 %v11134_v63  ;;  %v11202_v63 = vld [vmem:[%s15301_s3 + $0x3e4] ss:$8 sps:$4 sm:$0xff]  }
 0x277   : > { %2374 = vmatprep.subr.bf16.mxu1 %v11139_v1  ;;  %v2415_v1 = vld [vmem:[#allocation2 + $0x30] sm:$0x3f] }
 0x27a   : > { %2375 = vmatpush1.bf16.msra.mxu1 %v11137_v2  ;;  %v11200_v2 = vld [vmem:[%s15301_s3 + $0x3e0] ss:$8 sps:$4 sm:$0xff]  }
 0x27b   : > { %2376 = vmatprep.subr.bf16.mxu1 %v11142_v3  ;;  %v2689_v3 = vld [vmem:[#allocation2 + $0x38] sm:$0x7f] }
 0x27e   : > { %2377 = vmatpush1.bf16.msra.mxu1 %v11140_v4  ;;  %v11205_v4 = vld [vmem:[%s15301_s3 + $0x3f4] ss:$8 sps:$4 sm:$0xff]  }
 0x27f   : > { %2378 = vmatprep.subr.bf16.mxu1 %v11145_v5  ;;  %v2413_v5 = vld [vmem:[#allocation2] sm:$0xc0] }
 0x282   : > { %2379 = vmatpush1.bf16.msra.mxu1 %v11143_v6  ;;  %v2419_v6 = vpack.c.bf16 %v2415_v1, %v12667_v35  ;;  %v2686_v1 = vld [vmem:[#allocation2] sm:$0x80] }
 0x283   : > { %2380 = vmatprep.subr.bf16.mxu1 %v11148_v7  ;;  %v2687_v7 = vld [vmem:[#allocation2 + $0x8] sm:$0x80] }
 0x284   : > { %v2691_v12 = vpack.c.bf16 %v12663_v30, %v2687_v7 }
 0x286   : > { %2381 = vmatpush1.bf16.msra.mxu1 %v11146_v8  ;;  %v2693_v8 = vpack.c.bf16 %v2689_v3, %v12670_v38  ;;  %v11245_v3 = vld [vmem:[%s15301_s3 + $0x4d0] ss:$8 sps:$4 sm:$0xff]  }
 0x287   : > { %2382 = vmatprep.subr.bf16.mxu1 %v11151_v9  ;;  %v11203_v9 = vld [vmem:[%s15301_s3 + $0x3f0] ss:$8 sps:$4 sm:$0xff]  }
 0x288   : > { %v2757_v15 = vshll.u32 %v2693_v8, 16 }
 0x28a   : > { %2383 = vmatpush1.bf16.msra.mxu1 %v11149_v10  ;;  %v2417_v10 = vpack.c.bf16 %v12661_v27, %v2413_v5  ;;  %v2759_v23 = vrot.slane %v2757_v15, 4  ;;  %v11250_v5 = vld [vmem:[%s15301_s3 + $0x4e4] ss:$8 sps:$4 sm:$0xff]  }
 0x28b   : > { %2384 = vmatprep.subr.bf16.mxu1 %v11154_v11  ;;  %v11208_v11 = vld [vmem:[%s15301_s3 + $0x404] ss:$8 sps:$4 sm:$0xff]  }
 0x28c   : > { %v2459_v16 = vrot.slane %v2417_v10, 3 }
 0x28e   : > { %2385 = vmatpush1.bf16.msra.mxu1 %v11152_v13  ;;  %v2460_v13 = vrot.slane %v2419_v6, 3 }
 0x28f   : > { %2386 = vmatprep.subr.bf16.mxu1 %v11157_v14  ;;  %v2754_v14 = vshrl.u32 %v2693_v8, 16  ;;  %v11248_v8 = vld [vmem:[%s15301_s3 + $0x4e0] ss:$8 sps:$4 sm:$0xff]  }
 0x290   : > { %v2461_v21 = vsel %vm2458_vm6, %v2459_v16, %v2460_v13 }
 0x292   : > { %2387 = vmatpush1.bf16.msra.mxu1 %v11155_v17  ;;  %v11206_v17 = vld [vmem:[%s15301_s3 + $0x400] ss:$8 sps:$4 sm:$0xff]  }
 0x293   : > { %2629 = vmatprep.subr.bf16.mxu1 %v11160_v19  ;;  %v2746_v19 = vshrl.u32 %v2691_v12, 16 }
 0x295   : > { %2389 = vmatmul.mubr.bf16.vlgmr.msra.gmra.mrb[0].mxu1 %v2188_v25  ;;  %v11214_v25 = vld [vmem:[%s15301_s3 + $0x424] ss:$8 sps:$4 sm:$0xff]   ;;  %v2748_v26 = vrot.slane %v2746_v19, 3 }
 0x296   : > { %2398 = vmatprep.mubr.bf16.mxu1 %v12789_v45  ;;  %2630 = vmatpush1.bf16.msra.mxu1 %v11158_v22  ;;  %v11178_v45 = vld [vmem:[%s15301_s3 + $0x364] ss:$8 sps:$4 sm:$0xff]   ;;  %v2756_v22 = vrot.slane %v2754_v14, 3  ;;  %v11251_v14 = vld [vmem:[%s15301_s3 + $0x4f0] ss:$8 sps:$4 sm:$0xff]  }
 0x297   : > { %2631 = vmatprep.subr.bf16.mxu1 %v11163_v24  ;;  %v11209_v24 = vld [vmem:[%s15301_s3 + $0x410] ss:$8 sps:$4 sm:$0xff]  }
 0x29a   : > { %2632 = vmatpush1.bf16.msra.mxu1 %v11161_v29  ;;  %v13003_v29 = vor.u32 %v2759_v23, %v2756_v22  ;;  %v11257_v23 = vld [vmem:[%s15301_s3 + $0x510] ss:$8 sps:$4 sm:$0xff]  }
 0x29b   : > { %2633 = vmatprep.subr.bf16.mxu1 %v11166_v31  ;;  %v11212_v31 = vld [vmem:[%s15301_s3 + $0x420] ss:$8 sps:$4 sm:$0xff]  }
 0x29d   : > { %2399 = vmatmul.mubr.bf16.gmra.mrb[12].mxu1 %v2187_v20  ;;  %v2749_v20 = vshll.u32 %v2691_v12, 16 }
 0x29e   : > { %2634 = vmatpush1.bf16.msra.mxu1 %v11164_v34  ;;  %2661 = vmatprep.mubr.bf16.mxu1 %v2464_v39  ;;  %v11218_v39 = vld [vmem:[%s15301_s3 + $0x440] ss:$8 sps:$4 sm:$0xff]  }
 0x29f   : > { %2635 = vmatprep.subr.bf16.mxu1 %v11169_v37  ;;  %v2751_v28 = vrot.slane %v2749_v20, 4  ;;  %v11220_v37 = vld [vmem:[%s15301_s3 + $0x444] ss:$8 sps:$4 sm:$0xff]   ;;  %v11254_v20 = vld [vmem:[%s15301_s3 + $0x500] ss:$8 sps:$4 sm:$0xff]  }
 0x2a1   : > { %v2752_v32 = vor.u32 %v2751_v28, %v2748_v26  ;;  %v11265_v26 = vld [vmem:[%s15301_s3 + $0x534] ss:$8 sps:$4 sm:$0xff]   ;;  %v2986_v28 = vpack.c.bf16 %v12670_v38, %v12663_v30  ;;  %v11269_v38 = vld [vmem:[%s15301_s3 + $0x550] ss:$8 sps:$4 sm:$0xff]  }
 0x2a2   : > { %2636 = vmatpush1.bf16.msra.mxu1 %v11167_v40  ;;  %v11223_v40 = vld [vmem:[%s15301_s3 + $0x454] ss:$8 sps:$4 sm:$0xff]  }
 0x2a3   : > { %2637 = vmatprep.subr.bf16.mxu1 %v11172_v41  ;;  %v2761_v34 = vsel %vm2727_vm7, %v2752_v32, %v13003_v29  ;;  %v11221_v41 = vld [vmem:[%s15301_s3 + $0x450] ss:$8 sps:$4 sm:$0xff]   ;;  %v11266_v32 = vld [vmem:[%s15301_s3 + $0x540] ss:$8 sps:$4 sm:$0xff]   ;;  %v11271_v30 = vld [vmem:[%s15301_s3 + $0x554] ss:$8 sps:$4 sm:$0xff]  }
 0x2a6   : > { %2638 = vmatpush1.bf16.msra.mxu1 %v11170_v42  ;;  %v11226_v42 = vld [vmem:[%s15301_s3 + $0x464] ss:$8 sps:$4 sm:$0xff]  }
 0x2a7   : > { %2639 = vmatprep.subr.bf16.mxu1 %v11175_v43  ;;  %v11224_v43 = vld [vmem:[%s15301_s3 + $0x460] ss:$8 sps:$4 sm:$0xff]  }
 0x2aa   : > { %2640 = vmatpush1.bf16.msra.mxu1 %v11173_v44  ;;  %v11229_v44 = vld [vmem:[%s15301_s3 + $0x474] ss:$8 sps:$4 sm:$0xff]  }
 0x2ab   : > { %2641 = vmatprep.subr.bf16.mxu1 %v11178_v45  ;;  %v11227_v45 = vld [vmem:[%s15301_s3 + $0x470] ss:$8 sps:$4 sm:$0xff]  }
 0x2ae   : > { %2642 = vmatpush1.bf16.msra.mxu1 %v11176_v46  ;;  %v11232_v46 = vld [vmem:[%s15301_s3 + $0x484] ss:$8 sps:$4 sm:$0xff]  }
 0x2af   : > { %2643 = vmatprep.subr.bf16.mxu1 %v11181_v47 }
 0x2b2   : > { %2644 = vmatpush1.bf16.msra.mxu1 %v11179_v48 }
 0x2b3   : > { %2645 = vmatprep.subr.bf16.mxu1 %v11184_v49 }
 0x2b6   : > { %2646 = vmatpush1.bf16.msra.mxu1 %v11182_v50  ;;  %v11230_v50 = vld [vmem:[%s15301_s3 + $0x480] ss:$8 sps:$4 sm:$0xff]  }
 0x2b7   : > { %2647 = vmatprep.subr.bf16.mxu1 %v11187_v51 }
 0x2ba   : > { %2648 = vmatpush1.bf16.msra.mxu1 %v11185_v52  ;;  %v11235_v52 = vld [vmem:[%s15301_s3 + $0x494] ss:$8 sps:$4 sm:$0xff]  }
 0x2bb   : > { %2649 = vmatprep.subr.bf16.mxu1 %v11190_v53  ;;  %v11233_v53 = vld [vmem:[%s15301_s3 + $0x490] ss:$8 sps:$4 sm:$0xff]  }
 0x2be   : > { %2650 = vmatpush1.bf16.msra.mxu1 %v11188_v54  ;;  %v11238_v54 = vld [vmem:[%s15301_s3 + $0x4a4] ss:$8 sps:$4 sm:$0xff]  }
 0x2bf   : > { %2651 = vmatprep.subr.bf16.mxu1 %v11193_v55  ;;  %v11236_v55 = vld [vmem:[%s15301_s3 + $0x4a0] ss:$8 sps:$4 sm:$0xff]  }
 0x2c2   : > { %2652 = vmatpush1.bf16.msra.mxu1 %v11191_v56  ;;  %v11241_v56 = vld [vmem:[%s15301_s3 + $0x4b4] ss:$8 sps:$4 sm:$0xff]  }
 0x2c3   : > { %2653 = vmatprep.subr.bf16.mxu1 %v11196_v57  ;;  %v11239_v57 = vld [vmem:[%s15301_s3 + $0x4b0] ss:$8 sps:$4 sm:$0xff]  }
 0x2c6   : > { %2654 = vmatpush1.bf16.msra.mxu1 %v11194_v58  ;;  %v11244_v58 = vld [vmem:[%s15301_s3 + $0x4c4] ss:$8 sps:$4 sm:$0xff]  }
 0x2c7   : > { %2655 = vmatprep.subr.bf16.mxu1 %v11199_v59  ;;  %v2688_v59 = vld [vmem:[#allocation2 + $0x30] sm:$0x7f] }
 0x2ca   : > { %2656 = vmatpush1.bf16.msra.mxu1 %v11197_v60  ;;  %v11242_v60 = vld [vmem:[%s15301_s3 + $0x4c0] ss:$8 sps:$4 sm:$0xff]  }
 0x2cb   : > { %2657 = vmatprep.subr.bf16.mxu1 %v11202_v63  ;;  %v11247_v63 = vld [vmem:[%s15301_s3 + $0x4d4] ss:$8 sps:$4 sm:$0xff]  }
 0x2ce   : > { %2658 = vmatpush1.bf16.msra.mxu1 %v11200_v2  ;;  %v2692_v2 = vpack.c.bf16 %v2688_v59, %v12667_v35  ;;  %v11301_v59 = vld [vmem:[%s15301_s3 + $0x5f4] ss:$8 sps:$4 sm:$0xff]  }
 0x2cf   : > { %2659 = vmatprep.subr.bf16.mxu1 %v11205_v4  ;;  %v2690_v4 = vpack.c.bf16 %v12661_v27, %v2686_v1  ;;  %v13203_v1 = vld [vmem:[#allocation2 + $0x38] sm:$0xff] }
 0x2d0   : > { %v2737_v6 = vshrl.u32 %v2692_v2, 16  ;;  %v2740_v7 = vshll.u32 %v2692_v2, 16  ;;  %v11302_v2 = vld [vmem:[%s15301_s3 + $0x600] ss:$8 sps:$4 sm:$0xff]  }
 0x2d1   : > { %v2732_v10 = vshll.u32 %v2690_v4, 16 }
 0x2d2   : > { %2660 = vmatpush1.bf16.msra.mxu1 %v11203_v9  ;;  %v2729_v9 = vshrl.u32 %v2690_v4, 16  ;;  %v2739_v12 = vrot.slane %v2737_v6, 3  ;;  %v3246_v4 = vld [vmem:[#allocation2 + $0x48] sm:$0xf]  ;;  %v11307_v6 = vld [vmem:[%s15301_s3 + $0x614] ss:$8 sps:$4 sm:$0xff]  }
 0x2d3   : > { %2926 = vmatprep.subr.bf16.mxu1 %v11208_v11  ;;  %v11253_v11 = vld [vmem:[%s15301_s3 + $0x4f4] ss:$8 sps:$4 sm:$0xff]   ;;  %v2734_v16 = vrot.slane %v2732_v10, 4  ;;  %v3250_v10 = vpack.c.bf16 %v3246_v4, %v13203_v1 }
 0x2d4   : > { %v2731_v15 = vrot.slane %v2729_v9, 3 }
 0x2d5   : > { %2662 = vmatmul.mubr.bf16.vlgmr.msra.gmra.mrb[0].mxu1 %v2461_v21  ;;  %v11259_v21 = vld [vmem:[%s15301_s3 + $0x514] ss:$8 sps:$4 sm:$0xff]  }
 0x2d6   : > { %2671 = vmatprep.mubr.bf16.mxu1 %v12897_v33  ;;  %2927 = vmatpush1.bf16.msra.mxu1 %v11206_v17  ;;  %v11217_v33 = vld [vmem:[%s15301_s3 + $0x434] ss:$8 sps:$4 sm:$0xff]   ;;  %v11256_v17 = vld [vmem:[%s15301_s3 + $0x504] ss:$8 sps:$4 sm:$0xff]   ;;  %v2735_v19 = vor.u32 %v2734_v16, %v2731_v15 }
 0x2d7   : > { %2928 = vmatprep.subr.bf16.mxu1 %v11211_v18  ;;  %v11313_v16 = vld [vmem:[%s15301_s3 + $0x634] ss:$8 sps:$4 sm:$0xff]  }
 0x2da   : > { %2929 = vmatpush1.bf16.msra.mxu1 %v11209_v24  ;;  %v11262_v24 = vld [vmem:[%s15301_s3 + $0x524] ss:$8 sps:$4 sm:$0xff]  }
 0x2db   : > { %2930 = vmatprep.subr.bf16.mxu1 %v11214_v25  ;;  %v11260_v25 = vld [vmem:[%s15301_s3 + $0x520] ss:$8 sps:$4 sm:$0xff]  }
 0x2dd   : > { %2672 = vmatmul.mubr.bf16.gmra.mrb[16].mxu1 %v2460_v13  ;;  %v2742_v13 = vrot.slane %v2740_v7, 4  ;;  %v2988_v7 = vpack.c.bf16 %v13203_v1, %v13203_v1 }
 0x2de   : > { %2931 = vmatpush1.bf16.msra.mxu1 %v11212_v31  ;;  %2958 = vmatprep.mubr.bf16.mxu1 %v2761_v34  ;;  %v11268_v31 = vld [vmem:[%s15301_s3 + $0x544] ss:$8 sps:$4 sm:$0xff]   ;;  %v11272_v34 = vld [vmem:[%s15301_s3 + $0x560] ss:$8 sps:$4 sm:$0xff]  }
 0x2df   : > { %2932 = vmatprep.subr.bf16.mxu1 %v11217_v33  ;;  %v2743_v18 = vor.u32 %v2742_v13, %v2739_v12  ;;  %v11274_v33 = vld [vmem:[%s15301_s3 + $0x564] ss:$8 sps:$4 sm:$0xff]   ;;  %v13227_v13 = vrot.slane %v3250_v10, 2 }
 0x2e1   : > { %v2744_v22 = vsel %vm2727_vm7, %v2735_v19, %v2743_v18  ;;  %v11316_v19 = vld [vmem:[%s15301_s3 + $0x644] ss:$8 sps:$4 sm:$0xff]  }
 0x2e2   : > { %2933 = vmatpush1.bf16.msra.mxu1 %v11215_v36  ;;  %v11277_v36 = vld [vmem:[%s15301_s3 + $0x574] ss:$8 sps:$4 sm:$0xff]  }
 0x2e3   : > { %2934 = vmatprep.subr.bf16.mxu1 %v11220_v37  ;;  %v11275_v37 = vld [vmem:[%s15301_s3 + $0x570] ss:$8 sps:$4 sm:$0xff]  }
 0x2e6   : > { %2935 = vmatpush1.bf16.msra.mxu1 %v11218_v39  ;;  %v11280_v39 = vld [vmem:[%s15301_s3 + $0x584] ss:$8 sps:$4 sm:$0xff]  }
 0x2e7   : > { %2936 = vmatprep.subr.bf16.mxu1 %v11223_v40 }
 0x2ea   : > { %2937 = vmatpush1.bf16.msra.mxu1 %v11221_v41 }
 0x2eb   : > { %2938 = vmatprep.subr.bf16.mxu1 %v11226_v42 }
 0x2ee   : > { %2939 = vmatpush1.bf16.msra.mxu1 %v11224_v43 }
 0x2ef   : > { %2940 = vmatprep.subr.bf16.mxu1 %v11229_v44 }
 0x2f0   : > { %v13043_v47 = vpop.f32.mrb[4].mxu1 }
 0x2f1   : > { %v13045_v48 = vpop.f32.mrb[5].mxu1 }
 0x2f2   : > { %2941 = vmatpush1.bf16.msra.mxu1 %v11227_v45  ;;  %v1926_v49 = vpop.f32.mrb[6].mxu1  ;;  %v11278_v45 = vld [vmem:[%s15301_s3 + $0x580] ss:$8 sps:$4 sm:$0xff]  }
 0x2f3   : > { %v1927_v51 = vpop.f32.mrb[7].mxu1  ;;  %2942 = vmatprep.subr.bf16.mxu1 %v11232_v46  ;;  %v11283_v49 = vld [vmem:[%s15301_s3 + $0x594] ss:$8 sps:$4 sm:$0xff]  }
 0x2f4   : > { %v11289_v51 = vld [vmem:[%s15301_s3 + $0x5b4] ss:$8 sps:$4 sm:$0xff]  }
 0x2f6   : > { %2943 = vmatpush1.bf16.msra.mxu1 %v11230_v50  ;;  %v11284_v50 = vld [vmem:[%s15301_s3 + $0x5a0] ss:$8 sps:$4 sm:$0xff]  }
 0x2f7   : > { %2944 = vmatprep.subr.bf16.mxu1 %v11235_v52  ;;  %v11287_v52 = vld [vmem:[%s15301_s3 + $0x5b0] ss:$8 sps:$4 sm:$0xff]  }
 0x2fa   : > { %2945 = vmatpush1.bf16.msra.mxu1 %v11233_v53  ;;  %v11292_v53 = vld [vmem:[%s15301_s3 + $0x5c4] ss:$8 sps:$4 sm:$0xff]  }
 0x2fb   : > { %2946 = vmatprep.subr.bf16.mxu1 %v11238_v54  ;;  %v11290_v54 = vld [vmem:[%s15301_s3 + $0x5c0] ss:$8 sps:$4 sm:$0xff]  }
 0x2fe   : > { %2947 = vmatpush1.bf16.msra.mxu1 %v11236_v55  ;;  %v11295_v55 = vld [vmem:[%s15301_s3 + $0x5d4] ss:$8 sps:$4 sm:$0xff]  }
 0x2ff   : > { %2948 = vmatprep.subr.bf16.mxu1 %v11241_v56  ;;  %v11293_v56 = vld [vmem:[%s15301_s3 + $0x5d0] ss:$8 sps:$4 sm:$0xff]  }
 0x302   : > { %2949 = vmatpush1.bf16.msra.mxu1 %v11239_v57  ;;  %v11298_v57 = vld [vmem:[%s15301_s3 + $0x5e4] ss:$8 sps:$4 sm:$0xff]  }
 0x303   : > { %2950 = vmatprep.subr.bf16.mxu1 %v11244_v58  ;;  %v11296_v58 = vld [vmem:[%s15301_s3 + $0x5e0] ss:$8 sps:$4 sm:$0xff]  }
 0x306   : > { %2951 = vmatpush1.bf16.msra.mxu1 %v11242_v60  ;;  %v11299_v60 = vld [vmem:[%s15301_s3 + $0x5f0] ss:$8 sps:$4 sm:$0xff]  }
 0x307   : > { %2952 = vmatprep.subr.bf16.mxu1 %v11247_v63  ;;  %v11304_v63 = vld [vmem:[%s15301_s3 + $0x604] ss:$8 sps:$4 sm:$0xff]  }
 0x30a   : > { %2953 = vmatpush1.bf16.msra.mxu1 %v11245_v3  ;;  %v13208_v3 = vld [vmem:[#allocation2 + $0x28] sm:$0xff] }
 0x30b   : > { %2954 = vmatprep.subr.bf16.mxu1 %v11250_v5  ;;  %v2985_v5 = vpack.c.bf16 %v12667_v35, %v12661_v27  ;;  %v11305_v27 = vld [vmem:[%s15301_s3 + $0x610] ss:$8 sps:$4 sm:$0xff]   ;;  %v11310_v35 = vld [vmem:[%s15301_s3 + $0x624] ss:$8 sps:$4 sm:$0xff]  }
 0x30e   : > { %2955 = vmatpush1.bf16.msra.mxu1 %v11248_v8  ;;  %v3240_v8 = vld [vmem:[#allocation2 + $0x18] sm:$0xf0] }
 0x30f   : > { %2956 = vmatprep.subr.bf16.mxu1 %v11253_v11  ;;  %v3248_v9 = vpack.c.bf16 %v13208_v3, %v3240_v8  ;;  %v13225_v11 = vld [vmem:[#allocation2 + $0x30] sm:$0xff]  ;;  %v11350_v8 = vld [vmem:[%s15301_s3 + $0x700] ss:$8 sps:$4 sm:$0xff]  }
 0x310   : > { %v2987_v15 = vpack.c.bf16 %v13225_v11, %v13225_v11 }
 0x311   : > { %v3292_v12 = vrot.slane %v3248_v9, 2  ;;  %v11355_v9 = vld [vmem:[%s15301_s3 + $0x714] ss:$8 sps:$4 sm:$0xff]  }
 0x312   : > { %2957 = vmatpush1.bf16.msra.mxu1 %v11251_v14  ;;  %v11308_v14 = vld [vmem:[%s15301_s3 + $0x620] ss:$8 sps:$4 sm:$0xff]  }
 0x313   : > { %3182 = vmatprep.subr.bf16.mxu1 %v11256_v17  ;;  %v3294_v17 = vsel %vm3288_vm8, %v3292_v12, %v13227_v13 }
 0x315   : > { %2959 = vmatmul.mubr.bf16.vlgmr.msra.gmra.mrb[0].mxu1 %v2744_v22  ;;  %v11317_v22 = vld [vmem:[%s15301_s3 + $0x650] ss:$8 sps:$4 sm:$0xff]  }
 0x316   : > { %2968 = vmatprep.mubr.bf16.mxu1 %v13003_v29  ;;  %3183 = vmatpush1.bf16.msra.mxu1 %v11254_v20  ;;  %v11263_v29 = vld [vmem:[%s15301_s3 + $0x530] ss:$8 sps:$4 sm:$0xff]   ;;  %v11314_v20 = vld [vmem:[%s15301_s3 + $0x640] ss:$8 sps:$4 sm:$0xff]  }
 0x317   : > { %3184 = vmatprep.subr.bf16.mxu1 %v11259_v21  ;;  %v11319_v21 = vld [vmem:[%s15301_s3 + $0x654] ss:$8 sps:$4 sm:$0xff]  }
 0x31a   : > { %3185 = vmatpush1.bf16.msra.mxu1 %v11257_v23  ;;  %v11322_v23 = vld [vmem:[%s15301_s3 + $0x664] ss:$8 sps:$4 sm:$0xff]  }
 0x31b   : > { %3186 = vmatprep.subr.bf16.mxu1 %v11262_v24  ;;  %v11320_v24 = vld [vmem:[%s15301_s3 + $0x660] ss:$8 sps:$4 sm:$0xff]  }
 0x31d   : > { %2969 = vmatmul.mubr.bf16.gmra.mrb[20].mxu1 %v2743_v18  ;;  %v11311_v18 = vld [vmem:[%s15301_s3 + $0x630] ss:$8 sps:$4 sm:$0xff]  }
 0x31e   : > { %3187 = vmatpush1.bf16.msra.mxu1 %v11260_v25  ;;  %3214 = vmatprep.mubr.bf16.mxu1 %v2986_v28  ;;  %v11325_v25 = vld [vmem:[%s15301_s3 + $0x674] ss:$8 sps:$4 sm:$0xff]   ;;  %v11328_v28 = vld [vmem:[%s15301_s3 + $0x684] ss:$8 sps:$4 sm:$0xff]  }
 0x31f   : > { %3188 = vmatprep.subr.bf16.mxu1 %v11265_v26  ;;  %v11323_v26 = vld [vmem:[%s15301_s3 + $0x670] ss:$8 sps:$4 sm:$0xff]  }
 0x322   : > { %3189 = vmatpush1.bf16.msra.mxu1 %v11263_v29 }
 0x323   : > { %3190 = vmatprep.subr.bf16.mxu1 %v11268_v31 }
 0x326   : > { %3191 = vmatpush1.bf16.msra.mxu1 %v11266_v32 }
 0x327   : > { %3192 = vmatprep.subr.bf16.mxu1 %v11271_v30 }
 0x32a   : > { %3193 = vmatpush1.bf16.msra.mxu1 %v11269_v38 }
 0x32b   : > { %3194 = vmatprep.subr.bf16.mxu1 %v11274_v33  ;;  %v11326_v33 = vld [vmem:[%s15301_s3 + $0x680] ss:$8 sps:$4 sm:$0xff]  }
 0x32e   : > { %3195 = vmatpush1.bf16.msra.mxu1 %v11272_v34 }
 0x32f   : > { %3196 = vmatprep.subr.bf16.mxu1 %v11277_v36  ;;  %v11331_v36 = vld [vmem:[%s15301_s3 + $0x694] ss:$8 sps:$4 sm:$0xff]  }
 0x330   : > { %v2133_v40 = vpop.f32.mrb[8].mxu1 }
 0x331   : > { %v13150_v41 = vadd.f32 %v2133_v40, %v13043_v47  ;;  %v2135_v42 = vpop.f32.mrb[9].mxu1  ;;  %v11281_v47 = vld [vmem:[%s15301_s3 + $0x590] ss:$8 sps:$4 sm:$0xff]   ;;  %v11332_v40 = vld [vmem:[%s15301_s3 + $0x6a0] ss:$8 sps:$4 sm:$0xff]  }
 0x332   : > { %v13153_v43 = vadd.f32 %v2135_v42, %v13045_v48  ;;  %v2137_v44 = vpop.f32.mrb[10].mxu1  ;;  %3197 = vmatpush1.bf16.msra.mxu1 %v11275_v37  ;;  %v11286_v48 = vld [vmem:[%s15301_s3 + $0x5a4] ss:$8 sps:$4 sm:$0xff]   ;;  %v11329_v37 = vld [vmem:[%s15301_s3 + $0x690] ss:$8 sps:$4 sm:$0xff]  }
 0x333   : > { %v2138_v46 = vpop.f32.mrb[11].mxu1  ;;  %3198 = vmatprep.subr.bf16.mxu1 %v11280_v39  ;;  %v11334_v39 = vld [vmem:[%s15301_s3 + $0x6a4] ss:$8 sps:$4 sm:$0xff]   ;;  %v11335_v42 = vld [vmem:[%s15301_s3 + $0x6b0] ss:$8 sps:$4 sm:$0xff]  }
 0x334   : > { %v11338_v44 = vld [vmem:[%s15301_s3 + $0x6c0] ss:$8 sps:$4 sm:$0xff]   ;;  %v11341_v46 = vld [vmem:[%s15301_s3 + $0x6d0] ss:$8 sps:$4 sm:$0xff]  }
 0x336   : > { %3199 = vmatpush1.bf16.msra.mxu1 %v11278_v45  ;;  %v11343_v45 = vld [vmem:[%s15301_s3 + $0x6d4] ss:$8 sps:$4 sm:$0xff]  }
 0x337   : > { %3200 = vmatprep.subr.bf16.mxu1 %v11283_v49  ;;  %v11346_v49 = vld [vmem:[%s15301_s3 + $0x6e4] ss:$8 sps:$4 sm:$0xff]  }
 0x33a   : > { %3201 = vmatpush1.bf16.msra.mxu1 %v11281_v47  ;;  %v13311_v47 = vld [vmem:[#allocation2 + $0x20] sm:$0xff] }
 0x33b   : > { %3202 = vmatprep.subr.bf16.mxu1 %v11286_v48  ;;  %v3245_v48 = vld [vmem:[#allocation2 + $0x40] sm:$0xf] }
 0x33e   : > { %3203 = vmatpush1.bf16.msra.mxu1 %v11284_v50  ;;  %v11344_v50 = vld [vmem:[%s15301_s3 + $0x6e0] ss:$8 sps:$4 sm:$0xff]  }
 0x33f   : > { %3204 = vmatprep.subr.bf16.mxu1 %v11289_v51  ;;  %v3519_v51 = vld [vmem:[#allocation2 + $0x48] sm:$0x1f] }
 0x342   : > { %3205 = vmatpush1.bf16.msra.mxu1 %v11287_v52  ;;  %v11349_v52 = vld [vmem:[%s15301_s3 + $0x6f4] ss:$8 sps:$4 sm:$0xff]  }
 0x343   : > { %3206 = vmatprep.subr.bf16.mxu1 %v11292_v53  ;;  %v3239_v53 = vld [vmem:[#allocation2 + $0x10] sm:$0xf0] }
 0x346   : > { %3207 = vmatpush1.bf16.msra.mxu1 %v11290_v54  ;;  %v3247_v54 = vpack.c.bf16 %v13311_v47, %v3239_v53 }
 0x347   : > { %3208 = vmatprep.subr.bf16.mxu1 %v11295_v55  ;;  %v3249_v55 = vpack.c.bf16 %v3245_v48, %v13225_v11  ;;  %v11386_v48 = vld [vmem:[%s15301_s3 + $0x7c0] ss:$8 sps:$4 sm:$0xff]  }
 0x34a   : > { %3209 = vmatpush1.bf16.msra.mxu1 %v11293_v56  ;;  %v3517_v56 = vld [vmem:[#allocation2 + $0x18] sm:$0xe0] }
 0x34b   : > { %3210 = vmatprep.subr.bf16.mxu1 %v11298_v57  ;;  %v3521_v57 = vpack.c.bf16 %v13208_v3, %v3517_v56 }
 0x34d   : > { %v3576_v4 = vshrl.u32 %v3521_v57, 16 }
 0x34e   : > { %3211 = vmatpush1.bf16.msra.mxu1 %v11296_v58  ;;  %v3523_v58 = vpack.c.bf16 %v3519_v51, %v13203_v1  ;;  %v3516_v51 = vld [vmem:[#allocation2 + $0x10] sm:$0xe0] }
 0x34f   : > { %3212 = vmatprep.subr.bf16.mxu1 %v11301_v59  ;;  %v11347_v59 = vld [vmem:[%s15301_s3 + $0x6f0] ss:$8 sps:$4 sm:$0xff]  }
 0x352   : > { %3213 = vmatpush1.bf16.msra.mxu1 %v11299_v60  ;;  %v11352_v60 = vld [vmem:[%s15301_s3 + $0x704] ss:$8 sps:$4 sm:$0xff]  }
 0x353   : > { %3459 = vmatprep.subr.bf16.mxu1 %v11304_v63  ;;  %v3289_v63 = vrot.slane %v3247_v54, 2  ;;  %v11389_v54 = vld [vmem:[%s15301_s3 + $0x7d0] ss:$8 sps:$4 sm:$0xff]  }
 0x355   : > { %3215 = vmatmul.mubr.bf16.vlgmr.msra.gmra.mrb[0].mxu1 %v2985_v5  ;;  %v3579_v5 = vshll.u32 %v3521_v57, 16 }
 0x356   : > { %3224 = vmatprep.mubr.bf16.mxu1 %v2988_v7  ;;  %3460 = vmatpush1.bf16.msra.mxu1 %v11302_v2  ;;  %v3290_v2 = vrot.slane %v3249_v55, 2  ;;  %v3587_v7 = vshll.u32 %v3523_v58, 16  ;;  %v11394_v55 = vld [vmem:[%s15301_s3 + $0x7e4] ss:$8 sps:$4 sm:$0xff]  }
 0x357   : > { %3461 = vmatprep.subr.bf16.mxu1 %v11307_v6  ;;  %v3584_v6 = vshrl.u32 %v3523_v58, 16 }
 0x358   : > { %v3291_v10 = vsel %vm3288_vm8, %v3289_v63, %v3290_v2  ;;  %v11397_v63 = vld [vmem:[%s15301_s3 + $0x7f4] ss:$8 sps:$4 sm:$0xff]  }
 0x359   : > { %v3586_v12 = vrot.slane %v3584_v6, 2 }
 0x35a   : > { %3462 = vmatpush1.bf16.msra.mxu1 %v11305_v27  ;;  %v3578_v27 = vrot.slane %v3576_v4, 2 }
 0x35b   : > { %3463 = vmatprep.subr.bf16.mxu1 %v11310_v35  ;;  %v3581_v35 = vrot.slane %v3579_v5, 3 }
 0x35d   : > { %3225 = vmatmul.mubr.bf16.gmra.mrb[24].mxu1 %v2987_v15  ;;  %v11353_v15 = vld [vmem:[%s15301_s3 + $0x710] ss:$8 sps:$4 sm:$0xff]  }
 0x35e   : > { %3464 = vmatpush1.bf16.msra.mxu1 %v11308_v14  ;;  %3491 = vmatprep.mubr.bf16.mxu1 %v3294_v17  ;;  %v3589_v14 = vrot.slane %v3587_v7, 3  ;;  %v3582_v17 = vor.u32 %v3581_v35, %v3578_v27  ;;  %v11395_v7 = vld [vmem:[%s15301_s3 + $0x7f0] ss:$8 sps:$4 sm:$0xff]   ;;  %v11398_v27 = vld [vmem:[%s15301_s3 + $0x800] ss:$8 sps:$4 sm:$0xff]  }
 0x35f   : > { %3465 = vmatprep.subr.bf16.mxu1 %v11313_v16  ;;  %v11358_v16 = vld [vmem:[%s15301_s3 + $0x724] ss:$8 sps:$4 sm:$0xff]  }
 0x360   : > { %v3816_v35 = vld [vmem:[#allocation2 + $0x48] sm:$0x3f] }
 0x362   : > { %3466 = vmatpush1.bf16.msra.mxu1 %v11311_v18  ;;  %v13343_v18 = vor.u32 %v3589_v14, %v3586_v12  ;;  %v11403_v12 = vld [vmem:[%s15301_s3 + $0x814] ss:$8 sps:$4 sm:$0xff]  }
 0x363   : > { %3467 = vmatprep.subr.bf16.mxu1 %v11316_v19  ;;  %v11356_v19 = vld [vmem:[%s15301_s3 + $0x720] ss:$8 sps:$4 sm:$0xff]  }
 0x366   : > { %3468 = vmatpush1.bf16.msra.mxu1 %v11314_v20  ;;  %v3591_v20 = vsel %vm3557_vm9, %v3582_v17, %v13343_v18  ;;  %v3820_v17 = vpack.c.bf16 %v3816_v35, %v13203_v1  ;;  %v11404_v1 = vld [vmem:[%s15301_s3 + $0x820] ss:$8 sps:$4 sm:$0xff]  }
 0x367   : > { %3469 = vmatprep.subr.bf16.mxu1 %v11319_v21  ;;  %v11359_v21 = vld [vmem:[%s15301_s3 + $0x730] ss:$8 sps:$4 sm:$0xff]  }
 0x36a   : > { %3470 = vmatpush1.bf16.msra.mxu1 %v11317_v22  ;;  %v11364_v22 = vld [vmem:[%s15301_s3 + $0x744] ss:$8 sps:$4 sm:$0xff]  }
 0x36b   : > { %3471 = vmatprep.subr.bf16.mxu1 %v11322_v23  ;;  %v11362_v23 = vld [vmem:[%s15301_s3 + $0x740] ss:$8 sps:$4 sm:$0xff]  }
 0x36e   : > { %3472 = vmatpush1.bf16.msra.mxu1 %v11320_v24  ;;  %v11367_v24 = vld [vmem:[%s15301_s3 + $0x754] ss:$8 sps:$4 sm:$0xff]  }
 0x36f   : > { %3473 = vmatprep.subr.bf16.mxu1 %v11325_v25  ;;  %v11365_v25 = vld [vmem:[%s15301_s3 + $0x750] ss:$8 sps:$4 sm:$0xff]  }
 0x370   : > { %v2400_v29 = vpop.f32.mrb[12].mxu1 }
 0x371   : > { %v13270_v31 = vadd.f32 %v2400_v29, %v13150_v41  ;;  %v2402_v32 = vpop.f32.mrb[13].mxu1  ;;  %v11337_v41 = vld [vmem:[%s15301_s3 + $0x6b4] ss:$8 sps:$4 sm:$0xff]  }
 0x372   : > { %v13273_v30 = vadd.f32 %v2402_v32, %v13153_v43  ;;  %v2404_v38 = vpop.f32.mrb[14].mxu1  ;;  %3474 = vmatpush1.bf16.msra.mxu1 %v11323_v26  ;;  %v11340_v43 = vld [vmem:[%s15301_s3 + $0x6c4] ss:$8 sps:$4 sm:$0xff]   ;;  %v11373_v29 = vld [vmem:[%s15301_s3 + $0x774] ss:$8 sps:$4 sm:$0xff]  }
 0x373   : > { %v2405_v34 = vpop.f32.mrb[15].mxu1  ;;  %3475 = vmatprep.subr.bf16.mxu1 %v11328_v28  ;;  %v11370_v26 = vld [vmem:[%s15301_s3 + $0x764] ss:$8 sps:$4 sm:$0xff]   ;;  %v11368_v28 = vld [vmem:[%s15301_s3 + $0x760] ss:$8 sps:$4 sm:$0xff]  }
 0x374   : > { %v11371_v32 = vld [vmem:[%s15301_s3 + $0x770] ss:$8 sps:$4 sm:$0xff]   ;;  %v11376_v38 = vld [vmem:[%s15301_s3 + $0x784] ss:$8 sps:$4 sm:$0xff]  }
 0x376   : > { %3476 = vmatpush1.bf16.msra.mxu1 %v11326_v33 }
 0x377   : > { %3477 = vmatprep.subr.bf16.mxu1 %v11331_v36 }
 0x37a   : > { %3478 = vmatpush1.bf16.msra.mxu1 %v11329_v37 }
 0x37b   : > { %3479 = vmatprep.subr.bf16.mxu1 %v11334_v39 }
 0x37e   : > { %3480 = vmatpush1.bf16.msra.mxu1 %v11332_v40  ;;  %v11374_v40 = vld [vmem:[%s15301_s3 + $0x780] ss:$8 sps:$4 sm:$0xff]  }
 0x37f   : > { %3481 = vmatprep.subr.bf16.mxu1 %v11337_v41 }
 0x382   : > { %3482 = vmatpush1.bf16.msra.mxu1 %v11335_v42  ;;  %v11379_v42 = vld [vmem:[%s15301_s3 + $0x794] ss:$8 sps:$4 sm:$0xff]  }
 0x383   : > { %3483 = vmatprep.subr.bf16.mxu1 %v11340_v43  ;;  %v11380_v43 = vld [vmem:[%s15301_s3 + $0x7a0] ss:$8 sps:$4 sm:$0xff]  }
 0x386   : > { %3484 = vmatpush1.bf16.msra.mxu1 %v11338_v44  ;;  %v11385_v44 = vld [vmem:[%s15301_s3 + $0x7b4] ss:$8 sps:$4 sm:$0xff]  }
 0x387   : > { %3485 = vmatprep.subr.bf16.mxu1 %v11343_v45  ;;  %v11383_v45 = vld [vmem:[%s15301_s3 + $0x7b0] ss:$8 sps:$4 sm:$0xff]  }
 0x38a   : > { %3486 = vmatpush1.bf16.msra.mxu1 %v11341_v46  ;;  %v11388_v46 = vld [vmem:[%s15301_s3 + $0x7c4] ss:$8 sps:$4 sm:$0xff]  }
 0x38b   : > { %3487 = vmatprep.subr.bf16.mxu1 %v11346_v49  ;;  %v3518_v49 = vld [vmem:[#allocation2 + $0x40] sm:$0x1f] }
 0x38c   : > { %v3522_v53 = vpack.c.bf16 %v3518_v49, %v13225_v11  ;;  %v11436_v49 = vld [vmem:[%s15301_s3 + $0x8c4] ss:$8 sps:$4 sm:$0xff]  }
 0x38e   : > { %3488 = vmatpush1.bf16.msra.mxu1 %v11344_v50  ;;  %v11391_v50 = vld [vmem:[%s15301_s3 + $0x7d4] ss:$8 sps:$4 sm:$0xff]   ;;  %v3567_v58 = vshrl.u32 %v3522_v53, 16 }
 0x38f   : > { %3489 = vmatprep.subr.bf16.mxu1 %v11349_v52  ;;  %v3520_v52 = vpack.c.bf16 %v13311_v47, %v3516_v51  ;;  %v11437_v51 = vld [vmem:[%s15301_s3 + $0x8d0] ss:$8 sps:$4 sm:$0xff]  }
 0x390   : > { %v3569_v5 = vrot.slane %v3567_v58, 2 }
 0x391   : > { %v3559_v56 = vshrl.u32 %v3520_v52, 16  ;;  %v3562_v57 = vshll.u32 %v3520_v52, 16  ;;  %v11442_v52 = vld [vmem:[%s15301_s3 + $0x8e4] ss:$8 sps:$4 sm:$0xff]  }
 0x392   : > { %3490 = vmatpush1.bf16.msra.mxu1 %v11347_v59  ;;  %v3570_v59 = vshll.u32 %v3522_v53, 16  ;;  %v3815_v53 = vld [vmem:[#allocation2 + $0x40] sm:$0x3f] }
 0x393   : > { %3756 = vmatprep.subr.bf16.mxu1 %v11352_v60  ;;  %v11392_v60 = vld [vmem:[%s15301_s3 + $0x7e0] ss:$8 sps:$4 sm:$0xff]   ;;  %v3564_v4 = vrot.slane %v3562_v57, 3  ;;  %v3819_v58 = vpack.c.bf16 %v3815_v53, %v13225_v11  ;;  %v1548_v53 = vadd.s32 16, %v12648_v61 }
 0x394   : > { %v3572_v6 = vrot.slane %v3570_v59, 3  ;;  %v11443_v59 = vld [vmem:[%s15301_s3 + $0x8f0] ss:$8 sps:$4 sm:$0xff]  }
 0x395   : > { %3492 = vmatmul.mubr.bf16.vlgmr.msra.gmra.mrb[0].mxu1 %v3291_v10 }
 0x396   : > { %3501 = vmatprep.mubr.bf16.mxu1 %v13227_v13  ;;  %3757 = vmatpush1.bf16.msra.mxu1 %v11350_v8  ;;  %v11361_v13 = vld [vmem:[%s15301_s3 + $0x734] ss:$8 sps:$4 sm:$0xff]   ;;  %v11400_v8 = vld [vmem:[%s15301_s3 + $0x804] ss:$8 sps:$4 sm:$0xff]   ;;  %v3573_v10 = vor.u32 %v3572_v6, %v3569_v5 }
 0x397   : > { %3758 = vmatprep.subr.bf16.mxu1 %v11355_v9 }
 0x39a   : > { %3759 = vmatpush1.bf16.msra.mxu1 %v11353_v15  ;;  %v3814_v15 = vld [vmem:[#allocation2 + $0x18] sm:$0xc0] }
 0x39b   : > { %3760 = vmatprep.subr.bf16.mxu1 %v11358_v16  ;;  %v3818_v16 = vpack.c.bf16 %v13208_v3, %v3814_v15  ;;  %v11409_v3 = vld [vmem:[%s15301_s3 + $0x834] ss:$8 sps:$4 sm:$0xff]   ;;  %v11446_v15 = vld [vmem:[%s15303_s5 + $0x100] ss:$8 sps:$4 sm:$0xff]  }
 0x39d   : > { %3502 = vmatmul.mubr.bf16.gmra.mrb[28].mxu1 %v3290_v2  ;;  %v3561_v2 = vrot.slane %v3559_v56, 2  ;;  %v3813_v56 = vld [vmem:[#allocation2 + $0x10] sm:$0xc0] }
 0x39e   : > { %3761 = vmatpush1.bf16.msra.mxu1 %v11356_v19  ;;  %3788 = vmatprep.mubr.bf16.mxu1 %v3591_v20  ;;  %v11401_v19 = vld [vmem:[%s15301_s3 + $0x810] ss:$8 sps:$4 sm:$0xff]   ;;  %v3861_v20 = vrot.slane %v3818_v16, 3  ;;  %v3817_v57 = vpack.c.bf16 %v13311_v47, %v3813_v56  ;;  %v11451_v16 = vld [vmem:[%s15303_s5 + $0x114] ss:$8 sps:$4 sm:$0xff]  }
 0x39f   : > { %3762 = vmatprep.subr.bf16.mxu1 %v11361_v13  ;;  %v3565_v9 = vor.u32 %v3564_v4, %v3561_v2  ;;  %v11406_v13 = vld [vmem:[%s15301_s3 + $0x824] ss:$8 sps:$4 sm:$0xff]   ;;  %v11488_v56 = vld [vmem:[%s15303_s5 + $0x1e0] ss:$8 sps:$4 sm:$0xff]  }
 0x3a1   : > { %v3574_v14 = vsel %vm3557_vm9, %v3565_v9, %v3573_v10 }
 0x3a2   : > { %3763 = vmatpush1.bf16.msra.mxu1 %v11359_v21  ;;  %v13455_v21 = vrot.slane %v3820_v17, 3  ;;  %v11449_v17 = vld [vmem:[%s15303_s5 + $0x110] ss:$8 sps:$4 sm:$0xff]  }
 0x3a3   : > { %3764 = vmatprep.subr.bf16.mxu1 %v11364_v22  ;;  %v11407_v22 = vld [vmem:[%s15301_s3 + $0x830] ss:$8 sps:$4 sm:$0xff]  }
 0x3a6   : > { %3765 = vmatpush1.bf16.msra.mxu1 %v11362_v23  ;;  %v11412_v23 = vld [vmem:[%s15301_s3 + $0x844] ss:$8 sps:$4 sm:$0xff]  }
 0x3a7   : > { %3766 = vmatprep.subr.bf16.mxu1 %v11367_v24  ;;  %v11410_v24 = vld [vmem:[%s15301_s3 + $0x840] ss:$8 sps:$4 sm:$0xff]  }
 0x3aa   : > { %3767 = vmatpush1.bf16.msra.mxu1 %v11365_v25  ;;  %v11415_v25 = vld [vmem:[%s15301_s3 + $0x854] ss:$8 sps:$4 sm:$0xff]  }
 0x3ab   : > { %3768 = vmatprep.subr.bf16.mxu1 %v11370_v26  ;;  %v11413_v26 = vld [vmem:[%s15301_s3 + $0x850] ss:$8 sps:$4 sm:$0xff]  }
 0x3ae   : > { %3769 = vmatpush1.bf16.msra.mxu1 %v11368_v28  ;;  %v11418_v28 = vld [vmem:[%s15301_s3 + $0x864] ss:$8 sps:$4 sm:$0xff]  }
 0x3af   : > { %3770 = vmatprep.subr.bf16.mxu1 %v11373_v29  ;;  %v11416_v29 = vld [vmem:[%s15301_s3 + $0x860] ss:$8 sps:$4 sm:$0xff]  }
 0x3b0   : > { %v2673_v33 = vpop.f32.mrb[16].mxu1 }
 0x3b1   : > { %v13384_v34 = vadd.f32 %v2673_v33, %v13270_v31  ;;  %v2675_v36 = vpop.f32.mrb[17].mxu1  ;;  %v11377_v31 = vld [vmem:[%s15301_s3 + $0x790] ss:$8 sps:$4 sm:$0xff]   ;;  %v11424_v33 = vld [vmem:[%s15301_s3 + $0x884] ss:$8 sps:$4 sm:$0xff]  }
 0x3b2   : > { %v13387_v37 = vadd.f32 %v2675_v36, %v13273_v30  ;;  %v2677_v39 = vpop.f32.mrb[18].mxu1  ;;  %3771 = vmatpush1.bf16.msra.mxu1 %v11371_v32  ;;  %v11382_v30 = vld [vmem:[%s15301_s3 + $0x7a4] ss:$8 sps:$4 sm:$0xff]   ;;  %v11421_v32 = vld [vmem:[%s15301_s3 + $0x874] ss:$8 sps:$4 sm:$0xff]  }
 0x3b3   : > { %v2678_v41 = vpop.f32.mrb[19].mxu1  ;;  %3772 = vmatprep.subr.bf16.mxu1 %v11376_v38  ;;  %v11419_v38 = vld [vmem:[%s15301_s3 + $0x870] ss:$8 sps:$4 sm:$0xff]  }
 0x3b6   : > { %3773 = vmatpush1.bf16.msra.mxu1 %v11374_v40 }
 0x3b7   : > { %3774 = vmatprep.subr.bf16.mxu1 %v11379_v42 }
 0x3ba   : > { %3775 = vmatpush1.bf16.msra.mxu1 %v11377_v31  ;;  %v11422_v31 = vld [vmem:[%s15301_s3 + $0x880] ss:$8 sps:$4 sm:$0xff]  }
 0x3bb   : > { %3776 = vmatprep.subr.bf16.mxu1 %v11382_v30 }
 0x3be   : > { %3777 = vmatpush1.bf16.msra.mxu1 %v11380_v43  ;;  %v11427_v43 = vld [vmem:[%s15301_s3 + $0x894] ss:$8 sps:$4 sm:$0xff]  }
 0x3bf   : > { %3778 = vmatprep.subr.bf16.mxu1 %v11385_v44  ;;  %v11428_v44 = vld [vmem:[%s15301_s3 + $0x8a0] ss:$8 sps:$4 sm:$0xff]  }
 0x3c2   : > { %3779 = vmatpush1.bf16.msra.mxu1 %v11383_v45  ;;  %v11433_v45 = vld [vmem:[%s15301_s3 + $0x8b4] ss:$8 sps:$4 sm:$0xff]  }
 0x3c3   : > { %3780 = vmatprep.subr.bf16.mxu1 %v11388_v46  ;;  %v11431_v46 = vld [vmem:[%s15301_s3 + $0x8b0] ss:$8 sps:$4 sm:$0xff]  }
 0x3c6   : > { %3781 = vmatpush1.bf16.msra.mxu1 %v11386_v48  ;;  %v11434_v48 = vld [vmem:[%s15301_s3 + $0x8c0] ss:$8 sps:$4 sm:$0xff]  }
 0x3c7   : > { %3782 = vmatprep.subr.bf16.mxu1 %v11391_v50  ;;  %v11439_v50 = vld [vmem:[%s15301_s3 + $0x8d4] ss:$8 sps:$4 sm:$0xff]  }
 0x3ca   : > { %3783 = vmatpush1.bf16.msra.mxu1 %v11389_v54  ;;  %v11440_v54 = vld [vmem:[%s15301_s3 + $0x8e0] ss:$8 sps:$4 sm:$0xff]  }
 0x3cb   : > { %3784 = vmatprep.subr.bf16.mxu1 %v11394_v55  ;;  %v11445_v55 = vld [vmem:[%s15301_s3 + $0x8f4] ss:$8 sps:$4 sm:$0xff]  }
 0x3ce   : > { %3785 = vmatpush1.bf16.msra.mxu1 %v11392_v60  ;;  %v3858_v60 = vrot.slane %v3817_v57, 3 }
 0x3cf   : > { %3786 = vmatprep.subr.bf16.mxu1 %v11397_v63  ;;  %v3859_v63 = vrot.slane %v3819_v58, 3 }
 0x3d1   : > { %v3860_v2 = vsel %vm2458_vm6, %v3858_v60, %v3859_v63  ;;  %v11493_v60 = vld [vmem:[%s15303_s5 + $0x1f4] ss:$8 sps:$4 sm:$0xff]  }
 0x3d2   : > { %3787 = vmatpush1.bf16.msra.mxu1 %v11395_v7 }
 0x3d3   : > { %4028 = vmatprep.subr.bf16.mxu1 %v11400_v8 }
 0x3d5   : > { %3789 = vmatmul.mubr.bf16.vlgmr.msra.gmra.mrb[0].mxu1 %v3574_v14  ;;  %v11448_v14 = vld [vmem:[%s15303_s5 + $0x104] ss:$8 sps:$4 sm:$0xff]  }
 0x3d6   : > { %3798 = vmatprep.mubr.bf16.mxu1 %v13343_v18  ;;  %4029 = vmatpush1.bf16.msra.mxu1 %v11398_v27  ;;  %v3863_v18 = vsel %vm2458_vm6, %v3861_v20, %v13455_v21  ;;  %v11457_v20 = vld [vmem:[%s15303_s5 + $0x134] ss:$8 sps:$4 sm:$0xff]  }
 0x3d7   : > { %4030 = vmatprep.subr.bf16.mxu1 %v11403_v12  ;;  %4509 = vmatprep.subr.bf16.mxu0 %v11448_v14 }
 0x3d8   : > { %4510 = vmatpush1.bf16.msra.mxu0 %v11446_v15 }
 0x3d9   : > { %4511 = vmatprep.subr.bf16.mxu0 %v11451_v16 }
 0x3da   : > { %4031 = vmatpush1.bf16.msra.mxu1 %v11401_v19  ;;  %v11454_v19 = vld [vmem:[%s15303_s5 + $0x124] ss:$8 sps:$4 sm:$0xff]  }
 0x3db   : > { %4032 = vmatprep.subr.bf16.mxu1 %v11406_v13  ;;  %v11452_v13 = vld [vmem:[%s15303_s5 + $0x120] ss:$8 sps:$4 sm:$0xff]  }
 0x3dc   : > { %4512 = vmatpush1.bf16.msra.mxu0 %v11449_v17 }
 0x3dd   : > { %3799 = vmatmul.mubr.bf16.gmra.mrb[32].mxu1 %v3573_v10  ;;  %4513 = vmatprep.subr.bf16.mxu0 %v11454_v19 }
 0x3de   : > { %4033 = vmatpush1.bf16.msra.mxu1 %v11404_v1  ;;  %4060 = vmatprep.mubr.bf16.mxu1 %v3863_v18  ;;  %v11460_v1 = vld [vmem:[%s15303_s5 + $0x144] ss:$8 sps:$4 sm:$0xff]  }
 0x3df   : > { %4034 = vmatprep.subr.bf16.mxu1 %v11409_v3  ;;  %v11458_v3 = vld [vmem:[%s15303_s5 + $0x140] ss:$8 sps:$4 sm:$0xff]  }
 0x3e0   : > { %4514 = vmatpush1.bf16.msra.mxu0 %v11452_v13 }
 0x3e1   : > { %4515 = vmatprep.subr.bf16.mxu0 %v11457_v20 }
 0x3e2   : > { %4035 = vmatpush1.bf16.msra.mxu1 %v11407_v22 }
 0x3e3   : > { %4036 = vmatprep.subr.bf16.mxu1 %v11412_v23 }
 0x3e6   : > { %4037 = vmatpush1.bf16.msra.mxu1 %v11410_v24  ;;  %v11463_v24 = vld [vmem:[%s15303_s5 + $0x154] ss:$8 sps:$4 sm:$0xff]  }
 0x3e7   : > { %4038 = vmatprep.subr.bf16.mxu1 %v11415_v25 }
 0x3ea   : > { %4039 = vmatpush1.bf16.msra.mxu1 %v11413_v26 }
 0x3eb   : > { %4040 = vmatprep.subr.bf16.mxu1 %v11418_v28  ;;  %v11461_v28 = vld [vmem:[%s15303_s5 + $0x150] ss:$8 sps:$4 sm:$0xff]  }
 0x3ee   : > { %4041 = vmatpush1.bf16.msra.mxu1 %v11416_v29 }
 0x3ef   : > { %4042 = vmatprep.subr.bf16.mxu1 %v11421_v32  ;;  %v11466_v32 = vld [vmem:[%s15303_s5 + $0x164] ss:$8 sps:$4 sm:$0xff]  }
 0x3f0   : > { %v2970_v36 = vpop.f32.mrb[20].mxu1 }
 0x3f1   : > { %v2981_v39 = vadd.f32 %v2970_v36, %v13384_v34  ;;  %v2972_v40 = vpop.f32.mrb[21].mxu1  ;;  %v11425_v34 = vld [vmem:[%s15301_s3 + $0x890] ss:$8 sps:$4 sm:$0xff]  }
 0x3f2   : > { %v2982_v41 = vadd.f32 %v2972_v40, %v13387_v37  ;;  %v2974_v42 = vpop.f32.mrb[22].mxu1  ;;  %4043 = vmatpush1.bf16.msra.mxu1 %v11419_v38  ;;  %v11430_v37 = vld [vmem:[%s15301_s3 + $0x8a4] ss:$8 sps:$4 sm:$0xff]   ;;  %v11464_v38 = vld [vmem:[%s15303_s5 + $0x160] ss:$8 sps:$4 sm:$0xff]  }
 0x3f3   : > { %v2975_v30 = vpop.f32.mrb[23].mxu1  ;;  %4044 = vmatprep.subr.bf16.mxu1 %v11424_v33  ;;  %v11469_v33 = vld [vmem:[%s15303_s5 + $0x174] ss:$8 sps:$4 sm:$0xff]   ;;  %v11467_v36 = vld [vmem:[%s15303_s5 + $0x170] ss:$8 sps:$4 sm:$0xff]  }
 0x3f4   : > { %v11470_v40 = vld [vmem:[%s15303_s5 + $0x180] ss:$8 sps:$4 sm:$0xff]   ;;  %v11473_v42 = vld [vmem:[%s15303_s5 + $0x190] ss:$8 sps:$4 sm:$0xff]  }
 0x3f5   : > { %v11476_v30 = vld [vmem:[%s15303_s5 + $0x1a0] ss:$8 sps:$4 sm:$0xff]  }
 0x3f6   : > { %4045 = vmatpush1.bf16.msra.mxu1 %v11422_v31  ;;  %v11478_v31 = vld [vmem:[%s15303_s5 + $0x1a4] ss:$8 sps:$4 sm:$0xff]  }
 0x3f7   : > { %4046 = vmatprep.subr.bf16.mxu1 %v11427_v43  ;;  %v11481_v43 = vld [vmem:[%s15303_s5 + $0x1b4] ss:$8 sps:$4 sm:$0xff]  }
 0x3fa   : > { %4047 = vmatpush1.bf16.msra.mxu1 %v11425_v34  ;;  %v11479_v34 = vld [vmem:[%s15303_s5 + $0x1b0] ss:$8 sps:$4 sm:$0xff]  }
 0x3fb   : > { %4048 = vmatprep.subr.bf16.mxu1 %v11430_v37  ;;  %v1547_v37 = vadd.s32 8, %v12648_v61 }
 0x3fe   : > { %4049 = vmatpush1.bf16.msra.mxu1 %v11428_v44  ;;  %v11484_v44 = vld [vmem:[%s15303_s5 + $0x1c4] ss:$8 sps:$4 sm:$0xff]  }
 0x3ff   : > { %4050 = vmatprep.subr.bf16.mxu1 %v11433_v45 }
 0x402   : > { %4051 = vmatpush1.bf16.msra.mxu1 %v11431_v46  ;;  %v13627_v45 = vmul.u32.u64.low 2863311531, %v12648_v61  ;;  %v13628_v46 = vmul.u32.u64.high 2863311531, %v12648_v61, %v13627_v45 }
 0x403   : > { %4052 = vmatprep.subr.bf16.mxu1 %v11436_v49  ;;  %v11482_v49 = vld [vmem:[%s15303_s5 + $0x1c0] ss:$8 sps:$4 sm:$0xff]  }
 0x406   : > { %4053 = vmatpush1.bf16.msra.mxu1 %v11434_v48 }
 0x407   : > { %4054 = vmatprep.subr.bf16.mxu1 %v11439_v50  ;;  %v13633_v48 = vmul.u32.u64.low 2863311531, %v1547_v37  ;;  %v13634_v50 = vmul.u32.u64.high 2863311531, %v1547_v37, %v13633_v48 }
 0x409   : > { %v1566_v57 = vshrl.u32 %v13634_v50, 2 }
 0x40a   : > { %4055 = vmatpush1.bf16.msra.mxu1 %v11437_v51  ;;  %v11487_v51 = vld [vmem:[%s15303_s5 + $0x1d4] ss:$8 sps:$4 sm:$0xff]  }
 0x40b   : > { %4056 = vmatprep.subr.bf16.mxu1 %v11442_v52  ;;  %v11485_v52 = vld [vmem:[%s15303_s5 + $0x1d0] ss:$8 sps:$4 sm:$0xff]  }
 0x40e   : > { %4057 = vmatpush1.bf16.msra.mxu1 %v11440_v54  ;;  %v11490_v54 = vld [vmem:[%s15303_s5 + $0x1e4] ss:$8 sps:$4 sm:$0xff]  }
 0x40f   : > { %4058 = vmatprep.subr.bf16.mxu1 %v11445_v55  ;;  %v1555_v55 = vshrl.u32 %v13628_v46, 2 }
 0x412   : > { %4059 = vmatpush1.bf16.msra.mxu1 %v11443_v59  ;;  %v13651_v58 = vmul.u32.u64.low 2863311531, %v1548_v53  ;;  %v13652_v59 = vmul.u32.u64.high 2863311531, %v1548_v53, %v13651_v58 }
 0x415   : > { %4061 = vmatmul.mubr.bf16.vlgmr.msra.gmra.mrb[0].mxu1 %v3860_v2  ;;  %v11491_v2 = vld [vmem:[%s15303_s5 + $0x1f0] ss:$8 sps:$4 sm:$0xff]  }
 0x416   : > { %4070 = vmatprep.mubr.bf16.mxu1 %v13455_v21  ;;  %v11455_v21 = vld [vmem:[%s15303_s5 + $0x130] ss:$8 sps:$4 sm:$0xff]  }
 0x417   : > { %4516 = vmatpush1.bf16.msra.mxu0 %v11455_v21 }
 0x418   : > { %4517 = vmatprep.subr.bf16.mxu0 %v11460_v1 }
 0x41b   : > { %4518 = vmatpush1.bf16.msra.mxu0 %v11458_v3 }
 0x41c   : > { %4519 = vmatprep.subr.bf16.mxu0 %v11463_v24 }
 0x41d   : > { %4071 = vmatmul.mubr.bf16.gmra.mrb[36].mxu1 %v3859_v63  ;;  %v1556_v63 = vmul.u32 6, %v1555_v55 }
 0x41f   : > { %4520 = vmatpush1.bf16.msra.mxu0 %v11461_v28 }
 0x420   : > { %4521 = vmatprep.subr.bf16.mxu0 %v11466_v32 }
 0x423   : > { %4522 = vmatpush1.bf16.msra.mxu0 %v11464_v38 }
 0x424   : > { %4523 = vmatprep.subr.bf16.mxu0 %v11469_v33 }
 0x427   : > { %4524 = vmatpush1.bf16.msra.mxu0 %v11467_v36 }
 0x430   : > { %v3226_v4 = vpop.f32.mrb[24].mxu1 }
 0x431   : > { %v3237_v5 = vadd.f32 %v3226_v4, %v2981_v39  ;;  %v3228_v47 = vpop.f32.mrb[25].mxu1  ;;  %v11472_v39 = vld [vmem:[%s15303_s5 + $0x184] ss:$8 sps:$4 sm:$0xff]   ;;  %v1567_v4 = vmul.u32 6, %v1566_v57 }
 0x432   : > { %v3238_v6 = vadd.f32 %v3228_v47, %v2982_v41  ;;  %v3230_v11 = vpop.f32.mrb[26].mxu1  ;;  %4525 = vmatprep.subr.bf16.mxu0 %v11472_v39  ;;  %v11475_v41 = vld [vmem:[%s15303_s5 + $0x194] ss:$8 sps:$4 sm:$0xff]   ;;  %v1557_v47 = vsub.s32 %v12648_v61, %v1556_v63 }
 0x433   : > { %v3231_v7 = vpop.f32.mrb[27].mxu1  ;;  %4526 = vmatpush1.bf16.msra.mxu0 %v11470_v40  ;;  %v1577_v11 = vshrl.u32 %v13652_v59, 2 }
 0x434   : > { %4527 = vmatprep.subr.bf16.mxu0 %v11475_v41  ;;  %vm1582_vm10 = vcmp.ne.s32.totalorder %v1557_v47, 0  ;;  %vm1585_vm11 = vcmp.lt.s32.totalorder %v1557_v47, 0 }
 0x435   : > { %v1578_v7 = vmul.u32 6, %v1577_v11  ;;  %vm1588_vm14 = vmand %vm1585_vm11, %vm1582_vm10 }
 0x437   : > { %4528 = vmatpush1.bf16.msra.mxu0 %v11473_v42 }
 0x438   : > { %4529 = vmatprep.subr.bf16.mxu0 %v11478_v31 }
 0x43b   : > { %4530 = vmatpush1.bf16.msra.mxu0 %v11476_v30 }
 0x43c   : > { %4531 = vmatprep.subr.bf16.mxu0 %v11481_v43 }
 0x43f   : > { %4532 = vmatpush1.bf16.msra.mxu0 %v11479_v34 }
 0x440   : > { %4533 = vmatprep.subr.bf16.mxu0 %v11484_v44 }
 0x443   : > { %4534 = vmatpush1.bf16.msra.mxu0 %v11482_v49 }
 0x444   : > { %4535 = vmatprep.subr.bf16.mxu0 %v11487_v51 }
 0x447   : > { %4536 = vmatpush1.bf16.msra.mxu0 %v11485_v52 }
 0x448   : > { %4537 = vmatprep.subr.bf16.mxu0 %v11490_v54 }
 0x44b   : > { %4538 = vmatpush1.bf16.msra.mxu0 %v11488_v56 }
 0x44c   : > { %4539 = vmatprep.subr.bf16.mxu0 %v11493_v60 }
 0x44f   : > { %4540 = vmatpush1.bf16.msra.mxu0 %v11491_v2 }
 0x470   : > { %v3503_v8 = vpop.f32.mrb[28].mxu1 }
 0x471   : > { %v3514_v9 = vadd.f32 %v3503_v8, %v3237_v5  ;;  %v3505_v10 = vpop.f32.mrb[29].mxu1  ;;  %v11496_v5 = vld [vmem:[%s15303_s5 + $0x4] ss:$8 sps:$4 sm:$0xff]   ;;  %v4085_v8 = vld [vmem:[%s15302_s4] sm:$0x3] }
 0x472   : > { %v3515_v27 = vadd.f32 %v3505_v10, %v3238_v6  ;;  %v3507_v35 = vpop.f32.mrb[30].mxu1  ;;  %v1568_v6 = vsub.s32 %v1547_v37, %v1567_v4  ;;  %4720 = vmatprep.subr.bf16.mxu0 %v11496_v5  ;;  %v4090_v61 = vrot.slane %v4085_v8, %v12651_v62 }
 0x473   : > { %v3508_v12 = vpop.f32.mrb[31].mxu1  ;;  %v4094_v35 = vrot.slane %v4085_v8, %v12657_v0 }
 0x474   : > { %vm1583_vm12 = vcmp.ne.s32.totalorder %v1568_v6, 0  ;;  %vm1586_vm13 = vcmp.lt.s32.totalorder %v1568_v6, 0  ;;  %v1592_v10 = vadd.s32 6, %v1568_v6 }
 0x475   : > { %vm1589_vm15 = vmand %vm1586_vm13, %vm1583_vm12 }
 0x476   : > { %v1595_v14 = vsel %vm1589_vm15, %v1592_v10, %v1568_v6 }
 0x477   : > { %vm13674_vm3 = vcmp.lt.s32.totalorder %v1595_v14, 4 }
 0x4b0   : > { %v3800_v18 = vpop.f32.mrb[32].mxu1 }
 0x4b1   : > { %v13576_v22 = vadd.f32 %v3800_v18, %v3514_v9  ;;  %v3802_v23 = vpop.f32.mrb[33].mxu1  ;;  %v1591_v9 = vadd.s32 6, %v1557_v47 }
 0x4b2   : > { %v13581_v25 = vadd.f32 %v3802_v23, %v3515_v27  ;;  %v3804_v26 = vpop.f32.mrb[34].mxu1  ;;  %v1579_v27 = vsub.s32 %v1548_v53, %v1578_v7 }
 0x4b3   : > { %v3805_v29 = vpop.f32.mrb[35].mxu1  ;;  %v1594_v12 = vsel %vm1588_vm14, %v1591_v9, %v1557_v47 }
 0x4b4   : > { %vm1584_vm0 = vcmp.ne.s32.totalorder %v1579_v27, 0  ;;  %vm1587_vm1 = vcmp.lt.s32.totalorder %v1579_v27, 0  ;;  %vm13670_vm2 = vcmp.lt.s32.totalorder %v1594_v12, 4  ;;  %v1593_v18 = vadd.s32 6, %v1579_v27 }
 0x4b5   : > { %vm1590_vm10 = vmand %vm1587_vm1, %vm1584_vm0 }
 0x4b6   : > { %v1596_v33 = vsel %vm1590_vm10, %v1593_v18, %v1579_v27 }
 0x4b7   : > { %vm13687_vm11 = vcmp.lt.s32.totalorder %v1596_v33, 4 }
 0x4e8   : > { %v4062_v15 = vpop.f32.mrb[0].mxu1 }
 0x4e9   : > { %v4097_v16 = vadd.f32 %v4090_v61, %v4062_v15  ;;  %v4064_v17 = vpop.f32.mrb[1].mxu1 }
 0x4ea   : > { %v4098_v13 = vadd.f32 %v4094_v35, %v4064_v17  ;;  %v4066_v21 = vpop.f32.mrb[2].mxu1 }
 0x4eb   : > { %v4099_v1 = vadd.f32 %v4090_v61, %v4066_v21  ;;  %v4068_v3 = vpop.f32.mrb[3].mxu1  ;;  %v4103_v24 = vsel %vm13670_vm2, %v4097_v16, 0.0 }
 0x4ec   : > { %v4100_v23 = vadd.f32 %v4094_v35, %v4068_v3  ;;  %v4104_v28 = vsel %vm13670_vm2, %v4098_v13, 0.0 }
 0x4ed   : > { %v4105_v26 = vsel %vm13674_vm3, %v4099_v1, 0.0 }
 0x4ee   : > { %v4109_v29 = vadd.f32 %v4105_v26, %v4103_v24  ;;  %v4106_v32 = vsel %vm13674_vm3, %v4100_v23, 0.0 }
 0x4ef   : > { %v4117_v38 = vadd.f32 %v4106_v32, %v4104_v28 }
 0x4f0   : > { %v4072_v36 = vpop.f32.mrb[36].mxu1 }
 0x4f1   : > { %v4083_v39 = vadd.f32 %v4072_v36, %v13576_v22  ;;  %v4074_v40 = vpop.f32.mrb[37].mxu1 }
 0x4f2   : > { %v4084_v42 = vadd.f32 %v4074_v40, %v13581_v25  ;;  %v4076_v31 = vpop.f32.mrb[38].mxu1 }
 0x4f3   : > { %v4101_v30 = vadd.f32 %v4090_v61, %v4083_v39  ;;  %v4077_v43 = vpop.f32.mrb[39].mxu1 }
 0x4f4   : > { %v4102_v34 = vadd.f32 %v4094_v35, %v4084_v42 }
 0x4f5   : > { %v4107_v37 = vsel %vm13687_vm11, %v4101_v30, 0.0 }
 0x4f6   : > { %v4110_v44 = vadd.f32 %v4109_v29, %v4107_v37  ;;  %v4108_v45 = vsel %vm13687_vm11, %v4102_v34, 0.0 }
 0x4f7   : > { %v4118_v46 = vadd.f32 %v4117_v38, %v4108_v45 }
 0x4f8   : > { %v4111_v22 = vrot.slane %v4110_v44, 4 }
 0x4f9   : > { %v4119_v49 = vrot.slane %v4118_v46, 4 }
 0x4fa   : > { %v4112_v48 = vadd.f32 %v4111_v22, %v4110_v44 }
 0x4fb   : > { %v4120_v50 = vadd.f32 %v4119_v49, %v4118_v46 }
 0x4fc   : > { %v4113_v51 = vrot.slane %v4112_v48, 2 }
 0x4fd   : > { %v4121_v52 = vrot.slane %v4120_v50, 2 }
 0x4fe   : > { %v4114_v53 = vadd.f32 %v4113_v51, %v4112_v48 }
 0x4ff   : > { %v4122_v25 = vadd.f32 %v4121_v52, %v4120_v50 }
 0x500   : > { %v4115_v54 = vrot.slane %v4114_v53, 1 }
 0x501   : > { %v4123_v55 = vrot.slane %v4122_v25, 1 }
 0x502   : > { %v4116_v56 = vadd.f32 %v4115_v54, %v4114_v53 }
 0x503   : > { %v4124_v57 = vadd.f32 %v4123_v55, %v4122_v25 }
 0x504   : > { %v4125_v58 = vmul.f32 0.0625, %v4116_v56 }
 0x505   : > { %v4126_v59 = vmul.f32 0.0625, %v4124_v57 }
 0x506   : > { %v4127_v60 = vsub.f32 %v4097_v16, %v4125_v58  ;;  %v4129_v63 = vsub.f32 %v4099_v1, %v4125_v58  ;;  %v4131_v2 = vsub.f32 %v4101_v30, %v4125_v58 }
 0x507   : > { %v4128_v4 = vsub.f32 %v4098_v13, %v4126_v59  ;;  %v4130_v5 = vsub.f32 %v4100_v23, %v4126_v59  ;;  %v4132_v47 = vsub.f32 %v4102_v34, %v4126_v59 }
 0x508   : > { %v4133_v6 = vsel %vm13670_vm2, %v4127_v60, 0.0  ;;  %v4135_v11 = vsel %vm13674_vm3, %v4129_v63, 0.0  ;;  %v4137_v7 = vsel %vm13687_vm11, %v4131_v2, 0.0 }
 0x509   : > { %v4139_v8 = vmul.f32 %v4133_v6, %v4133_v6  ;;  %v4141_v9 = vmul.f32 %v4135_v11, %v4135_v11  ;;  %v4134_v10 = vsel %vm13670_vm2, %v4128_v4, 0.0  ;;  %v4136_v61 = vsel %vm13674_vm3, %v4130_v5, 0.0 }
 0x50a   : > { %v4138_v27 = vsel %vm13687_vm11, %v4132_v47, 0.0  ;;  %v4140_v35 = vmul.f32 %v4134_v10, %v4134_v10  ;;  %v4143_v12 = vmul.f32 %v4137_v7, %v4137_v7  ;;  %v4142_v15 = vmul.f32 %v4136_v61, %v4136_v61 }
 0x50b   : > { %v4145_v14 = vadd.f32 %v4141_v9, %v4139_v8  ;;  %v4144_v17 = vmul.f32 %v4138_v27, %v4138_v27 }
 0x50c   : > { %v4153_v13 = vadd.f32 %v4142_v15, %v4140_v35 }
 0x50d   : > { %v4146_v16 = vadd.f32 %v4145_v14, %v4143_v12 }
 0x50e   : > { %v4154_v1 = vadd.f32 %v4153_v13, %v4144_v17 }
 0x50f   : > { %v4147_v21 = vrot.slane %v4146_v16, 4 }
 0x510   : > { %v4155_v18 = vrot.slane %v4154_v1, 4 }
 0x511   : > { %v4148_v3 = vadd.f32 %v4147_v21, %v4146_v16 }
 0x512   : > { %v4156_v24 = vadd.f32 %v4155_v18, %v4154_v1 }
 0x513   : > { %v4149_v23 = vrot.slane %v4148_v3, 2 }
 0x514   : > { %v4157_v28 = vrot.slane %v4156_v24, 2 }
 0x515   : > { %v4150_v26 = vadd.f32 %v4149_v23, %v4148_v3 }
 0x516   : > { %v4158_v32 = vadd.f32 %v4157_v28, %v4156_v24 }
 0x517   : > { %v4151_v29 = vrot.slane %v4150_v26, 1 }
 0x518   : > { %v4159_v33 = vrot.slane %v4158_v32, 1 }
 0x519   : > { %v4152_v38 = vadd.f32 %v4151_v29, %v4150_v26 }
 0x51a   : > { %v4160_v39 = vadd.f32 %v4159_v33, %v4158_v32 }
 0x51b   : > { %v4161_v36 = vmul.f32 0.0625, %v4152_v38 }
 0x51c   : > { %v4162_v42 = vmul.f32 0.0625, %v4160_v39 }
 0x51d   : > { %v4163_v40 = vmax.f32 %v4161_v36, 0.0 }
 0x51e   : > { %v4164_v30 = vmax.f32 %v4162_v42, 0.0 }
 0x51f   : > { %v4165_v31 = vadd.f32 1e-05, %v4163_v40 }
 0x520   : > { %v4166_v43 = vadd.f32 1e-05, %v4164_v30 }
 0x521   : > { %12022 = vrsqrt.f32 %v4165_v31 }
 0x522   : > { %12024 = vrsqrt.f32 %v4166_v43 }
 0x52b   : > { %v12023_v34 = vpop.eup %12022 }
 0x52c   : > { %v4169_v37 = vmul.f32 %v12023_v34, %v4127_v60  ;;  %v4171_v44 = vmul.f32 %v12023_v34, %v4129_v63  ;;  %v4173_v45 = vmul.f32 %v12023_v34, %v4131_v2  ;;  %v12025_v46 = vpop.eup %12024 }
 0x52d   : > { %v4170_v50 = vmul.f32 %v12025_v46, %v4128_v4  ;;  %v4172_v51 = vmul.f32 %v12025_v46, %v4130_v5  ;;  %v4174_v53 = vmul.f32 %v12025_v46, %v4132_v47 }
 0x52e   : > { %vm4175_vm12 = vcmp.ge.f32.partialorder %v4169_v37, 0.0  ;;  %vm4177_vm13 = vcmp.ge.f32.partialorder %v4171_v44, 0.0  ;;  %vm4179_vm14 = vcmp.ge.f32.partialorder %v4173_v45, 0.0  ;;  %v4181_v22 = vmul.f32 0.2, %v4169_v37 }
 0x52f   : > { %v4183_v49 = vmul.f32 0.2, %v4171_v44  ;;  %v4185_v48 = vmul.f32 0.2, %v4173_v45  ;;  %vm4176_vm15 = vcmp.ge.f32.partialorder %v4170_v50, 0.0  ;;  %vm4178_vm0 = vcmp.ge.f32.partialorder %v4172_v51, 0.0 }
 0x530   : > { %v4187_v52 = vsel %vm4175_vm12, %v4169_v37, %v4181_v22  ;;  %vm4180_vm1 = vcmp.ge.f32.partialorder %v4174_v53, 0.0  ;;  %v4182_v63 = vmul.f32 0.2, %v4170_v50  ;;  %v4184_v2 = vmul.f32 0.2, %v4172_v51 }
 0x531   : > { %v4189_v25 = vsel %vm4177_vm13, %v4171_v44, %v4183_v49  ;;  %v4191_v54 = vsel %vm4179_vm14, %v4173_v45, %v4185_v48  ;;  %v4193_v55 = vsel %vm13670_vm2, %v4187_v52, 0.0  ;;  %v4186_v4 = vmul.f32 0.2, %v4174_v53 }
 0x532   : > { %v4195_v56 = vsel %vm13674_vm3, %v4189_v25, 0.0  ;;  %v4197_v57 = vsel %vm13687_vm11, %v4191_v54, 0.0  ;;  %v4206_v58 = vrot.slane %v4193_v55, 1  ;;  %v4188_v6 = vsel %vm4176_vm15, %v4170_v50, %v4182_v63 }
 0x533   : > { %v4208_v59 = vrot.slane %v4195_v56, 1  ;;  %v4212_v60 = vrot.slane %v4197_v57, 1  ;;  %v4190_v11 = vsel %vm4178_vm0, %v4172_v51, %v4184_v2  ;;  %v4192_v7 = vsel %vm4180_vm1, %v4174_v53, %v4186_v4 }
 0x534   : > { %4224 = vst [vmem:[#allocation3] sm:$0x80] %v4206_v58  ;;  %v4194_v8 = vsel %vm13670_vm2, %v4188_v6, 0.0  ;;  %v4196_v9 = vsel %vm13674_vm3, %v4190_v11, 0.0  ;;  %v4198_v10 = vsel %vm13687_vm11, %v4192_v7, 0.0 }
 0x535   : > { %v13715_v5 = vsel %vm2185_vm5, %v4206_v58, %v4208_v59  ;;  %v13718_v47 = vsel %vm2185_vm5, %v4208_v59, %v4212_v60  ;;  %4230 = vst [vmem:[#allocation3 + $0x30] sm:$0x7f] %v4212_v60  ;;  %v4207_v61 = vrot.slane %v4194_v8, 1  ;;  %v4210_v35 = vrot.slane %v4196_v9, 1 }
 0x536   : > { %4226 = vst [vmem:[#allocation3 + $0x10] sm:$0xff] %v13715_v5  ;;  %4228 = vst [vmem:[#allocation3 + $0x20] sm:$0xff] %v13718_v47  ;;  %v5613_v27 = vpack.c.bf16 %v13718_v47, %v13715_v5  ;;  %v4214_v12 = vrot.slane %v4198_v10, 1 }
 0x537   : > { %4225 = vst [vmem:[#allocation3 + $0x8] sm:$0x80] %v4207_v61  ;;  %v13731_v14 = vsel %vm2185_vm5, %v4207_v61, %v4210_v35 }
 0x538   : > { %v13734_v15 = vsel %vm2185_vm5, %v4210_v35, %v4214_v12  ;;  %4231 = vst [vmem:[#allocation3 + $0x38] sm:$0x7f] %v4214_v12  ;;  %4227 = vst [vmem:[#allocation3 + $0x18] sm:$0xff] %v13731_v14 }
 0x539   : > { %4229 = vst [vmem:[#allocation3 + $0x28] sm:$0xff] %v13734_v15  ;;  %v5614_v13 = vpack.c.bf16 %v13734_v15, %v13731_v14 }
 0x53b   : > { %v4274_v16 = vld [vmem:[#allocation3] sm:$0xfe] }
 0x53c   : > { %v4771_v17 = vld [vmem:[#allocation3] sm:$0xfc]  ;;  %v4276_v21 = vld [vmem:[#allocation3 + $0x30] sm:$0x1]  ;;  %v4278_v1 = vpack.c.bf16 %v13715_v5, %v4274_v16 }
 0x53d   : > { %v4775_v3 = vpack.c.bf16 %v13715_v5, %v4771_v17  ;;  %v13743_v18 = vpack.c.bf16 %v4276_v21, %v13718_v47  ;;  %v4773_v23 = vld [vmem:[#allocation3 + $0x30] sm:$0x3]  ;;  %v5043_v24 = vld [vmem:[#allocation3] sm:$0xc0] }
 0x53e   : > { %v4318_v26 = vshll.u32 %v4278_v1, 16  ;;  %v4777_v28 = vpack.c.bf16 %v4773_v23, %v13718_v47  ;;  %v5045_v29 = vld [vmem:[#allocation3 + $0x30] sm:$0x3f]  ;;  %v4316_v32 = vshrl.u32 %v4278_v1, 16  ;;  %v5315_v33 = vld [vmem:[#allocation3] sm:$0x80]  ;;  %v5047_v30 = vpack.c.bf16 %v13715_v5, %v5043_v24 }
 0x53f   : > { %v4323_v38 = vshll.u32 %v13743_v18, 16  ;;  %v5317_v36 = vld [vmem:[#allocation3 + $0x30] sm:$0x7f]  ;;  %v4275_v39 = vld [vmem:[#allocation3 + $0x8] sm:$0xfe]  ;;  %v4816_v31 = vrot.slane %v4775_v3, 1  ;;  %v5049_v46 = vpack.c.bf16 %v5045_v29, %v13718_v47  ;;  %v5319_v25 = vpack.c.bf16 %v13715_v5, %v5315_v33 }
 0x540   : > { %v4320_v40 = vrot.slane %v4318_v26, 1  ;;  %v4772_v42 = vld [vmem:[#allocation3 + $0x8] sm:$0xfc]  ;;  %v4277_v43 = vld [vmem:[#allocation3 + $0x38] sm:$0x1]  ;;  %v4279_v34 = vpack.c.bf16 %v13731_v14, %v4275_v39  ;;  %v13755_v50 = vrot.slane %v4777_v28, 1  ;;  %v5321_v54 = vpack.c.bf16 %v5317_v36, %v13718_v47 }
 0x541   : > { %v13749_v37 = vrot.slane %v4323_v38, 1  ;;  %v4774_v44 = vld [vmem:[#allocation3 + $0x38] sm:$0x3]  ;;  %v4776_v45 = vpack.c.bf16 %v13731_v14, %v4772_v42  ;;  %v4281_v22 = vpack.c.bf16 %v4277_v43, %v13734_v15  ;;  %v5044_v53 = vld [vmem:[#allocation3 + $0x8] sm:$0xc0]  ;;  %v5088_v4 = vrot.slane %v5047_v30, 3 }
 0x542   : > { %v4321_v49 = vor.u32 %v4320_v40, %v4316_v32  ;;  %v4778_v48 = vpack.c.bf16 %v4774_v44, %v13734_v15  ;;  %v4330_v51 = vshll.u32 %v4279_v34, 16  ;;  %v4328_v55 = vshrl.u32 %v4279_v34, 16  ;;  %v5046_v63 = vld [vmem:[#allocation3 + $0x38] sm:$0x3f]  ;;  %v5316_v9 = vld [vmem:[#allocation3 + $0x8] sm:$0x80] }
 0x543   : > { %v4819_v52 = vrot.slane %v4776_v45, 1  ;;  %v4335_v56 = vshll.u32 %v4281_v22, 16  ;;  %v13765_v60 = vsel %vm2185_vm5, %v4816_v31, %v13755_v50  ;;  %v5048_v2 = vpack.c.bf16 %v13731_v14, %v5044_v53  ;;  %v5318_v10 = vld [vmem:[#allocation3 + $0x38] sm:$0x7f]  ;;  %v11499_v26 = vld [vmem:[%s15303_s5 + $0x14] ss:$8 sps:$4 sm:$0xff]  }
 0x544   : > { %v4326_v57 = vsel %vm1683_vm4, %v4321_v49, %v13749_v37  ;;  %v13761_v58 = vrot.slane %v4778_v48, 1  ;;  %v4332_v59 = vrot.slane %v4330_v51, 1  ;;  %v5050_v7 = vpack.c.bf16 %v5046_v63, %v13734_v15  ;;  %v11494_v17 = vld [vmem:[%s15303_s5] ss:$8 sps:$4 sm:$0xff]   ;;  %v11497_v30 = vld [vmem:[%s15303_s5 + $0x10] ss:$8 sps:$4 sm:$0xff]  }
 0x545   : > { %v4337_v6 = vrot.slane %v4335_v56, 1  ;;  %v13773_v8 = vrot.slane %v5049_v46, 3  ;;  %v5091_v35 = vrot.slane %v5048_v2, 3  ;;  %v5320_v12 = vpack.c.bf16 %v13731_v14, %v5316_v9  ;;  %v11502_v44 = vld [vmem:[%s15303_s5 + $0x24] ss:$8 sps:$4 sm:$0xff]   ;;  %v13803_v56 = vld [vmem:[#allocation3 + $0x28] sm:$0xff] }
 0x546   : > { %v13770_v11 = vsel %vm2185_vm5, %v4819_v52, %v13761_v58  ;;  %v4333_v61 = vor.u32 %v4332_v59, %v4328_v55  ;;  %v5322_v16 = vpack.c.bf16 %v5318_v10, %v13734_v15  ;;  %v4342_v21 = vshrl.u32 %v4281_v22, 16  ;;  %v4233_v52 = vld [vmem:[#allocation3 + $0x8] sm:$0xff]  ;;  %v11500_v59 = vld [vmem:[%s15303_s5 + $0x20] ss:$8 sps:$4 sm:$0xff]   ;;  %v13821_v9 = vld [vmem:[#allocation3 + $0x20] sm:$0xff] }
 0x547   : > { %v13780_v1 = vrot.slane %v5050_v7, 3  ;;  %v13784_v3 = vsel %vm2458_vm6, %v5088_v4, %v13773_v8  ;;  %v5357_v23 = vshrl.u32 %v5319_v25, 16  ;;  %v5374_v28 = vshrl.u32 %v5320_v12, 16  ;;  %v11505_v4 = vld [vmem:[%s15303_s5 + $0x34] ss:$8 sps:$4 sm:$0xff]  }
 0x548   : > { %v4338_v24 = vsel %vm1683_vm4, %v4333_v61, %v4337_v6  ;;  %v5377_v29 = vshll.u32 %v5320_v12, 16  ;;  %v5382_v32 = vshrl.u32 %v5322_v16, 16  ;;  %v4344_v38 = vor.u32 %v4342_v21, %v4337_v6  ;;  %v6439_v61 = vld [vmem:[#allocation3 + $0x10] sm:$0xc0] }
 0x549   : > { %4541 = vmatprep.mubr.bf16.mxu0 %v4338_v24  ;;  %v13792_v33 = vsel %vm2458_vm6, %v5091_v35, %v13780_v1  ;;  %v5385_v36 = vshll.u32 %v5322_v16, 16  ;;  %v5360_v39 = vshll.u32 %v5319_v25, 16  ;;  %v5376_v40 = vrot.slane %v5374_v28, 3  ;;  %v13828_v12 = vld [vmem:[#allocation3 + $0x30] sm:$0xff]  ;;  %v6441_v16 = vld [vmem:[#allocation3 + $0x40] sm:$0x3f] }
 0x54a   : > { %4542 = vmatmul.mubr.bf16.vlgmr.msra.gmra.mrb[4].mxu0 %v4326_v57  ;;  %v5379_v42 = vrot.slane %v5377_v29, 4  ;;  %v5359_v31 = vrot.slane %v5357_v23, 3  ;;  %v5384_v43 = vrot.slane %v5382_v32, 3  ;;  %v5365_v22 = vshrl.u32 %v5321_v54, 16  ;;  %v6440_v57 = vld [vmem:[#allocation3 + $0x18] sm:$0xc0] }
 0x54b   : > { %4721 = vmatpush1.bf16.msra.mxu0 %v11494_v17  ;;  %4551 = vmatprep.mubr.bf16.mxu0 %v4344_v38  ;;  %v5387_v34 = vrot.slane %v5385_v36, 4  ;;  %v5362_v46 = vrot.slane %v5360_v39, 4  ;;  %v5368_v49 = vshll.u32 %v5321_v54, 16  ;;  %v4339_v48 = vshrl.u32 %v13743_v18, 16  ;;  %v13812_v54 = vld [vmem:[#allocation3 + $0x38] sm:$0xff] }
 0x54c   : > { %4722 = vmatprep.subr.bf16.mxu0 %v11499_v26  ;;  %v5380_v45 = vor.u32 %v5379_v42, %v5376_v40  ;;  %v5367_v25 = vrot.slane %v5365_v22, 3  ;;  %v6442_v18 = vld [vmem:[#allocation3 + $0x48] sm:$0x3f]  ;;  %v4239_v7 = vpack.c.bf16 %v13731_v14, %v4233_v52  ;;  %v6444_v10 = vpack.c.bf16 %v13803_v56, %v6440_v57  ;;  %v11508_v21 = vld [vmem:[%s15303_s5 + $0x44] ss:$8 sps:$4 sm:$0xff]  }
 0x54d   : > { %v13801_v51 = vor.u32 %v5387_v34, %v5384_v43  ;;  %v5363_v53 = vor.u32 %v5362_v46, %v5359_v31  ;;  %v5370_v55 = vrot.slane %v5368_v49, 4  ;;  %v4341_v2 = vor.u32 %v4339_v48, %v13749_v37  ;;  %v11503_v17 = vld [vmem:[%s15303_s5 + $0x30] ss:$8 sps:$4 sm:$0xff]   ;;  %v11506_v29 = vld [vmem:[%s15303_s5 + $0x40] ss:$8 sps:$4 sm:$0xff]  }
 0x54e   : > { %v6446_v37 = vpack.c.bf16 %v6442_v18, %v13812_v54  ;;  %v6443_v23 = vpack.c.bf16 %v13821_v9, %v6439_v61  ;;  %v6487_v24 = vrot.slane %v6444_v10, 3  ;;  %v6445_v26 = vpack.c.bf16 %v6441_v16, %v13828_v12  ;;  %v11511_v32 = vld [vmem:[%s15303_s5 + $0x54] ss:$8 sps:$4 sm:$0xff]   ;;  %v11509_v40 = vld [vmem:[%s15303_s5 + $0x50] ss:$8 sps:$4 sm:$0xff]  }
 0x54f   : > { %4723 = vmatpush1.bf16.msra.mxu0 %v11497_v30  ;;  %v13810_v63 = vsel %vm2727_vm7, %v5380_v45, %v13801_v51  ;;  %v13818_v6 = vor.u32 %v5370_v55, %v5367_v25  ;;  %v11514_v31 = vld [vmem:[%s15303_s5 + $0x64] ss:$8 sps:$4 sm:$0xff]   ;;  %v11512_v30 = vld [vmem:[%s15303_s5 + $0x60] ss:$8 sps:$4 sm:$0xff]   ;;  %v11517_v43 = vld [vmem:[%s15303_s5 + $0x74] ss:$8 sps:$4 sm:$0xff]  }
 0x550   : > { %4724 = vmatprep.subr.bf16.mxu0 %v11502_v44  ;;  %v13839_v28 = vrot.slane %v6446_v37, 3  ;;  %v6484_v36 = vrot.slane %v6443_v23, 3  ;;  %v13851_v39 = vrot.slane %v6445_v26, 3  ;;  %v11515_v34 = vld [vmem:[%s15303_s5 + $0x70] ss:$8 sps:$4 sm:$0xff]  }
 0x551   : > { %v13826_v35 = vsel %vm2727_vm7, %v5363_v53, %v13818_v6  ;;  %v11520_v44 = vld [vmem:[%s15303_s5 + $0x84] ss:$8 sps:$4 sm:$0xff]   ;;  %v11518_v45 = vld [vmem:[%s15303_s5 + $0x80] ss:$8 sps:$4 sm:$0xff]   ;;  %v11523_v46 = vld [vmem:[%s15303_s5 + $0x94] ss:$8 sps:$4 sm:$0xff]  }
 0x552   : > { %4552 = vmatmul.mubr.bf16.gmra.mrb[8].mxu0 %v4341_v2  ;;  %v13849_v38 = vsel %vm2458_vm6, %v6487_v24, %v13839_v28  ;;  %v13858_v42 = vsel %vm2458_vm6, %v6484_v36, %v13851_v39  ;;  %v11521_v22 = vld [vmem:[%s15303_s5 + $0x90] ss:$8 sps:$4 sm:$0xff]   ;;  %v11526_v49 = vld [vmem:[%s15303_s5 + $0xa4] ss:$8 sps:$4 sm:$0xff]   ;;  %v11524_v48 = vld [vmem:[%s15303_s5 + $0xa0] ss:$8 sps:$4 sm:$0xff]  }
 0x553   : > { %4725 = vmatpush1.bf16.msra.mxu0 %v11500_v59  ;;  %4752 = vmatprep.mubr.bf16.mxu0 %v4239_v7  ;;  %v11529_v52 = vld [vmem:[%s15303_s5 + $0xb4] ss:$8 sps:$4 sm:$0xff]   ;;  %v11527_v53 = vld [vmem:[%s15303_s5 + $0xb0] ss:$8 sps:$4 sm:$0xff]   ;;  %v11532_v25 = vld [vmem:[%s15303_s5 + $0xc4] ss:$8 sps:$4 sm:$0xff]  }
 0x554   : > { %4726 = vmatprep.subr.bf16.mxu0 %v11505_v4  ;;  %v11530_v55 = vld [vmem:[%s15303_s5 + $0xc0] ss:$8 sps:$4 sm:$0xff]   ;;  %v11535_v57 = vld [vmem:[%s15303_s5 + $0xd4] ss:$8 sps:$4 sm:$0xff]   ;;  %v11533_v59 = vld [vmem:[%s15303_s5 + $0xd0] ss:$8 sps:$4 sm:$0xff]  }
 0x555   : > { %v11538_v18 = vld [vmem:[%s15303_s5 + $0xe4] ss:$8 sps:$4 sm:$0xff]   ;;  %v11536_v2 = vld [vmem:[%s15303_s5 + $0xe0] ss:$8 sps:$4 sm:$0xff]   ;;  %v11541_v4 = vld [vmem:[%s15303_s5 + $0xf4] ss:$8 sps:$4 sm:$0xff]  }
 0x556   : > { %v11539_v7 = vld [vmem:[%s15303_s5 + $0xf0] ss:$8 sps:$4 sm:$0xff]   ;;  %v11544_v10 = vld [vmem:[%s15303_s5 + $0x204] ss:$8 sps:$4 sm:$0xff]   ;;  %v11542_v37 = vld [vmem:[%s15303_s5 + $0x200] ss:$8 sps:$4 sm:$0xff]  }
 0x557   : > { %4727 = vmatpush1.bf16.msra.mxu0 %v11503_v17  ;;  %v4232_v61 = vld [vmem:[#allocation3] sm:$0xff]  ;;  %v11550_v24 = vld [vmem:[%s15303_s5 + $0x224] ss:$8 sps:$4 sm:$0xff]   ;;  %v11548_v26 = vld [vmem:[%s15303_s5 + $0x220] ss:$8 sps:$4 sm:$0xff]  }
 0x558   : > { %4728 = vmatprep.subr.bf16.mxu0 %v11508_v21  ;;  %v4238_v16 = vpack.c.bf16 %v13715_v5, %v4232_v61  ;;  %v11547_v17 = vld [vmem:[%s15303_s5 + $0x214] ss:$8 sps:$4 sm:$0xff]   ;;  %v4241_v21 = vpack.c.bf16 %v13734_v15, %v13734_v15  ;;  %v11545_v23 = vld [vmem:[%s15303_s5 + $0x210] ss:$8 sps:$4 sm:$0xff]   ;;  %v11740_v5 = vld [vmem:[%s15303_s5 + $0x620] ss:$8 sps:$4 sm:$0xff]  }
 0x559   : > { %v11551_v36 = vld [vmem:[%s15303_s5 + $0x230] ss:$8 sps:$4 sm:$0xff]   ;;  %v11703_v14 = vld [vmem:[%s15303_s5 + $0x554] ss:$8 sps:$4 sm:$0xff]  }
 0x55a   : > { %v11587_v61 = vld [vmem:[%s15303_s5 + $0x2f0] ss:$8 sps:$4 sm:$0xff]  }
 0x55b   : > { %4729 = vmatpush1.bf16.msra.mxu0 %v11506_v29  ;;  %v4240_v29 = vpack.c.bf16 %v13718_v47, %v13718_v47  ;;  %v11701_v15 = vld [vmem:[%s15303_s5 + $0x550] ss:$8 sps:$4 sm:$0xff]   ;;  %v5615_v47 = vpack.c.bf16 %v13828_v12, %v13828_v12 }
 0x55c   : > { %4730 = vmatprep.subr.bf16.mxu0 %v11511_v32  ;;  %v11553_v32 = vld [vmem:[%s15303_s5 + $0x234] ss:$8 sps:$4 sm:$0xff]  }
 0x55f   : > { %4731 = vmatpush1.bf16.msra.mxu0 %v11509_v40  ;;  %v11556_v40 = vld [vmem:[%s15303_s5 + $0x244] ss:$8 sps:$4 sm:$0xff]  }
 0x560   : > { %4732 = vmatprep.subr.bf16.mxu0 %v11514_v31  ;;  %v11554_v31 = vld [vmem:[%s15303_s5 + $0x240] ss:$8 sps:$4 sm:$0xff]  }
 0x563   : > { %4733 = vmatpush1.bf16.msra.mxu0 %v11512_v30  ;;  %v11559_v30 = vld [vmem:[%s15303_s5 + $0x254] ss:$8 sps:$4 sm:$0xff]  }
 0x564   : > { %4734 = vmatprep.subr.bf16.mxu0 %v11517_v43  ;;  %v11562_v43 = vld [vmem:[%s15303_s5 + $0x264] ss:$8 sps:$4 sm:$0xff]  }
 0x567   : > { %4735 = vmatpush1.bf16.msra.mxu0 %v11515_v34  ;;  %v11560_v34 = vld [vmem:[%s15303_s5 + $0x260] ss:$8 sps:$4 sm:$0xff]  }
 0x568   : > { %4736 = vmatprep.subr.bf16.mxu0 %v11520_v44  ;;  %v11565_v44 = vld [vmem:[%s15303_s5 + $0x274] ss:$8 sps:$4 sm:$0xff]  }
 0x56b   : > { %4737 = vmatpush1.bf16.msra.mxu0 %v11518_v45  ;;  %v11563_v45 = vld [vmem:[%s15303_s5 + $0x270] ss:$8 sps:$4 sm:$0xff]  }
 0x56c   : > { %4738 = vmatprep.subr.bf16.mxu0 %v11523_v46  ;;  %v11568_v46 = vld [vmem:[%s15303_s5 + $0x284] ss:$8 sps:$4 sm:$0xff]  }
 0x56f   : > { %4739 = vmatpush1.bf16.msra.mxu0 %v11521_v22  ;;  %v11566_v22 = vld [vmem:[%s15303_s5 + $0x280] ss:$8 sps:$4 sm:$0xff]  }
 0x570   : > { %4740 = vmatprep.subr.bf16.mxu0 %v11526_v49  ;;  %v11571_v49 = vld [vmem:[%s15303_s5 + $0x294] ss:$8 sps:$4 sm:$0xff]  }
 0x573   : > { %4741 = vmatpush1.bf16.msra.mxu0 %v11524_v48  ;;  %v11569_v48 = vld [vmem:[%s15303_s5 + $0x290] ss:$8 sps:$4 sm:$0xff]  }
 0x574   : > { %4742 = vmatprep.subr.bf16.mxu0 %v11529_v52  ;;  %v11574_v52 = vld [vmem:[%s15303_s5 + $0x2a4] ss:$8 sps:$4 sm:$0xff]  }
 0x577   : > { %4743 = vmatpush1.bf16.msra.mxu0 %v11527_v53  ;;  %v11572_v53 = vld [vmem:[%s15303_s5 + $0x2a0] ss:$8 sps:$4 sm:$0xff]  }
 0x578   : > { %4744 = vmatprep.subr.bf16.mxu0 %v11532_v25  ;;  %v11577_v25 = vld [vmem:[%s15303_s5 + $0x2b4] ss:$8 sps:$4 sm:$0xff]  }
 0x57b   : > { %4745 = vmatpush1.bf16.msra.mxu0 %v11530_v55  ;;  %v11575_v55 = vld [vmem:[%s15303_s5 + $0x2b0] ss:$8 sps:$4 sm:$0xff]  }
 0x57c   : > { %4746 = vmatprep.subr.bf16.mxu0 %v11535_v57  ;;  %v11580_v57 = vld [vmem:[%s15303_s5 + $0x2c4] ss:$8 sps:$4 sm:$0xff]  }
 0x57f   : > { %4747 = vmatpush1.bf16.msra.mxu0 %v11533_v59  ;;  %v11578_v59 = vld [vmem:[%s15303_s5 + $0x2c0] ss:$8 sps:$4 sm:$0xff]  }
 0x580   : > { %4748 = vmatprep.subr.bf16.mxu0 %v11538_v18  ;;  %v11583_v18 = vld [vmem:[%s15303_s5 + $0x2d4] ss:$8 sps:$4 sm:$0xff]  }
 0x583   : > { %4749 = vmatpush1.bf16.msra.mxu0 %v11536_v2  ;;  %v11581_v2 = vld [vmem:[%s15303_s5 + $0x2d0] ss:$8 sps:$4 sm:$0xff]  }
 0x584   : > { %4750 = vmatprep.subr.bf16.mxu0 %v11541_v4  ;;  %v11586_v4 = vld [vmem:[%s15303_s5 + $0x2e4] ss:$8 sps:$4 sm:$0xff]  }
 0x587   : > { %4751 = vmatpush1.bf16.msra.mxu0 %v11539_v7  ;;  %v11584_v7 = vld [vmem:[%s15303_s5 + $0x2e0] ss:$8 sps:$4 sm:$0xff]  }
 0x588   : > { %4986 = vmatprep.subr.bf16.mxu0 %v11544_v10  ;;  %v11589_v10 = vld [vmem:[%s15303_s5 + $0x2f4] ss:$8 sps:$4 sm:$0xff]  }
 0x58a   : > { %4753 = vmatmul.mubr.bf16.vlgmr.msra.gmra.mrb[4].mxu0 %v4238_v16  ;;  %v11590_v16 = vld [vmem:[%s15303_s5 + $0x300] ss:$8 sps:$4 sm:$0xff]  }
 0x58b   : > { %4762 = vmatprep.mubr.bf16.mxu0 %v4241_v21  ;;  %4987 = vmatpush1.bf16.msra.mxu0 %v11542_v37  ;;  %v11592_v37 = vld [vmem:[%s15303_s5 + $0x304] ss:$8 sps:$4 sm:$0xff]   ;;  %v11593_v21 = vld [vmem:[%s15303_s5 + $0x310] ss:$8 sps:$4 sm:$0xff]  }
 0x58c   : > { %4988 = vmatprep.subr.bf16.mxu0 %v11547_v17  ;;  %v11595_v17 = vld [vmem:[%s15303_s5 + $0x314] ss:$8 sps:$4 sm:$0xff]  }
 0x58f   : > { %4989 = vmatpush1.bf16.msra.mxu0 %v11545_v23  ;;  %v11598_v23 = vld [vmem:[%s15303_s5 + $0x324] ss:$8 sps:$4 sm:$0xff]  }
 0x590   : > { %4990 = vmatprep.subr.bf16.mxu0 %v11550_v24  ;;  %v11596_v24 = vld [vmem:[%s15303_s5 + $0x320] ss:$8 sps:$4 sm:$0xff]  }
 0x592   : > { %4763 = vmatmul.mubr.bf16.gmra.mrb[12].mxu0 %v4240_v29  ;;  %v11602_v29 = vld [vmem:[%s15303_s5 + $0x340] ss:$8 sps:$4 sm:$0xff]  }
 0x593   : > { %4991 = vmatpush1.bf16.msra.mxu0 %v11548_v26  ;;  %5018 = vmatprep.mubr.bf16.mxu0 %v13770_v11  ;;  %v11557_v11 = vld [vmem:[%s15303_s5 + $0x250] ss:$8 sps:$4 sm:$0xff]   ;;  %v11604_v26 = vld [vmem:[%s15303_s5 + $0x344] ss:$8 sps:$4 sm:$0xff]  }
 0x594   : > { %4992 = vmatprep.subr.bf16.mxu0 %v11553_v32  ;;  %v11610_v32 = vld [vmem:[%s15303_s5 + $0x364] ss:$8 sps:$4 sm:$0xff]  }
 0x597   : > { %4993 = vmatpush1.bf16.msra.mxu0 %v11551_v36  ;;  %v11608_v36 = vld [vmem:[%s15303_s5 + $0x360] ss:$8 sps:$4 sm:$0xff]  }
 0x598   : > { %4994 = vmatprep.subr.bf16.mxu0 %v11556_v40  ;;  %v11613_v40 = vld [vmem:[%s15303_s5 + $0x374] ss:$8 sps:$4 sm:$0xff]  }
 0x59b   : > { %4995 = vmatpush1.bf16.msra.mxu0 %v11554_v31  ;;  %v11611_v31 = vld [vmem:[%s15303_s5 + $0x370] ss:$8 sps:$4 sm:$0xff]  }
 0x59c   : > { %4996 = vmatprep.subr.bf16.mxu0 %v11559_v30  ;;  %v11616_v30 = vld [vmem:[%s15303_s5 + $0x384] ss:$8 sps:$4 sm:$0xff]  }
 0x59f   : > { %4997 = vmatpush1.bf16.msra.mxu0 %v11557_v11  ;;  %v11614_v11 = vld [vmem:[%s15303_s5 + $0x380] ss:$8 sps:$4 sm:$0xff]  }
 0x5a0   : > { %4998 = vmatprep.subr.bf16.mxu0 %v11562_v43  ;;  %v11619_v43 = vld [vmem:[%s15303_s5 + $0x394] ss:$8 sps:$4 sm:$0xff]  }
 0x5a3   : > { %4999 = vmatpush1.bf16.msra.mxu0 %v11560_v34  ;;  %v11617_v34 = vld [vmem:[%s15303_s5 + $0x390] ss:$8 sps:$4 sm:$0xff]  }
 0x5a4   : > { %5000 = vmatprep.subr.bf16.mxu0 %v11565_v44  ;;  %v11622_v44 = vld [vmem:[%s15303_s5 + $0x3a4] ss:$8 sps:$4 sm:$0xff]  }
 0x5a7   : > { %5001 = vmatpush1.bf16.msra.mxu0 %v11563_v45  ;;  %v11620_v45 = vld [vmem:[%s15303_s5 + $0x3a0] ss:$8 sps:$4 sm:$0xff]  }
 0x5a8   : > { %5002 = vmatprep.subr.bf16.mxu0 %v11568_v46  ;;  %v11625_v46 = vld [vmem:[%s15303_s5 + $0x3b4] ss:$8 sps:$4 sm:$0xff]  }
 0x5ab   : > { %5003 = vmatpush1.bf16.msra.mxu0 %v11566_v22  ;;  %v11623_v22 = vld [vmem:[%s15303_s5 + $0x3b0] ss:$8 sps:$4 sm:$0xff]  }
 0x5ac   : > { %5004 = vmatprep.subr.bf16.mxu0 %v11571_v49  ;;  %v11628_v49 = vld [vmem:[%s15303_s5 + $0x3c4] ss:$8 sps:$4 sm:$0xff]  }
 0x5af   : > { %5005 = vmatpush1.bf16.msra.mxu0 %v11569_v48  ;;  %v11626_v48 = vld [vmem:[%s15303_s5 + $0x3c0] ss:$8 sps:$4 sm:$0xff]  }
 0x5b0   : > { %5006 = vmatprep.subr.bf16.mxu0 %v11574_v52  ;;  %v11631_v52 = vld [vmem:[%s15303_s5 + $0x3d4] ss:$8 sps:$4 sm:$0xff]  }
 0x5b3   : > { %5007 = vmatpush1.bf16.msra.mxu0 %v11572_v53  ;;  %v11629_v53 = vld [vmem:[%s15303_s5 + $0x3d0] ss:$8 sps:$4 sm:$0xff]  }
 0x5b4   : > { %5008 = vmatprep.subr.bf16.mxu0 %v11577_v25  ;;  %v11634_v25 = vld [vmem:[%s15303_s5 + $0x3e4] ss:$8 sps:$4 sm:$0xff]  }
 0x5b7   : > { %5009 = vmatpush1.bf16.msra.mxu0 %v11575_v55  ;;  %v11632_v55 = vld [vmem:[%s15303_s5 + $0x3e0] ss:$8 sps:$4 sm:$0xff]  }
 0x5b8   : > { %5010 = vmatprep.subr.bf16.mxu0 %v11580_v57  ;;  %v11637_v57 = vld [vmem:[%s15303_s5 + $0x3f4] ss:$8 sps:$4 sm:$0xff]  }
 0x5bb   : > { %5011 = vmatpush1.bf16.msra.mxu0 %v11578_v59  ;;  %v11635_v59 = vld [vmem:[%s15303_s5 + $0x3f0] ss:$8 sps:$4 sm:$0xff]  }
 0x5bc   : > { %5012 = vmatprep.subr.bf16.mxu0 %v11583_v18  ;;  %v11640_v18 = vld [vmem:[%s15303_s5 + $0x404] ss:$8 sps:$4 sm:$0xff]  }
 0x5bf   : > { %5013 = vmatpush1.bf16.msra.mxu0 %v11581_v2  ;;  %v11638_v2 = vld [vmem:[%s15303_s5 + $0x400] ss:$8 sps:$4 sm:$0xff]  }
 0x5c0   : > { %5014 = vmatprep.subr.bf16.mxu0 %v11586_v4  ;;  %v11643_v4 = vld [vmem:[%s15303_s5 + $0x414] ss:$8 sps:$4 sm:$0xff]  }
 0x5c3   : > { %5015 = vmatpush1.bf16.msra.mxu0 %v11584_v7  ;;  %v11641_v7 = vld [vmem:[%s15303_s5 + $0x410] ss:$8 sps:$4 sm:$0xff]  }
 0x5c4   : > { %5016 = vmatprep.subr.bf16.mxu0 %v11589_v10  ;;  %v11646_v10 = vld [vmem:[%s15303_s5 + $0x424] ss:$8 sps:$4 sm:$0xff]  }
 0x5c7   : > { %5017 = vmatpush1.bf16.msra.mxu0 %v11587_v61  ;;  %v11644_v61 = vld [vmem:[%s15303_s5 + $0x420] ss:$8 sps:$4 sm:$0xff]  }
 0x5c8   : > { %5258 = vmatprep.subr.bf16.mxu0 %v11592_v37  ;;  %v11652_v37 = vld [vmem:[%s15303_s5 + $0x444] ss:$8 sps:$4 sm:$0xff]  }
 0x5ca   : > { %5019 = vmatmul.mubr.bf16.vlgmr.msra.gmra.mrb[4].mxu0 %v13765_v60  ;;  %v11599_v60 = vld [vmem:[%s15303_s5 + $0x330] ss:$8 sps:$4 sm:$0xff]  }
 0x5cb   : > { %5028 = vmatprep.mubr.bf16.mxu0 %v13761_v58  ;;  %5259 = vmatpush1.bf16.msra.mxu0 %v11590_v16  ;;  %v11601_v58 = vld [vmem:[%s15303_s5 + $0x334] ss:$8 sps:$4 sm:$0xff]   ;;  %v11650_v16 = vld [vmem:[%s15303_s5 + $0x440] ss:$8 sps:$4 sm:$0xff]  }
 0x5cc   : > { %5260 = vmatprep.subr.bf16.mxu0 %v11595_v17  ;;  %v11658_v17 = vld [vmem:[%s15303_s5 + $0x464] ss:$8 sps:$4 sm:$0xff]  }
 0x5cf   : > { %5261 = vmatpush1.bf16.msra.mxu0 %v11593_v21  ;;  %v11656_v21 = vld [vmem:[%s15303_s5 + $0x460] ss:$8 sps:$4 sm:$0xff]  }
 0x5d0   : > { %5262 = vmatprep.subr.bf16.mxu0 %v11598_v23  ;;  %v11661_v23 = vld [vmem:[%s15303_s5 + $0x474] ss:$8 sps:$4 sm:$0xff]  }
 0x5d2   : > { %5029 = vmatmul.mubr.bf16.gmra.mrb[16].mxu0 %v13755_v50  ;;  %v11607_v50 = vld [vmem:[%s15303_s5 + $0x354] ss:$8 sps:$4 sm:$0xff]  }
 0x5d3   : > { %5263 = vmatpush1.bf16.msra.mxu0 %v11596_v24  ;;  %5290 = vmatprep.mubr.bf16.mxu0 %v13792_v33  ;;  %v11605_v33 = vld [vmem:[%s15303_s5 + $0x350] ss:$8 sps:$4 sm:$0xff]  }
 0x5d4   : > { %5264 = vmatprep.subr.bf16.mxu0 %v11601_v58  ;;  %v11659_v24 = vld [vmem:[%s15303_s5 + $0x470] ss:$8 sps:$4 sm:$0xff]   ;;  %v11664_v58 = vld [vmem:[%s15303_s5 + $0x484] ss:$8 sps:$4 sm:$0xff]  }
 0x5d7   : > { %5265 = vmatpush1.bf16.msra.mxu0 %v11599_v60 }
 0x5d8   : > { %5266 = vmatprep.subr.bf16.mxu0 %v11604_v26 }
 0x5db   : > { %5267 = vmatpush1.bf16.msra.mxu0 %v11602_v29 }
 0x5dc   : > { %5268 = vmatprep.subr.bf16.mxu0 %v11607_v50  ;;  %v11662_v50 = vld [vmem:[%s15303_s5 + $0x480] ss:$8 sps:$4 sm:$0xff]  }
 0x5df   : > { %5269 = vmatpush1.bf16.msra.mxu0 %v11605_v33 }
 0x5e0   : > { %5270 = vmatprep.subr.bf16.mxu0 %v11610_v32  ;;  %v11667_v32 = vld [vmem:[%s15303_s5 + $0x494] ss:$8 sps:$4 sm:$0xff]  }
 0x5e3   : > { %5271 = vmatpush1.bf16.msra.mxu0 %v11608_v36  ;;  %v11665_v36 = vld [vmem:[%s15303_s5 + $0x490] ss:$8 sps:$4 sm:$0xff]  }
 0x5e4   : > { %5272 = vmatprep.subr.bf16.mxu0 %v11613_v40  ;;  %v11670_v40 = vld [vmem:[%s15303_s5 + $0x4a4] ss:$8 sps:$4 sm:$0xff]  }
 0x5e7   : > { %5273 = vmatpush1.bf16.msra.mxu0 %v11611_v31  ;;  %v11668_v31 = vld [vmem:[%s15303_s5 + $0x4a0] ss:$8 sps:$4 sm:$0xff]  }
 0x5e8   : > { %5274 = vmatprep.subr.bf16.mxu0 %v11616_v30  ;;  %v11673_v30 = vld [vmem:[%s15303_s5 + $0x4b4] ss:$8 sps:$4 sm:$0xff]  }
 0x5eb   : > { %5275 = vmatpush1.bf16.msra.mxu0 %v11614_v11  ;;  %v11671_v11 = vld [vmem:[%s15303_s5 + $0x4b0] ss:$8 sps:$4 sm:$0xff]  }
 0x5ec   : > { %5276 = vmatprep.subr.bf16.mxu0 %v11619_v43  ;;  %v11676_v43 = vld [vmem:[%s15303_s5 + $0x4c4] ss:$8 sps:$4 sm:$0xff]  }
 0x5ef   : > { %5277 = vmatpush1.bf16.msra.mxu0 %v11617_v34  ;;  %v11674_v34 = vld [vmem:[%s15303_s5 + $0x4c0] ss:$8 sps:$4 sm:$0xff]  }
 0x5f0   : > { %5278 = vmatprep.subr.bf16.mxu0 %v11622_v44  ;;  %v11679_v44 = vld [vmem:[%s15303_s5 + $0x4d4] ss:$8 sps:$4 sm:$0xff]  }
 0x5f3   : > { %5279 = vmatpush1.bf16.msra.mxu0 %v11620_v45  ;;  %v11677_v45 = vld [vmem:[%s15303_s5 + $0x4d0] ss:$8 sps:$4 sm:$0xff]  }
 0x5f4   : > { %5280 = vmatprep.subr.bf16.mxu0 %v11625_v46  ;;  %v11682_v46 = vld [vmem:[%s15303_s5 + $0x4e4] ss:$8 sps:$4 sm:$0xff]  }
 0x5f7   : > { %5281 = vmatpush1.bf16.msra.mxu0 %v11623_v22  ;;  %v11680_v22 = vld [vmem:[%s15303_s5 + $0x4e0] ss:$8 sps:$4 sm:$0xff]  }
 0x5f8   : > { %5282 = vmatprep.subr.bf16.mxu0 %v11628_v49  ;;  %v11685_v49 = vld [vmem:[%s15303_s5 + $0x4f4] ss:$8 sps:$4 sm:$0xff]  }
 0x5fb   : > { %5283 = vmatpush1.bf16.msra.mxu0 %v11626_v48  ;;  %v11683_v48 = vld [vmem:[%s15303_s5 + $0x4f0] ss:$8 sps:$4 sm:$0xff]  }
 0x5fc   : > { %5284 = vmatprep.subr.bf16.mxu0 %v11631_v52  ;;  %v11688_v52 = vld [vmem:[%s15303_s5 + $0x504] ss:$8 sps:$4 sm:$0xff]  }
 0x5ff   : > { %5285 = vmatpush1.bf16.msra.mxu0 %v11629_v53  ;;  %v11686_v53 = vld [vmem:[%s15303_s5 + $0x500] ss:$8 sps:$4 sm:$0xff]  }
 0x600   : > { %5286 = vmatprep.subr.bf16.mxu0 %v11634_v25  ;;  %v11691_v25 = vld [vmem:[%s15303_s5 + $0x514] ss:$8 sps:$4 sm:$0xff]  }
 0x603   : > { %5287 = vmatpush1.bf16.msra.mxu0 %v11632_v55  ;;  %v11689_v55 = vld [vmem:[%s15303_s5 + $0x510] ss:$8 sps:$4 sm:$0xff]  }
 0x604   : > { %5288 = vmatprep.subr.bf16.mxu0 %v11637_v57  ;;  %v11694_v57 = vld [vmem:[%s15303_s5 + $0x524] ss:$8 sps:$4 sm:$0xff]  }
 0x607   : > { %5289 = vmatpush1.bf16.msra.mxu0 %v11635_v59  ;;  %v11692_v59 = vld [vmem:[%s15303_s5 + $0x520] ss:$8 sps:$4 sm:$0xff]  }
 0x608   : > { %5554 = vmatprep.subr.bf16.mxu0 %v11640_v18  ;;  %v11700_v18 = vld [vmem:[%s15303_s5 + $0x544] ss:$8 sps:$4 sm:$0xff]  }
 0x60a   : > { %5291 = vmatmul.mubr.bf16.vlgmr.msra.gmra.mrb[4].mxu0 %v13784_v3  ;;  %v11647_v3 = vld [vmem:[%s15303_s5 + $0x430] ss:$8 sps:$4 sm:$0xff]  }
 0x60b   : > { %5300 = vmatprep.mubr.bf16.mxu0 %v13780_v1  ;;  %5555 = vmatpush1.bf16.msra.mxu0 %v11638_v2  ;;  %v11649_v1 = vld [vmem:[%s15303_s5 + $0x434] ss:$8 sps:$4 sm:$0xff]   ;;  %v11698_v2 = vld [vmem:[%s15303_s5 + $0x540] ss:$8 sps:$4 sm:$0xff]  }
 0x60c   : > { %5556 = vmatprep.subr.bf16.mxu0 %v11643_v4  ;;  %v11709_v4 = vld [vmem:[%s15303_s5 + $0x574] ss:$8 sps:$4 sm:$0xff]  }
 0x60f   : > { %5557 = vmatpush1.bf16.msra.mxu0 %v11641_v7  ;;  %v11707_v7 = vld [vmem:[%s15303_s5 + $0x570] ss:$8 sps:$4 sm:$0xff]  }
 0x610   : > { %5558 = vmatprep.subr.bf16.mxu0 %v11646_v10  ;;  %v11712_v10 = vld [vmem:[%s15303_s5 + $0x584] ss:$8 sps:$4 sm:$0xff]  }
 0x612   : > { %5301 = vmatmul.mubr.bf16.gmra.mrb[20].mxu0 %v13773_v8  ;;  %v11655_v8 = vld [vmem:[%s15303_s5 + $0x454] ss:$8 sps:$4 sm:$0xff]  }
 0x613   : > { %5559 = vmatpush1.bf16.msra.mxu0 %v11644_v61  ;;  %5586 = vmatprep.mubr.bf16.mxu0 %v13810_v63  ;;  %v11653_v63 = vld [vmem:[%s15303_s5 + $0x450] ss:$8 sps:$4 sm:$0xff]  }
 0x614   : > { %5560 = vmatprep.subr.bf16.mxu0 %v11649_v1 }
 0x617   : > { %5561 = vmatpush1.bf16.msra.mxu0 %v11647_v3 }
 0x618   : > { %5562 = vmatprep.subr.bf16.mxu0 %v11652_v37 }
 0x61b   : > { %5563 = vmatpush1.bf16.msra.mxu0 %v11650_v16 }
 0x61c   : > { %5564 = vmatprep.subr.bf16.mxu0 %v11655_v8  ;;  %v11710_v8 = vld [vmem:[%s15303_s5 + $0x580] ss:$8 sps:$4 sm:$0xff]  }
 0x61f   : > { %5565 = vmatpush1.bf16.msra.mxu0 %v11653_v63 }
 0x620   : > { %5566 = vmatprep.subr.bf16.mxu0 %v11658_v17  ;;  %v11715_v17 = vld [vmem:[%s15303_s5 + $0x594] ss:$8 sps:$4 sm:$0xff]  }
 0x623   : > { %5567 = vmatpush1.bf16.msra.mxu0 %v11656_v21  ;;  %v11713_v21 = vld [vmem:[%s15303_s5 + $0x590] ss:$8 sps:$4 sm:$0xff]  }
 0x624   : > { %5568 = vmatprep.subr.bf16.mxu0 %v11661_v23  ;;  %v11718_v23 = vld [vmem:[%s15303_s5 + $0x5a4] ss:$8 sps:$4 sm:$0xff]  }
 0x625   : > { %v14177_v60 = vpop.f32.mrb[8].mxu0 }
 0x626   : > { %v14179_v26 = vpop.f32.mrb[9].mxu0 }
 0x627   : > { %5569 = vmatpush1.bf16.msra.mxu0 %v11659_v24  ;;  %v4557_v29 = vpop.f32.mrb[10].mxu0  ;;  %v11716_v24 = vld [vmem:[%s15303_s5 + $0x5a0] ss:$8 sps:$4 sm:$0xff]  }
 0x628   : > { %v4558_v33 = vpop.f32.mrb[11].mxu0  ;;  %5570 = vmatprep.subr.bf16.mxu0 %v11664_v58  ;;  %v11721_v58 = vld [vmem:[%s15303_s5 + $0x5b4] ss:$8 sps:$4 sm:$0xff]   ;;  %v11722_v29 = vld [vmem:[%s15303_s5 + $0x5c0] ss:$8 sps:$4 sm:$0xff]  }
 0x629   : > { %v11725_v33 = vld [vmem:[%s15303_s5 + $0x5d0] ss:$8 sps:$4 sm:$0xff]  }
 0x62b   : > { %5571 = vmatpush1.bf16.msra.mxu0 %v11662_v50  ;;  %v11727_v50 = vld [vmem:[%s15303_s5 + $0x5d4] ss:$8 sps:$4 sm:$0xff]  }
 0x62c   : > { %5572 = vmatprep.subr.bf16.mxu0 %v11667_v32  ;;  %v11730_v32 = vld [vmem:[%s15303_s5 + $0x5e4] ss:$8 sps:$4 sm:$0xff]  }
 0x62f   : > { %5573 = vmatpush1.bf16.msra.mxu0 %v11665_v36  ;;  %v11728_v36 = vld [vmem:[%s15303_s5 + $0x5e0] ss:$8 sps:$4 sm:$0xff]  }
 0x630   : > { %5574 = vmatprep.subr.bf16.mxu0 %v11670_v40  ;;  %v11733_v40 = vld [vmem:[%s15303_s5 + $0x5f4] ss:$8 sps:$4 sm:$0xff]  }
 0x633   : > { %5575 = vmatpush1.bf16.msra.mxu0 %v11668_v31  ;;  %v11731_v31 = vld [vmem:[%s15303_s5 + $0x5f0] ss:$8 sps:$4 sm:$0xff]  }
 0x634   : > { %5576 = vmatprep.subr.bf16.mxu0 %v11673_v30  ;;  %v11736_v30 = vld [vmem:[%s15303_s5 + $0x604] ss:$8 sps:$4 sm:$0xff]  }
 0x637   : > { %5577 = vmatpush1.bf16.msra.mxu0 %v11671_v11  ;;  %v11734_v11 = vld [vmem:[%s15303_s5 + $0x600] ss:$8 sps:$4 sm:$0xff]  }
 0x638   : > { %5578 = vmatprep.subr.bf16.mxu0 %v11676_v43  ;;  %v5868_v43 = vld [vmem:[#allocation3 + $0x18] sm:$0xf0] }
 0x63b   : > { %5579 = vmatpush1.bf16.msra.mxu0 %v11674_v34  ;;  %v5874_v34 = vld [vmem:[#allocation3 + $0x48] sm:$0xf] }
 0x63c   : > { %5580 = vmatprep.subr.bf16.mxu0 %v11679_v44  ;;  %v11739_v44 = vld [vmem:[%s15303_s5 + $0x614] ss:$8 sps:$4 sm:$0xff]  }
 0x63f   : > { %5581 = vmatpush1.bf16.msra.mxu0 %v11677_v45  ;;  %v5616_v45 = vpack.c.bf16 %v13812_v54, %v13812_v54 }
 0x640   : > { %5582 = vmatprep.subr.bf16.mxu0 %v11682_v46  ;;  %v5876_v46 = vpack.c.bf16 %v13803_v56, %v5868_v43 }
 0x643   : > { %5583 = vmatpush1.bf16.msra.mxu0 %v11680_v22  ;;  %v5878_v22 = vpack.c.bf16 %v5874_v34, %v13812_v54  ;;  %v11779_v34 = vld [vmem:[%s15303_s5 + $0x6f0] ss:$8 sps:$4 sm:$0xff]  }
 0x644   : > { %5584 = vmatprep.subr.bf16.mxu0 %v11685_v49  ;;  %v11737_v49 = vld [vmem:[%s15303_s5 + $0x610] ss:$8 sps:$4 sm:$0xff]  }
 0x647   : > { %5585 = vmatpush1.bf16.msra.mxu0 %v11683_v48  ;;  %v11742_v48 = vld [vmem:[%s15303_s5 + $0x624] ss:$8 sps:$4 sm:$0xff]  }
 0x648   : > { %5810 = vmatprep.subr.bf16.mxu0 %v11688_v52  ;;  %v5919_v52 = vrot.slane %v5876_v46, 2 }
 0x64a   : > { %5587 = vmatmul.mubr.bf16.vlgmr.msra.gmra.mrb[4].mxu0 %v13826_v35  ;;  %v11695_v35 = vld [vmem:[%s15303_s5 + $0x530] ss:$8 sps:$4 sm:$0xff]  }
 0x64b   : > { %5596 = vmatprep.mubr.bf16.mxu0 %v13801_v51  ;;  %5811 = vmatpush1.bf16.msra.mxu0 %v11686_v53  ;;  %v11697_v51 = vld [vmem:[%s15303_s5 + $0x534] ss:$8 sps:$4 sm:$0xff]   ;;  %v14356_v53 = vrot.slane %v5878_v22, 2 }
 0x64c   : > { %5812 = vmatprep.subr.bf16.mxu0 %v11691_v25 }
 0x64d   : > { %v5921_v25 = vsel %vm3288_vm8, %v5919_v52, %v14356_v53 }
 0x64f   : > { %5813 = vmatpush1.bf16.msra.mxu0 %v11689_v55  ;;  %v11743_v55 = vld [vmem:[%s15303_s5 + $0x630] ss:$8 sps:$4 sm:$0xff]  }
 0x650   : > { %5814 = vmatprep.subr.bf16.mxu0 %v11694_v57  ;;  %v11748_v57 = vld [vmem:[%s15303_s5 + $0x644] ss:$8 sps:$4 sm:$0xff]  }
 0x652   : > { %5597 = vmatmul.mubr.bf16.gmra.mrb[24].mxu0 %v13818_v6  ;;  %v11704_v6 = vld [vmem:[%s15303_s5 + $0x560] ss:$8 sps:$4 sm:$0xff]  }
 0x653   : > { %5815 = vmatpush1.bf16.msra.mxu0 %v11692_v59  ;;  %5842 = vmatprep.mubr.bf16.mxu0 %v5614_v13  ;;  %v11706_v13 = vld [vmem:[%s15303_s5 + $0x564] ss:$8 sps:$4 sm:$0xff]   ;;  %v11746_v59 = vld [vmem:[%s15303_s5 + $0x640] ss:$8 sps:$4 sm:$0xff]  }
 0x654   : > { %5816 = vmatprep.subr.bf16.mxu0 %v11697_v51  ;;  %v11751_v51 = vld [vmem:[%s15303_s5 + $0x654] ss:$8 sps:$4 sm:$0xff]  }
 0x657   : > { %5817 = vmatpush1.bf16.msra.mxu0 %v11695_v35  ;;  %v11749_v35 = vld [vmem:[%s15303_s5 + $0x650] ss:$8 sps:$4 sm:$0xff]  }
 0x658   : > { %5818 = vmatprep.subr.bf16.mxu0 %v11700_v18  ;;  %v11754_v18 = vld [vmem:[%s15303_s5 + $0x664] ss:$8 sps:$4 sm:$0xff]  }
 0x65b   : > { %5819 = vmatpush1.bf16.msra.mxu0 %v11698_v2  ;;  %v11752_v2 = vld [vmem:[%s15303_s5 + $0x660] ss:$8 sps:$4 sm:$0xff]  }
 0x65c   : > { %5820 = vmatprep.subr.bf16.mxu0 %v11703_v14  ;;  %v11757_v14 = vld [vmem:[%s15303_s5 + $0x674] ss:$8 sps:$4 sm:$0xff]  }
 0x65f   : > { %5821 = vmatpush1.bf16.msra.mxu0 %v11701_v15  ;;  %v11755_v15 = vld [vmem:[%s15303_s5 + $0x670] ss:$8 sps:$4 sm:$0xff]  }
 0x660   : > { %5822 = vmatprep.subr.bf16.mxu0 %v11706_v13  ;;  %v11760_v13 = vld [vmem:[%s15303_s5 + $0x684] ss:$8 sps:$4 sm:$0xff]  }
 0x663   : > { %5823 = vmatpush1.bf16.msra.mxu0 %v11704_v6 }
 0x664   : > { %5824 = vmatprep.subr.bf16.mxu0 %v11709_v4 }
 0x665   : > { %v4764_v61 = vpop.f32.mrb[12].mxu0 }
 0x666   : > { %v14284_v1 = vadd.f32 %v4764_v61, %v14177_v60  ;;  %v4766_v3 = vpop.f32.mrb[13].mxu0  ;;  %v11719_v60 = vld [vmem:[%s15303_s5 + $0x5b0] ss:$8 sps:$4 sm:$0xff]  }
 0x667   : > { %v14287_v37 = vadd.f32 %v4766_v3, %v14179_v26  ;;  %v4768_v16 = vpop.f32.mrb[14].mxu0  ;;  %5825 = vmatpush1.bf16.msra.mxu0 %v11707_v7  ;;  %v11724_v26 = vld [vmem:[%s15303_s5 + $0x5c4] ss:$8 sps:$4 sm:$0xff]   ;;  %v11758_v3 = vld [vmem:[%s15303_s5 + $0x680] ss:$8 sps:$4 sm:$0xff]  }
 0x668   : > { %v4769_v63 = vpop.f32.mrb[15].mxu0  ;;  %5826 = vmatprep.subr.bf16.mxu0 %v11712_v10 }
 0x669   : > { %v11764_v63 = vld [vmem:[%s15303_s5 + $0x6a0] ss:$8 sps:$4 sm:$0xff]  }
 0x66b   : > { %5827 = vmatpush1.bf16.msra.mxu0 %v11710_v8  ;;  %v11763_v8 = vld [vmem:[%s15303_s5 + $0x694] ss:$8 sps:$4 sm:$0xff]  }
 0x66c   : > { %5828 = vmatprep.subr.bf16.mxu0 %v11715_v17  ;;  %v11769_v17 = vld [vmem:[%s15303_s5 + $0x6b4] ss:$8 sps:$4 sm:$0xff]  }
 0x66f   : > { %5829 = vmatpush1.bf16.msra.mxu0 %v11713_v21  ;;  %v11767_v21 = vld [vmem:[%s15303_s5 + $0x6b0] ss:$8 sps:$4 sm:$0xff]  }
 0x670   : > { %5830 = vmatprep.subr.bf16.mxu0 %v11718_v23  ;;  %v11772_v23 = vld [vmem:[%s15303_s5 + $0x6c4] ss:$8 sps:$4 sm:$0xff]  }
 0x673   : > { %5831 = vmatpush1.bf16.msra.mxu0 %v11716_v24  ;;  %v11770_v24 = vld [vmem:[%s15303_s5 + $0x6c0] ss:$8 sps:$4 sm:$0xff]  }
 0x674   : > { %5832 = vmatprep.subr.bf16.mxu0 %v11721_v58  ;;  %v11775_v58 = vld [vmem:[%s15303_s5 + $0x6d4] ss:$8 sps:$4 sm:$0xff]  }
 0x677   : > { %5833 = vmatpush1.bf16.msra.mxu0 %v11719_v60  ;;  %v11773_v60 = vld [vmem:[%s15303_s5 + $0x6d0] ss:$8 sps:$4 sm:$0xff]  }
 0x678   : > { %5834 = vmatprep.subr.bf16.mxu0 %v11724_v26  ;;  %v11778_v26 = vld [vmem:[%s15303_s5 + $0x6e4] ss:$8 sps:$4 sm:$0xff]  }
 0x67b   : > { %5835 = vmatpush1.bf16.msra.mxu0 %v11722_v29  ;;  %v5867_v29 = vld [vmem:[#allocation3 + $0x10] sm:$0xf0] }
 0x67c   : > { %5836 = vmatprep.subr.bf16.mxu0 %v11727_v50  ;;  %v5873_v50 = vld [vmem:[#allocation3 + $0x40] sm:$0xf] }
 0x67f   : > { %5837 = vmatpush1.bf16.msra.mxu0 %v11725_v33  ;;  %v11776_v33 = vld [vmem:[%s15303_s5 + $0x6e0] ss:$8 sps:$4 sm:$0xff]  }
 0x680   : > { %5838 = vmatprep.subr.bf16.mxu0 %v11730_v32  ;;  %v6144_v32 = vld [vmem:[#allocation3 + $0x18] sm:$0xe0] }
 0x683   : > { %5839 = vmatpush1.bf16.msra.mxu0 %v11728_v36  ;;  %v6146_v36 = vld [vmem:[#allocation3 + $0x48] sm:$0x1f] }
 0x684   : > { %5840 = vmatprep.subr.bf16.mxu0 %v11733_v40  ;;  %v11781_v40 = vld [vmem:[%s15303_s5 + $0x6f4] ss:$8 sps:$4 sm:$0xff]   ;;  %v6150_v43 = vpack.c.bf16 %v6146_v36, %v13812_v54 }
 0x685   : > { %v11787_v54 = vld [vmem:[%s15303_s5 + $0x714] ss:$8 sps:$4 sm:$0xff]  }
 0x686   : > { %v11823_v36 = vld [vmem:[%s15303_s5 + $0x7d4] ss:$8 sps:$4 sm:$0xff]  }
 0x687   : > { %5841 = vmatpush1.bf16.msra.mxu0 %v11731_v31  ;;  %v5875_v31 = vpack.c.bf16 %v13821_v9, %v5867_v29  ;;  %v11820_v29 = vld [vmem:[%s15303_s5 + $0x7c4] ss:$8 sps:$4 sm:$0xff]  }
 0x688   : > { %6086 = vmatprep.subr.bf16.mxu0 %v11736_v30  ;;  %v5877_v30 = vpack.c.bf16 %v5873_v50, %v13828_v12  ;;  %v6213_v12 = vshll.u32 %v6150_v43, 16  ;;  %v6143_v50 = vld [vmem:[#allocation3 + $0x10] sm:$0xe0] }
 0x68a   : > { %5843 = vmatmul.mubr.bf16.vlgmr.msra.gmra.mrb[4].mxu0 %v5613_v27  ;;  %v11745_v27 = vld [vmem:[%s15303_s5 + $0x634] ss:$8 sps:$4 sm:$0xff]   ;;  %v5917_v46 = vrot.slane %v5877_v30, 2  ;;  %v12031_v30 = vld [vmem:[#allocation3 + $0x30] sm:$0xff] }
 0x68b   : > { %5852 = vmatprep.mubr.bf16.mxu0 %v5616_v45  ;;  %6087 = vmatpush1.bf16.msra.mxu0 %v11734_v11  ;;  %v6148_v11 = vpack.c.bf16 %v13803_v56, %v6144_v32  ;;  %v5916_v45 = vrot.slane %v5875_v31, 2  ;;  %v11782_v56 = vld [vmem:[%s15303_s5 + $0x700] ss:$8 sps:$4 sm:$0xff]  }
 0x68c   : > { %6088 = vmatprep.subr.bf16.mxu0 %v11739_v44  ;;  %v11784_v44 = vld [vmem:[%s15303_s5 + $0x704] ss:$8 sps:$4 sm:$0xff]   ;;  %v11818_v32 = vld [vmem:[%s15303_s5 + $0x7c0] ss:$8 sps:$4 sm:$0xff]  }
 0x68d   : > { %v6202_v22 = vshrl.u32 %v6148_v11, 16  ;;  %v6205_v9 = vshll.u32 %v6148_v11, 16 }
 0x68f   : > { %6089 = vmatpush1.bf16.msra.mxu0 %v11737_v49  ;;  %v6210_v49 = vshrl.u32 %v6150_v43, 16  ;;  %v6204_v52 = vrot.slane %v6202_v22, 2  ;;  %v11821_v43 = vld [vmem:[%s15303_s5 + $0x7d0] ss:$8 sps:$4 sm:$0xff]  }
 0x690   : > { %6090 = vmatprep.subr.bf16.mxu0 %v11742_v48  ;;  %v5918_v48 = vsel %vm3288_vm8, %v5916_v45, %v5917_v46 }
 0x692   : > { %5853 = vmatmul.mubr.bf16.gmra.mrb[28].mxu0 %v5615_v47  ;;  %v6212_v47 = vrot.slane %v6210_v49, 2  ;;  %v11829_v49 = vld [vmem:[%s15303_s5 + $0x7f4] ss:$8 sps:$4 sm:$0xff]  }
 0x693   : > { %6091 = vmatpush1.bf16.msra.mxu0 %v11740_v5  ;;  %6118 = vmatprep.mubr.bf16.mxu0 %v5921_v25  ;;  %v6207_v5 = vrot.slane %v6205_v9, 3  ;;  %v11785_v25 = vld [vmem:[%s15303_s5 + $0x710] ss:$8 sps:$4 sm:$0xff]   ;;  %v11824_v9 = vld [vmem:[%s15303_s5 + $0x7e0] ss:$8 sps:$4 sm:$0xff]  }
 0x694   : > { %6092 = vmatprep.subr.bf16.mxu0 %v11745_v27  ;;  %v6215_v27 = vrot.slane %v6213_v12, 3 }
 0x697   : > { %6093 = vmatpush1.bf16.msra.mxu0 %v11743_v55  ;;  %v11790_v55 = vld [vmem:[%s15303_s5 + $0x724] ss:$8 sps:$4 sm:$0xff]  }
 0x698   : > { %6094 = vmatprep.subr.bf16.mxu0 %v11748_v57  ;;  %v6208_v57 = vor.u32 %v6207_v5, %v6204_v52  ;;  %v11827_v52 = vld [vmem:[%s15303_s5 + $0x7f0] ss:$8 sps:$4 sm:$0xff]   ;;  %v11832_v5 = vld [vmem:[%s15303_s5 + $0x804] ss:$8 sps:$4 sm:$0xff]  }
 0x69b   : > { %6095 = vmatpush1.bf16.msra.mxu0 %v11746_v59  ;;  %v14470_v59 = vor.u32 %v6215_v27, %v6212_v47 }
 0x69c   : > { %6096 = vmatprep.subr.bf16.mxu0 %v11751_v51  ;;  %v11788_v51 = vld [vmem:[%s15303_s5 + $0x720] ss:$8 sps:$4 sm:$0xff]  }
 0x69f   : > { %6097 = vmatpush1.bf16.msra.mxu0 %v11749_v35  ;;  %v6217_v35 = vsel %vm3557_vm9, %v6208_v57, %v14470_v59 }
 0x6a0   : > { %6098 = vmatprep.subr.bf16.mxu0 %v11754_v18  ;;  %v11791_v18 = vld [vmem:[%s15303_s5 + $0x730] ss:$8 sps:$4 sm:$0xff]  }
 0x6a3   : > { %6099 = vmatpush1.bf16.msra.mxu0 %v11752_v2  ;;  %v11796_v2 = vld [vmem:[%s15303_s5 + $0x744] ss:$8 sps:$4 sm:$0xff]  }
 0x6a4   : > { %6100 = vmatprep.subr.bf16.mxu0 %v11757_v14  ;;  %v11794_v14 = vld [vmem:[%s15303_s5 + $0x740] ss:$8 sps:$4 sm:$0xff]  }
 0x6a5   : > { %v5030_v6 = vpop.f32.mrb[16].mxu0 }
 0x6a6   : > { %v14399_v4 = vadd.f32 %v5030_v6, %v14284_v1  ;;  %v5032_v7 = vpop.f32.mrb[17].mxu0  ;;  %v11761_v1 = vld [vmem:[%s15303_s5 + $0x690] ss:$8 sps:$4 sm:$0xff]   ;;  %v11802_v6 = vld [vmem:[%s15303_s5 + $0x764] ss:$8 sps:$4 sm:$0xff]  }
 0x6a7   : > { %v14402_v10 = vadd.f32 %v5032_v7, %v14287_v37  ;;  %v5034_v61 = vpop.f32.mrb[18].mxu0  ;;  %6101 = vmatpush1.bf16.msra.mxu0 %v11755_v15  ;;  %v11766_v37 = vld [vmem:[%s15303_s5 + $0x6a4] ss:$8 sps:$4 sm:$0xff]   ;;  %v11799_v15 = vld [vmem:[%s15303_s5 + $0x754] ss:$8 sps:$4 sm:$0xff]  }
 0x6a8   : > { %v5035_v16 = vpop.f32.mrb[19].mxu0  ;;  %6102 = vmatprep.subr.bf16.mxu0 %v11760_v13  ;;  %v11797_v13 = vld [vmem:[%s15303_s5 + $0x750] ss:$8 sps:$4 sm:$0xff]   ;;  %v11800_v7 = vld [vmem:[%s15303_s5 + $0x760] ss:$8 sps:$4 sm:$0xff]  }
 0x6a9   : > { %v11805_v61 = vld [vmem:[%s15303_s5 + $0x774] ss:$8 sps:$4 sm:$0xff]   ;;  %v11808_v16 = vld [vmem:[%s15303_s5 + $0x784] ss:$8 sps:$4 sm:$0xff]  }
 0x6ab   : > { %6103 = vmatpush1.bf16.msra.mxu0 %v11758_v3  ;;  %v11803_v3 = vld [vmem:[%s15303_s5 + $0x770] ss:$8 sps:$4 sm:$0xff]  }
 0x6ac   : > { %6104 = vmatprep.subr.bf16.mxu0 %v11763_v8 }
 0x6af   : > { %6105 = vmatpush1.bf16.msra.mxu0 %v11761_v1 }
 0x6b0   : > { %6106 = vmatprep.subr.bf16.mxu0 %v11766_v37 }
 0x6b3   : > { %6107 = vmatpush1.bf16.msra.mxu0 %v11764_v63 }
 0x6b4   : > { %6108 = vmatprep.subr.bf16.mxu0 %v11769_v17 }
 0x6b7   : > { %6109 = vmatpush1.bf16.msra.mxu0 %v11767_v21  ;;  %v11806_v21 = vld [vmem:[%s15303_s5 + $0x780] ss:$8 sps:$4 sm:$0xff]  }
 0x6b8   : > { %6110 = vmatprep.subr.bf16.mxu0 %v11772_v23 }
 0x6bb   : > { %6111 = vmatpush1.bf16.msra.mxu0 %v11770_v24  ;;  %v11811_v24 = vld [vmem:[%s15303_s5 + $0x794] ss:$8 sps:$4 sm:$0xff]  }
 0x6bc   : > { %6112 = vmatprep.subr.bf16.mxu0 %v11775_v58  ;;  %v11812_v58 = vld [vmem:[%s15303_s5 + $0x7a0] ss:$8 sps:$4 sm:$0xff]  }
 0x6bf   : > { %6113 = vmatpush1.bf16.msra.mxu0 %v11773_v60  ;;  %v11817_v60 = vld [vmem:[%s15303_s5 + $0x7b4] ss:$8 sps:$4 sm:$0xff]  }
 0x6c0   : > { %6114 = vmatprep.subr.bf16.mxu0 %v11778_v26  ;;  %v11815_v26 = vld [vmem:[%s15303_s5 + $0x7b0] ss:$8 sps:$4 sm:$0xff]  }
 0x6c3   : > { %6115 = vmatpush1.bf16.msra.mxu0 %v11776_v33  ;;  %v6145_v33 = vld [vmem:[#allocation3 + $0x40] sm:$0x1f] }
 0x6c4   : > { %6116 = vmatprep.subr.bf16.mxu0 %v11781_v40  ;;  %v12030_v40 = vld [vmem:[#allocation3 + $0x20] sm:$0xff]  ;;  %v6149_v11 = vpack.c.bf16 %v6145_v33, %v12031_v30 }
 0x6c5   : > { %v6147_v31 = vpack.c.bf16 %v12030_v40, %v6143_v50  ;;  %v11871_v50 = vld [vmem:[%s15303_s5 + $0x8d4] ss:$8 sps:$4 sm:$0xff]   ;;  %v11869_v33 = vld [vmem:[%s15303_s5 + $0x8d0] ss:$8 sps:$4 sm:$0xff]  }
 0x6c6   : > { %v6196_v22 = vshll.u32 %v6149_v11, 16  ;;  %v11877_v40 = vld [vmem:[%s15303_s5 + $0x8f4] ss:$8 sps:$4 sm:$0xff]  }
 0x6c7   : > { %6117 = vmatpush1.bf16.msra.mxu0 %v11779_v34  ;;  %v11826_v34 = vld [vmem:[%s15303_s5 + $0x7e4] ss:$8 sps:$4 sm:$0xff]   ;;  %v6188_v45 = vshll.u32 %v6147_v31, 16 }
 0x6c8   : > { %6382 = vmatprep.subr.bf16.mxu0 %v11784_v44  ;;  %v6185_v44 = vshrl.u32 %v6147_v31, 16  ;;  %v11875_v31 = vld [vmem:[%s15303_s5 + $0x8f0] ss:$8 sps:$4 sm:$0xff]  }
 0x6ca   : > { %6119 = vmatmul.mubr.bf16.vlgmr.msra.gmra.mrb[4].mxu0 %v5918_v48  ;;  %v6187_v12 = vrot.slane %v6185_v44, 2  ;;  %v6198_v48 = vrot.slane %v6196_v22, 3 }
 0x6cb   : > { %6128 = vmatprep.mubr.bf16.mxu0 %v14356_v53  ;;  %6383 = vmatpush1.bf16.msra.mxu0 %v11782_v56  ;;  %v11793_v53 = vld [vmem:[%s15303_s5 + $0x734] ss:$8 sps:$4 sm:$0xff]   ;;  %v6190_v56 = vrot.slane %v6188_v45, 3 }
 0x6cc   : > { %6384 = vmatprep.subr.bf16.mxu0 %v11787_v54 }
 0x6cd   : > { %v6191_v47 = vor.u32 %v6190_v56, %v6187_v12 }
 0x6cf   : > { %6385 = vmatpush1.bf16.msra.mxu0 %v11785_v25  ;;  %v11830_v25 = vld [vmem:[%s15303_s5 + $0x800] ss:$8 sps:$4 sm:$0xff]  }
 0x6d0   : > { %6386 = vmatprep.subr.bf16.mxu0 %v11790_v55  ;;  %v11835_v55 = vld [vmem:[%s15303_s5 + $0x814] ss:$8 sps:$4 sm:$0xff]  }
 0x6d2   : > { %6129 = vmatmul.mubr.bf16.gmra.mrb[32].mxu0 %v5917_v46  ;;  %v6193_v46 = vshrl.u32 %v6149_v11, 16 }
 0x6d3   : > { %6387 = vmatpush1.bf16.msra.mxu0 %v11788_v51  ;;  %6414 = vmatprep.mubr.bf16.mxu0 %v6217_v35  ;;  %v11833_v51 = vld [vmem:[%s15303_s5 + $0x810] ss:$8 sps:$4 sm:$0xff]   ;;  %v11836_v35 = vld [vmem:[%s15303_s5 + $0x820] ss:$8 sps:$4 sm:$0xff]  }
 0x6d4   : > { %6388 = vmatprep.subr.bf16.mxu0 %v11793_v53  ;;  %v6195_v54 = vrot.slane %v6193_v46, 2  ;;  %v11838_v53 = vld [vmem:[%s15303_s5 + $0x824] ss:$8 sps:$4 sm:$0xff]  }
 0x6d6   : > { %v6199_v27 = vor.u32 %v6198_v48, %v6195_v54 }
 0x6d7   : > { %6389 = vmatpush1.bf16.msra.mxu0 %v11791_v18  ;;  %v11839_v18 = vld [vmem:[%s15303_s5 + $0x830] ss:$8 sps:$4 sm:$0xff]  }
 0x6d8   : > { %6390 = vmatprep.subr.bf16.mxu0 %v11796_v2  ;;  %v6200_v57 = vsel %vm3557_vm9, %v6191_v47, %v6199_v27  ;;  %v11844_v2 = vld [vmem:[%s15303_s5 + $0x844] ss:$8 sps:$4 sm:$0xff]  }
 0x6d9   : > { %v11879_v47 = vld [vmem:[%s15305_s7 + $0x80] sm:$0xff]  }
 0x6db   : > { %6391 = vmatpush1.bf16.msra.mxu0 %v11794_v14  ;;  %v11842_v14 = vld [vmem:[%s15303_s5 + $0x840] ss:$8 sps:$4 sm:$0xff]  }
 0x6dc   : > { %6392 = vmatprep.subr.bf16.mxu0 %v11799_v15  ;;  %v11847_v15 = vld [vmem:[%s15303_s5 + $0x854] ss:$8 sps:$4 sm:$0xff]  }
 0x6df   : > { %6393 = vmatpush1.bf16.msra.mxu0 %v11797_v13  ;;  %v11850_v13 = vld [vmem:[%s15303_s5 + $0x864] ss:$8 sps:$4 sm:$0xff]  }
 0x6e0   : > { %6394 = vmatprep.subr.bf16.mxu0 %v11802_v6  ;;  %v11848_v6 = vld [vmem:[%s15303_s5 + $0x860] ss:$8 sps:$4 sm:$0xff]  }
 0x6e3   : > { %6395 = vmatpush1.bf16.msra.mxu0 %v11800_v7  ;;  %v11853_v7 = vld [vmem:[%s15303_s5 + $0x874] ss:$8 sps:$4 sm:$0xff]  }
 0x6e4   : > { %6396 = vmatprep.subr.bf16.mxu0 %v11805_v61  ;;  %v11851_v61 = vld [vmem:[%s15303_s5 + $0x870] ss:$8 sps:$4 sm:$0xff]  }
 0x6e5   : > { %v5302_v8 = vpop.f32.mrb[20].mxu0 }
 0x6e6   : > { %v14511_v1 = vadd.f32 %v5302_v8, %v14399_v4  ;;  %v5304_v37 = vpop.f32.mrb[21].mxu0  ;;  %v11809_v4 = vld [vmem:[%s15303_s5 + $0x790] ss:$8 sps:$4 sm:$0xff]  }
 0x6e7   : > { %v14514_v63 = vadd.f32 %v5304_v37, %v14402_v10  ;;  %v5306_v17 = vpop.f32.mrb[22].mxu0  ;;  %6397 = vmatpush1.bf16.msra.mxu0 %v11803_v3  ;;  %v11814_v10 = vld [vmem:[%s15303_s5 + $0x7a4] ss:$8 sps:$4 sm:$0xff]  }
 0x6e8   : > { %v5307_v23 = vpop.f32.mrb[23].mxu0  ;;  %6398 = vmatprep.subr.bf16.mxu0 %v11808_v16  ;;  %v11856_v3 = vld [vmem:[%s15303_s5 + $0x884] ss:$8 sps:$4 sm:$0xff]  }
 0x6e9   : > { %v11854_v23 = vld [vmem:[%s15303_s5 + $0x880] ss:$8 sps:$4 sm:$0xff]  }
 0x6eb   : > { %6399 = vmatpush1.bf16.msra.mxu0 %v11806_v21 }
 0x6ec   : > { %6400 = vmatprep.subr.bf16.mxu0 %v11811_v24 }
 0x6ef   : > { %6401 = vmatpush1.bf16.msra.mxu0 %v11809_v4  ;;  %v11859_v4 = vld [vmem:[%s15303_s5 + $0x894] ss:$8 sps:$4 sm:$0xff]  }
 0x6f0   : > { %6402 = vmatprep.subr.bf16.mxu0 %v11814_v10  ;;  %v11860_v10 = vld [vmem:[%s15303_s5 + $0x8a0] ss:$8 sps:$4 sm:$0xff]  }
 0x6f3   : > { %6403 = vmatpush1.bf16.msra.mxu0 %v11812_v58  ;;  %v11865_v58 = vld [vmem:[%s15303_s5 + $0x8b4] ss:$8 sps:$4 sm:$0xff]  }
 0x6f4   : > { %6404 = vmatprep.subr.bf16.mxu0 %v11817_v60  ;;  %v11863_v60 = vld [vmem:[%s15303_s5 + $0x8b0] ss:$8 sps:$4 sm:$0xff]  }
 0x6f7   : > { %6405 = vmatpush1.bf16.msra.mxu0 %v11815_v26  ;;  %v11868_v26 = vld [vmem:[%s15303_s5 + $0x8c4] ss:$8 sps:$4 sm:$0xff]  }
 0x6f8   : > { %6406 = vmatprep.subr.bf16.mxu0 %v11820_v29  ;;  %v11866_v29 = vld [vmem:[%s15303_s5 + $0x8c0] ss:$8 sps:$4 sm:$0xff]  }
 0x6fb   : > { %6407 = vmatpush1.bf16.msra.mxu0 %v11818_v32  ;;  %v11874_v32 = vld [vmem:[%s15303_s5 + $0x8e4] ss:$8 sps:$4 sm:$0xff]  }
 0x6fc   : > { %6408 = vmatprep.subr.bf16.mxu0 %v11823_v36  ;;  %v11872_v36 = vld [vmem:[%s15303_s5 + $0x8e0] ss:$8 sps:$4 sm:$0xff]  }
 0x6ff   : > { %6409 = vmatpush1.bf16.msra.mxu0 %v11821_v43 }
 0x700   : > { %6410 = vmatprep.subr.bf16.mxu0 %v11826_v34 }
 0x703   : > { %6411 = vmatpush1.bf16.msra.mxu0 %v11824_v9 }
 0x704   : > { %6412 = vmatprep.subr.bf16.mxu0 %v11829_v49 }
 0x707   : > { %6413 = vmatpush1.bf16.msra.mxu0 %v11827_v52 }
 0x708   : > { %6654 = vmatprep.subr.bf16.mxu0 %v11832_v5 }
 0x70a   : > { %6415 = vmatmul.mubr.bf16.vlgmr.msra.gmra.mrb[4].mxu0 %v6200_v57  ;;  %v11883_v57 = vld [vmem:[%s15305_s7 + $0x90] sm:$0xff]  }
 0x70b   : > { %6424 = vmatprep.mubr.bf16.mxu0 %v14470_v59  ;;  %6655 = vmatpush1.bf16.msra.mxu0 %v11830_v25  ;;  %v11841_v59 = vld [vmem:[%s15303_s5 + $0x834] ss:$8 sps:$4 sm:$0xff]   ;;  %v11881_v25 = vld [vmem:[%s15305_s7 + $0x88] sm:$0xff]  }
 0x70c   : > { %6656 = vmatprep.subr.bf16.mxu0 %v11835_v55  ;;  %v11882_v55 = vld [vmem:[%s15305_s7 + $0xd0] sm:$0xff]  }
 0x70f   : > { %6657 = vmatpush1.bf16.msra.mxu0 %v11833_v51  ;;  %v11884_v51 = vld [vmem:[%s15305_s7 + $0xd8] sm:$0xff]  }
 0x710   : > { %6658 = vmatprep.subr.bf16.mxu0 %v11838_v53  ;;  %v11885_v53 = vld [vmem:[%s15305_s7 + $0x98] sm:$0xff]  }
 0x712   : > { %6425 = vmatmul.mubr.bf16.gmra.mrb[36].mxu0 %v6199_v27  ;;  %v11880_v27 = vld [vmem:[%s15305_s7 + $0xc8] sm:$0xff]  }
 0x713   : > { %6659 = vmatpush1.bf16.msra.mxu0 %v11836_v35  ;;  %6686 = vmatprep.mubr.bf16.mxu0 %v13849_v38  ;;  %v11845_v38 = vld [vmem:[%s15303_s5 + $0x850] ss:$8 sps:$4 sm:$0xff]   ;;  %v11886_v35 = vld [vmem:[%s15305_s7 + $0xe0] sm:$0xff]  }
 0x714   : > { %6660 = vmatprep.subr.bf16.mxu0 %v11841_v59  ;;  %v11887_v59 = vld [vmem:[%s15305_s7 + $0xa0] sm:$0xff]  }
 0x717   : > { %6661 = vmatpush1.bf16.msra.mxu0 %v11839_v18  ;;  %v11888_v18 = vld [vmem:[%s15305_s7 + $0xe8] sm:$0xff]  }
 0x718   : > { %6662 = vmatprep.subr.bf16.mxu0 %v11844_v2  ;;  %v11889_v2 = vld [vmem:[%s15305_s7 + $0xa8] sm:$0xff]  }
 0x71b   : > { %6663 = vmatpush1.bf16.msra.mxu0 %v11842_v14  ;;  %v11890_v14 = vld [vmem:[%s15305_s7 + $0xf0] sm:$0xff]  }
 0x71c   : > { %6664 = vmatprep.subr.bf16.mxu0 %v11847_v15  ;;  %v11891_v15 = vld [vmem:[%s15305_s7 + $0xb0] sm:$0xff]  }
 0x71f   : > { %6665 = vmatpush1.bf16.msra.mxu0 %v11845_v38  ;;  %v11892_v38 = vld [vmem:[%s15305_s7 + $0xf8] sm:$0xff]  }
 0x720   : > { %6666 = vmatprep.subr.bf16.mxu0 %v11850_v13  ;;  %v11893_v13 = vld [vmem:[%s15305_s7 + $0xb8] sm:$0xff]  }
 0x723   : > { %6667 = vmatpush1.bf16.msra.mxu0 %v11848_v6  ;;  %v11894_v6 = vld [vmem:[%s15305_s7 + $0x40] sm:$0xff]  }
 0x724   : > { %6668 = vmatprep.subr.bf16.mxu0 %v11853_v7  ;;  %v6711_v7 = vld [vmem:[%s15304_s6] sm:$0x3] }
 0x725   : > { %v5598_v16 = vpop.f32.mrb[24].mxu0 }
 0x726   : > { %v5609_v8 = vadd.f32 %v5598_v16, %v14511_v1  ;;  %v5600_v37 = vpop.f32.mrb[25].mxu0  ;;  %v11857_v1 = vld [vmem:[%s15303_s5 + $0x890] ss:$8 sps:$4 sm:$0xff]  }
 0x727   : > { %v5610_v17 = vadd.f32 %v5600_v37, %v14514_v63  ;;  %v5602_v21 = vpop.f32.mrb[26].mxu0  ;;  %6669 = vmatpush1.bf16.msra.mxu0 %v11851_v61  ;;  %v11862_v63 = vld [vmem:[%s15303_s5 + $0x8a4] ss:$8 sps:$4 sm:$0xff]   ;;  %v6716_v61 = vrot.slane %v6711_v7, %v12651_v62 }
 0x728   : > { %v5603_v24 = vpop.f32.mrb[27].mxu0  ;;  %6670 = vmatprep.subr.bf16.mxu0 %v11856_v3  ;;  %v6720_v3 = vrot.slane %v6711_v7, %v12657_v0 }
 0x72b   : > { %6671 = vmatpush1.bf16.msra.mxu0 %v11854_v23 }
 0x72c   : > { %6672 = vmatprep.subr.bf16.mxu0 %v11859_v4 }
 0x72f   : > { %6673 = vmatpush1.bf16.msra.mxu0 %v11857_v1 }
 0x730   : > { %6674 = vmatprep.subr.bf16.mxu0 %v11862_v63 }
 0x733   : > { %6675 = vmatpush1.bf16.msra.mxu0 %v11860_v10 }
 0x734   : > { %6676 = vmatprep.subr.bf16.mxu0 %v11865_v58 }
 0x737   : > { %6677 = vmatpush1.bf16.msra.mxu0 %v11863_v60 }
 0x738   : > { %6678 = vmatprep.subr.bf16.mxu0 %v11868_v26 }
 0x73b   : > { %6679 = vmatpush1.bf16.msra.mxu0 %v11866_v29 }
 0x73c   : > { %6680 = vmatprep.subr.bf16.mxu0 %v11871_v50 }
 0x73f   : > { %6681 = vmatpush1.bf16.msra.mxu0 %v11869_v33 }
 0x740   : > { %6682 = vmatprep.subr.bf16.mxu0 %v11874_v32 }
 0x743   : > { %6683 = vmatpush1.bf16.msra.mxu0 %v11872_v36 }
 0x744   : > { %6684 = vmatprep.subr.bf16.mxu0 %v11877_v40 }
 0x747   : > { %6685 = vmatpush1.bf16.msra.mxu0 %v11875_v31 }
 0x74a   : > { %6687 = vmatmul.mubr.bf16.vlgmr.msra.gmra.mrb[4].mxu0 %v13858_v42 }
 0x74b   : > { %6696 = vmatprep.mubr.bf16.mxu0 %v13839_v28 }
 0x752   : > { %6697 = vmatmul.mubr.bf16.gmra.mrb[40].mxu0 %v13851_v39  ;;  %v11878_v39 = vld [vmem:[%s15305_s7 + $0xc0] sm:$0xff]  }
 0x753   : > { %10431 = vmatprep.subr.bf16.mxu1 %v11878_v39 }
 0x754   : > { %10432 = vmatpush3.bf16.msra.mxu1 %v11879_v47 }
 0x755   : > { %10433 = vmatprep.subr.bf16.mxu1 %v11880_v27 }
 0x758   : > { %10434 = vmatpush3.bf16.msra.mxu1 %v11881_v25 }
 0x759   : > { %10435 = vmatprep.subr.bf16.mxu1 %v11882_v55 }
 0x75c   : > { %10436 = vmatpush3.bf16.msra.mxu1 %v11883_v57 }
 0x75d   : > { %10437 = vmatprep.subr.bf16.mxu1 %v11884_v51 }
 0x760   : > { %10438 = vmatpush3.bf16.msra.mxu1 %v11885_v53 }
 0x761   : > { %10439 = vmatprep.subr.bf16.mxu1 %v11886_v35 }
 0x764   : > { %10440 = vmatpush3.bf16.msra.mxu1 %v11887_v59 }
 0x765   : > { %v5854_v30 = vpop.f32.mrb[28].mxu0  ;;  %10441 = vmatprep.subr.bf16.mxu1 %v11888_v18 }
 0x766   : > { %v5865_v11 = vadd.f32 %v5854_v30, %v5609_v8  ;;  %v5856_v43 = vpop.f32.mrb[29].mxu0 }
 0x767   : > { %v5866_v34 = vadd.f32 %v5856_v43, %v5610_v17  ;;  %v5858_v44 = vpop.f32.mrb[30].mxu0 }
 0x768   : > { %v5859_v45 = vpop.f32.mrb[31].mxu0  ;;  %10442 = vmatpush3.bf16.msra.mxu1 %v11889_v2 }
 0x769   : > { %10443 = vmatprep.subr.bf16.mxu1 %v11890_v14 }
 0x76c   : > { %10444 = vmatpush3.bf16.msra.mxu1 %v11891_v15 }
 0x76d   : > { %10445 = vmatprep.subr.bf16.mxu1 %v11892_v38 }
 0x770   : > { %10446 = vmatpush3.bf16.msra.mxu1 %v11893_v13 }
 0x771   : > { %10459 = vmatprep.subr.bf16.mxu1 %v11894_v6 }
 0x7a5   : > { %v6130_v46 = vpop.f32.mrb[32].mxu0 }
 0x7a6   : > { %v6141_v22 = vadd.f32 %v6130_v46, %v5865_v11  ;;  %v6132_v9 = vpop.f32.mrb[33].mxu0 }
 0x7a7   : > { %v6142_v49 = vadd.f32 %v6132_v9, %v5866_v34  ;;  %v6134_v12 = vpop.f32.mrb[34].mxu0 }
 0x7a8   : > { %v6135_v56 = vpop.f32.mrb[35].mxu0 }
 0x7e5   : > { %v6426_v54 = vpop.f32.mrb[36].mxu0 }
 0x7e6   : > { %v6437_v48 = vadd.f32 %v6426_v54, %v6141_v22  ;;  %v6428_v52 = vpop.f32.mrb[37].mxu0 }
 0x7e7   : > { %v6438_v42 = vadd.f32 %v6428_v52, %v6142_v49  ;;  %v6430_v5 = vpop.f32.mrb[38].mxu0 }
 0x7e8   : > { %v6431_v28 = vpop.f32.mrb[39].mxu0 }
 0x81d   : > { %v6688_v16 = vpop.f32.mrb[4].mxu0 }
 0x81e   : > { %v6723_v8 = vadd.f32 %v6716_v61, %v6688_v16  ;;  %v6690_v37 = vpop.f32.mrb[5].mxu0 }
 0x81f   : > { %v6724_v17 = vadd.f32 %v6720_v3, %v6690_v37  ;;  %v6692_v21 = vpop.f32.mrb[6].mxu0 }
 0x820   : > { %v6725_v23 = vadd.f32 %v6716_v61, %v6692_v21  ;;  %v6694_v24 = vpop.f32.mrb[7].mxu0  ;;  %v6729_v1 = vsel %vm13670_vm2, %v6723_v8, 0.0 }
 0x821   : > { %v6726_v4 = vadd.f32 %v6720_v3, %v6694_v24  ;;  %v6730_v10 = vsel %vm13670_vm2, %v6724_v17, 0.0 }
 0x822   : > { %v6731_v63 = vsel %vm13674_vm3, %v6725_v23, 0.0 }
 0x823   : > { %v6735_v62 = vadd.f32 %v6731_v63, %v6729_v1  ;;  %v6732_v0 = vsel %vm13674_vm3, %v6726_v4, 0.0 }
 0x824   : > { %v6743_v58 = vadd.f32 %v6732_v0, %v6730_v10 }
 0x825   : > { %v6698_v60 = vpop.f32.mrb[40].mxu0 }
 0x826   : > { %v6709_v26 = vadd.f32 %v6698_v60, %v6437_v48  ;;  %v6700_v29 = vpop.f32.mrb[41].mxu0 }
 0x827   : > { %v6710_v50 = vadd.f32 %v6700_v29, %v6438_v42  ;;  %v6702_v33 = vpop.f32.mrb[42].mxu0 }
 0x828   : > { %v6727_v32 = vadd.f32 %v6716_v61, %v6709_v26  ;;  %v6703_v36 = vpop.f32.mrb[43].mxu0 }
 0x829   : > { %v6728_v40 = vadd.f32 %v6720_v3, %v6710_v50 }
 0x82a   : > { %v6733_v31 = vsel %vm13687_vm11, %v6727_v32, 0.0 }
 0x82b   : > { %v6736_v30 = vadd.f32 %v6735_v62, %v6733_v31  ;;  %v6734_v11 = vsel %vm13687_vm11, %v6728_v40, 0.0 }
 0x82c   : > { %v6744_v43 = vadd.f32 %v6743_v58, %v6734_v11 }
 0x82d   : > { %v6737_v34 = vrot.slane %v6736_v30, 4 }
 0x82e   : > { %v6745_v44 = vrot.slane %v6744_v43, 4 }
 0x82f   : > { %v6738_v45 = vadd.f32 %v6737_v34, %v6736_v30 }
 0x830   : > { %v6746_v46 = vadd.f32 %v6745_v44, %v6744_v43 }
 0x831   : > { %v6739_v22 = vrot.slane %v6738_v45, 2 }
 0x832   : > { %v6747_v9 = vrot.slane %v6746_v46, 2 }
 0x833   : > { %v6740_v49 = vadd.f32 %v6739_v22, %v6738_v45 }
 0x834   : > { %v6748_v12 = vadd.f32 %v6747_v9, %v6746_v46 }
 0x835   : > { %v6741_v56 = vrot.slane %v6740_v49, 1 }
 0x836   : > { %v6749_v54 = vrot.slane %v6748_v12, 1 }
 0x837   : > { %v6742_v48 = vadd.f32 %v6741_v56, %v6740_v49 }
 0x838   : > { %v6750_v52 = vadd.f32 %v6749_v54, %v6748_v12 }
 0x839   : > { %v6751_v42 = vmul.f32 0.0625, %v6742_v48 }
 0x83a   : > { %v6752_v5 = vmul.f32 0.0625, %v6750_v52 }
 0x83b   : > { %v6753_v28 = vsub.f32 %v6723_v8, %v6751_v42  ;;  %v6755_v39 = vsub.f32 %v6725_v23, %v6751_v42  ;;  %v6757_v47 = vsub.f32 %v6727_v32, %v6751_v42 }
 0x83c   : > { %v6754_v27 = vsub.f32 %v6724_v17, %v6752_v5  ;;  %v6756_v25 = vsub.f32 %v6726_v4, %v6752_v5  ;;  %v6758_v55 = vsub.f32 %v6728_v40, %v6752_v5 }
 0x83d   : > { %v6759_v57 = vsel %vm13670_vm2, %v6753_v28, 0.0  ;;  %v6761_v51 = vsel %vm13674_vm3, %v6755_v39, 0.0  ;;  %v6763_v53 = vsel %vm13687_vm11, %v6757_v47, 0.0 }
 0x83e   : > { %v6765_v35 = vmul.f32 %v6759_v57, %v6759_v57  ;;  %v6767_v59 = vmul.f32 %v6761_v51, %v6761_v51  ;;  %v6760_v18 = vsel %vm13670_vm2, %v6754_v27, 0.0  ;;  %v6762_v2 = vsel %vm13674_vm3, %v6756_v25, 0.0 }
 0x83f   : > { %v6764_v14 = vsel %vm13687_vm11, %v6758_v55, 0.0  ;;  %v6766_v15 = vmul.f32 %v6760_v18, %v6760_v18  ;;  %v6769_v38 = vmul.f32 %v6763_v53, %v6763_v53  ;;  %v6768_v6 = vmul.f32 %v6762_v2, %v6762_v2 }
 0x840   : > { %v6771_v13 = vadd.f32 %v6767_v59, %v6765_v35  ;;  %v6770_v61 = vmul.f32 %v6764_v14, %v6764_v14 }
 0x841   : > { %v6779_v3 = vadd.f32 %v6768_v6, %v6766_v15 }
 0x842   : > { %v6772_v7 = vadd.f32 %v6771_v13, %v6769_v38 }
 0x843   : > { %v6780_v8 = vadd.f32 %v6779_v3, %v6770_v61 }
 0x844   : > { %v6773_v16 = vrot.slane %v6772_v7, 4 }
 0x845   : > { %v6781_v17 = vrot.slane %v6780_v8, 4 }
 0x846   : > { %v6774_v37 = vadd.f32 %v6773_v16, %v6772_v7 }
 0x847   : > { %v6782_v23 = vadd.f32 %v6781_v17, %v6780_v8 }
 0x848   : > { %v6775_v21 = vrot.slane %v6774_v37, 2 }
 0x849   : > { %v6783_v4 = vrot.slane %v6782_v23, 2 }
 0x84a   : > { %v6776_v24 = vadd.f32 %v6775_v21, %v6774_v37 }
 0x84b   : > { %v6784_v63 = vadd.f32 %v6783_v4, %v6782_v23 }
 0x84c   : > { %v6777_v1 = vrot.slane %v6776_v24, 1 }
 0x84d   : > { %v6785_v62 = vrot.slane %v6784_v63, 1 }
 0x84e   : > { %v6778_v10 = vadd.f32 %v6777_v1, %v6776_v24 }
 0x84f   : > { %v6786_v58 = vadd.f32 %v6785_v62, %v6784_v63 }
 0x850   : > { %v6787_v0 = vmul.f32 0.0625, %v6778_v10 }
 0x851   : > { %v6788_v26 = vmul.f32 0.0625, %v6786_v58 }
 0x852   : > { %v6789_v60 = vmax.f32 %v6787_v0, 0.0 }
 0x853   : > { %v6790_v50 = vmax.f32 %v6788_v26, 0.0 }
 0x854   : > { %v6791_v29 = vadd.f32 1e-05, %v6789_v60 }
 0x855   : > { %v6792_v33 = vadd.f32 1e-05, %v6790_v50 }
 0x856   : > { %12026 = vrsqrt.f32 %v6791_v29 }
 0x857   : > { %12028 = vrsqrt.f32 %v6792_v33 }
 0x860   : > { %v12027_v32 = vpop.eup %12026 }
 0x861   : > { %v6795_v36 = vmul.f32 %v12027_v32, %v6753_v28  ;;  %v6797_v40 = vmul.f32 %v12027_v32, %v6755_v39  ;;  %v6799_v31 = vmul.f32 %v12027_v32, %v6757_v47  ;;  %v12029_v30 = vpop.eup %12028 }
 0x862   : > { %v6796_v44 = vmul.f32 %v12029_v30, %v6754_v27  ;;  %v6798_v45 = vmul.f32 %v12029_v30, %v6756_v25  ;;  %v6800_v22 = vmul.f32 %v12029_v30, %v6758_v55 }
 0x863   : > { %vm6801_vm10 = vcmp.ge.f32.partialorder %v6795_v36, 0.0  ;;  %vm6803_vm12 = vcmp.ge.f32.partialorder %v6797_v40, 0.0  ;;  %vm6805_vm13 = vcmp.ge.f32.partialorder %v6799_v31, 0.0  ;;  %v6807_v11 = vmul.f32 0.2, %v6795_v36 }
 0x864   : > { %v6809_v43 = vmul.f32 0.2, %v6797_v40  ;;  %v6811_v34 = vmul.f32 0.2, %v6799_v31  ;;  %vm6802_vm14 = vcmp.ge.f32.partialorder %v6796_v44, 0.0  ;;  %vm6804_vm15 = vcmp.ge.f32.partialorder %v6798_v45, 0.0 }
 0x865   : > { %v6813_v46 = vsel %vm6801_vm10, %v6795_v36, %v6807_v11  ;;  %vm6806_vm0 = vcmp.ge.f32.partialorder %v6800_v22, 0.0  ;;  %v6808_v5 = vmul.f32 0.2, %v6796_v44  ;;  %v6810_v28 = vmul.f32 0.2, %v6798_v45 }
 0x866   : > { %v6815_v9 = vsel %vm6803_vm12, %v6797_v40, %v6809_v43  ;;  %v6817_v49 = vsel %vm6805_vm13, %v6799_v31, %v6811_v34  ;;  %v6819_v12 = vsel %vm13670_vm2, %v6813_v46, 0.0  ;;  %v6812_v39 = vmul.f32 0.2, %v6800_v22 }
 0x867   : > { %v6821_v56 = vsel %vm13674_vm3, %v6815_v9, 0.0  ;;  %v6823_v54 = vsel %vm13687_vm11, %v6817_v49, 0.0  ;;  %v6831_v48 = vrot.slane %v6819_v12, 1  ;;  %v6814_v25 = vsel %vm6802_vm14, %v6796_v44, %v6808_v5 }
 0x868   : > { %v6833_v52 = vrot.slane %v6821_v56, 1  ;;  %v6837_v42 = vrot.slane %v6823_v54, 1  ;;  %v6816_v55 = vsel %vm6804_vm15, %v6798_v45, %v6810_v28  ;;  %v6818_v57 = vsel %vm6806_vm0, %v6800_v22, %v6812_v39 }
 0x869   : > { %6849 = vst [vmem:[#allocation2] sm:$0x80] %v6831_v48  ;;  %v6820_v51 = vsel %vm13670_vm2, %v6814_v25, 0.0  ;;  %v6822_v53 = vsel %vm13674_vm3, %v6816_v55, 0.0  ;;  %v6824_v35 = vsel %vm13687_vm11, %v6818_v57, 0.0 }
 0x86a   : > { %v14752_v47 = vsel %vm2185_vm5, %v6831_v48, %v6833_v52  ;;  %v14755_v27 = vsel %vm2185_vm5, %v6833_v52, %v6837_v42  ;;  %6855 = vst [vmem:[#allocation2 + $0x30] sm:$0x7f] %v6837_v42  ;;  %v6832_v59 = vrot.slane %v6820_v51, 1  ;;  %v6835_v2 = vrot.slane %v6822_v53, 1 }
 0x86b   : > { %6851 = vst [vmem:[#allocation2 + $0x10] sm:$0xff] %v14752_v47  ;;  %6853 = vst [vmem:[#allocation2 + $0x20] sm:$0xff] %v14755_v27  ;;  %v7894_v18 = vpack.c.bf16 %v14755_v27, %v14752_v47  ;;  %v6839_v14 = vrot.slane %v6824_v35, 1 }
 0x86c   : > { %6850 = vst [vmem:[#allocation2 + $0x8] sm:$0x80] %v6832_v59  ;;  %v14768_v15 = vsel %vm2185_vm5, %v6832_v59, %v6835_v2 }
 0x86d   : > { %v14771_v38 = vsel %vm2185_vm5, %v6835_v2, %v6839_v14  ;;  %6856 = vst [vmem:[#allocation2 + $0x38] sm:$0x7f] %v6839_v14  ;;  %6852 = vst [vmem:[#allocation2 + $0x18] sm:$0xff] %v14768_v15  ;;  %v11895_v14 = vld [vmem:[%s15305_s7] sm:$0xff]  }
 0x86e   : > { %6854 = vst [vmem:[#allocation2 + $0x28] sm:$0xff] %v14771_v38  ;;  %v7895_v41 = vpack.c.bf16 %v14771_v38, %v14768_v15 }
 0x870   : > { %v6899_v19 = vld [vmem:[#allocation2] sm:$0xfe] }
 0x871   : > { %v7262_v20 = vld [vmem:[#allocation2] sm:$0xfc]  ;;  %v6901_v13 = vld [vmem:[#allocation2 + $0x30] sm:$0x1]  ;;  %v6903_v6 = vpack.c.bf16 %v14752_v47, %v6899_v19 }
 0x872   : > { %v7264_v7 = vld [vmem:[#allocation2 + $0x30] sm:$0x3]  ;;  %v7266_v61 = vpack.c.bf16 %v14752_v47, %v7262_v20  ;;  %v7464_v3 = vld [vmem:[#allocation2] sm:$0xc0]  ;;  %v14780_v16 = vpack.c.bf16 %v6901_v13, %v14755_v27 }
 0x873   : > { %v7268_v8 = vpack.c.bf16 %v7264_v7, %v14755_v27  ;;  %v7466_v37 = vld [vmem:[#allocation2 + $0x30] sm:$0x3f]  ;;  %v7468_v17 = vpack.c.bf16 %v14752_v47, %v7464_v3  ;;  %v6943_v21 = vshll.u32 %v6903_v6, 16  ;;  %v7666_v24 = vld [vmem:[#allocation2] sm:$0x80]  ;;  %v6941_v4 = vshrl.u32 %v6903_v6, 16 }
 0x874   : > { %v7307_v23 = vrot.slane %v7266_v61, 1  ;;  %v6948_v1 = vshll.u32 %v14780_v16, 16  ;;  %v7668_v10 = vld [vmem:[#allocation2 + $0x30] sm:$0x7f]  ;;  %v6900_v62 = vld [vmem:[#allocation2 + $0x8] sm:$0xfe]  ;;  %v7470_v60 = vpack.c.bf16 %v7466_v37, %v14755_v27  ;;  %v7670_v40 = vpack.c.bf16 %v14752_v47, %v7666_v24 }
 0x875   : > { %v14785_v63 = vrot.slane %v7268_v8, 1  ;;  %v6945_v0 = vrot.slane %v6943_v21, 1  ;;  %v7263_v58 = vld [vmem:[#allocation2 + $0x8] sm:$0xfc]  ;;  %v7509_v26 = vrot.slane %v7468_v17, 3  ;;  %v6904_v50 = vpack.c.bf16 %v14768_v15, %v6900_v62 }
 0x876   : > { %v6902_v29 = vld [vmem:[#allocation2 + $0x38] sm:$0x1]  ;;  %v14789_v33 = vrot.slane %v6948_v1, 1  ;;  %v7267_v36 = vpack.c.bf16 %v14768_v15, %v7263_v58  ;;  %v7465_v34 = vld [vmem:[#allocation2 + $0x8] sm:$0xc0]  ;;  %v7672_v12 = vpack.c.bf16 %v7668_v10, %v14755_v27  ;;  %v14806_v39 = vrot.slane %v7470_v60, 3 }
 0x877   : > { %v7265_v32 = vld [vmem:[#allocation2 + $0x38] sm:$0x3]  ;;  %v6906_v31 = vpack.c.bf16 %v6902_v29, %v14771_v38  ;;  %v6946_v30 = vor.u32 %v6945_v0, %v6941_v4  ;;  %v14797_v43 = vsel %vm2185_vm5, %v7307_v23, %v14785_v63  ;;  %v7667_v45 = vld [vmem:[#allocation2 + $0x8] sm:$0x80]  ;;  %v6953_v46 = vshrl.u32 %v6904_v50, 16 }
 0x878   : > { %v7269_v11 = vpack.c.bf16 %v7265_v32, %v14771_v38  ;;  %v7467_v44 = vld [vmem:[#allocation2 + $0x38] sm:$0x3f]  ;;  %v6955_v22 = vshll.u32 %v6904_v50, 16  ;;  %v7310_v9 = vrot.slane %v7267_v36, 1  ;;  %v7469_v5 = vpack.c.bf16 %v14768_v15, %v7465_v34  ;;  %v11896_v61 = vld [vmem:[%s15305_s7 + $0x48] sm:$0xff]   ;;  %v11899_v34 = vld [vmem:[%s15305_s7 + $0x10] sm:$0xff]  }
 0x879   : > { %v7669_v49 = vld [vmem:[#allocation2 + $0x38] sm:$0x7f]  ;;  %v6960_v56 = vshll.u32 %v6906_v31, 16  ;;  %v6951_v54 = vsel %vm1683_vm4, %v6946_v30, %v14789_v33  ;;  %v6967_v48 = vshrl.u32 %v6906_v31, 16  ;;  %v7471_v28 = vpack.c.bf16 %v7467_v44, %v14771_v38  ;;  %v11897_v0 = vld [vmem:[%s15305_s7 + $0x8] sm:$0xff]  }
 0x87a   : > { %v14802_v52 = vrot.slane %v7269_v11, 1  ;;  %v6957_v42 = vrot.slane %v6955_v22, 1  ;;  %v7671_v57 = vpack.c.bf16 %v14768_v15, %v7667_v45  ;;  %v7673_v51 = vpack.c.bf16 %v7669_v49, %v14771_v38  ;;  %v6858_v31 = vld [vmem:[#allocation2 + $0x8] sm:$0xff]  ;;  %v11900_v45 = vld [vmem:[%s15305_s7 + $0x58] sm:$0xff]  }
 0x87b   : > { %v6962_v25 = vrot.slane %v6960_v56, 1  ;;  %v7512_v35 = vrot.slane %v7469_v5, 3  ;;  %v14814_v59 = vrot.slane %v7471_v28, 3  ;;  %v14818_v2 = vsel %vm2458_vm6, %v7509_v26, %v14806_v39  ;;  %v11898_v26 = vld [vmem:[%s15305_s7 + $0x50] sm:$0xff]   ;;  %v14858_v22 = vld [vmem:[#allocation2 + $0x28] sm:$0xff]  ;;  %v11902_v5 = vld [vmem:[%s15305_s7 + $0x60] sm:$0xff]  }
 0x87c   : > { %v14810_v55 = vsel %vm2185_vm5, %v7310_v9, %v14802_v52  ;;  %v6958_v53 = vor.u32 %v6957_v42, %v6953_v46  ;;  %v7725_v20 = vshrl.u32 %v7671_v57, 16  ;;  %v7728_v13 = vshll.u32 %v7671_v57, 16  ;;  %v8511_v9 = vld [vmem:[#allocation2 + $0x18] sm:$0xc0]  ;;  %v8513_v49 = vld [vmem:[#allocation2 + $0x48] sm:$0x3f] }
 0x87d   : > { %v6969_v19 = vor.u32 %v6967_v48, %v6962_v25  ;;  %v7733_v6 = vshrl.u32 %v7673_v51, 16  ;;  %v14829_v3 = vsel %vm2458_vm6, %v7512_v35, %v14814_v59  ;;  %v7736_v8 = vshll.u32 %v7673_v51, 16  ;;  %v8512_v56 = vld [vmem:[#allocation2 + $0x40] sm:$0x3f]  ;;  %v8510_v42 = vld [vmem:[#allocation2 + $0x10] sm:$0xc0] }
 0x87e   : > { %v6963_v7 = vsel %vm1683_vm4, %v6958_v53, %v6962_v25  ;;  %v7708_v37 = vshrl.u32 %v7670_v40, 16  ;;  %v7727_v17 = vrot.slane %v7725_v20, 3  ;;  %v7730_v21 = vrot.slane %v7728_v13, 4  ;;  %v14867_v48 = vld [vmem:[#allocation2 + $0x20] sm:$0xff] }
 0x87f   : > { %7102 = vmatprep.mubr.bf16.mxu1 %v6963_v7  ;;  %v7735_v23 = vrot.slane %v7733_v6, 3  ;;  %v7711_v24 = vshll.u32 %v7670_v40, 16  ;;  %v7738_v4 = vrot.slane %v7736_v8, 4  ;;  %v7716_v10 = vshrl.u32 %v7672_v12, 16  ;;  %v11903_v35 = vld [vmem:[%s15305_s7 + $0x20] sm:$0xff]   ;;  %v11906_v8 = vld [vmem:[%s15305_s7 + $0x70] sm:$0xff]  }
 0x880   : > { %7103 = vmatmul.mubr.bf16.vlgmr.msra.gmra.mrb[40].mxu1 %v6951_v54  ;;  %v7710_v1 = vrot.slane %v7708_v37, 3  ;;  %v7719_v62 = vshll.u32 %v7672_v12, 16  ;;  %v7731_v58 = vor.u32 %v7730_v21, %v7727_v17  ;;  %v6964_v40 = vshrl.u32 %v14780_v16, 16  ;;  %v11901_v12 = vld [vmem:[%s15305_s7 + $0x18] sm:$0xff]   ;;  %v14865_v54 = vld [vmem:[#allocation2 + $0x30] sm:$0xff] }
 0x881   : > { %10460 = vmatpush3.bf16.msra.mxu1 %v11895_v14  ;;  %7110 = vmatprep.mubr.bf16.mxu1 %v6969_v19  ;;  %v7713_v60 = vrot.slane %v7711_v24, 4  ;;  %v14837_v29 = vor.u32 %v7738_v4, %v7735_v23  ;;  %v7718_v50 = vrot.slane %v7716_v10, 3  ;;  %v6864_v46 = vpack.c.bf16 %v14768_v15, %v6858_v31  ;;  %v11904_v19 = vld [vmem:[%s15305_s7 + $0x68] sm:$0xff]   ;;  %v11907_v37 = vld [vmem:[%s15305_s7 + $0x30] sm:$0xff]   ;;  %v11908_v17 = vld [vmem:[%s15305_s7 + $0x78] sm:$0xff]  }
 0x882   : > { %10461 = vmatprep.subr.bf16.mxu1 %v11896_v61  ;;  %v7721_v32 = vrot.slane %v7719_v62, 4  ;;  %v6966_v44 = vor.u32 %v6964_v40, %v14789_v33  ;;  %v14863_v33 = vld [vmem:[#allocation2 + $0x38] sm:$0xff]  ;;  %v8515_v28 = vpack.c.bf16 %v14858_v22, %v8511_v9  ;;  %v8514_v51 = vpack.c.bf16 %v14867_v48, %v8510_v42  ;;  %v11905_v61 = vld [vmem:[%s15305_s7 + $0x28] sm:$0xff]   ;;  %v11910_v23 = vld [vmem:[%s15305_s7 + $0x140] sm:$0xff]  }
 0x883   : > { %v7714_v36 = vor.u32 %v7713_v60, %v7710_v1  ;;  %v14842_v30 = vsel %vm2727_vm7, %v7731_v58, %v14837_v29  ;;  %v8517_v25 = vpack.c.bf16 %v8513_v49, %v14863_v33  ;;  %v8516_v53 = vpack.c.bf16 %v8512_v56, %v14865_v54  ;;  %v11909_v21 = vld [vmem:[%s15305_s7 + $0x38] sm:$0xff]   ;;  %v6857_v24 = vld [vmem:[#allocation2] sm:$0xff]  ;;  %v11912_v10 = vld [vmem:[%s15305_s7 + $0x148] sm:$0xff]  }
 0x884   : > { %v14844_v11 = vor.u32 %v7721_v32, %v7718_v50  ;;  %v8558_v57 = vrot.slane %v8515_v28, 3  ;;  %v8555_v20 = vrot.slane %v8514_v51, 3  ;;  %v11911_v4 = vld [vmem:[%s15305_s7 + $0x100] sm:$0xff]   ;;  %v6863_v1 = vpack.c.bf16 %v14752_v47, %v6857_v24  ;;  %v11914_v58 = vld [vmem:[%s15305_s7 + $0x150] sm:$0xff]   ;;  %v11916_v50 = vld [vmem:[%s15305_s7 + $0x158] sm:$0xff]  }
 0x885   : > { %10462 = vmatpush3.bf16.msra.mxu1 %v11897_v0  ;;  %v14879_v14 = vrot.slane %v8517_v25, 3  ;;  %v14884_v13 = vrot.slane %v8516_v53, 3  ;;  %v6866_v62 = vpack.c.bf16 %v14771_v38, %v14771_v38  ;;  %v11913_v0 = vld [vmem:[%s15305_s7 + $0x108] sm:$0xff]   ;;  %v11915_v60 = vld [vmem:[%s15305_s7 + $0x110] sm:$0xff]   ;;  %v11917_v32 = vld [vmem:[%s15305_s7 + $0x118] sm:$0xff]  }
 0x886   : > { %10463 = vmatprep.subr.bf16.mxu1 %v11898_v26  ;;  %v14855_v16 = vsel %vm2727_vm7, %v7714_v36, %v14844_v11  ;;  %v6865_v26 = vpack.c.bf16 %v14755_v27, %v14755_v27  ;;  %v11918_v36 = vld [vmem:[%s15305_s7 + $0x160] sm:$0xff]   ;;  %v11920_v31 = vld [vmem:[%s15305_s7 + $0x168] sm:$0xff]   ;;  %v11930_v42 = vld [vmem:[%s15305_s7 + $0x1d0] sm:$0xff]   ;;  %v7896_v27 = vpack.c.bf16 %v14865_v54, %v14865_v54 }
 0x887   : > { %v14888_v6 = vsel %vm2458_vm6, %v8558_v57, %v14879_v14  ;;  %v14892_v7 = vsel %vm2458_vm6, %v8555_v20, %v14884_v13  ;;  %v11919_v40 = vld [vmem:[%s15305_s7 + $0x120] sm:$0xff]   ;;  %v11929_v56 = vld [vmem:[%s15305_s7 + $0x188] sm:$0xff]   ;;  %v11938_v57 = vld [vmem:[%s15305_s7 + $0x1f0] sm:$0xff]  }
 0x888   : > { %7111 = vmatmul.mubr.bf16.gmra.mrb[44].mxu1 %v6966_v44  ;;  %v11923_v44 = vld [vmem:[%s15305_s7 + $0x130] sm:$0xff]   ;;  %v11926_v9 = vld [vmem:[%s15305_s7 + $0x1c0] sm:$0xff]   ;;  %v11940_v53 = vld [vmem:[%s15305_s7 + $0x1f8] sm:$0xff]  }
 0x889   : > { %10464 = vmatpush3.bf16.msra.mxu1 %v11899_v34  ;;  %7246 = vmatprep.mubr.bf16.mxu1 %v6864_v46  ;;  %v11922_v34 = vld [vmem:[%s15305_s7 + $0x170] sm:$0xff]   ;;  %v11925_v46 = vld [vmem:[%s15305_s7 + $0x138] sm:$0xff]   ;;  %v11927_v49 = vld [vmem:[%s15305_s7 + $0x180] sm:$0xff]  }
 0x88a   : > { %10465 = vmatprep.subr.bf16.mxu1 %v11900_v45  ;;  %v11924_v45 = vld [vmem:[%s15305_s7 + $0x178] sm:$0xff]   ;;  %v11934_v28 = vld [vmem:[%s15305_s7 + $0x1e0] sm:$0xff]   ;;  %v11939_v51 = vld [vmem:[%s15305_s7 + $0x1b0] sm:$0xff]  }
 0x88b   : > { %v11935_v25 = vld [vmem:[%s15305_s7 + $0x1a0] sm:$0xff]   ;;  %v11954_v24 = vld [vmem:[%s15305_s7 + $0x270] sm:$0xff]   ;;  %v11968_v15 = vld [vmem:[%s15305_s7 + $0x2e8] sm:$0xff]  }
 0x88c   : > { %v11943_v20 = vld [vmem:[%s15305_s7 + $0x200] sm:$0xff]   ;;  %v11969_v38 = vld [vmem:[%s15305_s7 + $0x2a8] sm:$0xff]   ;;  %v11979_v47 = vld [vmem:[%s15305_s7 + $0x310] sm:$0xff]  }
 0x88d   : > { %10466 = vmatpush3.bf16.msra.mxu1 %v11901_v12  ;;  %v11928_v12 = vld [vmem:[%s15305_s7 + $0x1c8] sm:$0xff]  }
 0x88e   : > { %10467 = vmatprep.subr.bf16.mxu1 %v11902_v5  ;;  %v11931_v5 = vld [vmem:[%s15305_s7 + $0x190] sm:$0xff]  }
 0x891   : > { %10468 = vmatpush3.bf16.msra.mxu1 %v11903_v35  ;;  %v11941_v35 = vld [vmem:[%s15305_s7 + $0x1b8] sm:$0xff]  }
 0x892   : > { %10469 = vmatprep.subr.bf16.mxu1 %v11904_v19  ;;  %v11942_v19 = vld [vmem:[%s15305_s7 + $0x240] sm:$0xff]  }
 0x895   : > { %10470 = vmatpush3.bf16.msra.mxu1 %v11905_v61  ;;  %v11944_v61 = vld [vmem:[%s15305_s7 + $0x248] sm:$0xff]  }
 0x896   : > { %10471 = vmatprep.subr.bf16.mxu1 %v11906_v8  ;;  %v11945_v8 = vld [vmem:[%s15305_s7 + $0x208] sm:$0xff]  }
 0x899   : > { %10472 = vmatpush3.bf16.msra.mxu1 %v11907_v37  ;;  %v11946_v37 = vld [vmem:[%s15305_s7 + $0x250] sm:$0xff]  }
 0x89a   : > { %10473 = vmatprep.subr.bf16.mxu1 %v11908_v17  ;;  %v11947_v17 = vld [vmem:[%s15305_s7 + $0x210] sm:$0xff]  }
 0x89d   : > { %10474 = vmatpush3.bf16.msra.mxu1 %v11909_v21  ;;  %v11950_v21 = vld [vmem:[%s15305_s7 + $0x260] sm:$0xff]  }
 0x89e   : > { %10487 = vmatprep.subr.bf16.mxu1 %v11910_v23  ;;  %v11951_v23 = vld [vmem:[%s15305_s7 + $0x220] sm:$0xff]  }
 0x8a0   : > { %7247 = vmatmul.mubr.bf16.vlgmr.msra.gmra.mrb[48].mxu1 %v6863_v1  ;;  %v11956_v1 = vld [vmem:[%s15305_s7 + $0x278] sm:$0xff]  }
 0x8a1   : > { %7254 = vmatprep.mubr.bf16.mxu1 %v6866_v62  ;;  %10488 = vmatpush3.bf16.msra.mxu1 %v11911_v4  ;;  %v11955_v4 = vld [vmem:[%s15305_s7 + $0x230] sm:$0xff]   ;;  %v11958_v62 = vld [vmem:[%s15305_s7 + $0x2c0] sm:$0xff]  }
 0x8a2   : > { %10489 = vmatprep.subr.bf16.mxu1 %v11912_v10  ;;  %v11957_v10 = vld [vmem:[%s15305_s7 + $0x238] sm:$0xff]  }
 0x8a5   : > { %10490 = vmatpush3.bf16.msra.mxu1 %v11913_v0  ;;  %v11959_v0 = vld [vmem:[%s15305_s7 + $0x280] sm:$0xff]  }
 0x8a6   : > { %10491 = vmatprep.subr.bf16.mxu1 %v11914_v58  ;;  %v11960_v58 = vld [vmem:[%s15305_s7 + $0x2c8] sm:$0xff]  }
 0x8a8   : > { %7255 = vmatmul.mubr.bf16.gmra.mrb[52].mxu1 %v6865_v26  ;;  %v11962_v26 = vld [vmem:[%s15305_s7 + $0x2d0] sm:$0xff]  }
 0x8a9   : > { %10492 = vmatpush3.bf16.msra.mxu1 %v11915_v60  ;;  %7445 = vmatprep.mubr.bf16.mxu1 %v14810_v55  ;;  %v11921_v55 = vld [vmem:[%s15305_s7 + $0x128] sm:$0xff]  }
 0x8aa   : > { %10493 = vmatprep.subr.bf16.mxu1 %v11916_v50  ;;  %v11961_v60 = vld [vmem:[%s15305_s7 + $0x288] sm:$0xff]   ;;  %v11963_v50 = vld [vmem:[%s15305_s7 + $0x290] sm:$0xff]  }
 0x8ad   : > { %10494 = vmatpush3.bf16.msra.mxu1 %v11917_v32  ;;  %v11966_v32 = vld [vmem:[%s15305_s7 + $0x2e0] sm:$0xff]  }
 0x8ae   : > { %10495 = vmatprep.subr.bf16.mxu1 %v11918_v36  ;;  %v11967_v36 = vld [vmem:[%s15305_s7 + $0x2a0] sm:$0xff]  }
 0x8b1   : > { %10496 = vmatpush3.bf16.msra.mxu1 %v11919_v40  ;;  %v11972_v40 = vld [vmem:[%s15305_s7 + $0x2f8] sm:$0xff]  }
 0x8b2   : > { %10497 = vmatprep.subr.bf16.mxu1 %v11920_v31  ;;  %v11973_v31 = vld [vmem:[%s15305_s7 + $0x2b8] sm:$0xff]  }
 0x8b5   : > { %10498 = vmatpush3.bf16.msra.mxu1 %v11921_v55  ;;  %v11974_v55 = vld [vmem:[%s15305_s7 + $0x340] sm:$0xff]  }
 0x8b6   : > { %10499 = vmatprep.subr.bf16.mxu1 %v11922_v34  ;;  %v11975_v34 = vld [vmem:[%s15305_s7 + $0x300] sm:$0xff]  }
 0x8b9   : > { %10500 = vmatpush3.bf16.msra.mxu1 %v11923_v44  ;;  %v8079_v44 = vld [vmem:[#allocation2 + $0x18] sm:$0xf0] }
 0x8ba   : > { %10501 = vmatprep.subr.bf16.mxu1 %v11924_v45  ;;  %v8085_v45 = vld [vmem:[#allocation2 + $0x48] sm:$0xf] }
 0x8bd   : > { %10502 = vmatpush3.bf16.msra.mxu1 %v11925_v46  ;;  %v11976_v46 = vld [vmem:[%s15305_s7 + $0x348] sm:$0xff]  }
 0x8be   : > { %10515 = vmatprep.subr.bf16.mxu1 %v11926_v9  ;;  %v7897_v9 = vpack.c.bf16 %v14863_v33, %v14863_v33 }
 0x8c0   : > { %7446 = vmatmul.mubr.bf16.vlgmr.msra.gmra.mrb[56].mxu1 %v14797_v43  ;;  %v11932_v43 = vld [vmem:[%s15305_s7 + $0x1d8] sm:$0xff]  }
 0x8c1   : > { %7453 = vmatprep.mubr.bf16.mxu1 %v14802_v52  ;;  %10516 = vmatpush3.bf16.msra.mxu1 %v11927_v49  ;;  %v11933_v52 = vld [vmem:[%s15305_s7 + $0x198] sm:$0xff]   ;;  %v8087_v49 = vpack.c.bf16 %v14858_v22, %v8079_v44 }
 0x8c2   : > { %10517 = vmatprep.subr.bf16.mxu1 %v11928_v12  ;;  %v8089_v12 = vpack.c.bf16 %v8085_v45, %v14863_v33 }
 0x8c5   : > { %10518 = vmatpush3.bf16.msra.mxu1 %v11929_v56  ;;  %v11977_v56 = vld [vmem:[%s15305_s7 + $0x308] sm:$0xff]  }
 0x8c6   : > { %10519 = vmatprep.subr.bf16.mxu1 %v11930_v42  ;;  %v11978_v42 = vld [vmem:[%s15305_s7 + $0x350] sm:$0xff]  }
 0x8c8   : > { %7454 = vmatmul.mubr.bf16.gmra.mrb[60].mxu1 %v14785_v63  ;;  %v11936_v63 = vld [vmem:[%s15305_s7 + $0x1e8] sm:$0xff]  }
 0x8c9   : > { %10520 = vmatpush3.bf16.msra.mxu1 %v11931_v5  ;;  %7647 = vmatprep.mubr.bf16.mxu1 %v14829_v3  ;;  %v11937_v3 = vld [vmem:[%s15305_s7 + $0x1a8] sm:$0xff]   ;;  %v8130_v5 = vrot.slane %v8087_v49, 2 }
 0x8ca   : > { %10521 = vmatprep.subr.bf16.mxu1 %v11932_v43  ;;  %v8131_v43 = vrot.slane %v8089_v12, 2 }
 0x8cd   : > { %10522 = vmatpush3.bf16.msra.mxu1 %v11933_v52  ;;  %v8132_v52 = vsel %vm3288_vm8, %v8130_v5, %v8131_v43 }
 0x8ce   : > { %10523 = vmatprep.subr.bf16.mxu1 %v11934_v28  ;;  %v11981_v28 = vld [vmem:[%s15305_s7 + $0x318] sm:$0xff]  }
 0x8d1   : > { %10524 = vmatpush3.bf16.msra.mxu1 %v11935_v25  ;;  %v11982_v25 = vld [vmem:[%s15305_s7 + $0x360] sm:$0xff]  }
 0x8d2   : > { %10525 = vmatprep.subr.bf16.mxu1 %v11936_v63  ;;  %v11983_v63 = vld [vmem:[%s15305_s7 + $0x320] sm:$0xff]  }
 0x8d5   : > { %10526 = vmatpush3.bf16.msra.mxu1 %v11937_v3  ;;  %v11984_v3 = vld [vmem:[%s15305_s7 + $0x368] sm:$0xff]  }
 0x8d6   : > { %10527 = vmatprep.subr.bf16.mxu1 %v11938_v57  ;;  %v11985_v57 = vld [vmem:[%s15305_s7 + $0x328] sm:$0xff]  }
 0x8d9   : > { %10528 = vmatpush3.bf16.msra.mxu1 %v11939_v51  ;;  %v11986_v51 = vld [vmem:[%s15305_s7 + $0x370] sm:$0xff]  }
 0x8da   : > { %10529 = vmatprep.subr.bf16.mxu1 %v11940_v53  ;;  %v8078_v53 = vld [vmem:[#allocation2 + $0x10] sm:$0xf0] }
 0x8dd   : > { %10530 = vmatpush3.bf16.msra.mxu1 %v11941_v35  ;;  %v8084_v35 = vld [vmem:[#allocation2 + $0x40] sm:$0xf] }
 0x8de   : > { %10543 = vmatprep.subr.bf16.mxu1 %v11942_v19  ;;  %v11987_v19 = vld [vmem:[%s15305_s7 + $0x330] sm:$0xff]  }
 0x8e0   : > { %7648 = vmatmul.mubr.bf16.vlgmr.msra.gmra.mrb[64].mxu1 %v14818_v2  ;;  %v11949_v2 = vld [vmem:[%s15305_s7 + $0x218] sm:$0xff]  }
 0x8e1   : > { %7655 = vmatprep.mubr.bf16.mxu1 %v14814_v59  ;;  %10544 = vmatpush3.bf16.msra.mxu1 %v11943_v20  ;;  %v11948_v59 = vld [vmem:[%s15305_s7 + $0x258] sm:$0xff]  }
 0x8e2   : > { %10545 = vmatprep.subr.bf16.mxu1 %v11944_v61  ;;  %v8285_v20 = vld [vmem:[#allocation2 + $0x18] sm:$0xe0]  ;;  %v8287_v61 = vld [vmem:[#allocation2 + $0x48] sm:$0x1f] }
 0x8e5   : > { %10546 = vmatpush3.bf16.msra.mxu1 %v11945_v8  ;;  %v11988_v8 = vld [vmem:[%s15305_s7 + $0x378] sm:$0xff]  }
 0x8e6   : > { %10547 = vmatprep.subr.bf16.mxu1 %v11946_v37  ;;  %v8086_v37 = vpack.c.bf16 %v14867_v48, %v8078_v53 }
 0x8e8   : > { %7656 = vmatmul.mubr.bf16.gmra.mrb[68].mxu1 %v14806_v39  ;;  %v11952_v39 = vld [vmem:[%s15305_s7 + $0x268] sm:$0xff]  }
 0x8e9   : > { %10548 = vmatpush3.bf16.msra.mxu1 %v11947_v17  ;;  %7873 = vmatprep.mubr.bf16.mxu1 %v14842_v30  ;;  %v11953_v30 = vld [vmem:[%s15305_s7 + $0x228] sm:$0xff]   ;;  %v8088_v17 = vpack.c.bf16 %v8084_v35, %v14865_v54 }
 0x8ea   : > { %10549 = vmatprep.subr.bf16.mxu1 %v11948_v59  ;;  %v8289_v59 = vpack.c.bf16 %v14858_v22, %v8285_v20  ;;  %v11991_v22 = vld [vmem:[%s15305_s7 + $0x380] sm:$0xff]  }
 0x8ed   : > { %10550 = vmatpush3.bf16.msra.mxu1 %v11949_v2  ;;  %v8291_v2 = vpack.c.bf16 %v8287_v61, %v14863_v33  ;;  %v11992_v33 = vld [vmem:[%s15305_s7 + $0x3c8] sm:$0xff]  }
 0x8ee   : > { %10551 = vmatprep.subr.bf16.mxu1 %v11950_v21  ;;  %v11989_v21 = vld [vmem:[%s15305_s7 + $0x338] sm:$0xff]  }
 0x8f1   : > { %10552 = vmatpush3.bf16.msra.mxu1 %v11951_v23  ;;  %v11990_v23 = vld [vmem:[%s15305_s7 + $0x3c0] sm:$0xff]  }
 0x8f2   : > { %10553 = vmatprep.subr.bf16.mxu1 %v11952_v39  ;;  %v8127_v39 = vrot.slane %v8086_v37, 2  ;;  %v12007_v37 = vld [vmem:[%s15305_s7 + $0x400] sm:$0xff]  }
 0x8f5   : > { %10554 = vmatpush3.bf16.msra.mxu1 %v11953_v30  ;;  %v8128_v30 = vrot.slane %v8088_v17, 2 }
 0x8f6   : > { %10555 = vmatprep.subr.bf16.mxu1 %v11954_v24  ;;  %v8343_v24 = vshrl.u32 %v8289_v59, 16 }
 0x8f9   : > { %10556 = vmatpush3.bf16.msra.mxu1 %v11955_v4  ;;  %v8346_v4 = vshll.u32 %v8289_v59, 16  ;;  %v12008_v59 = vld [vmem:[%s15305_s7 + $0x448] sm:$0xff]  }
 0x8fa   : > { %10557 = vmatprep.subr.bf16.mxu1 %v11956_v1  ;;  %v8351_v1 = vshrl.u32 %v8291_v2, 16 }
 0x8fd   : > { %10558 = vmatpush3.bf16.msra.mxu1 %v11957_v10  ;;  %v8354_v10 = vshll.u32 %v8291_v2, 16 }
 0x8fe   : > { %10571 = vmatprep.subr.bf16.mxu1 %v11958_v62  ;;  %v8129_v62 = vsel %vm3288_vm8, %v8127_v39, %v8128_v30  ;;  %v12011_v39 = vld [vmem:[%s15305_s7 + $0x410] sm:$0xff]  }
 0x900   : > { %7874 = vmatmul.mubr.bf16.vlgmr.msra.gmra.mrb[72].mxu1 %v14855_v16  ;;  %v11965_v16 = vld [vmem:[%s15305_s7 + $0x298] sm:$0xff]  }
 0x901   : > { %7881 = vmatprep.mubr.bf16.mxu1 %v14837_v29  ;;  %10572 = vmatpush3.bf16.msra.mxu1 %v11959_v0  ;;  %v11964_v29 = vld [vmem:[%s15305_s7 + $0x2d8] sm:$0xff]   ;;  %v8345_v0 = vrot.slane %v8343_v24, 2 }
 0x902   : > { %10573 = vmatprep.subr.bf16.mxu1 %v11960_v58  ;;  %v8348_v58 = vrot.slane %v8346_v4, 3  ;;  %v12013_v24 = vld [vmem:[%s15305_s7 + $0x418] sm:$0xff]   ;;  %v12014_v4 = vld [vmem:[%s15305_s7 + $0x460] sm:$0xff]  }
 0x905   : > { %10574 = vmatpush3.bf16.msra.mxu1 %v11961_v60  ;;  %v8353_v60 = vrot.slane %v8351_v1, 2  ;;  %v12015_v1 = vld [vmem:[%s15305_s7 + $0x420] sm:$0xff]  }
 0x906   : > { %10575 = vmatprep.subr.bf16.mxu1 %v11962_v26  ;;  %v8356_v26 = vrot.slane %v8354_v10, 3  ;;  %v12016_v10 = vld [vmem:[%s15305_s7 + $0x468] sm:$0xff]  }
 0x908   : > { %7882 = vmatmul.mubr.bf16.gmra.mrb[76].mxu1 %v14844_v11  ;;  %v11971_v11 = vld [vmem:[%s15305_s7 + $0x2b0] sm:$0xff]  }
 0x909   : > { %10576 = vmatpush3.bf16.msra.mxu1 %v11963_v50  ;;  %8059 = vmatprep.mubr.bf16.mxu1 %v7895_v41  ;;  %v11970_v41 = vld [vmem:[%s15305_s7 + $0x2f0] sm:$0xff]   ;;  %v11993_v50 = vld [vmem:[%s15305_s7 + $0x388] sm:$0xff]  }
 0x90a   : > { %10577 = vmatprep.subr.bf16.mxu1 %v11964_v29  ;;  %v11994_v29 = vld [vmem:[%s15305_s7 + $0x3d0] sm:$0xff]  }
 0x90d   : > { %10578 = vmatpush3.bf16.msra.mxu1 %v11965_v16  ;;  %v8349_v16 = vor.u32 %v8348_v58, %v8345_v0 }
 0x90e   : > { %10579 = vmatprep.subr.bf16.mxu1 %v11966_v32  ;;  %v8357_v32 = vor.u32 %v8356_v26, %v8353_v60  ;;  %v12019_v60 = vld [vmem:[%s15305_s7 + $0x430] sm:$0xff]  }
 0x911   : > { %10580 = vmatpush3.bf16.msra.mxu1 %v11967_v36  ;;  %v11995_v36 = vld [vmem:[%s15305_s7 + $0x390] sm:$0xff]  }
 0x912   : > { %10581 = vmatprep.subr.bf16.mxu1 %v11968_v15  ;;  %v11996_v15 = vld [vmem:[%s15305_s7 + $0x3d8] sm:$0xff]  }
 0x915   : > { %10582 = vmatpush3.bf16.msra.mxu1 %v11969_v38  ;;  %v8358_v38 = vsel %vm3557_vm9, %v8349_v16, %v8357_v32 }
 0x916   : > { %10583 = vmatprep.subr.bf16.mxu1 %v11970_v41  ;;  %v11997_v41 = vld [vmem:[%s15305_s7 + $0x398] sm:$0xff]  }
 0x919   : > { %10584 = vmatpush3.bf16.msra.mxu1 %v11971_v11  ;;  %v11998_v11 = vld [vmem:[%s15305_s7 + $0x3e0] sm:$0xff]  }
 0x91a   : > { %10585 = vmatprep.subr.bf16.mxu1 %v11972_v40  ;;  %v8284_v40 = vld [vmem:[#allocation2 + $0x10] sm:$0xe0] }
 0x91b   : > { %v8288_v44 = vpack.c.bf16 %v14867_v48, %v8284_v40 }
 0x91d   : > { %10586 = vmatpush3.bf16.msra.mxu1 %v11973_v31  ;;  %v8286_v31 = vld [vmem:[#allocation2 + $0x40] sm:$0x1f]  ;;  %v8326_v49 = vshrl.u32 %v8288_v44, 16 }
 0x91e   : > { %10599 = vmatprep.subr.bf16.mxu1 %v11974_v55  ;;  %v11999_v55 = vld [vmem:[%s15305_s7 + $0x3a0] sm:$0xff]   ;;  %v8290_v45 = vpack.c.bf16 %v8286_v31, %v14865_v54  ;;  %v12003_v54 = vld [vmem:[%s15305_s7 + $0x3b0] sm:$0xff]  }
 0x920   : > { %8060 = vmatmul.mubr.bf16.vlgmr.msra.gmra.mrb[80].mxu1 %v7894_v18  ;;  %v11980_v18 = vld [vmem:[%s15305_s7 + $0x358] sm:$0xff]   ;;  %v8337_v5 = vshll.u32 %v8290_v45, 16 }
 0x921   : > { %8067 = vmatprep.mubr.bf16.mxu1 %v7897_v9  ;;  %10600 = vmatpush3.bf16.msra.mxu1 %v11975_v34  ;;  %v12000_v34 = vld [vmem:[%s15305_s7 + $0x3e8] sm:$0xff]   ;;  %v12002_v9 = vld [vmem:[%s15305_s7 + $0x3f0] sm:$0xff]  }
 0x922   : > { %10601 = vmatprep.subr.bf16.mxu1 %v11976_v46  ;;  %v12001_v46 = vld [vmem:[%s15305_s7 + $0x3a8] sm:$0xff]  }
 0x925   : > { %10602 = vmatpush3.bf16.msra.mxu1 %v11977_v56  ;;  %v8329_v56 = vshll.u32 %v8288_v44, 16 }
 0x926   : > { %10603 = vmatprep.subr.bf16.mxu1 %v11978_v42  ;;  %v8334_v42 = vshrl.u32 %v8290_v45, 16 }
 0x928   : > { %8068 = vmatmul.mubr.bf16.gmra.mrb[84].mxu1 %v7896_v27 }
 0x929   : > { %10604 = vmatpush3.bf16.msra.mxu1 %v11979_v47  ;;  %8265 = vmatprep.mubr.bf16.mxu1 %v8132_v52  ;;  %v8328_v52 = vrot.slane %v8326_v49, 2 }
 0x92a   : > { %10605 = vmatprep.subr.bf16.mxu1 %v11980_v18  ;;  %v12004_v18 = vld [vmem:[%s15305_s7 + $0x3f8] sm:$0xff]  }
 0x92d   : > { %10606 = vmatpush3.bf16.msra.mxu1 %v11981_v28 }
 0x92e   : > { %10607 = vmatprep.subr.bf16.mxu1 %v11982_v25  ;;  %v8331_v25 = vrot.slane %v8329_v56, 3 }
 0x930   : > { %v8332_v35 = vor.u32 %v8331_v25, %v8328_v52 }
 0x931   : > { %10608 = vmatpush3.bf16.msra.mxu1 %v11983_v63  ;;  %v8336_v63 = vrot.slane %v8334_v42, 2 }
 0x932   : > { %10609 = vmatprep.subr.bf16.mxu1 %v11984_v3  ;;  %v8339_v3 = vrot.slane %v8337_v5, 3 }
 0x935   : > { %10610 = vmatpush3.bf16.msra.mxu1 %v11985_v57  ;;  %v12005_v57 = vld [vmem:[%s15305_s7 + $0x3b8] sm:$0xff]  }
 0x936   : > { %10611 = vmatprep.subr.bf16.mxu1 %v11986_v51  ;;  %v12006_v51 = vld [vmem:[%s15305_s7 + $0x440] sm:$0xff]  }
 0x939   : > { %10612 = vmatpush3.bf16.msra.mxu1 %v11987_v19  ;;  %v8340_v19 = vor.u32 %v8339_v3, %v8336_v63 }
 0x93a   : > { %10613 = vmatprep.subr.bf16.mxu1 %v11988_v8 }
 0x93b   : > { %v8341_v2 = vsel %vm3557_vm9, %v8332_v35, %v8340_v19 }
 0x93d   : > { %10614 = vmatpush3.bf16.msra.mxu1 %v11989_v21  ;;  %v12009_v21 = vld [vmem:[%s15305_s7 + $0x408] sm:$0xff]  }
 0x93e   : > { %10627 = vmatprep.subr.bf16.mxu1 %v11990_v23  ;;  %v12010_v23 = vld [vmem:[%s15305_s7 + $0x450] sm:$0xff]  }
 0x940   : > { %8266 = vmatmul.mubr.bf16.vlgmr.msra.gmra.mrb[88].mxu1 %v8129_v62 }
 0x941   : > { %8273 = vmatprep.mubr.bf16.mxu1 %v8131_v43  ;;  %10628 = vmatpush3.bf16.msra.mxu1 %v11991_v22  ;;  %v12018_v22 = vld [vmem:[%s15305_s7 + $0x470] sm:$0xff]  }
 0x942   : > { %10629 = vmatprep.subr.bf16.mxu1 %v11992_v33 }
 0x945   : > { %10630 = vmatpush3.bf16.msra.mxu1 %v11993_v50  ;;  %v12020_v50 = vld [vmem:[%s15305_s7 + $0x478] sm:$0xff]  }
 0x946   : > { %10631 = vmatprep.subr.bf16.mxu1 %v11994_v29 }
 0x948   : > { %8274 = vmatmul.mubr.bf16.gmra.mrb[92].mxu1 %v8128_v30  ;;  %v12012_v30 = vld [vmem:[%s15305_s7 + $0x458] sm:$0xff]  }
 0x949   : > { %10632 = vmatpush3.bf16.msra.mxu1 %v11995_v36  ;;  %8491 = vmatprep.mubr.bf16.mxu1 %v8358_v38  ;;  %v12021_v36 = vld [vmem:[%s15305_s7 + $0x438] sm:$0xff]  }
 0x94a   : > { %10633 = vmatprep.subr.bf16.mxu1 %v11996_v15 }
 0x94d   : > { %10634 = vmatpush3.bf16.msra.mxu1 %v11997_v41 }
 0x94e   : > { %10635 = vmatprep.subr.bf16.mxu1 %v11998_v11 }
 0x951   : > { %10636 = vmatpush3.bf16.msra.mxu1 %v11999_v55 }
 0x952   : > { %10637 = vmatprep.subr.bf16.mxu1 %v12000_v34 }
 0x953   : > { %v10447_v12 = vpop.f32.mrb[40].mxu1 }
 0x954   : > { %v10448_v43 = vpop.f32.mrb[41].mxu1 }
 0x955   : > { %v10449_v47 = vadd.f32 %v10448_v43, %v10447_v12  ;;  %10638 = vmatpush3.bf16.msra.mxu1 %v12001_v46  ;;  %v10450_v48 = vpop.f32.mrb[42].mxu1 }
 0x956   : > { %v10451_v27 = vpop.f32.mrb[43].mxu1  ;;  %10639 = vmatprep.subr.bf16.mxu1 %v12002_v9 }
 0x957   : > { %v10452_v28 = vadd.f32 %v10451_v27, %v10450_v48 }
 0x959   : > { %10640 = vmatpush3.bf16.msra.mxu1 %v12003_v54 }
 0x95a   : > { %10641 = vmatprep.subr.bf16.mxu1 %v12004_v18 }
 0x95b   : > { %v10453_v53 = vpop.f32.mrb[44].mxu1 }
 0x95c   : > { %v10454_v20 = vpop.f32.mrb[45].mxu1 }
 0x95d   : > { %v10455_v61 = vadd.f32 %v10454_v20, %v10453_v53  ;;  %10642 = vmatpush3.bf16.msra.mxu1 %v12005_v57  ;;  %v10456_v8 = vpop.f32.mrb[46].mxu1 }
 0x95e   : > { %v10457_v17 = vpop.f32.mrb[47].mxu1  ;;  %10655 = vmatprep.subr.bf16.mxu1 %v12006_v51 }
 0x960   : > { %8492 = vmatmul.mubr.bf16.vlgmr.msra.gmra.mrb[96].mxu1 %v8341_v2 }
 0x961   : > { %8499 = vmatprep.mubr.bf16.mxu1 %v8357_v32  ;;  %10656 = vmatpush3.bf16.msra.mxu1 %v12007_v37 }
 0x962   : > { %10657 = vmatprep.subr.bf16.mxu1 %v12008_v59 }
 0x965   : > { %10658 = vmatpush3.bf16.msra.mxu1 %v12009_v21 }
 0x966   : > { %10659 = vmatprep.subr.bf16.mxu1 %v12010_v23 }
 0x968   : > { %8500 = vmatmul.mubr.bf16.gmra.mrb[100].mxu1 %v8340_v19 }
 0x969   : > { %10660 = vmatpush3.bf16.msra.mxu1 %v12011_v39  ;;  %8693 = vmatprep.mubr.bf16.mxu1 %v14888_v6  ;;  %v12017_v6 = vld [vmem:[%s15305_s7 + $0x428] sm:$0xff]  }
 0x96a   : > { %10661 = vmatprep.subr.bf16.mxu1 %v12012_v30 }
 0x96d   : > { %10662 = vmatpush3.bf16.msra.mxu1 %v12013_v24 }
 0x96e   : > { %10663 = vmatprep.subr.bf16.mxu1 %v12014_v4 }
 0x971   : > { %10664 = vmatpush3.bf16.msra.mxu1 %v12015_v1 }
 0x972   : > { %10665 = vmatprep.subr.bf16.mxu1 %v12016_v10 }
 0x973   : > { %v10475_v33 = vpop.f32.mrb[48].mxu1 }
 0x974   : > { %v10476_v62 = vpop.f32.mrb[49].mxu1 }
 0x975   : > { %v10477_v0 = vadd.f32 %v10476_v62, %v10475_v33  ;;  %v10478_v58 = vpop.f32.mrb[50].mxu1  ;;  %10666 = vmatpush3.bf16.msra.mxu1 %v12017_v6 }
 0x976   : > { %v10479_v26 = vpop.f32.mrb[51].mxu1  ;;  %10667 = vmatprep.subr.bf16.mxu1 %v12018_v22 }
 0x977   : > { %v7249_v29 = vadd.f32 %v10477_v0, %v10449_v47  ;;  %v10480_v16 = vadd.f32 %v10479_v26, %v10478_v58 }
 0x979   : > { %v7252_v32 = vadd.f32 %v10480_v16, %v10452_v28  ;;  %10668 = vmatpush3.bf16.msra.mxu1 %v12019_v60 }
 0x97a   : > { %10669 = vmatprep.subr.bf16.mxu1 %v12020_v50 }
 0x97b   : > { %v10481_v15 = vpop.f32.mrb[52].mxu1 }
 0x97c   : > { %v10482_v38 = vpop.f32.mrb[53].mxu1 }
 0x97d   : > { %v10483_v41 = vadd.f32 %v10482_v38, %v10481_v15  ;;  %v10484_v11 = vpop.f32.mrb[54].mxu1  ;;  %10670 = vmatpush3.bf16.msra.mxu1 %v12021_v36 }
 0x97e   : > { %v10485_v40 = vpop.f32.mrb[55].mxu1 }
 0x97f   : > { %v7257_v31 = vadd.f32 %v10483_v41, %v10455_v61 }
 0x980   : > { %8694 = vmatmul.mubr.bf16.vlgmr.msra.gmra.mrb[104].mxu1 %v14892_v7 }
 0x981   : > { %8701 = vmatprep.mubr.bf16.mxu1 %v14879_v14 }
 0x988   : > { %8702 = vmatmul.mubr.bf16.gmra.mrb[108].mxu1 %v14884_v13 }
 0x993   : > { %v10503_v55 = vpop.f32.mrb[56].mxu1 }
 0x994   : > { %v10504_v34 = vpop.f32.mrb[57].mxu1 }
 0x995   : > { %v10505_v44 = vadd.f32 %v10504_v34, %v10503_v55  ;;  %v10506_v45 = vpop.f32.mrb[58].mxu1 }
 0x996   : > { %v10507_v46 = vpop.f32.mrb[59].mxu1 }
 0x997   : > { %v7461_v9 = vadd.f32 %v10505_v44, %v7249_v29  ;;  %v10508_v49 = vadd.f32 %v10507_v46, %v10506_v45 }
 0x999   : > { %v7462_v12 = vadd.f32 %v10508_v49, %v7252_v32 }
 0x99b   : > { %v10509_v56 = vpop.f32.mrb[60].mxu1 }
 0x99c   : > { %v10510_v42 = vpop.f32.mrb[61].mxu1 }
 0x99d   : > { %v10511_v5 = vadd.f32 %v10510_v42, %v10509_v56  ;;  %v10512_v43 = vpop.f32.mrb[62].mxu1 }
 0x99e   : > { %v10513_v47 = vpop.f32.mrb[63].mxu1 }
 0x99f   : > { %v7463_v48 = vadd.f32 %v10511_v5, %v7257_v31 }
 0x9b3   : > { %v10531_v54 = vpop.f32.mrb[64].mxu1 }
 0x9b4   : > { %v10532_v7 = vpop.f32.mrb[65].mxu1 }
 0x9b5   : > { %v10533_v27 = vadd.f32 %v10532_v7, %v10531_v54  ;;  %v10534_v14 = vpop.f32.mrb[66].mxu1 }
 0x9b6   : > { %v10535_v18 = vpop.f32.mrb[67].mxu1 }
 0x9b7   : > { %v7663_v13 = vadd.f32 %v10533_v27, %v7461_v9  ;;  %v10536_v52 = vadd.f32 %v10535_v18, %v10534_v14 }
 0x9b9   : > { %v7664_v28 = vadd.f32 %v10536_v52, %v7462_v12 }
 0x9bb   : > { %v10537_v25 = vpop.f32.mrb[68].mxu1 }
 0x9bc   : > { %v10538_v63 = vpop.f32.mrb[69].mxu1 }
 0x9bd   : > { %v10539_v3 = vadd.f32 %v10538_v63, %v10537_v25  ;;  %v10540_v57 = vpop.f32.mrb[70].mxu1 }
 0x9be   : > { %v10541_v51 = vpop.f32.mrb[71].mxu1 }
 0x9bf   : > { %v7665_v53 = vadd.f32 %v10539_v3, %v7463_v48  ;;  %v10428_v3 = vld [vmem:[%s15306_s8] ss:$0 sm:$0xff] }
 0x9d3   : > { %v10559_v35 = vpop.f32.mrb[72].mxu1 }
 0x9d4   : > { %v10560_v19 = vpop.f32.mrb[73].mxu1 }
 0x9d5   : > { %v10561_v20 = vadd.f32 %v10560_v19, %v10559_v35  ;;  %v10562_v61 = vpop.f32.mrb[74].mxu1 }
 0x9d6   : > { %v10563_v8 = vpop.f32.mrb[75].mxu1 }
 0x9d7   : > { %v7889_v37 = vadd.f32 %v10561_v20, %v7663_v13  ;;  %v10564_v17 = vadd.f32 %v10563_v8, %v10562_v61 }
 0x9d9   : > { %v7890_v59 = vadd.f32 %v10564_v17, %v7664_v28 }
 0x9db   : > { %v10565_v2 = vpop.f32.mrb[76].mxu1 }
 0x9dc   : > { %v10566_v21 = vpop.f32.mrb[77].mxu1 }
 0x9dd   : > { %v10567_v23 = vadd.f32 %v10566_v21, %v10565_v2  ;;  %v10568_v39 = vpop.f32.mrb[78].mxu1 }
 0x9de   : > { %v10569_v30 = vpop.f32.mrb[79].mxu1 }
 0x9df   : > { %v7891_v24 = vadd.f32 %v10567_v23, %v7665_v53 }
 0x9f3   : > { %v10587_v4 = vpop.f32.mrb[80].mxu1 }
 0x9f4   : > { %v10588_v1 = vpop.f32.mrb[81].mxu1 }
 0x9f5   : > { %v10589_v10 = vadd.f32 %v10588_v1, %v10587_v4  ;;  %v10590_v6 = vpop.f32.mrb[82].mxu1 }
 0x9f6   : > { %v10591_v22 = vpop.f32.mrb[83].mxu1 }
 0x9f7   : > { %v8075_v33 = vadd.f32 %v10589_v10, %v7889_v37  ;;  %v10592_v62 = vadd.f32 %v10591_v22, %v10590_v6 }
 0x9f9   : > { %v8076_v0 = vadd.f32 %v10592_v62, %v7890_v59 }
 0x9fb   : > { %v10593_v58 = vpop.f32.mrb[84].mxu1 }
 0x9fc   : > { %v10594_v60 = vpop.f32.mrb[85].mxu1 }
 0x9fd   : > { %v10595_v26 = vadd.f32 %v10594_v60, %v10593_v58  ;;  %v10596_v50 = vpop.f32.mrb[86].mxu1 }
 0x9fe   : > { %v10597_v29 = vpop.f32.mrb[87].mxu1 }
 0x9ff   : > { %v8077_v16 = vadd.f32 %v10595_v26, %v7891_v24 }
 0xa13   : > { %v10615_v32 = vpop.f32.mrb[88].mxu1 }
 0xa14   : > { %v10616_v36 = vpop.f32.mrb[89].mxu1 }
 0xa15   : > { %v10617_v15 = vadd.f32 %v10616_v36, %v10615_v32  ;;  %v10618_v38 = vpop.f32.mrb[90].mxu1 }
 0xa16   : > { %v10619_v41 = vpop.f32.mrb[91].mxu1 }
 0xa17   : > { %v8281_v11 = vadd.f32 %v10617_v15, %v8075_v33  ;;  %v10620_v40 = vadd.f32 %v10619_v41, %v10618_v38 }
 0xa19   : > { %v8282_v31 = vadd.f32 %v10620_v40, %v8076_v0 }
 0xa1b   : > { %v10621_v55 = vpop.f32.mrb[92].mxu1 }
 0xa1c   : > { %v10622_v34 = vpop.f32.mrb[93].mxu1 }
 0xa1d   : > { %v10623_v44 = vadd.f32 %v10622_v34, %v10621_v55  ;;  %v10624_v45 = vpop.f32.mrb[94].mxu1 }
 0xa1e   : > { %v10625_v46 = vpop.f32.mrb[95].mxu1 }
 0xa1f   : > { %v8283_v9 = vadd.f32 %v10623_v44, %v8077_v16 }
 0xa33   : > { %v10643_v49 = vpop.f32.mrb[96].mxu1 }
 0xa34   : > { %v10644_v12 = vpop.f32.mrb[97].mxu1 }
 0xa35   : > { %v10645_v56 = vadd.f32 %v10644_v12, %v10643_v49  ;;  %v10646_v42 = vpop.f32.mrb[98].mxu1 }
 0xa36   : > { %v10647_v5 = vpop.f32.mrb[99].mxu1 }
 0xa37   : > { %v8507_v43 = vadd.f32 %v10645_v56, %v8281_v11  ;;  %v10648_v47 = vadd.f32 %v10647_v5, %v10646_v42 }
 0xa39   : > { %v8508_v48 = vadd.f32 %v10648_v47, %v8282_v31 }
 0xa3b   : > { %v10649_v54 = vpop.f32.mrb[100].mxu1 }
 0xa3c   : > { %v10650_v7 = vpop.f32.mrb[101].mxu1 }
 0xa3d   : > { %v10651_v27 = vadd.f32 %v10650_v7, %v10649_v54  ;;  %v10652_v14 = vpop.f32.mrb[102].mxu1 }
 0xa3e   : > { %v10653_v18 = vpop.f32.mrb[103].mxu1 }
 0xa3f   : > { %v8509_v13 = vadd.f32 %v10651_v27, %v8283_v9 }
 0xa53   : > { %v10671_v52 = vpop.f32.mrb[104].mxu1 }
 0xa54   : > { %v10672_v28 = vpop.f32.mrb[105].mxu1 }
 0xa55   : > { %v10673_v25 = vadd.f32 %v10672_v28, %v10671_v52  ;;  %v10674_v63 = vpop.f32.mrb[106].mxu1 }
 0xa56   : > { %v10675_v57 = vpop.f32.mrb[107].mxu1 }
 0xa57   : > { %v8709_v51 = vadd.f32 %v10673_v25, %v8507_v43  ;;  %v10676_v53 = vadd.f32 %v10675_v57, %v10674_v63 }
 0xa59   : > { %v8719_v35 = vadd.f32 %v10428_v3, %v8709_v51  ;;  %v8710_v19 = vadd.f32 %v10676_v53, %v8508_v48 }
 0xa5b   : > { %8722 = vst [vmem:[%s332_s23] sm:$0xff] %v8719_v35  ;;  %v8720_v20 = vadd.f32 %v10428_v3, %v8710_v19  ;;  %v10677_v61 = vpop.f32.mrb[108].mxu1 }
 0xa5c   : > { %v10678_v8 = vpop.f32.mrb[109].mxu1 }
 0xa5d   : > { %8723 = vst [vmem:[%s332_s23 + $0x8] sm:$0xff] %v8720_v20  ;;  %v10679_v37 = vadd.f32 %v10678_v8, %v10677_v61  ;;  %v10680_v17 = vpop.f32.mrb[110].mxu1 }
 0xa5e   : > { %v10681_v59 = vpop.f32.mrb[111].mxu1 }
 0xa5f   : > { %v8711_v2 = vadd.f32 %v10679_v37, %v8509_v13 }
 0xa61   : > { %v8721_v21 = vadd.f32 %v10428_v3, %v8711_v2 }
 0xa63   : > { %8724 = vst [vmem:[%s332_s23 + $0x10] sm:$0xff] %v8721_v21 }
 0xa64 PF: > { %s19_s30 = sadd.s32 1, %s12038_s30  }
 0xa65   : > { %p16_p4 = scmp.ge.s32.totalorder %s19_s30, 4  }
 0xa67   :  { %18 = sbr.rel (!%p16_p4) target bundleno = 1 (0x1), region = 110 }

</bundles_post_ra>
